<compile_context>
chip_gen: v5e
topology: v5e:2x2
jax: 0.10.0
libtpu: 0.0.40
codegen_flags: <defaults>
</compile_context>

<pallas_src>
import functools

import jax
import jax.numpy as jnp
from jax.experimental import pallas as pl
from jax.experimental.pallas import tpu as pltpu


# ----------------------------------------------------------------------------
# Generation-aware compiler params & tile picking
# ----------------------------------------------------------------------------
@functools.lru_cache(maxsize=None)
def _vmem_limit_bytes():
    try:
        cap = int(pltpu.get_tpu_info().vmem_capacity_bytes)
    except Exception:
        cap = 64 * 1024 * 1024      # conservative (v7x physical) if the query is unavailable
    return min((cap * 3) // 4, 100 * 1024 * 1024)   # ~48 MiB v7x, ~96 MiB v5e/v6e


def _compiler_params(dimension_semantics):
    return pltpu.CompilerParams(dimension_semantics=dimension_semantics,
                                vmem_limit_bytes=_vmem_limit_bytes())


def _pick_tile(total, tile, align, min_blocks=1):
    """Largest tile <= `tile`, aligned to `align` (or equal to `total`), capped so the grid
    axis keeps >= `min_blocks` blocks when `total` is big enough (v7x megacore)."""
    cdiv = lambda a, b: -(-a // b)
    t = min(tile, total)
    if min_blocks > 1 and total >= min_blocks * align:
        t = min(t, cdiv(total, min_blocks))
    if t >= total:
        return total
    t = max(align, (t // align) * align)
    return min(t, total)


# ----------------------------------------------------------------------------
# scatter_add(edges, dst, dim_size=N) as a tiled one-hot matmul on the MXU.
# Output is written TRANSPOSED as (L, N) so its stores are lane-dense.
#   out_t[l, n] = sum_e [dst[e] == n] * edges[e, l]
# ----------------------------------------------------------------------------
def _scatter_add_kernel(dst_ref, edges_ref, out_ref, acc_ref, *, num_edges,
                        mxu_dtype, precision):
    e_blk = pl.program_id(1)

    @pl.when(e_blk == 0)
    def _init():
        acc_ref[...] = jnp.zeros_like(acc_ref)

    te = dst_ref.shape[0]
    tn = acc_ref.shape[1]
    n_base = pl.program_id(0) * tn

    dst = dst_ref[...]                                                    # (TE, 1) int32
    ev = edges_ref[...]                                                   # (TE, L)
    if num_edges % te != 0:
        # Ragged last E tile: zero the unspecified tail edge values so 0-weighted garbage
        # (potentially NaN bit patterns) cannot pollute the accumulator.
        e_ids = jax.lax.broadcasted_iota(jnp.int32, (te, 1), 0) + e_blk * te
        ev = jnp.where(e_ids < num_edges, ev, 0.0)

    node_row = jax.lax.broadcasted_iota(jnp.int32, (1, tn), 1) + n_base   # (1, TN)
    onehot = jnp.where(dst == node_row,
                       jnp.ones((), mxu_dtype), jnp.zeros((), mxu_dtype))  # (TE, TN)

    # Contract over edges: (TE, L) x (TE, TN) -> (L, TN) on the MXU (transposed-LHS dot).
    acc_ref[...] += jax.lax.dot_general(
        ev.astype(mxu_dtype), onehot, (((0,), (0,)), ((), ())),
        preferred_element_type=jnp.float32, precision=precision)

    @pl.when(e_blk == pl.num_programs(1) - 1)
    def _done():
        out_ref[...] = acc_ref[...].astype(out_ref.dtype)


def scatter_add_pallas(edges, dst, num_nodes, *, tile_e=512, tile_n=2048,
                       out_dtype=None, mxu_dtype=jnp.bfloat16, precision=None):
    """Returns the scatter-add result TRANSPOSED as (L, num_nodes)."""
    E, L = edges.shape
    if out_dtype is None:
        out_dtype = edges.dtype
    te = _pick_tile(E, tile_e, 8, min_blocks=1)
    tn = _pick_tile(num_nodes, tile_n, 128, min_blocks=2)   # lane dim of the output -> 128-aligned
    dst_col = dst.reshape(E, 1).astype(jnp.int32)

    kernel = functools.partial(_scatter_add_kernel, num_edges=E,
                               mxu_dtype=mxu_dtype, precision=precision)
    return pl.pallas_call(
        kernel,
        out_shape=jax.ShapeDtypeStruct((L, num_nodes), out_dtype),
        grid_spec=pltpu.PrefetchScalarGridSpec(
            num_scalar_prefetch=0,
            grid=(pl.cdiv(num_nodes, tn), pl.cdiv(E, te)),   # reduction (E) axis last
            in_specs=[pl.BlockSpec((te, 1), lambda n, e: (e, 0)),
                      pl.BlockSpec((te, L), lambda n, e: (e, 0))],
            out_specs=pl.BlockSpec((L, tn), lambda n, e: (0, n)),
            scratch_shapes=[pltpu.VMEM((L, tn), jnp.float32)]),
        compiler_params=_compiler_params(("parallel", "arbitrary")),
    )(dst_col, edges)


# ----------------------------------------------------------------------------
# 2-layer MLP (Linear -> LN -> act -> Linear -> LN -> out_act) + residual, with the
# torch.cat() input fused via split W1 blocks.  Inputs may arrive transposed (L_i, rows)
# — e.g. the lane-dense scatter output — and are contracted over dim 0 without an
# explicit transpose.
# ----------------------------------------------------------------------------
def _layernorm(x, gamma, beta, eps=1e-5):
    mean = jnp.mean(x, axis=-1, keepdims=True)
    xc = x - mean
    var = jnp.mean(xc * xc, axis=-1, keepdims=True)     # one-pass variance on centered x
    return xc * jax.lax.rsqrt(var + eps) * gamma + beta


def _make_mlp2_kernel(n_inputs, transposed, residual_idx, hidden_act, output_act,
                      mxu_dtype, precision):
    def kernel(*refs):
        x_refs = refs[:n_inputs]
        w1_refs = refs[n_inputs:2 * n_inputs]
        (b1_ref, g1_ref, be1_ref,
         w2_ref, b2_ref, g2_ref, be2_ref, o_ref) = refs[2 * n_inputs:]

        xs = [r[...] for r in x_refs]

        # Layer 1:  h = sum_i x_i @ W1_i + b1   (fused torch.cat)
        h = None
        for j in range(n_inputs):
            xv = xs[j].astype(mxu_dtype)
            w = w1_refs[j][...]
            if transposed[j]:
                # xv is (L_j, rows): contract dim 0 of both operands -> (rows, dh).
                part = jax.lax.dot_general(xv, w, (((0,), (0,)), ((), ())),
                                           preferred_element_type=jnp.float32,
                                           precision=precision)
            else:
                part = jnp.dot(xv, w, preferred_element_type=jnp.float32,
                               precision=precision)
            h = part if h is None else h + part
        h = hidden_act(_layernorm(h + b1_ref[...], g1_ref[...], be1_ref[...]))

        # Layer 2
        y = jnp.dot(h.astype(mxu_dtype), w2_ref[...],
                    preferred_element_type=jnp.float32, precision=precision)
        y = output_act(_layernorm(y + b2_ref[...], g2_ref[...], be2_ref[...]))

        # Residual is one of the kernel inputs -> no extra HBM stream.
        o_ref[...] = (y + xs[residual_idx].astype(jnp.float32)).astype(o_ref.dtype)

    return kernel


def mlp2_residual_pallas(xs, residual_idx, params, hidden_act, output_act, *,
                         transposed=None, tile_rows=2048, mxu_dtype=jnp.bfloat16,
                         precision=None):
    """output_act(LN(hidden_act(LN(sum_i xs[i]@W1_i + b1))@W2 + b2)) + xs[residual_idx]."""
    n_inputs = len(xs)
    if transposed is None:
        transposed = (False,) * n_inputs
    transposed = tuple(transposed)
    assert not transposed[residual_idx], "residual input must be row-major"

    rows = xs[residual_idx].shape[0]
    feat = [x.shape[0] if t else x.shape[1] for x, t in zip(xs, transposed)]
    w1, b1, g1, be1, w2, b2, g2, be2 = params
    dh = w1.shape[1]
    dout = w2.shape[1]
    out_dtype = xs[residual_idx].dtype

    # Split W1 into per-source blocks (the torch.cat never hits HBM).
    w1_splits = []
    off = 0
    for li in feat:
        w1_splits.append(w1[off:off + li].astype(mxu_dtype))
        off += li
    assert off == w1.shape[0], "sum of input widths must match W1 fan-in"
    w2c = w2.astype(mxu_dtype)

    # 128-aligned row tiles (transposed inputs put `rows` on the lane dim), >= 2 blocks
    # when possible so both v7x TensorCores get work.
    tr = _pick_tile(rows, tile_rows, 128, min_blocks=2)

    in_specs = []
    for t, li in zip(transposed, feat):
        if t:
            in_specs.append(pl.BlockSpec((li, tr), lambda i: (0, i)))
        else:
            in_specs.append(pl.BlockSpec((tr, li), lambda i: (i, 0)))
    in_specs += [pl.BlockSpec(w.shape, lambda i: (0, 0)) for w in w1_splits]
    in_specs += [pl.BlockSpec((1, dh), lambda i: (0, 0))] * 3
    in_specs += [pl.BlockSpec((dh, dout), lambda i: (0, 0))]
    in_specs += [pl.BlockSpec((1, dout), lambda i: (0, 0))] * 3

    kernel = _make_mlp2_kernel(n_inputs, transposed, residual_idx,
                               hidden_act, output_act, mxu_dtype, precision)
    return pl.pallas_call(
        kernel,
        out_shape=jax.ShapeDtypeStruct((rows, dout), out_dtype),
        grid_spec=pltpu.PrefetchScalarGridSpec(
            num_scalar_prefetch=0,
            grid=(pl.cdiv(rows, tr),),
            in_specs=in_specs,
            out_specs=pl.BlockSpec((tr, dout), lambda i: (i, 0))),
        compiler_params=_compiler_params(("parallel",)),
    )(*xs, *w1_splits, b1, g1, be1, w2c, b2, g2, be2)


# ----------------------------------------------------------------------------
# Parameter init (PyTorch-Linear-style uniform(-1/sqrt(fan_in), +), LN gamma=1/beta=0)
# ----------------------------------------------------------------------------
def init_mlp2_params(key, din, dh, dout):
    ks = jax.random.split(key, 4)
    k1 = 1.0 / jnp.sqrt(din)
    k2 = 1.0 / jnp.sqrt(dh)
    w1 = jax.random.uniform(ks[0], (din, dh), jnp.float32, -k1, k1)
    b1 = jax.random.uniform(ks[1], (1, dh), jnp.float32, -k1, k1)
    w2 = jax.random.uniform(ks[2], (dh, dout), jnp.float32, -k2, k2)
    b2 = jax.random.uniform(ks[3], (1, dout), jnp.float32, -k2, k2)
    g1 = jnp.ones((1, dh), jnp.float32)
    be1 = jnp.zeros((1, dh), jnp.float32)
    g2 = jnp.ones((1, dout), jnp.float32)
    be2 = jnp.zeros((1, dout), jnp.float32)
    return (w1, b1, g1, be1, w2, b2, g2, be2)


# ----------------------------------------------------------------------------
# InteractionGNNCell.forward
# ----------------------------------------------------------------------------
def interaction_gnn_cell(nodes, edges, graph, node_params, edge_params, *,
                         mxu_dtype=jnp.bfloat16, tile_rows=2048, tile_n=2048, tile_e=512):
    num_nodes = nodes.shape[0]
    src = graph[0]
    dst = graph[1]
    precision = jax.lax.Precision.HIGHEST if mxu_dtype == jnp.float32 else None

    # edge_messages = scatter_add(edges, graph[1], dim=0, dim_size=N)
    # (emitted transposed (L, N) for lane-dense stores, and in mxu_dtype on the fast path
    #  since it is only ever consumed as an MXU operand.)
    edge_messages_t = scatter_add_pallas(edges, dst, num_nodes,
                                         tile_e=tile_e, tile_n=tile_n,
                                         out_dtype=mxu_dtype, mxu_dtype=mxu_dtype,
                                         precision=precision)

    # nodes = node_network(cat([nodes, edge_messages])) + nodes
    # (concat fused via split W1; residual = input 0; messages consumed transposed.)
    nodes = mlp2_residual_pallas([nodes, edge_messages_t], 0, node_params,
                                 hidden_act=jax.nn.relu, output_act=jax.nn.relu,
                                 transposed=(False, True),
                                 tile_rows=tile_rows, mxu_dtype=mxu_dtype,
                                 precision=precision)

    # edges = edge_network(cat([nodes[src], nodes[dst], edges])) + edges
    # TODO(synk): fuse these row gathers into the edge-MLP kernel (see file header).
    edge_in = [jnp.take(nodes, src, axis=0), jnp.take(nodes, dst, axis=0), edges]
    edges = mlp2_residual_pallas(edge_in, 2, edge_params,
                                 hidden_act=jax.nn.relu, output_act=jnp.tanh,
                                 tile_rows=tile_rows, mxu_dtype=mxu_dtype,
                                 precision=precision)
    return nodes, edges


# ----------------------------------------------------------------------------
# Pure-JAX reference (for the sanity check)
# ----------------------------------------------------------------------------
def _mlp2_ref(x, params, hidden_act, output_act):
    w1, b1, g1, be1, w2, b2, g2, be2 = params
    hp = jax.lax.Precision.HIGHEST
    h = hidden_act(_layernorm(jnp.dot(x, w1, precision=hp) + b1, g1, be1))
    y = jnp.dot(h, w2, precision=hp)
    return output_act(_layernorm(y + b2, g2, be2))


def _reference(nodes, edges, graph, node_params, edge_params):
    msgs = jnp.zeros_like(nodes).at[graph[1]].add(edges)
    n_in = jnp.concatenate([nodes, msgs], axis=-1)
    nodes = _mlp2_ref(n_in, node_params, jax.nn.relu, jax.nn.relu) + nodes
    e_in = jnp.concatenate([nodes[graph[0]], nodes[graph[1]], edges], axis=-1)
    edges = _mlp2_ref(e_in, edge_params, jax.nn.relu, jnp.tanh) + edges
    return nodes, edges


if __name__ == "__main__":
    # hparams (synthetic): latent=32, hidden=64, nb_node_layer=2, nb_edge_layer=2,
    # hidden_activation='ReLU', layernorm=True.
    LATENT, HIDDEN = 32, 64
    N_NODES, N_EDGES = 256, 320      # exercises multi-block grids + ragged E / row tails

    key = jax.random.PRNGKey(0)
    k_nodes, k_edges, k_graph, k_np, k_ep = jax.random.split(key, 5)

    nodes = jax.random.normal(k_nodes, (N_NODES, LATENT), jnp.float32)
    edges = jax.random.normal(k_edges, (N_EDGES, LATENT), jnp.float32)
    graph = jax.random.randint(k_graph, (2, N_EDGES), 0, N_NODES, jnp.int32)

    node_params = init_mlp2_params(k_np, 2 * LATENT, HIDDEN, LATENT)
    edge_params = init_mlp2_params(k_ep, 3 * LATENT, HIDDEN, LATENT)

    ref_nodes, ref_edges = _reference(nodes, edges, graph, node_params, edge_params)

    # Exact path (f32 MXU operands, precision=HIGHEST everywhere).
    run_f32 = jax.jit(functools.partial(interaction_gnn_cell,
                                        mxu_dtype=jnp.float32, tile_e=128))
    f32_nodes, f32_edges = run_f32(nodes, edges, graph, node_params, edge_params)
    jax.block_until_ready((f32_nodes, f32_edges))
    dn = float(jnp.max(jnp.abs(f32_nodes - ref_nodes)))
    de = float(jnp.max(jnp.abs(f32_edges - ref_edges)))
    assert jnp.allclose(f32_nodes, ref_nodes, rtol=2e-3, atol=2e-3), f"f32 nodes diff {dn}"
    assert jnp.allclose(f32_edges, ref_edges, rtol=2e-3, atol=2e-3), f"f32 edges diff {de}"

    # Fast path (bf16 MXU operands + bf16 edge messages, f32 accumulation/LN).
    run_bf16 = jax.jit(functools.partial(interaction_gnn_cell,
                                         mxu_dtype=jnp.bfloat16, tile_e=128))
    bf_nodes, bf_edges = run_bf16(nodes, edges, graph, node_params, edge_params)
    jax.block_until_ready((bf_nodes, bf_edges))
    dn = float(jnp.max(jnp.abs(bf_nodes - ref_nodes)))
    de = float(jnp.max(jnp.abs(bf_edges - ref_edges)))
    assert jnp.allclose(bf_nodes, ref_nodes, rtol=5e-2, atol=1e-1), f"bf16 nodes diff {dn}"
    assert jnp.allclose(bf_edges, ref_edges, rtol=5e-2, atol=1e-1), f"bf16 edges diff {de}"

    print("KERNEL_OK")
</pallas_src>

<mosaic_0001>
module attributes {stable_mosaic.version = 11 : i64} {
  func.func @kernel(%arg0: i32, %arg1: memref<128x32xf32, #tpu.memory_space<vmem>>, %arg2: memref<32x128xf32, #tpu.memory_space<vmem>>, %arg3: memref<32x64xf32, #tpu.memory_space<vmem>>, %arg4: memref<32x64xf32, #tpu.memory_space<vmem>>, %arg5: memref<1x64xf32, #tpu.memory_space<vmem>>, %arg6: memref<1x64xf32, #tpu.memory_space<vmem>>, %arg7: memref<1x64xf32, #tpu.memory_space<vmem>>, %arg8: memref<64x32xf32, #tpu.memory_space<vmem>>, %arg9: memref<1x32xf32, #tpu.memory_space<vmem>>, %arg10: memref<1x32xf32, #tpu.memory_space<vmem>>, %arg11: memref<1x32xf32, #tpu.memory_space<vmem>>, %arg12: memref<128x32xf32, #tpu.memory_space<vmem>>) attributes {dimension_semantics = [#tpu.dimension_semantics<parallel>], iteration_bounds = array<i64: 2>, scalar_prefetch = 0 : i64, scratch_operands = 0 : i64, tpu.core_type = #tpu.core_type<tc>, window_params = [{transform_indices = @transform_0, window_bounds = array<i64: 128, 32>}, {transform_indices = @transform_1, window_bounds = array<i64: 32, 128>}, {pipeline_mode = #tpu.pipeline_mode<synchronous>, transform_indices = @transform_2, window_bounds = array<i64: 32, 64>}, {pipeline_mode = #tpu.pipeline_mode<synchronous>, transform_indices = @transform_3, window_bounds = array<i64: 32, 64>}, {pipeline_mode = #tpu.pipeline_mode<synchronous>, transform_indices = @transform_4, window_bounds = array<i64: 1, 64>}, {pipeline_mode = #tpu.pipeline_mode<synchronous>, transform_indices = @transform_5, window_bounds = array<i64: 1, 64>}, {pipeline_mode = #tpu.pipeline_mode<synchronous>, transform_indices = @transform_6, window_bounds = array<i64: 1, 64>}, {pipeline_mode = #tpu.pipeline_mode<synchronous>, transform_indices = @transform_7, window_bounds = array<i64: 64, 32>}, {pipeline_mode = #tpu.pipeline_mode<synchronous>, transform_indices = @transform_8, window_bounds = array<i64: 1, 32>}, {pipeline_mode = #tpu.pipeline_mode<synchronous>, transform_indices = @transform_9, window_bounds = array<i64: 1, 32>}, {pipeline_mode = #tpu.pipeline_mode<synchronous>, transform_indices = @transform_10, window_bounds = array<i64: 1, 32>}, {transform_indices = @transform_11, window_bounds = array<i64: 128, 32>}]} {
    %c0 = arith.constant 0 : index
    %c0_0 = arith.constant 0 : index
    %0 = vector.load %arg1[%c0, %c0_0] : memref<128x32xf32, #tpu.memory_space<vmem>>, vector<128x32xf32>
    %c0_1 = arith.constant 0 : index
    %c0_2 = arith.constant 0 : index
    %1 = vector.load %arg2[%c0_1, %c0_2] : memref<32x128xf32, #tpu.memory_space<vmem>>, vector<32x128xf32>
    %c0_3 = arith.constant 0 : index
    %c0_4 = arith.constant 0 : index
    %2 = vector.load %arg3[%c0_3, %c0_4] : memref<32x64xf32, #tpu.memory_space<vmem>>, vector<32x64xf32>
    %cst = arith.constant dense<0.000000e+00> : vector<128x64xf32>
    %3 = tpu.matmul %0, %2, %cst {dimension_numbers = #tpu.dot_dimension_numbers<[1], [0], [0], [1], [0, 0, 1, 1], [], []>, precision = #tpu.contract_precision<fp32>} : vector<128x32xf32>, vector<32x64xf32>, vector<128x64xf32> -> vector<128x64xf32>
    %c0_5 = arith.constant 0 : index
    %c0_6 = arith.constant 0 : index
    %4 = vector.load %arg4[%c0_5, %c0_6] : memref<32x64xf32, #tpu.memory_space<vmem>>, vector<32x64xf32>
    %cst_7 = arith.constant dense<0.000000e+00> : vector<128x64xf32>
    %5 = tpu.matmul %1, %4, %cst_7 {dimension_numbers = #tpu.dot_dimension_numbers<[0], [0], [1], [1], [0, 1, 1, 1], [], []>, precision = #tpu.contract_precision<fp32>} : vector<32x128xf32>, vector<32x64xf32>, vector<128x64xf32> -> vector<128x64xf32>
    %6 = arith.addf %3, %5 : vector<128x64xf32>
    %c0_8 = arith.constant 0 : index
    %c0_9 = arith.constant 0 : index
    %7 = vector.load %arg5[%c0_8, %c0_9] : memref<1x64xf32, #tpu.memory_space<vmem>>, vector<1x64xf32>
    %8 = vector.broadcast %7 : vector<1x64xf32> to vector<128x64xf32>
    %9 = arith.addf %6, %8 : vector<128x64xf32>
    %c0_10 = arith.constant 0 : index
    %c0_11 = arith.constant 0 : index
    %10 = vector.load %arg6[%c0_10, %c0_11] : memref<1x64xf32, #tpu.memory_space<vmem>>, vector<1x64xf32>
    %c0_12 = arith.constant 0 : index
    %c0_13 = arith.constant 0 : index
    %11 = vector.load %arg7[%c0_12, %c0_13] : memref<1x64xf32, #tpu.memory_space<vmem>>, vector<1x64xf32>
    %cst_14 = arith.constant dense<0.000000e+00> : vector<128xf32>
    %12 = vector.multi_reduction <add>, %9, %cst_14 [1] : vector<128x64xf32> to vector<128xf32>
    %13 = vector.shape_cast %12 : vector<128xf32> to vector<128x1xf32>
    %cst_15 = arith.constant 6.400000e+01 : f32
    %14 = vector.broadcast %cst_15 : f32 to vector<128x1xf32>
    %15 = arith.divf %13, %14 : vector<128x1xf32>
    %16 = vector.broadcast %15 : vector<128x1xf32> to vector<128x64xf32>
    %17 = arith.subf %9, %16 : vector<128x64xf32>
    %18 = arith.mulf %17, %17 : vector<128x64xf32>
    %cst_16 = arith.constant dense<0.000000e+00> : vector<128xf32>
    %19 = vector.multi_reduction <add>, %18, %cst_16 [1] : vector<128x64xf32> to vector<128xf32>
    %20 = vector.shape_cast %19 : vector<128xf32> to vector<128x1xf32>
    %cst_17 = arith.constant 6.400000e+01 : f32
    %21 = vector.broadcast %cst_17 : f32 to vector<128x1xf32>
    %22 = arith.divf %20, %21 : vector<128x1xf32>
    %cst_18 = arith.constant 9.99999974E-6 : f32
    %23 = vector.broadcast %cst_18 : f32 to vector<128x1xf32>
    %24 = arith.addf %22, %23 : vector<128x1xf32>
    %25 = math.rsqrt %24 : vector<128x1xf32>
    %26 = vector.broadcast %25 : vector<128x1xf32> to vector<128x64xf32>
    %27 = arith.mulf %17, %26 : vector<128x64xf32>
    %28 = vector.broadcast %10 : vector<1x64xf32> to vector<128x64xf32>
    %29 = arith.mulf %27, %28 : vector<128x64xf32>
    %30 = vector.broadcast %11 : vector<1x64xf32> to vector<128x64xf32>
    %31 = arith.addf %29, %30 : vector<128x64xf32>
    %cst_19 = arith.constant 0.000000e+00 : f32
    %32 = vector.broadcast %cst_19 : f32 to vector<128x64xf32>
    %33 = arith.maximumf %31, %32 : vector<128x64xf32>
    %c0_20 = arith.constant 0 : index
    %c0_21 = arith.constant 0 : index
    %34 = vector.load %arg8[%c0_20, %c0_21] : memref<64x32xf32, #tpu.memory_space<vmem>>, vector<64x32xf32>
    %cst_22 = arith.constant dense<0.000000e+00> : vector<128x32xf32>
    %35 = tpu.matmul %33, %34, %cst_22 {dimension_numbers = #tpu.dot_dimension_numbers<[1], [0], [0], [1], [0, 0, 1, 1], [], []>, precision = #tpu.contract_precision<fp32>} : vector<128x64xf32>, vector<64x32xf32>, vector<128x32xf32> -> vector<128x32xf32>
    %c0_23 = arith.constant 0 : index
    %c0_24 = arith.constant 0 : index
    %36 = vector.load %arg9[%c0_23, %c0_24] : memref<1x32xf32, #tpu.memory_space<vmem>>, vector<1x32xf32>
    %37 = vector.broadcast %36 : vector<1x32xf32> to vector<128x32xf32>
    %38 = arith.addf %35, %37 : vector<128x32xf32>
    %c0_25 = arith.constant 0 : index
    %c0_26 = arith.constant 0 : index
    %39 = vector.load %arg10[%c0_25, %c0_26] : memref<1x32xf32, #tpu.memory_space<vmem>>, vector<1x32xf32>
    %c0_27 = arith.constant 0 : index
    %c0_28 = arith.constant 0 : index
    %40 = vector.load %arg11[%c0_27, %c0_28] : memref<1x32xf32, #tpu.memory_space<vmem>>, vector<1x32xf32>
    %cst_29 = arith.constant dense<0.000000e+00> : vector<128xf32>
    %41 = vector.multi_reduction <add>, %38, %cst_29 [1] : vector<128x32xf32> to vector<128xf32>
    %42 = vector.shape_cast %41 : vector<128xf32> to vector<128x1xf32>
    %cst_30 = arith.constant 3.200000e+01 : f32
    %43 = vector.broadcast %cst_30 : f32 to vector<128x1xf32>
    %44 = arith.divf %42, %43 : vector<128x1xf32>
    %45 = vector.broadcast %44 : vector<128x1xf32> to vector<128x32xf32>
    %46 = arith.subf %38, %45 : vector<128x32xf32>
    %47 = arith.mulf %46, %46 : vector<128x32xf32>
    %cst_31 = arith.constant dense<0.000000e+00> : vector<128xf32>
    %48 = vector.multi_reduction <add>, %47, %cst_31 [1] : vector<128x32xf32> to vector<128xf32>
    %49 = vector.shape_cast %48 : vector<128xf32> to vector<128x1xf32>
    %cst_32 = arith.constant 3.200000e+01 : f32
    %50 = vector.broadcast %cst_32 : f32 to vector<128x1xf32>
    %51 = arith.divf %49, %50 : vector<128x1xf32>
    %cst_33 = arith.constant 9.99999974E-6 : f32
    %52 = vector.broadcast %cst_33 : f32 to vector<128x1xf32>
    %53 = arith.addf %51, %52 : vector<128x1xf32>
    %54 = math.rsqrt %53 : vector<128x1xf32>
    %55 = vector.broadcast %54 : vector<128x1xf32> to vector<128x32xf32>
    %56 = arith.mulf %46, %55 : vector<128x32xf32>
    %57 = vector.broadcast %39 : vector<1x32xf32> to vector<128x32xf32>
    %58 = arith.mulf %56, %57 : vector<128x32xf32>
    %59 = vector.broadcast %40 : vector<1x32xf32> to vector<128x32xf32>
    %60 = arith.addf %58, %59 : vector<128x32xf32>
    %cst_34 = arith.constant 0.000000e+00 : f32
    %61 = vector.broadcast %cst_34 : f32 to vector<128x32xf32>
    %62 = arith.maximumf %60, %61 : vector<128x32xf32>
    %63 = arith.addf %62, %0 : vector<128x32xf32>
    %c0_35 = arith.constant 0 : index
    %c0_36 = arith.constant 0 : index
    %64 = vector.load %arg12[%c0_35, %c0_36] : memref<128x32xf32, #tpu.memory_space<vmem>>, vector<128x32xf32>
    tpu.vector_store %arg12[%c0_35, %c0_36], %63 {strides = array<i32>} : memref<128x32xf32, #tpu.memory_space<vmem>>, vector<128x32xf32>,
    return
  }
  func.func @transform_0(%arg0: i32) -> (i32, i32) {
    %c0_i32 = arith.constant 0 : i32
    %c0_i32_0 = arith.constant 0 : i32
    return %arg0, %c0_i32 : i32, i32
  }
  func.func @transform_1(%arg0: i32) -> (i32, i32) {
    %c0_i32 = arith.constant 0 : i32
    %c0_i32_0 = arith.constant 0 : i32
    return %c0_i32, %arg0 : i32, i32
  }
  func.func @transform_2(%arg0: i32) -> (i32, i32) {
    %c0_i32 = arith.constant 0 : i32
    %c0_i32_0 = arith.constant 0 : i32
    %c0_i32_1 = arith.constant 0 : i32
    return %c0_i32, %c0_i32_0 : i32, i32
  }
  func.func @transform_3(%arg0: i32) -> (i32, i32) {
    %c0_i32 = arith.constant 0 : i32
    %c0_i32_0 = arith.constant 0 : i32
    %c0_i32_1 = arith.constant 0 : i32
    return %c0_i32, %c0_i32_0 : i32, i32
  }
  func.func @transform_4(%arg0: i32) -> (i32, i32) {
    %c0_i32 = arith.constant 0 : i32
    %c0_i32_0 = arith.constant 0 : i32
    %c0_i32_1 = arith.constant 0 : i32
    return %c0_i32, %c0_i32_0 : i32, i32
  }
  func.func @transform_5(%arg0: i32) -> (i32, i32) {
    %c0_i32 = arith.constant 0 : i32
    %c0_i32_0 = arith.constant 0 : i32
    %c0_i32_1 = arith.constant 0 : i32
    return %c0_i32, %c0_i32_0 : i32, i32
  }
  func.func @transform_6(%arg0: i32) -> (i32, i32) {
    %c0_i32 = arith.constant 0 : i32
    %c0_i32_0 = arith.constant 0 : i32
    %c0_i32_1 = arith.constant 0 : i32
    return %c0_i32, %c0_i32_0 : i32, i32
  }
  func.func @transform_7(%arg0: i32) -> (i32, i32) {
    %c0_i32 = arith.constant 0 : i32
    %c0_i32_0 = arith.constant 0 : i32
    %c0_i32_1 = arith.constant 0 : i32
    return %c0_i32, %c0_i32_0 : i32, i32
  }
  func.func @transform_8(%arg0: i32) -> (i32, i32) {
    %c0_i32 = arith.constant 0 : i32
    %c0_i32_0 = arith.constant 0 : i32
    %c0_i32_1 = arith.constant 0 : i32
    return %c0_i32, %c0_i32_0 : i32, i32
  }
  func.func @transform_9(%arg0: i32) -> (i32, i32) {
    %c0_i32 = arith.constant 0 : i32
    %c0_i32_0 = arith.constant 0 : i32
    %c0_i32_1 = arith.constant 0 : i32
    return %c0_i32, %c0_i32_0 : i32, i32
  }
  func.func @transform_10(%arg0: i32) -> (i32, i32) {
    %c0_i32 = arith.constant 0 : i32
    %c0_i32_0 = arith.constant 0 : i32
    %c0_i32_1 = arith.constant 0 : i32
    return %c0_i32, %c0_i32_0 : i32, i32
  }
  func.func @transform_11(%arg0: i32) -> (i32, i32) {
    %c0_i32 = arith.constant 0 : i32
    %c0_i32_0 = arith.constant 0 : i32
    return %arg0, %c0_i32 : i32, i32
  }
}

module attributes {stable_mosaic.version = 11 : i64} {
  func.func @_scatter_add_kernel(%arg0: i32, %arg1: i32, %arg2: memref<128x1xi32, #tpu.memory_space<vmem>>, %arg3: memref<128x32xf32, #tpu.memory_space<vmem>>, %arg4: memref<32x128xf32, #tpu.memory_space<vmem>>, %arg5: memref<32x128xf32, #tpu.memory_space<vmem>>) attributes {dimension_semantics = [#tpu.dimension_semantics<parallel>, #tpu.dimension_semantics<arbitrary>], iteration_bounds = array<i64: 2, 3>, scalar_prefetch = 0 : i64, scratch_operands = 1 : i64, tpu.core_type = #tpu.core_type<tc>, window_params = [{transform_indices = @transform_0, window_bounds = array<i64: 128, 1>}, {transform_indices = @transform_1, window_bounds = array<i64: 128, 32>}, {transform_indices = @transform_2, window_bounds = array<i64: 32, 128>}]} {
    %c0_i32 = arith.constant 0 : i32
    %0 = arith.cmpi eq, %arg1, %c0_i32 : i32
    %1 = arith.extui %0 : i1 to i32
    %c0_i32_0 = arith.constant 0 : i32
    %2 = arith.cmpi ne, %1, %c0_i32_0 : i32
    scf.if %2 {
      %cst_13 = arith.constant 0.000000e+00 : f32
      %32 = vector.broadcast %cst_13 : f32 to vector<32x128xf32>
      %c0_14 = arith.constant 0 : index
      %c0_15 = arith.constant 0 : index
      %33 = vector.load %arg5[%c0_14, %c0_15] : memref<32x128xf32, #tpu.memory_space<vmem>>, vector<32x128xf32>
      tpu.vector_store %arg5[%c0_14, %c0_15], %32 {strides = array<i32>} : memref<32x128xf32, #tpu.memory_space<vmem>>, vector<32x128xf32>,
    } else {
    }
    %c128_i32 = arith.constant 128 : i32
    %3 = arith.muli %arg0, %c128_i32 : i32
    %c0 = arith.constant 0 : index
    %c0_1 = arith.constant 0 : index
    %4 = vector.load %arg2[%c0, %c0_1] : memref<128x1xi32, #tpu.memory_space<vmem>>, vector<128x1xi32>
    %c0_2 = arith.constant 0 : index
    %c0_3 = arith.constant 0 : index
    %5 = vector.load %arg3[%c0_2, %c0_3] : memref<128x32xf32, #tpu.memory_space<vmem>>, vector<128x32xf32>
    %6 = tpu.iota {dimensions = array<i32: 0>} : vector<128x1xi32>
    %c128_i32_4 = arith.constant 128 : i32
    %7 = arith.muli %arg1, %c128_i32_4 : i32
    %8 = vector.broadcast %7 : i32 to vector<128x1xi32>
    %9 = arith.addi %6, %8 : vector<128x1xi32>
    %c320_i32 = arith.constant 320 : i32
    %10 = vector.broadcast %c320_i32 : i32 to vector<128x1xi32>
    %11 = arith.cmpi slt, %9, %10 : vector<128x1xi32>
    %cst = arith.constant 0.000000e+00 : f32
    %12 = vector.shape_cast %11 : vector<128x1xi1> to vector<128x1xi1>
    %13 = vector.broadcast %12 : vector<128x1xi1> to vector<128x32xi1>
    %14 = vector.broadcast %cst : f32 to vector<128x32xf32>
    %15 = arith.select %13, %5, %14 : vector<128x32xi1>, vector<128x32xf32>
    %16 = tpu.iota {dimensions = array<i32: 1>} : vector<1x128xi32>
    %17 = vector.broadcast %3 : i32 to vector<1x128xi32>
    %18 = arith.addi %16, %17 : vector<1x128xi32>
    %19 = vector.broadcast %4 : vector<128x1xi32> to vector<128x128xi32>
    %20 = vector.broadcast %18 : vector<1x128xi32> to vector<128x128xi32>
    %21 = arith.cmpi eq, %19, %20 : vector<128x128xi32>
    %cst_5 = arith.constant 1.000000e+00 : f32
    %cst_6 = arith.constant 0.000000e+00 : f32
    %22 = vector.broadcast %cst_5 : f32 to vector<128x128xf32>
    %23 = vector.broadcast %cst_6 : f32 to vector<128x128xf32>
    %24 = arith.select %21, %22, %23 : vector<128x128xi1>, vector<128x128xf32>
    %c0_7 = arith.constant 0 : index
    %c0_8 = arith.constant 0 : index
    %25 = vector.load %arg5[%c0_7, %c0_8] : memref<32x128xf32, #tpu.memory_space<vmem>>, vector<32x128xf32>
    %cst_9 = arith.constant dense<0.000000e+00> : vector<32x128xf32>
    %26 = tpu.matmul %15, %24, %cst_9 {dimension_numbers = #tpu.dot_dimension_numbers<[0], [0], [1], [1], [0, 1, 1, 1], [], []>, precision = #tpu.contract_precision<fp32>} : vector<128x32xf32>, vector<128x128xf32>, vector<32x128xf32> -> vector<32x128xf32>
    %27 = arith.addf %25, %26 : vector<32x128xf32>
    %c0_10 = arith.constant 0 : index
    %c0_11 = arith.constant 0 : index
    %28 = vector.load %arg5[%c0_10, %c0_11] : memref<32x128xf32, #tpu.memory_space<vmem>>, vector<32x128xf32>
    tpu.vector_store %arg5[%c0_10, %c0_11], %27 {strides = array<i32>} : memref<32x128xf32, #tpu.memory_space<vmem>>, vector<32x128xf32>,
    %c2_i32 = arith.constant 2 : i32
    %29 = arith.cmpi eq, %arg1, %c2_i32 : i32
    %30 = arith.extui %29 : i1 to i32
    %c0_i32_12 = arith.constant 0 : i32
    %31 = arith.cmpi ne, %30, %c0_i32_12 : i32
    scf.if %31 {
      %c0_13 = arith.constant 0 : index
      %c0_14 = arith.constant 0 : index
      %32 = vector.load %arg5[%c0_13, %c0_14] : memref<32x128xf32, #tpu.memory_space<vmem>>, vector<32x128xf32>
      %c0_15 = arith.constant 0 : index
      %c0_16 = arith.constant 0 : index
      %33 = vector.load %arg4[%c0_15, %c0_16] : memref<32x128xf32, #tpu.memory_space<vmem>>, vector<32x128xf32>
      tpu.vector_store %arg4[%c0_15, %c0_16], %32 {strides = array<i32>} : memref<32x128xf32, #tpu.memory_space<vmem>>, vector<32x128xf32>,
    } else {
    }
    return
  }
  func.func @transform_0(%arg0: i32, %arg1: i32) -> (i32, i32) {
    %c0_i32 = arith.constant 0 : i32
    %c0_i32_0 = arith.constant 0 : i32
    return %arg1, %c0_i32 : i32, i32
  }
  func.func @transform_1(%arg0: i32, %arg1: i32) -> (i32, i32) {
    %c0_i32 = arith.constant 0 : i32
    %c0_i32_0 = arith.constant 0 : i32
    return %arg1, %c0_i32 : i32, i32
  }
  func.func @transform_2(%arg0: i32, %arg1: i32) -> (i32, i32) {
    %c0_i32 = arith.constant 0 : i32
    %c0_i32_0 = arith.constant 0 : i32
    return %c0_i32, %arg0 : i32, i32
  }
}

module attributes {stable_mosaic.version = 11 : i64} {
  func.func @kernel(%arg0: i32, %arg1: memref<128x32xf32, #tpu.memory_space<vmem>>, %arg2: memref<128x32xf32, #tpu.memory_space<vmem>>, %arg3: memref<128x32xf32, #tpu.memory_space<vmem>>, %arg4: memref<32x64xf32, #tpu.memory_space<vmem>>, %arg5: memref<32x64xf32, #tpu.memory_space<vmem>>, %arg6: memref<32x64xf32, #tpu.memory_space<vmem>>, %arg7: memref<1x64xf32, #tpu.memory_space<vmem>>, %arg8: memref<1x64xf32, #tpu.memory_space<vmem>>, %arg9: memref<1x64xf32, #tpu.memory_space<vmem>>, %arg10: memref<64x32xf32, #tpu.memory_space<vmem>>, %arg11: memref<1x32xf32, #tpu.memory_space<vmem>>, %arg12: memref<1x32xf32, #tpu.memory_space<vmem>>, %arg13: memref<1x32xf32, #tpu.memory_space<vmem>>, %arg14: memref<128x32xf32, #tpu.memory_space<vmem>>) attributes {dimension_semantics = [#tpu.dimension_semantics<parallel>], iteration_bounds = array<i64: 3>, scalar_prefetch = 0 : i64, scratch_operands = 0 : i64, tpu.core_type = #tpu.core_type<tc>, window_params = [{transform_indices = @transform_0, window_bounds = array<i64: 128, 32>}, {transform_indices = @transform_1, window_bounds = array<i64: 128, 32>}, {transform_indices = @transform_2, window_bounds = array<i64: 128, 32>}, {pipeline_mode = #tpu.pipeline_mode<synchronous>, transform_indices = @transform_3, window_bounds = array<i64: 32, 64>}, {pipeline_mode = #tpu.pipeline_mode<synchronous>, transform_indices = @transform_4, window_bounds = array<i64: 32, 64>}, {pipeline_mode = #tpu.pipeline_mode<synchronous>, transform_indices = @transform_5, window_bounds = array<i64: 32, 64>}, {pipeline_mode = #tpu.pipeline_mode<synchronous>, transform_indices = @transform_6, window_bounds = array<i64: 1, 64>}, {pipeline_mode = #tpu.pipeline_mode<synchronous>, transform_indices = @transform_7, window_bounds = array<i64: 1, 64>}, {pipeline_mode = #tpu.pipeline_mode<synchronous>, transform_indices = @transform_8, window_bounds = array<i64: 1, 64>}, {pipeline_mode = #tpu.pipeline_mode<synchronous>, transform_indices = @transform_9, window_bounds = array<i64: 64, 32>}, {pipeline_mode = #tpu.pipeline_mode<synchronous>, transform_indices = @transform_10, window_bounds = array<i64: 1, 32>}, {pipeline_mode = #tpu.pipeline_mode<synchronous>, transform_indices = @transform_11, window_bounds = array<i64: 1, 32>}, {pipeline_mode = #tpu.pipeline_mode<synchronous>, transform_indices = @transform_12, window_bounds = array<i64: 1, 32>}, {transform_indices = @transform_13, window_bounds = array<i64: 128, 32>}]} {
    %c0 = arith.constant 0 : index
    %c0_0 = arith.constant 0 : index
    %0 = vector.load %arg1[%c0, %c0_0] : memref<128x32xf32, #tpu.memory_space<vmem>>, vector<128x32xf32>
    %c0_1 = arith.constant 0 : index
    %c0_2 = arith.constant 0 : index
    %1 = vector.load %arg2[%c0_1, %c0_2] : memref<128x32xf32, #tpu.memory_space<vmem>>, vector<128x32xf32>
    %c0_3 = arith.constant 0 : index
    %c0_4 = arith.constant 0 : index
    %2 = vector.load %arg3[%c0_3, %c0_4] : memref<128x32xf32, #tpu.memory_space<vmem>>, vector<128x32xf32>
    %c0_5 = arith.constant 0 : index
    %c0_6 = arith.constant 0 : index
    %3 = vector.load %arg4[%c0_5, %c0_6] : memref<32x64xf32, #tpu.memory_space<vmem>>, vector<32x64xf32>
    %cst = arith.constant dense<0.000000e+00> : vector<128x64xf32>
    %4 = tpu.matmul %0, %3, %cst {dimension_numbers = #tpu.dot_dimension_numbers<[1], [0], [0], [1], [0, 0, 1, 1], [], []>, precision = #tpu.contract_precision<fp32>} : vector<128x32xf32>, vector<32x64xf32>, vector<128x64xf32> -> vector<128x64xf32>
    %c0_7 = arith.constant 0 : index
    %c0_8 = arith.constant 0 : index
    %5 = vector.load %arg5[%c0_7, %c0_8] : memref<32x64xf32, #tpu.memory_space<vmem>>, vector<32x64xf32>
    %cst_9 = arith.constant dense<0.000000e+00> : vector<128x64xf32>
    %6 = tpu.matmul %1, %5, %cst_9 {dimension_numbers = #tpu.dot_dimension_numbers<[1], [0], [0], [1], [0, 0, 1, 1], [], []>, precision = #tpu.contract_precision<fp32>} : vector<128x32xf32>, vector<32x64xf32>, vector<128x64xf32> -> vector<128x64xf32>
    %7 = arith.addf %4, %6 : vector<128x64xf32>
    %c0_10 = arith.constant 0 : index
    %c0_11 = arith.constant 0 : index
    %8 = vector.load %arg6[%c0_10, %c0_11] : memref<32x64xf32, #tpu.memory_space<vmem>>, vector<32x64xf32>
    %cst_12 = arith.constant dense<0.000000e+00> : vector<128x64xf32>
    %9 = tpu.matmul %2, %8, %cst_12 {dimension_numbers = #tpu.dot_dimension_numbers<[1], [0], [0], [1], [0, 0, 1, 1], [], []>, precision = #tpu.contract_precision<fp32>} : vector<128x32xf32>, vector<32x64xf32>, vector<128x64xf32> -> vector<128x64xf32>
    %10 = arith.addf %7, %9 : vector<128x64xf32>
    %c0_13 = arith.constant 0 : index
    %c0_14 = arith.constant 0 : index
    %11 = vector.load %arg7[%c0_13, %c0_14] : memref<1x64xf32, #tpu.memory_space<vmem>>, vector<1x64xf32>
    %12 = vector.broadcast %11 : vector<1x64xf32> to vector<128x64xf32>
    %13 = arith.addf %10, %12 : vector<128x64xf32>
    %c0_15 = arith.constant 0 : index
    %c0_16 = arith.constant 0 : index
    %14 = vector.load %arg8[%c0_15, %c0_16] : memref<1x64xf32, #tpu.memory_space<vmem>>, vector<1x64xf32>
    %c0_17 = arith.constant 0 : index
    %c0_18 = arith.constant 0 : index
    %15 = vector.load %arg9[%c0_17, %c0_18] : memref<1x64xf32, #tpu.memory_space<vmem>>, vector<1x64xf32>
    %cst_19 = arith.constant dense<0.000000e+00> : vector<128xf32>
    %16 = vector.multi_reduction <add>, %13, %cst_19 [1] : vector<128x64xf32> to vector<128xf32>
    %17 = vector.shape_cast %16 : vector<128xf32> to vector<128x1xf32>
    %cst_20 = arith.constant 6.400000e+01 : f32
    %18 = vector.broadcast %cst_20 : f32 to vector<128x1xf32>
    %19 = arith.divf %17, %18 : vector<128x1xf32>
    %20 = vector.broadcast %19 : vector<128x1xf32> to vector<128x64xf32>
    %21 = arith.subf %13, %20 : vector<128x64xf32>
    %22 = arith.mulf %21, %21 : vector<128x64xf32>
    %cst_21 = arith.constant dense<0.000000e+00> : vector<128xf32>
    %23 = vector.multi_reduction <add>, %22, %cst_21 [1] : vector<128x64xf32> to vector<128xf32>
    %24 = vector.shape_cast %23 : vector<128xf32> to vector<128x1xf32>
    %cst_22 = arith.constant 6.400000e+01 : f32
    %25 = vector.broadcast %cst_22 : f32 to vector<128x1xf32>
    %26 = arith.divf %24, %25 : vector<128x1xf32>
    %cst_23 = arith.constant 9.99999974E-6 : f32
    %27 = vector.broadcast %cst_23 : f32 to vector<128x1xf32>
    %28 = arith.addf %26, %27 : vector<128x1xf32>
    %29 = math.rsqrt %28 : vector<128x1xf32>
    %30 = vector.broadcast %29 : vector<128x1xf32> to vector<128x64xf32>
    %31 = arith.mulf %21, %30 : vector<128x64xf32>
    %32 = vector.broadcast %14 : vector<1x64xf32> to vector<128x64xf32>
    %33 = arith.mulf %31, %32 : vector<128x64xf32>
    %34 = vector.broadcast %15 : vector<1x64xf32> to vector<128x64xf32>
    %35 = arith.addf %33, %34 : vector<128x64xf32>
    %cst_24 = arith.constant 0.000000e+00 : f32
    %36 = vector.broadcast %cst_24 : f32 to vector<128x64xf32>
    %37 = arith.maximumf %35, %36 : vector<128x64xf32>
    %c0_25 = arith.constant 0 : index
    %c0_26 = arith.constant 0 : index
    %38 = vector.load %arg10[%c0_25, %c0_26] : memref<64x32xf32, #tpu.memory_space<vmem>>, vector<64x32xf32>
    %cst_27 = arith.constant dense<0.000000e+00> : vector<128x32xf32>
    %39 = tpu.matmul %37, %38, %cst_27 {dimension_numbers = #tpu.dot_dimension_numbers<[1], [0], [0], [1], [0, 0, 1, 1], [], []>, precision = #tpu.contract_precision<fp32>} : vector<128x64xf32>, vector<64x32xf32>, vector<128x32xf32> -> vector<128x32xf32>
    %c0_28 = arith.constant 0 : index
    %c0_29 = arith.constant 0 : index
    %40 = vector.load %arg11[%c0_28, %c0_29] : memref<1x32xf32, #tpu.memory_space<vmem>>, vector<1x32xf32>
    %41 = vector.broadcast %40 : vector<1x32xf32> to vector<128x32xf32>
    %42 = arith.addf %39, %41 : vector<128x32xf32>
    %c0_30 = arith.constant 0 : index
    %c0_31 = arith.constant 0 : index
    %43 = vector.load %arg12[%c0_30, %c0_31] : memref<1x32xf32, #tpu.memory_space<vmem>>, vector<1x32xf32>
    %c0_32 = arith.constant 0 : index
    %c0_33 = arith.constant 0 : index
    %44 = vector.load %arg13[%c0_32, %c0_33] : memref<1x32xf32, #tpu.memory_space<vmem>>, vector<1x32xf32>
    %cst_34 = arith.constant dense<0.000000e+00> : vector<128xf32>
    %45 = vector.multi_reduction <add>, %42, %cst_34 [1] : vector<128x32xf32> to vector<128xf32>
    %46 = vector.shape_cast %45 : vector<128xf32> to vector<128x1xf32>
    %cst_35 = arith.constant 3.200000e+01 : f32
    %47 = vector.broadcast %cst_35 : f32 to vector<128x1xf32>
    %48 = arith.divf %46, %47 : vector<128x1xf32>
    %49 = vector.broadcast %48 : vector<128x1xf32> to vector<128x32xf32>
    %50 = arith.subf %42, %49 : vector<128x32xf32>
    %51 = arith.mulf %50, %50 : vector<128x32xf32>
    %cst_36 = arith.constant dense<0.000000e+00> : vector<128xf32>
    %52 = vector.multi_reduction <add>, %51, %cst_36 [1] : vector<128x32xf32> to vector<128xf32>
    %53 = vector.shape_cast %52 : vector<128xf32> to vector<128x1xf32>
    %cst_37 = arith.constant 3.200000e+01 : f32
    %54 = vector.broadcast %cst_37 : f32 to vector<128x1xf32>
    %55 = arith.divf %53, %54 : vector<128x1xf32>
    %cst_38 = arith.constant 9.99999974E-6 : f32
    %56 = vector.broadcast %cst_38 : f32 to vector<128x1xf32>
    %57 = arith.addf %55, %56 : vector<128x1xf32>
    %58 = math.rsqrt %57 : vector<128x1xf32>
    %59 = vector.broadcast %58 : vector<128x1xf32> to vector<128x32xf32>
    %60 = arith.mulf %50, %59 : vector<128x32xf32>
    %61 = vector.broadcast %43 : vector<1x32xf32> to vector<128x32xf32>
    %62 = arith.mulf %60, %61 : vector<128x32xf32>
    %63 = vector.broadcast %44 : vector<1x32xf32> to vector<128x32xf32>
    %64 = arith.addf %62, %63 : vector<128x32xf32>
    %65 = math.tanh %64 : vector<128x32xf32>
    %66 = arith.addf %65, %2 : vector<128x32xf32>
    %c0_39 = arith.constant 0 : index
    %c0_40 = arith.constant 0 : index
    %67 = vector.load %arg14[%c0_39, %c0_40] : memref<128x32xf32, #tpu.memory_space<vmem>>, vector<128x32xf32>
    tpu.vector_store %arg14[%c0_39, %c0_40], %66 {strides = array<i32>} : memref<128x32xf32, #tpu.memory_space<vmem>>, vector<128x32xf32>,
    return
  }
  func.func @transform_0(%arg0: i32) -> (i32, i32) {
    %c0_i32 = arith.constant 0 : i32
    %c0_i32_0 = arith.constant 0 : i32
    return %arg0, %c0_i32 : i32, i32
  }
  func.func @transform_1(%arg0: i32) -> (i32, i32) {
    %c0_i32 = arith.constant 0 : i32
    %c0_i32_0 = arith.constant 0 : i32
    return %arg0, %c0_i32 : i32, i32
  }
  func.func @transform_2(%arg0: i32) -> (i32, i32) {
    %c0_i32 = arith.constant 0 : i32
    %c0_i32_0 = arith.constant 0 : i32
    return %arg0, %c0_i32 : i32, i32
  }
  func.func @transform_3(%arg0: i32) -> (i32, i32) {
    %c0_i32 = arith.constant 0 : i32
    %c0_i32_0 = arith.constant 0 : i32
    %c0_i32_1 = arith.constant 0 : i32
    return %c0_i32, %c0_i32_0 : i32, i32
  }
  func.func @transform_4(%arg0: i32) -> (i32, i32) {
    %c0_i32 = arith.constant 0 : i32
    %c0_i32_0 = arith.constant 0 : i32
    %c0_i32_1 = arith.constant 0 : i32
    return %c0_i32, %c0_i32_0 : i32, i32
  }
  func.func @transform_5(%arg0: i32) -> (i32, i32) {
    %c0_i32 = arith.constant 0 : i32
    %c0_i32_0 = arith.constant 0 : i32
    %c0_i32_1 = arith.constant 0 : i32
    return %c0_i32, %c0_i32_0 : i32, i32
  }
  func.func @transform_6(%arg0: i32) -> (i32, i32) {
    %c0_i32 = arith.constant 0 : i32
    %c0_i32_0 = arith.constant 0 : i32
    %c0_i32_1 = arith.constant 0 : i32
    return %c0_i32, %c0_i32_0 : i32, i32
  }
  func.func @transform_7(%arg0: i32) -> (i32, i32) {
    %c0_i32 = arith.constant 0 : i32
    %c0_i32_0 = arith.constant 0 : i32
    %c0_i32_1 = arith.constant 0 : i32
    return %c0_i32, %c0_i32_0 : i32, i32
  }
  func.func @transform_8(%arg0: i32) -> (i32, i32) {
    %c0_i32 = arith.constant 0 : i32
    %c0_i32_0 = arith.constant 0 : i32
    %c0_i32_1 = arith.constant 0 : i32
    return %c0_i32, %c0_i32_0 : i32, i32
  }
  func.func @transform_9(%arg0: i32) -> (i32, i32) {
    %c0_i32 = arith.constant 0 : i32
    %c0_i32_0 = arith.constant 0 : i32
    %c0_i32_1 = arith.constant 0 : i32
    return %c0_i32, %c0_i32_0 : i32, i32
  }
  func.func @transform_10(%arg0: i32) -> (i32, i32) {
    %c0_i32 = arith.constant 0 : i32
    %c0_i32_0 = arith.constant 0 : i32
    %c0_i32_1 = arith.constant 0 : i32
    return %c0_i32, %c0_i32_0 : i32, i32
  }
  func.func @transform_11(%arg0: i32) -> (i32, i32) {
    %c0_i32 = arith.constant 0 : i32
    %c0_i32_0 = arith.constant 0 : i32
    %c0_i32_1 = arith.constant 0 : i32
    return %c0_i32, %c0_i32_0 : i32, i32
  }
  func.func @transform_12(%arg0: i32) -> (i32, i32) {
    %c0_i32 = arith.constant 0 : i32
    %c0_i32_0 = arith.constant 0 : i32
    %c0_i32_1 = arith.constant 0 : i32
    return %c0_i32, %c0_i32_0 : i32, i32
  }
  func.func @transform_13(%arg0: i32) -> (i32, i32) {
    %c0_i32 = arith.constant 0 : i32
    %c0_i32_0 = arith.constant 0 : i32
    return %arg0, %c0_i32 : i32, i32
  }
}

</mosaic_0001>

<bundles_post_ra>
// kernel: interaction_gnn_cell.3
= control target key start
LH: loop header
LB: loop body
LE: loop exit
PB: predicated region body
PF: predicated region fallthrough
CT: control target
= control target key end

     0   :  { %s1196_s9 = smov 0   ;;  %s1198_s10 = smov 0   ;;  %s1784_s0 = inlined_call_operand.vmem [shape: s32[320,1], index: 0, kind: input, shape index: {}]   ;;  %s1785_s1 = inlined_call_operand.vmem [shape: f32[320,32], index: 1, kind: input, shape index: {}]   ;;  %s1786_s2 = inlined_call_operand.vmem [shape: f32[32,256], index: 2, kind: output, shape index: {}]  }
   0x1   :  { %s1200_s11 = smov 0   ;;  %s1202_s12 = smov 0  }
   0x2   :  { %s1204_s13 = smov 0   ;;  %s1206_s14 = smov 0  }
   0x3   :  { %s1208_s15 = smov 0  }
   0x4 LB: > { %s21_s16 = sadd.s32 1, %s1167_s13  ;;  %s24_s17 = sadd.s32 1, %s1171_s14  ;;  %s1175_s15 = sphi %s1208_s15, %s12_s15   ;;  %s1171_s14 = sphi %s1206_s14, %s1828_s14   ;;  %s1167_s13 = sphi %s1204_s13, %s1827_s13   ;;  %s1163_s12 = sphi %s1202_s12, %s1826_s12   ;;  %s1159_s11 = sphi %s1200_s11, %s1825_s11   ;;  %s1155_s10 = sphi %s1198_s10, %s1824_s10   ;;  %s1151_s9 = sphi %s1196_s9, %s1823_s9  }
   0x5   : > { %p22_p0 = scmp.ge.s32.totalorder %s21_s16, 3  ;;  %s960_s18 = sadd.s32 4294967295, %s1175_s15  }
   0x6   : > { %p93_p1 = scmp.ne.s32.totalorder %s1155_s10, %s1151_s9  ;;  %p94_p2 = scmp.eq.s32.totalorder %s960_s18, 5 }
   0x7   : > { %s1830_s16 = smov (%p22_p0, %s21_s16), 0  ;;  %s1832_s17 = smov (!%p22_p0, %s24_s17), %s1171_s14 }
   0x8   : > { %p964_p3 = scmp.ge.s32.totalorder %s1175_s15, 1  ;;  %p26_p4 = scmp.ge.s32.totalorder %s1832_s17, 2 }
   0x9   : > { %p152_p5 = scmp.lt.s32.totalorder %s1175_s15, 7  ;;  %p1238_p6 = por %p94_p2, %p93_p1 }
   0xa   : > { %s1834_s17 = smov (%p26_p4, %s1832_s17), 0  ;;  %s83_s21 = sadd.s32 1, %s1155_s10 }
   0xb   : > { %p153_p7 = pnand %p964_p3, %p152_p5  ;;  %s80_s20 = ssub.s32 %s1171_s14, %s1834_s17 }
   0xc   : > { %p81_p8 = scmp.eq.s32.totalorder %s80_s20, 0  ;;  %s183_s23 = sand.u32 (!%p153_p7), 1, %s1151_s9  }
   0xd   : > { %156 = sbr.rel (%p153_p7) target bundleno = 482 (0x1e2), region = 28  ;;  %s966_s24 = sshll.u32 (!%p153_p7), %s1159_s11, 4 }
   0xe   : > { %s1248_s22 = scalar_select %p81_p8, %s1155_s10, %s83_s21  }
   0xf   : > { %s965_s25 = sshll.u32 (!%p153_p7), %s183_s23, 5  ;;  %p191_p9 = scmp.lt.s32.totalorder (!%p153_p7), %s966_s24, 39 }
  0x10   : > { %s1261_s5 = scalar_lea.vmem (!%p153_p7), [#allocation3], %s965_s25  ;;  %p970_p10 = scmp.ne.s32.totalorder (!%p153_p7), %s1159_s11, 0 }
  0x12   : > { %s1836_s24 = smov (!%p191_p9, %s966_s24), 39  ;;  %217 = sbr.rel (%p970_p10) target bundleno = 28 (0x1c), region = 32 }
  0x13   : > { %s967_s26 = sshll.u32 %s1836_s24, 3 }
  0x14   : > { %s1254_s29 = scalar_lea.vmem %s1784_s0, %s967_s26  ;;  %s1259_s4 = scalar_lea.vmem %s1785_s1, %s967_s26 }
  0x17   : > { %v1177_v0 = vmov 0.0  }
  0x18   : > { %218 = vst [vmem:[#allocation2 + $0x10] sm:$0xff] %v1177_v0 }
  0x19   : > { %219 = vst [vmem:[#allocation2] sm:$0xff] %v1177_v0 }
  0x1a   : > { %220 = vst [vmem:[#allocation2 + $0x18] sm:$0xff] %v1177_v0 }
  0x1b   : > { %221 = vst [vmem:[#allocation2 + $0x8] sm:$0xff] %v1177_v0 }
  0x1c PF: > { %v238_v1 = vld [vmem:[%s1254_s29 + $0x78] sm:$0xff]  ;;  %v236_v2 = vld [vmem:[%s1254_s29 + $0x68] sm:$0xff]  ;;  %v1178_v3 = vmov 0   ;;  %v237_v5 = vld [vmem:[%s1254_s29 + $0x70] sm:$0xff]  ;;  %v255_v18 = vlaneseq  ;;  %s972_s6 = sshll.u32 %s1159_s11, 7  ;;  %s971_s7 = sshll.u32 %s1163_s12, 7 }
  0x1d   : > { %1119 = vset.pattern.permute.xlu1 %v1178_v3  ;;  %1118 = vset.pattern.permute.xlu0 %v1178_v3  ;;  %v234_v4 = vld [vmem:[%s1254_s29 + $0x58] sm:$0xff]  ;;  %v235_v6 = vld [vmem:[%s1254_s29 + $0x60] sm:$0xff]  ;;  %v233_v7 = vld [vmem:[%s1254_s29 + $0x50] sm:$0xff]  ;;  %v1283_v20 = vstv %s972_s6  ;;  %v1179_v52 = vmov 1.0   ;;  %v1180_v53 = vmov 0.0   ;;  %p1021_p11 = scmp.ne.s32.totalorder %s1159_s11, 2 }
  0x1e   : > { %404 = vperm.xlu0 %1118, %v238_v1   ;;  %398 = vperm.xlu1 %1119, %v236_v2   ;;  %v232_v8 = vld [vmem:[%s1254_s29 + $0x48] sm:$0xff]  ;;  %v231_v9 = vld [vmem:[%s1254_s29 + $0x40] sm:$0xff]  ;;  %v230_v10 = vld [vmem:[%s1254_s29 + $0x38] sm:$0xff]  ;;  %v1281_v19 = vshrl.u32 %v255_v18, 7  ;;  %v355_v39 = vand.u32 127, %v255_v18  ;;  %v356_v41 = vstv %s971_s7 }
  0x1f   : > { %1120 = vset.pattern.permute.xlu2 %v1178_v3  ;;  %v229_v11 = vld [vmem:[%s1254_s29 + $0x30] sm:$0xff]  ;;  %v228_v12 = vld [vmem:[%s1254_s29 + $0x28] sm:$0xff]  ;;  %v227_v13 = vld [vmem:[%s1254_s29 + $0x20] sm:$0xff] }
  0x20   : > { %392 = vperm.xlu2 %1120, %v234_v4   ;;  %v226_v14 = vld [vmem:[%s1254_s29 + $0x18] sm:$0xff]  ;;  %v225_v15 = vld [vmem:[%s1254_s29 + $0x10] sm:$0xff]  ;;  %v224_v16 = vld [vmem:[%s1254_s29 + $0x8] sm:$0xff]  ;;  %v274_v21 = vadd.s32 %v1283_v20, %v1281_v19  ;;  %v257_v23 = vadd.s32 8, %v1281_v19  ;;  %v258_v27 = vadd.s32 16, %v1281_v19  ;;  %v259_v31 = vadd.s32 24, %v1281_v19 }
  0x21   : > { %v223_v17 = vld [vmem:[%s1254_s29] sm:$0xff]  ;;  %v240_v26 = vld [vmem:[%s1259_s4 + $0x8] sm:$0xff]  ;;  %v241_v30 = vld [vmem:[%s1259_s4 + $0x10] sm:$0xff]  ;;  %v260_v36 = vadd.s32 32, %v1281_v19  ;;  %v1300_v42 = vadd.s32 %v356_v41, %v355_v39  ;;  %v261_v44 = vadd.s32 40, %v1281_v19  ;;  %v262_v58 = vadd.s32 48, %v1281_v19 }
  0x22   : > { %v239_v22 = vld [vmem:[%s1259_s4] sm:$0xff]  ;;  %vm290_vm0 = vcmp.lt.s32.totalorder %v274_v21, 320  ;;  %v275_v25 = vadd.s32 %v1283_v20, %v257_v23  ;;  %v276_v29 = vadd.s32 %v1283_v20, %v258_v27  ;;  %v277_v34 = vadd.s32 %v1283_v20, %v259_v31  ;;  %v242_v35 = vld [vmem:[%s1259_s4 + $0x18] sm:$0xff]  ;;  %v244_v59 = vld [vmem:[%s1259_s4 + $0x28] sm:$0xff] }
  0x23   : > { %v338_v24 = vsel %vm290_vm0, %v239_v22, 0.0  ;;  %v278_v40 = vadd.s32 %v1283_v20, %v260_v36  ;;  %v243_v43 = vld [vmem:[%s1259_s4 + $0x20] sm:$0xff]  ;;  %v279_v50 = vadd.s32 %v1283_v20, %v261_v44  ;;  %v280_v4 = vadd.s32 %v1283_v20, %v262_v58  ;;  %v252_v62 = vld [vmem:[%s1259_s4 + $0x68] sm:$0xff] }
  0x24   : > { %vm291_vm1 = vcmp.lt.s32.totalorder %v275_v25, 320  ;;  %vm292_vm2 = vcmp.lt.s32.totalorder %v276_v29, 320  ;;  %vm293_vm3 = vcmp.lt.s32.totalorder %v277_v34, 320  ;;  %v263_v21 = vadd.s32 56, %v1281_v19  ;;  %v251_v49 = vld [vmem:[%s1259_s4 + $0x60] sm:$0xff] }
  0x25   : > { %v339_v28 = vsel %vm291_vm1, %v240_v26, 0.0  ;;  %v340_v33 = vsel %vm292_vm2, %v241_v30, 0.0  ;;  %v341_v37 = vsel %vm293_vm3, %v242_v35, 0.0  ;;  %vm294_vm4 = vcmp.lt.s32.totalorder %v278_v40, 320  ;;  %v253_v35 = vld [vmem:[%s1259_s4 + $0x70] sm:$0xff] }
  0x26   : > { %401 = vperm.xlu0 %1118, %v237_v5   ;;  %395 = vperm.xlu1 %1119, %v235_v6   ;;  %v342_v47 = vsel %vm294_vm4, %v243_v43, 0.0  ;;  %vm295_vm8 = vcmp.lt.s32.totalorder %v279_v50, 320  ;;  %vm296_vm13 = vcmp.lt.s32.totalorder %v280_v4, 320  ;;  %v271_v36 = vadd.s32 120, %v1281_v19 }
  0x27   : > { %v343_v3 = vsel %vm295_vm8, %v244_v59, 0.0 }
  0x28   : > { %389 = vperm.xlu2 %1120, %v233_v7   ;;  %v269_v7 = vadd.s32 104, %v1281_v19  ;;  %v289_v41 = vadd.s32 %v1283_v20, %v271_v36 }
  0x2e   : > { %386 = vperm.xlu0 %1118, %v232_v8   ;;  %383 = vperm.xlu1 %1119, %v231_v9  }
  0x30   : > { %380 = vperm.xlu2 %1120, %v230_v10  }
  0x36   : > { %377 = vperm.xlu0 %1118, %v229_v11   ;;  %374 = vperm.xlu1 %1119, %v228_v12  }
  0x38   : > { %371 = vperm.xlu2 %1120, %v227_v13  }
  0x3e   : > { %368 = vperm.xlu0 %1118, %v226_v14   ;;  %365 = vperm.xlu1 %1119, %v225_v15  }
  0x40   : > { %362 = vperm.xlu2 %1120, %v224_v16   ;;  %v245_v16 = vld [vmem:[%s1259_s4 + $0x30] sm:$0xff] }
  0x41   : > { %v344_v26 = vsel %vm296_vm13, %v245_v16, 0.0 }
  0x46   : > { %359 = vperm.xlu0 %1118, %v223_v17  }
  0x73   : > { %442 = vxpose.xlu1.b32.start [1/16] (narrow) %v338_v24, 32 }
  0x7a   : > { %v393_v32 = vpop.permute.xlu2 %392 }
  0x7b   : > { %443 = vxpose.xlu1.b32.cont [2/16] (narrow) %v339_v28, 32  ;;  %vm1316_vm7 = vcmp.eq.s32.totalorder %v393_v32, %v1300_v42  ;;  %v281_v32 = vadd.s32 %v1283_v20, %v263_v21 }
  0x7c   : > { %v433_v61 = vsel %vm1316_vm7, 1.0, %v1180_v53 }
  0x7d   : > { %v1346_v5 = vsub.f32 %v433_v61, %v433_v61  ;;  %vm297_vm1 = vcmp.lt.s32.totalorder %v281_v32, 320 }
  0x7f   : > { %v1388_v18 = vand.u32 4294901760, %v1346_v5 }
  0x81   : > { %v545_v31 = vsub.f32 %v1346_v5, %v1388_v18 }
  0x82   : > { %v390_v38 = vpop.permute.xlu2 %389 }
  0x83   : > { %444 = vxpose.xlu1.b32.cont [3/16] (narrow) %v340_v33, 32  ;;  %vm1340_vm9 = vcmp.eq.s32.totalorder %v390_v38, %v1300_v42 }
  0x84   : > { %v432_v9 = vsel %vm1340_vm9, 1.0, %v1180_v53 }
  0x85   : > { %v548_v17 = vsub.f32 %v432_v9, %v432_v9 }
  0x87   : > { %v1415_v33 = vand.u32 4294901760, %v548_v17 }
  0x8a   : > { %v381_v55 = vpop.permute.xlu2 %380 }
  0x8b   : > { %445 = vxpose.xlu1.b32.cont [4/16] (narrow) %v341_v37, 32  ;;  %vm1374_vm12 = vcmp.eq.s32.totalorder %v381_v55, %v1300_v42 }
  0x8c   : > { %v429_v25 = vsel %vm1374_vm12, 1.0, %v1180_v53 }
  0x8d   : > { %v1417_v34 = vsub.f32 %v429_v25, %v429_v25 }
  0x8f   : > { %v1454_v50 = vand.u32 4294901760, %v1417_v34 }
  0x90   : > { %v405_v45 = vpop.permute.xlu0 %404  ;;  %v399_v46 = vpop.permute.xlu1 %398 }
  0x91   : > { %vm1305_vm5 = vcmp.eq.s32.totalorder %v405_v45, %v1300_v42  ;;  %vm1310_vm6 = vcmp.eq.s32.totalorder %v399_v46, %v1300_v42  ;;  %v246_v46 = vld [vmem:[%s1259_s4 + $0x38] sm:$0xff]  ;;  %v565_v4 = vsub.f32 %v1417_v34, %v1454_v50 }
  0x92   : > { %973 = vmatpush.msk.msra.mxu0 %vm1305_vm5, %v1179_v52  ;;  %989 = vmatpush.msk.msra.mxu3 %vm1305_vm5, %v1179_v52  ;;  %v437_v54 = vsel %vm1305_vm5, 1.0, %v1180_v53  ;;  %v435_v57 = vsel %vm1310_vm6, 1.0, %v1180_v53  ;;  %v372_v22 = vpop.permute.xlu2 %371 }
  0x93   : > { %446 = vxpose.xlu1.b32.cont [5/16] (narrow) %v342_v47, 32  ;;  %v523_v56 = vsub.f32 %v437_v54, %v437_v54  ;;  %v533_v63 = vsub.f32 %v435_v57, %v435_v57  ;;  %vm1443_vm0 = vcmp.eq.s32.totalorder %v372_v22, %v1300_v42  ;;  %v550_v47 = vsub.f32 %v548_v17, %v1415_v33 }
  0x94   : > { %v264_v54 = vadd.s32 64, %v1281_v19  ;;  %v426_v58 = vsel %vm1443_vm0, 1.0, %v1180_v53  ;;  %v566_v32 = vand.u32 4294901760, %v565_v4 }
  0x95   : > { %621 = vmatpush.msra.mxu2 %v523_v56  ;;  %v1334_v60 = vand.u32 4294901760, %v523_v56  ;;  %v1378_v15 = vand.u32 4294901760, %v533_v63 }
  0x97   : > { %v525_v0 = vsub.f32 %v523_v56, %v1334_v60  ;;  %v535_v28 = vsub.f32 %v533_v63, %v1378_v15  ;;  %v546_v56 = vand.u32 4294901760, %v545_v31 }
  0x98   : > { %v402_v1 = vpop.permute.xlu0 %401  ;;  %v396_v2 = vpop.permute.xlu1 %395 }
  0x99   : > { %vm1349_vm10 = vcmp.eq.s32.totalorder %v402_v1, %v1300_v42  ;;  %vm1354_vm11 = vcmp.eq.s32.totalorder %v396_v2, %v1300_v42  ;;  %v526_v8 = vand.u32 4294901760, %v525_v0  ;;  %v536_v43 = vand.u32 4294901760, %v535_v28 }
  0x9a   : > { %974 = vmatpush.msk.msra.mxu0 %vm1349_vm10, %v1179_v52  ;;  %990 = vmatpush.msk.msra.mxu3 %vm1349_vm10, %v1179_v52  ;;  %v436_v10 = vsel %vm1349_vm10, 1.0, %v1180_v53  ;;  %v434_v11 = vsel %vm1354_vm11, 1.0, %v1180_v53  ;;  %v363_v61 = vpop.permute.xlu2 %362 }
  0x9b   : > { %447 = vxpose.xlu1.b32.cont [6/16] (narrow) %v343_v3, 32  ;;  %v528_v13 = vsub.f32 %v436_v10, %v436_v10  ;;  %527 = vmatpush.msra.mxu1 %v526_v8  ;;  %v538_v14 = vsub.f32 %v434_v11, %v434_v11  ;;  %v551_v3 = vand.u32 4294901760, %v550_v47  ;;  %v578_v8 = vsub.f32 %v426_v58, %v426_v58 }
  0x9c   : > { %975 = vmatpush.msk.msra.mxu0 %vm1310_vm6, %v1179_v52  ;;  %991 = vmatpush.msk.msra.mxu3 %vm1310_vm6, %v1179_v52  ;;  %vm1495_vm4 = vcmp.eq.s32.totalorder %v363_v61, %v1300_v42 }
  0x9d   : > { %623 = vmatpush.msra.mxu2 %v528_v13  ;;  %v1391_v23 = vand.u32 4294901760, %v528_v13  ;;  %v1393_v24 = vand.u32 4294901760, %v538_v14  ;;  %v1513_v25 = vand.u32 4294901760, %v578_v8 }
  0x9e   : > { %976 = vmatpush.msk.msra.mxu0 %vm1354_vm11, %v1179_v52  ;;  %992 = vmatpush.msk.msra.mxu3 %vm1354_vm11, %v1179_v52 }
  0x9f   : > { %625 = vmatpush.msra.mxu2 %v533_v63  ;;  %v530_v27 = vsub.f32 %v528_v13, %v1391_v23  ;;  %v540_v38 = vsub.f32 %v538_v14, %v1393_v24  ;;  %v345_v63 = vsel %vm297_vm1, %v246_v46, 0.0  ;;  %v1818_v46 = vmov 0 }
  0xa0   : > { %v387_v29 = vpop.permute.xlu0 %386  ;;  %v384_v30 = vpop.permute.xlu1 %383  ;;  %977 = vmatpush.msk.msra.mxu0 %vm1316_vm7, %v1179_v52  ;;  %993 = vmatpush.msk.msra.mxu3 %vm1316_vm7, %v1179_v52 }
  0xa1   : > { %vm1420_vm14 = vcmp.eq.s32.totalorder %v387_v29, %v1300_v42  ;;  %vm1425_vm15 = vcmp.eq.s32.totalorder %v384_v30, %v1300_v42  ;;  %627 = vmatpush.msra.mxu2 %v538_v14  ;;  %v531_v37 = vand.u32 4294901760, %v530_v27  ;;  %v541_v55 = vand.u32 4294901760, %v540_v38 }
  0xa2   : > { %978 = vmatpush.msk.msra.mxu0 %vm1340_vm9, %v1179_v52  ;;  %994 = vmatpush.msk.msra.mxu3 %vm1340_vm9, %v1179_v52  ;;  %v431_v39 = vsel %vm1420_vm14, 1.0, %v1180_v53  ;;  %v430_v40 = vsel %vm1425_vm15, 1.0, %v1180_v53  ;;  %v265_v29 = vadd.s32 72, %v1281_v19  ;;  %v423_v30 = vsel %vm1495_vm4, 1.0, %v1180_v53 }
  0xa3   : > { %448 = vxpose.xlu1.b32.cont [7/16] (narrow) %v344_v26, 32  ;;  %532 = vmatpush.msra.mxu1 %v531_v37  ;;  %v553_v44 = vsub.f32 %v431_v39, %v431_v39  ;;  %v558_v45 = vsub.f32 %v430_v40, %v430_v40  ;;  %v247_v26 = vld [vmem:[%s1259_s4 + $0x40] sm:$0xff] }
  0xa4   : > { %629 = vmatpush.msra.mxu2 %v1346_v5  ;;  %979 = vmatpush.msk.msra.mxu0 %vm1420_vm14, %v1179_v52  ;;  %v282_v5 = vadd.s32 %v1283_v20, %v264_v54  ;;  %v283_v54 = vadd.s32 %v1283_v20, %v265_v29 }
  0xa5   : > { %995 = vmatpush.msk.msra.mxu3 %vm1420_vm14, %v1179_v52  ;;  %537 = vmatpush.msra.mxu1 %v536_v43  ;;  %v1460_v57 = vand.u32 4294901760, %v553_v44  ;;  %v1468_v59 = vand.u32 4294901760, %v558_v45  ;;  %v580_v43 = vsub.f32 %v578_v8, %v1513_v25 }
  0xa6   : > { %631 = vmatpush.msra.mxu2 %v548_v17  ;;  %980 = vmatpush.msk.msra.mxu0 %vm1425_vm15, %v1179_v52  ;;  %vm298_vm8 = vcmp.lt.s32.totalorder %v282_v5, 320  ;;  %v266_v5 = vadd.s32 80, %v1281_v19 }
  0xa7   : > { %996 = vmatpush.msk.msra.mxu3 %vm1425_vm15, %v1179_v52  ;;  %542 = vmatpush.msra.mxu1 %v541_v55  ;;  %v555_v0 = vsub.f32 %v553_v44, %v1460_v57  ;;  %v560_v16 = vsub.f32 %v558_v45, %v1468_v59  ;;  %v346_v39 = vsel %vm298_vm8, %v247_v26, 0.0  ;;  %vm299_vm8 = vcmp.lt.s32.totalorder %v283_v54, 320 }
  0xa8   : > { %633 = vmatpush.msra.mxu2 %v553_v44  ;;  %v378_v1 = vpop.permute.xlu0 %377  ;;  %v375_v2 = vpop.permute.xlu1 %374  ;;  %981 = vmatpush.msk.msra.mxu0 %vm1374_vm12, %v1179_v52  ;;  %v593_v44 = vsub.f32 %v423_v30, %v423_v30  ;;  %v284_v29 = vadd.s32 %v1283_v20, %v266_v5 }
  0xa9   : > { %vm1482_vm2 = vcmp.eq.s32.totalorder %v378_v1, %v1300_v42  ;;  %vm1487_vm3 = vcmp.eq.s32.totalorder %v375_v2, %v1300_v42  ;;  %997 = vmatpush.msk.msra.mxu3 %vm1374_vm12, %v1179_v52  ;;  %547 = vmatpush.msra.mxu1 %v546_v56  ;;  %v556_v13 = vand.u32 4294901760, %v555_v0  ;;  %v561_v31 = vand.u32 4294901760, %v560_v16  ;;  %v248_v2 = vld [vmem:[%s1259_s4 + $0x48] sm:$0xff] }
  0xaa   : > { %635 = vmatpush.msra.mxu2 %v558_v45  ;;  %982 = vmatpush.msk.msra.mxu0 %vm1482_vm2, %v1179_v52  ;;  %v428_v14 = vsel %vm1482_vm2, 1.0, %v1180_v53  ;;  %v427_v17 = vsel %vm1487_vm3, 1.0, %v1180_v53  ;;  %v581_v0 = vand.u32 4294901760, %v580_v43  ;;  %v1563_v1 = vand.u32 4294901760, %v593_v44 }
  0xab   : > { %998 = vmatpush.msk.msra.mxu3 %vm1482_vm2, %v1179_v52  ;;  %449 = vxpose.xlu1.b32.cont [8/16] (narrow) %v345_v63, 32  ;;  %v568_v21 = vsub.f32 %v428_v14, %v428_v14  ;;  %v573_v22 = vsub.f32 %v427_v17, %v427_v17  ;;  %v347_v16 = vsel %vm299_vm8, %v248_v2, 0.0  ;;  %vm300_vm8 = vcmp.lt.s32.totalorder %v284_v29, 320 }
  0xac   : > { %552 = vmatpush.msra.mxu1 %v551_v3  ;;  %637 = vmatpush.msra.mxu2 %v1417_v34  ;;  %v595_v17 = vsub.f32 %v593_v44, %v1563_v1 }
  0xad   : > { %983 = vmatpush.msk.msra.mxu0 %vm1487_vm3, %v1179_v52  ;;  %999 = vmatpush.msk.msra.mxu3 %vm1487_vm3, %v1179_v52  ;;  %v1522_v27 = vand.u32 4294901760, %v568_v21  ;;  %v1524_v28 = vand.u32 4294901760, %v573_v22 }
  0xae   : > { %557 = vmatpush.msra.mxu1 %v556_v13  ;;  %639 = vmatpush.msra.mxu2 %v568_v21 }
  0xaf   : > { %984 = vmatpush.msk.msra.mxu0 %vm1443_vm0, %v1179_v52  ;;  %1000 = vmatpush.msk.msra.mxu3 %vm1443_vm0, %v1179_v52  ;;  %v570_v34 = vsub.f32 %v568_v21, %v1522_v27  ;;  %v575_v40 = vsub.f32 %v573_v22, %v1524_v28 }
  0xb0   : > { %562 = vmatpush.msra.mxu1 %v561_v31  ;;  %641 = vmatpush.msra.mxu2 %v573_v22  ;;  %v369_v37 = vpop.permute.xlu0 %368  ;;  %v366_v38 = vpop.permute.xlu1 %365  ;;  %v596_v31 = vand.u32 4294901760, %v595_v17 }
  0xb1   : > { %vm1541_vm13 = vcmp.eq.s32.totalorder %v369_v37, %v1300_v42  ;;  %vm1546_vm1 = vcmp.eq.s32.totalorder %v366_v38, %v1300_v42  ;;  %v571_v47 = vand.u32 4294901760, %v570_v34  ;;  %v576_v63 = vand.u32 4294901760, %v575_v40 }
  0xb2   : > { %v1819_v46 = vsel %vm1546_vm1, 4294967295, %v1818_v46  ;;  %567 = vmatpush.msra.mxu1 %v566_v32  ;;  %985 = vmatpush.msk.msra.mxu0 %vm1541_vm13, %v1179_v52  ;;  %v425_v55 = vsel %vm1541_vm13, 1.0, %v1180_v53  ;;  %v424_v56 = vsel %vm1546_vm1, 1.0, %v1180_v53  ;;  %v267_v37 = vadd.s32 88, %v1281_v19 }
  0xb3   : > { %1001 = vmatpush.msk.msra.mxu3 %vm1541_vm13, %v1179_v52  ;;  %450 = vxpose.xlu1.b32.cont [9/16] (narrow) %v346_v39, 32  ;;  %v583_v58 = vsub.f32 %v425_v55, %v425_v55  ;;  %v588_v61 = vsub.f32 %v424_v56, %v424_v56 }
  0xb4   : > { %572 = vmatpush.msra.mxu1 %v571_v47  ;;  %643 = vmatpush.msra.mxu2 %v578_v8 }
  0xb5   : > { %986 = vmatpush.msk.msra.mxu0 %vm1546_vm1, %v1179_v52  ;;  %1002 = vmatpush.msk.msra.mxu3 %vm1546_vm1, %v1179_v52  ;;  %v1572_v3 = vand.u32 4294901760, %v583_v58  ;;  %v1574_v4 = vand.u32 4294901760, %v588_v61 }
  0xb6   : > { %577 = vmatpush.msra.mxu1 %v576_v63  ;;  %645 = vmatpush.msra.mxu2 %v583_v58 }
  0xb7   : > { %987 = vmatpush.msk.msra.mxu0 %vm1495_vm4, %v1179_v52  ;;  %1003 = vmatpush.msk.msra.mxu3 %vm1495_vm4, %v1179_v52  ;;  %v585_v8 = vsub.f32 %v583_v58, %v1572_v3  ;;  %v590_v13 = vsub.f32 %v588_v61, %v1574_v4 }
  0xb8   : > { %647 = vmatpush.msra.mxu2 %v588_v61  ;;  %v360_v14 = vpop.permute.xlu0 %359  ;;  %582 = vmatpush.msra.mxu1 %v581_v0 }
  0xb9   : > { %vm1587_vm1 = vcmp.eq.s32.totalorder %v360_v14, %v1300_v42  ;;  %v586_v22 = vand.u32 4294901760, %v585_v8  ;;  %v591_v42 = vand.u32 4294901760, %v590_v13 }
  0xba   : > { %988 = vmatpush.msk.msra.mxu0 %vm1587_vm1, %v1179_v52  ;;  %1004 = vmatpush.msk.msra.mxu3 %vm1587_vm1, %v1179_v52  ;;  %v422_v26 = vsel %vm1587_vm1, 1.0, %v1180_v53  ;;  %v249_v53 = vld [vmem:[%s1259_s4 + $0x50] sm:$0xff] }
  0xbb   : > { %451 = vxpose.xlu1.b32.cont [10/16] (narrow) %v347_v16, 32  ;;  %587 = vmatpush.msra.mxu1 %v586_v22  ;;  %v598_v30 = vsub.f32 %v422_v26, %v422_v26  ;;  %v348_v38 = vsel %vm300_vm8, %v249_v53, 0.0 }
  0xbc   : > { %649 = vmatpush.msra.mxu2 %v593_v44  ;;  %716 = vmatpush.msrb.mxu0 %v1334_v60 }
  0xbd   : > { %1042 = vmatpush.msk.msrb.mxu3 %vm1305_vm5, %v1179_v52  ;;  %592 = vmatpush.msra.mxu1 %v591_v42  ;;  %v1605_v32 = vand.u32 4294901760, %v598_v30 }
  0xbe   : > { %651 = vmatpush.msra.mxu2 %v598_v30  ;;  %719 = vmatpush.msrb.mxu0 %v1391_v23 }
  0xbf   : > { %1043 = vmatpush.msk.msrb.mxu3 %vm1349_vm10, %v1179_v52  ;;  %v600_v34 = vsub.f32 %v598_v30, %v1605_v32  ;;  %597 = vmatpush.msra.mxu1 %v596_v31 }
  0xc0   : > { %1026 = vmatpush.msrb.mxu2 %v1334_v60  ;;  %722 = vmatpush.msrb.mxu0 %v1378_v15  ;;  %v285_v60 = vadd.s32 %v1283_v20, %v267_v37 }
  0xc1   : > { %1044 = vmatpush.msk.msrb.mxu3 %vm1310_vm6, %v1179_v52  ;;  %v601_v39 = vand.u32 4294901760, %v600_v34 }
  0xc2   : > { %1027 = vmatpush.msrb.mxu2 %v1391_v23  ;;  %725 = vmatpush.msrb.mxu0 %v1393_v24  ;;  %vm301_vm8 = vcmp.lt.s32.totalorder %v285_v60, 320  ;;  %v268_v23 = vadd.s32 96, %v1281_v19 }
  0xc3   : > { %1045 = vmatpush.msk.msrb.mxu3 %vm1354_vm11, %v1179_v52  ;;  %452 = vxpose.xlu1.b32.cont [11/16] (narrow) %v348_v38, 32 }
  0xc4   : > { %1028 = vmatpush.msrb.mxu2 %v1378_v15  ;;  %602 = vmatpush.msra.mxu1 %v601_v39  ;;  %v250_v15 = vld [vmem:[%s1259_s4 + $0x58] sm:$0xff]  ;;  %v286_v6 = vadd.s32 %v1283_v20, %v268_v23 }
  0xc5   : > { %728 = vmatpush.msrb.mxu0 %v1388_v18  ;;  %1046 = vmatpush.msk.msrb.mxu3 %vm1316_vm7, %v1179_v52  ;;  %v349_v48 = vsel %vm301_vm8, %v250_v15, 0.0 }
  0xc6   : > { %1029 = vmatpush.msrb.mxu2 %v1393_v24  ;;  %1005 = vmatpush.msk.msrb.mxu1 %vm1305_vm5, %v1179_v52  ;;  %vm302_vm5 = vcmp.lt.s32.totalorder %v286_v6, 320  ;;  %v270_v24 = vadd.s32 112, %v1281_v19 }
  0xc7   : > { %731 = vmatpush.msrb.mxu0 %v1415_v33  ;;  %1047 = vmatpush.msk.msrb.mxu3 %vm1340_vm9, %v1179_v52  ;;  %v350_v51 = vsel %vm302_vm5, %v251_v49, 0.0 }
  0xc8   : > { %1030 = vmatpush.msrb.mxu2 %v1388_v18  ;;  %1006 = vmatpush.msk.msrb.mxu1 %vm1349_vm10, %v1179_v52  ;;  %v287_v18 = vadd.s32 %v1283_v20, %v269_v7  ;;  %v288_v12 = vadd.s32 %v1283_v20, %v270_v24  ;;  %vm305_vm10 = vcmp.lt.s32.totalorder %v289_v41, 320 }
  0xc9   : > { %734 = vmatpush.msrb.mxu0 %v1460_v57  ;;  %1048 = vmatpush.msk.msrb.mxu3 %vm1420_vm14, %v1179_v52 }
  0xca   : > { %1031 = vmatpush.msrb.mxu2 %v1415_v33  ;;  %1007 = vmatpush.msk.msrb.mxu1 %vm1310_vm6, %v1179_v52  ;;  %vm303_vm6 = vcmp.lt.s32.totalorder %v287_v18, 320 }
  0xcb   : > { %737 = vmatpush.msrb.mxu0 %v1468_v59  ;;  %1049 = vmatpush.msk.msrb.mxu3 %vm1425_vm15, %v1179_v52  ;;  %v351_v33 = vsel %vm303_vm6, %v252_v62, 0.0 }
  0xcc   : > { %1032 = vmatpush.msrb.mxu2 %v1460_v57  ;;  %1008 = vmatpush.msk.msrb.mxu1 %vm1354_vm11, %v1179_v52  ;;  %v254_v57 = vld [vmem:[%s1259_s4 + $0x78] sm:$0xff] }
  0xcd   : > { %453 = vxpose.xlu1.b32.cont [12/16] (narrow) %v349_v48, 32  ;;  %740 = vmatpush.msrb.mxu0 %v1454_v50  ;;  %v353_v19 = vsel %vm305_vm10, %v254_v57, 0.0 }
  0xce   : > { %1050 = vmatpush.msk.msrb.mxu3 %vm1374_vm12, %v1179_v52  ;;  %1033 = vmatpush.msrb.mxu2 %v1468_v59 }
  0xcf   : > { %1009 = vmatpush.msk.msrb.mxu1 %vm1316_vm7, %v1179_v52  ;;  %743 = vmatpush.msrb.mxu0 %v1522_v27  ;;  %vm1822_vm7 = vnez %v1819_v46 }
  0xd0   : > { %1051 = vmatpush.msk.msrb.mxu3 %vm1482_vm2, %v1179_v52  ;;  %1034 = vmatpush.msrb.mxu2 %v1454_v50 }
  0xd1   : > { %1010 = vmatpush.msk.msrb.mxu1 %vm1340_vm9, %v1179_v52  ;;  %746 = vmatpush.msrb.mxu0 %v1524_v28  ;;  %vm304_vm9 = vcmp.lt.s32.totalorder %v288_v12, 320  ;;  %v440_v12 = vld [vmem:[#allocation2 + $0x18] sm:$0xff] }
  0xd2   : > { %1052 = vmatpush.msk.msrb.mxu3 %vm1487_vm3, %v1179_v52  ;;  %1035 = vmatpush.msrb.mxu2 %v1522_v27  ;;  %v352_v50 = vsel %vm304_vm9, %v253_v35, 0.0 }
  0xd3   : > { %1011 = vmatpush.msk.msrb.mxu1 %vm1420_vm14, %v1179_v52  ;;  %749 = vmatpush.msrb.mxu0 %v1513_v25 }
  0xd4   : > { %1053 = vmatpush.msk.msrb.mxu3 %vm1443_vm0, %v1179_v52  ;;  %1036 = vmatpush.msrb.mxu2 %v1524_v28 }
  0xd5   : > { %1012 = vmatpush.msk.msrb.mxu1 %vm1425_vm15, %v1179_v52  ;;  %454 = vxpose.xlu1.b32.cont [13/16] (narrow) %v350_v51, 32  ;;  %v438_v51 = vld [vmem:[#allocation2 + $0x10] sm:$0xff] }
  0xd6   : > { %752 = vmatpush.msrb.mxu0 %v1572_v3  ;;  %1054 = vmatpush.msk.msrb.mxu3 %vm1541_vm13, %v1179_v52 }
  0xd7   : > { %1037 = vmatpush.msrb.mxu2 %v1513_v25  ;;  %1013 = vmatpush.msk.msrb.mxu1 %vm1374_vm12, %v1179_v52 }
  0xd8   : > { %755 = vmatpush.msrb.mxu0 %v1574_v4  ;;  %1055 = vmatpush.msk.msrb.mxu3 %vm1822_vm7, %v1179_v52 }
  0xd9   : > { %1038 = vmatpush.msrb.mxu2 %v1572_v3  ;;  %1014 = vmatpush.msk.msrb.mxu1 %vm1482_vm2, %v1179_v52 }
  0xda   : > { %1056 = vmatpush.msk.msrb.mxu3 %vm1495_vm4, %v1179_v52  ;;  %758 = vmatpush.msrb.mxu0 %v1563_v1 }
  0xdb   : > { %1039 = vmatpush.msrb.mxu2 %v1574_v4  ;;  %1015 = vmatpush.msk.msrb.mxu1 %vm1487_vm3, %v1179_v52 }
  0xdc   : > { %1057 = vmatpush.msk.msrb.mxu3 %vm1587_vm1, %v1179_v52  ;;  %761 = vmatpush.msrb.mxu0 %v1605_v32 }
  0xdd   : > { %1016 = vmatpush.msk.msrb.mxu1 %vm1443_vm0, %v1179_v52  ;;  %455 = vxpose.xlu1.b32.cont [14/16] (narrow) %v351_v33, 32 }
  0xde   : > { %1040 = vmatpush.msrb.mxu2 %v1563_v1 }
  0xdf   : > { %1017 = vmatpush.msk.msrb.mxu1 %vm1541_vm13, %v1179_v52 }
  0xe0   : > { %1041 = vmatpush.msrb.mxu2 %v1605_v32 }
  0xe1   : > { %1018 = vmatpush.msk.msrb.mxu1 %vm1822_vm7, %v1179_v52 }
  0xe3   : > { %1019 = vmatpush.msk.msrb.mxu1 %vm1495_vm4, %v1179_v52 }
  0xe5   : > { %456 = vxpose.xlu1.b32.cont [15/16] (narrow) %v352_v50, 32  ;;  %1020 = vmatpush.msk.msrb.mxu1 %vm1587_vm1, %v1179_v52 }
  0xed   : > { %457 = vxpose.xlu1.b32.end [16/16] (narrow) %v353_v19, 32 }
 0x119   : > { %v458_v59 = vpop.trf.xlu1 }
 0x11a   : > { %v490_v9 = vand.u32 4294901760, %v458_v59 }
 0x11c   : > { %v491_v10 = vsub.f32 %v458_v59, %v490_v9  ;;  %604 = vmatmul.f32.vlgmr.msra.gmra.mxu1 %v490_v9 }
 0x11e   : > { %654 = vmatmul.f32.vlgmr.msra.gmra.mxu2 %v491_v10  ;;  %v492_v25 = vand.u32 4294901760, %v491_v10 }
 0x120   : > { %692 = vmatmul.f32.vlgmr.msra.gmra.mxu3 %v492_v25  ;;  %v493_v20 = vsub.f32 %v491_v10, %v492_v25 }
 0x121   : > { %v459_v27 = vpop.trf.xlu1 }
 0x122   : > { %v498_v11 = vand.u32 4294901760, %v459_v27  ;;  %v494_v28 = vand.u32 4294901760, %v493_v20  ;;  %v439_v20 = vld [vmem:[#allocation2] sm:$0xff] }
 0x124   : > { %v499_v40 = vsub.f32 %v459_v27, %v498_v11  ;;  %495 = vmatmul.f32.vlgmr.msra.gmra.mxu0 %v494_v28  ;;  %608 = vmatmul.f32.gmra.mxu1 %v498_v11 }
 0x126   : > { %659 = vmatmul.f32.gmra.mxu2 %v499_v40  ;;  %v500_v52 = vand.u32 4294901760, %v499_v40 }
 0x128   : > { %698 = vmatmul.f32.gmra.mxu3 %v500_v52  ;;  %v501_v43 = vsub.f32 %v499_v40, %v500_v52  ;;  %v441_v40 = vld [vmem:[#allocation2 + $0x8] sm:$0xff] }
 0x129   : > { %v460_v44 = vpop.trf.xlu1 }
 0x12a   : > { %v506_v45 = vand.u32 4294901760, %v460_v44  ;;  %v502_v46 = vand.u32 4294901760, %v501_v43 }
 0x12c   : > { %v507_v47 = vsub.f32 %v460_v44, %v506_v45  ;;  %503 = vmatmul.f32.gmra.mxu0 %v502_v46  ;;  %612 = vmatmul.f32.gmra.mxu1 %v506_v45 }
 0x12e   : > { %664 = vmatmul.f32.gmra.mxu2 %v507_v47  ;;  %v508_v54 = vand.u32 4294901760, %v507_v47 }
 0x130   : > { %704 = vmatmul.f32.gmra.mxu3 %v508_v54  ;;  %v509_v55 = vsub.f32 %v507_v47, %v508_v54 }
 0x131   : > { %v461_v56 = vpop.trf.xlu1 }
 0x132   : > { %v514_v58 = vand.u32 4294901760, %v461_v56  ;;  %v510_v61 = vand.u32 4294901760, %v509_v55 }
 0x134   : > { %v515_v63 = vsub.f32 %v461_v56, %v514_v58  ;;  %511 = vmatmul.f32.gmra.mxu0 %v510_v61  ;;  %616 = vmatmul.f32.gmra.mxu1 %v514_v58 }
 0x136   : > { %669 = vmatmul.f32.gmra.mxu2 %v515_v63  ;;  %v516_v0 = vand.u32 4294901760, %v515_v63 }
 0x138   : > { %710 = vmatmul.f32.gmra.mxu3 %v516_v0  ;;  %v517_v1 = vsub.f32 %v515_v63, %v516_v0 }
 0x13a   : > { %v518_v2 = vand.u32 4294901760, %v517_v1 }
 0x13c   : > { %519 = vmatmul.f32.gmra.mxu0 %v518_v2  ;;  %796 = vmatmul.f32.vlgmr.msrb.gmra.mxu1 %v490_v9 }
 0x13e   : > { %771 = vmatmul.f32.vlgmr.msrb.gmra.mxu2 %v506_v45 }
 0x140   : > { %804 = vmatmul.f32.vlgmr.msrb.gmra.mxu3 %v506_v45 }
 0x144   : > { %763 = vmatmul.f32.vlgmr.msrb.gmra.mxu0 %v490_v9  ;;  %800 = vmatmul.f32.gmra.mxu1 %v498_v11 }
 0x146   : > { %775 = vmatmul.f32.gmra.mxu2 %v514_v58 }
 0x148   : > { %808 = vmatmul.f32.gmra.mxu3 %v514_v58 }
 0x14c   : > { %767 = vmatmul.f32.gmra.mxu0 %v498_v11 }
 0x199   : > { %v605_v3 = vpop.f32.mrf.mxu1 }
 0x1a1   : > { %v496_v4 = vpop.f32.mrf.mxu0  ;;  %v655_v5 = vpop.f32.mrf.mxu2 }
 0x1a2   : > { %v609_v8 = vpop.f32.mrf.mxu1  ;;  %v606_v30 = vadd.f32 %v605_v3, %v496_v4 }
 0x1a3   : > { %v693_v13 = vpop.f32.mrf.mxu3 }
 0x1a4   : > { %v656_v37 = vadd.f32 %v655_v5, %v606_v30 }
 0x1a6   : > { %v694_v39 = vadd.f32 %v693_v13, %v656_v37 }
 0x1a9   : > { %v504_v14 = vpop.f32.mrf.mxu0  ;;  %v660_v16 = vpop.f32.mrf.mxu2 }
 0x1aa   : > { %v613_v21 = vpop.f32.mrf.mxu1  ;;  %v610_v60 = vadd.f32 %v609_v8, %v504_v14 }
 0x1ab   : > { %v699_v17 = vpop.f32.mrf.mxu3 }
 0x1ac   : > { %v661_v24 = vadd.f32 %v660_v16, %v610_v60 }
 0x1ae   : > { %v700_v57 = vadd.f32 %v699_v17, %v661_v24 }
 0x1b1   : > { %v512_v22 = vpop.f32.mrf.mxu0  ;;  %v665_v26 = vpop.f32.mrf.mxu2 }
 0x1b2   : > { %v617_v42 = vpop.f32.mrf.mxu1  ;;  %v614_v31 = vadd.f32 %v613_v21, %v512_v22 }
 0x1b3   : > { %v705_v29 = vpop.f32.mrf.mxu3 }
 0x1b4   : > { %v666_v38 = vadd.f32 %v665_v26, %v614_v31 }
 0x1b6   : > { %v706_v15 = vadd.f32 %v705_v29, %v666_v38 }
 0x1b9   : > { %v520_v32 = vpop.f32.mrf.mxu0  ;;  %v670_v53 = vpop.f32.mrf.mxu2 }
 0x1ba   : > { %v618_v23 = vadd.f32 %v617_v42, %v520_v32  ;;  %v797_v48 = vpop.f32.mrf.mxu1 }
 0x1bb   : > { %v711_v34 = vpop.f32.mrf.mxu3 }
 0x1bc   : > { %v671_v35 = vadd.f32 %v670_v53, %v618_v23 }
 0x1be   : > { %v712_v19 = vadd.f32 %v711_v34, %v671_v35 }
 0x1c1   : > { %v764_v6 = vpop.f32.mrf.mxu0  ;;  %v772_v7 = vpop.f32.mrf.mxu2 }
 0x1c2   : > { %v765_v49 = vadd.f32 %v764_v6, %v694_v39  ;;  %v773_v18 = vadd.f32 %v772_v7, %v706_v15  ;;  %v801_v25 = vpop.f32.mrf.mxu1 }
 0x1c3   : > { %v805_v62 = vpop.f32.mrf.mxu3 }
 0x1c4   : > { %v798_v33 = vadd.f32 %v797_v48, %v765_v49  ;;  %v806_v36 = vadd.f32 %v805_v62, %v773_v18 }
 0x1c6   : > { %v812_v50 = vadd.f32 %v798_v33, %v438_v51  ;;  %v814_v41 = vadd.f32 %v806_v36, %v440_v12 }
 0x1c8   : > { %816 = vst [vmem:[#allocation2 + $0x10] sm:$0xff] %v812_v50 }
 0x1c9   : > { %818 = vst [vmem:[#allocation2 + $0x18] sm:$0xff] %v814_v41  ;;  %v768_v59 = vpop.f32.mrf.mxu0  ;;  %v776_v10 = vpop.f32.mrf.mxu2 }
 0x1ca   : > { %v769_v9 = vadd.f32 %v768_v59, %v700_v57  ;;  %v777_v27 = vadd.f32 %v776_v10, %v712_v19 }
 0x1cb   : > { %v809_v11 = vpop.f32.mrf.mxu3 }
 0x1cc   : > { %v802_v28 = vadd.f32 %v801_v25, %v769_v9  ;;  %v810_v52 = vadd.f32 %v809_v11, %v777_v27 }
 0x1cd   : > { %823 = sbr.rel (%p1021_p11) target bundleno = 474 (0x1da), region = 36 }
 0x1ce   : > { %v813_v43 = vadd.f32 %v802_v28, %v439_v20  ;;  %v815_v44 = vadd.f32 %v810_v52, %v441_v40 }
 0x1d0   : > { %817 = vst [vmem:[#allocation2] sm:$0xff] %v813_v43 }
 0x1d1   : > { %819 = vst [vmem:[#allocation2 + $0x8] sm:$0xff] %v815_v44 }
 0x1d2   : > { %v824_v45 = vld [vmem:[#allocation2 + $0x10] sm:$0xff]  ;;  %v826_v47 = vld [vmem:[#allocation2 + $0x18] sm:$0xff] }
 0x1d3   : > { %828 = vst [vmem:[%s1261_s5] sm:$0xff] %v824_v45 }
 0x1d4   : > { %830 = vst [vmem:[%s1261_s5 + $0x10] sm:$0xff] %v826_v47 }
 0x1d7   : > { %v825_v46 = vld [vmem:[#allocation2] sm:$0xff] }
 0x1d8   : > { %v827_v54 = vld [vmem:[#allocation2 + $0x8] sm:$0xff]  ;;  %829 = vst [vmem:[%s1261_s5 + $0x8] sm:$0xff] %v825_v46 }
 0x1d9   : > { %831 = vst [vmem:[%s1261_s5 + $0x18] sm:$0xff] %v827_v54 }
 0x1da PF: > { %838 = sbr.rel (!%p1238_p6) target bundleno = 482 (0x1e2), region = 40  ;;  %s1023_s8 = sshll.u32 (%p1238_p6), %s1163_s12, 3  ;;  %v875_v55 = vld [vmem:[%s1261_s5] sm:$0xff] (%p1238_p6) }
 0x1db   : > { %s840_s18 = scalar_lea.vmem (%p1238_p6), %s1786_s2, %s1023_s8  ;;  %v879_v58 = vld [vmem:[%s1261_s5 + $0x10] sm:$0xff] (%p1238_p6) }
 0x1dc   : > { %876 = vst [vmem:[%s840_s18] sm:$0xff] (%p1238_p6), %v875_v55 }
 0x1dd   : > { %880 = vst [vmem:[%s840_s18 + $0x20] sm:$0xff] (%p1238_p6), %v879_v58 }
 0x1df   : > { %v877_v56 = vld [vmem:[%s1261_s5 + $0x8] sm:$0xff] }
 0x1e0   : > { %v881_v61 = vld [vmem:[%s1261_s5 + $0x18] sm:$0xff]  ;;  %878 = vst [vmem:[%s840_s18 + $0x10] sm:$0xff] %v877_v56 }
 0x1e1   : > { %882 = vst [vmem:[%s840_s18 + $0x30] sm:$0xff] %v881_v61 }
 0x1e2 PF: > { %s12_s15 = sadd.s32 1, %s1175_s15   ;;  %s1823_s9 = smov %s1155_s10 }
 0x1e3   : > { %p9_p12 = scmp.ge.s32.totalorder %s12_s15, 8   ;;  %s1824_s10 = smov %s1248_s22 }
 0x1e4   : > { %s1825_s11 = smov %s1167_s13  ;;  %s1826_s12 = smov %s1171_s14 }
 0x1e5   : > { %s1827_s13 = smov %s1830_s16  ;;  %s1828_s14 = smov %s1834_s17 }
 0x1e6   :  { %11 = sbr.rel (!%p9_p12) target bundleno = 4 (0x4), region = 107 }

// kernel: interaction_gnn_cell.4
= control target key start
LH: loop header
LB: loop body
LE: loop exit
PB: predicated region body
PF: predicated region fallthrough
CT: control target
= control target key end

     0   :  { %s3858_s17 = smov 0   ;;  %s3860_s18 = smov 0   ;;  %s5612_s0 = inlined_call_operand.vmem [shape: f32[256,32], index: 0, kind: input, shape index: {}]   ;;  %s5613_s1 = inlined_call_operand.vmem [shape: f32[32,256], index: 1, kind: input, shape index: {}]   ;;  %s5614_s2 = inlined_call_operand.vmem [shape: f32[32,64], index: 2, kind: input, shape index: {}]   ;;  %s5615_s3 = inlined_call_operand.vmem [shape: f32[32,64], index: 3, kind: input, shape index: {}]   ;;  %s5616_s4 = inlined_call_operand.vmem [shape: f32[1,64], index: 4, kind: input, shape index: {}]   ;;  %s5617_s5 = inlined_call_operand.vmem [shape: f32[1,64], index: 5, kind: input, shape index: {}]   ;;  %s5618_s6 = inlined_call_operand.vmem [shape: f32[1,64], index: 6, kind: input, shape index: {}]   ;;  %s5619_s7 = inlined_call_operand.vmem [shape: f32[64,32], index: 7, kind: input, shape index: {}]   ;;  %s5620_s8 = inlined_call_operand.vmem [shape: f32[1,32], index: 8, kind: input, shape index: {}]   ;;  %s5621_s9 = inlined_call_operand.vmem [shape: f32[1,32], index: 9, kind: input, shape index: {}]   ;;  %s5622_s10 = inlined_call_operand.vmem [shape: f32[1,32], index: 10, kind: input, shape index: {}]   ;;  %s5623_s11 = inlined_call_operand.vmem [shape: f32[256,32], index: 11, kind: output, shape index: {}]  }
   0x1   :  { %s3862_s19 = smov 0  }
   0x2 LB: > { %s3633_s20 = sadd.s32 4294967295, %s3794_s19   ;;  %s3875_s21 = sadd.s32 1, %s3794_s19   ;;  %s3794_s19 = sphi %s3862_s19, %s5657_s19   ;;  %s3790_s18 = sphi %s3860_s18, %s5656_s18   ;;  %s3786_s17 = sphi %s3858_s17, %s5655_s17  }
   0x3   : > { %s51_s22 = ssub.s32 %s3794_s19, %s3875_s21  ;;  %s54_s23 = sadd.s32 1, %s3790_s18 }
   0x4   : > { %p52_p0 = scmp.eq.s32.totalorder %s51_s22, 0  ;;  %p61_p1 = scmp.ne.s32.totalorder %s3790_s18, %s3786_s17 }
   0x5   : > { %p62_p2 = scmp.eq.s32.totalorder %s3794_s19, 0  ;;  %p3636_p4 = scmp.ge.s32.totalorder %s3794_s19, 2 }
   0x6   : > { %s3884_s24 = scalar_select %p52_p0, %s3790_s18, %s54_s23  }
   0x7   : > { %p63_p3 = por %p62_p2, %p61_p1  ;;  %329 = sbr.rel (%p3636_p4) target bundleno = 20 (0x14), region = 52 }
   0xc   : > { %341 = sbr.rel (!%p63_p3) target bundleno = 20 (0x14), region = 60  ;;  %s343_s25 = sand.u32 (%p63_p3), 1, %s3790_s18  }
   0xd   : > { %s3638_s26 = sshll.u32 (%p63_p3), %s3794_s19, 3  ;;  %s3637_s27 = sshll.u32 (%p63_p3), %s343_s25, 5 }
   0xe   : > { %s347_s30 = scalar_lea.vmem (%p63_p3), %s5613_s1, %s3638_s26  ;;  %s345_s12 = scalar_lea.vmem (%p63_p3), [#allocation2], %s3637_s27 }
   0xf   : > { %v382_v0 = vld [vmem:[%s347_s30] sm:$0xff] (%p63_p3)  ;;  %v384_v1 = vld [vmem:[%s347_s30 + $0x10] sm:$0xff] (%p63_p3) }
  0x10   : > { %v386_v2 = vld [vmem:[%s347_s30 + $0x20] sm:$0xff] (%p63_p3)  ;;  %383 = vst [vmem:[%s345_s12] sm:$0xff] (%p63_p3), %v382_v0  ;;  %v388_v3 = vld [vmem:[%s347_s30 + $0x30] sm:$0xff] (%p63_p3) }
  0x11   : > { %385 = vst [vmem:[%s345_s12 + $0x8] sm:$0xff] %v384_v1 }
  0x12   : > { %387 = vst [vmem:[%s345_s12 + $0x10] sm:$0xff] %v386_v2 }
  0x13   : > { %389 = vst [vmem:[%s345_s12 + $0x18] sm:$0xff] %v388_v3 }
  0x14 PF: > { %p3639_p5 = scmp.ge.s32.totalorder %s3794_s19, 1  ;;  %p394_p6 = scmp.lt.s32.totalorder %s3794_s19, 3 }
  0x16   : > { %p395_p7 = pnand %p3639_p5, %p394_p6 }
  0x18   : > { %398 = sbr.rel (%p395_p7) target bundleno = 1738 (0x6ca), region = 98 }
  0x1d   : > { %s401_s13 = sand.u32 1, %s3786_s17   ;;  %v484_v4 = vld [vmem:[%s5615_s3 + $0x18] sm:$0xff]  ;;  %v483_v5 = vld [vmem:[%s5615_s3 + $0x10] sm:$0xff]  ;;  %v482_v20 = vld [vmem:[%s5615_s3 + $0x8] sm:$0xff]  ;;  %vm517_vm0 = vcmask 261120   ;;  %vm1936_vm1 = vcmask 523264  }
  0x1e   : > { %s3640_s23 = sshll.u32 %s401_s13, 5  ;;  %v578_v6 = vand.u32 4294901760, %v484_v4  ;;  %v580_v7 = vand.u32 4294901760, %v483_v5  ;;  %v582_v21 = vand.u32 4294901760, %v482_v20  ;;  %v481_v22 = vld [vmem:[%s5615_s3] sm:$0xff] }
  0x1f   : > { %s403_s25 = scalar_lea.vmem [#allocation2], %s3640_s23  ;;  %v584_v24 = vand.u32 4294901760, %v481_v22  ;;  %s3641_s23 = sshll.u32 %s3633_s20, 4 }
  0x20   : > { %v473_v8 = vld [vmem:[%s403_s25] sm:$0xff]  ;;  %v728_v9 = vsub.f32 %v484_v4, %v578_v6  ;;  %v734_v10 = vsub.f32 %v483_v5, %v580_v7  ;;  %579 = vmatpush.msra.mxu0 %v578_v6  ;;  %3647 = vmatpush.msra.mxu2 %v578_v6  ;;  %v474_v15 = vld [vmem:[%s403_s25 + $0x8] sm:$0xff]  ;;  %v475_v18 = vld [vmem:[%s403_s25 + $0x10] sm:$0xff]  ;;  %v740_v23 = vsub.f32 %v482_v20, %v582_v21  ;;  %p446_p8 = scmp.lt.s32.totalorder %s3641_s23, 31 }
  0x21   : > { %485 = vxpose.xlu0.b32.start [1/4] (short) %v473_v8, 128  ;;  %v476_v19 = vld [vmem:[%s403_s25 + $0x18] sm:$0xff]  ;;  %v746_v26 = vsub.f32 %v481_v22, %v584_v24 }
  0x22   : > { %v729_v11 = vand.u32 4294901760, %v728_v9  ;;  %v735_v12 = vand.u32 4294901760, %v734_v10  ;;  %581 = vmatpush.msra.mxu0 %v580_v7  ;;  %3648 = vmatpush.msra.mxu2 %v580_v7  ;;  %v741_v25 = vand.u32 4294901760, %v740_v23  ;;  %s5659_s23 = smov (!%p446_p8, %s3641_s23), 31 }
  0x23   : > { %v747_v28 = vand.u32 4294901760, %v746_v26  ;;  %s3642_s19 = sshll.u32 %s5659_s23, 3 }
  0x24   : > { %v730_v13 = vsub.f32 %v728_v9, %v729_v11  ;;  %v736_v14 = vsub.f32 %v734_v10, %v735_v12  ;;  %583 = vmatpush.msra.mxu0 %v582_v21  ;;  %3649 = vmatpush.msra.mxu2 %v582_v21  ;;  %v742_v27 = vsub.f32 %v740_v23, %v741_v25  ;;  %s4209_s17 = scalar_lea.vmem %s5612_s0, %s3642_s19  ;;  %s5495_s30 = scalar_lea.vmem %s5623_s11, %s3642_s19 }
  0x25   : > { %v748_v30 = vsub.f32 %v746_v26, %v747_v28 }
  0x26   : > { %v731_v16 = vand.u32 4294901760, %v730_v13  ;;  %v737_v17 = vand.u32 4294901760, %v736_v14  ;;  %585 = vmatpush.msra.mxu0 %v584_v24  ;;  %3650 = vmatpush.msra.mxu2 %v584_v24  ;;  %v743_v29 = vand.u32 4294901760, %v742_v27 }
  0x27   : > { %v749_v31 = vand.u32 4294901760, %v748_v30 }
  0x28   : > { %732 = vmatpush.msra.mxu1 %v731_v16  ;;  %3651 = vmatpush.msra.mxu3 %v731_v16 }
  0x29   : > { %486 = vxpose.xlu0.b32.cont [2/4] (short) %v474_v15, 128  ;;  %1053 = vmatpush.msrb.mxu0 %v729_v11 }
  0x2a   : > { %738 = vmatpush.msra.mxu1 %v737_v17  ;;  %3652 = vmatpush.msra.mxu3 %v737_v17 }
  0x2b   : > { %830 = vmatpush.msrb.mxu2 %v728_v9  ;;  %1057 = vmatpush.msrb.mxu0 %v735_v12 }
  0x2c   : > { %744 = vmatpush.msra.mxu1 %v743_v29  ;;  %3653 = vmatpush.msra.mxu3 %v743_v29 }
  0x2d   : > { %833 = vmatpush.msrb.mxu2 %v734_v10  ;;  %1061 = vmatpush.msrb.mxu0 %v741_v25 }
  0x2e   : > { %750 = vmatpush.msra.mxu1 %v749_v31  ;;  %3654 = vmatpush.msra.mxu3 %v749_v31 }
  0x2f   : > { %836 = vmatpush.msrb.mxu2 %v740_v23  ;;  %1065 = vmatpush.msrb.mxu0 %v747_v28 }
  0x30   : > { %1144 = vmatpush.msrb.mxu1 %v578_v6  ;;  %934 = vmatpush.msrb.mxu3 %v578_v6 }
  0x31   : > { %487 = vxpose.xlu0.b32.cont [3/4] (short) %v475_v18, 128  ;;  %839 = vmatpush.msrb.mxu2 %v746_v26 }
  0x32   : > { %1146 = vmatpush.msrb.mxu1 %v580_v7  ;;  %936 = vmatpush.msrb.mxu3 %v580_v7 }
  0x34   : > { %1148 = vmatpush.msrb.mxu1 %v582_v21  ;;  %938 = vmatpush.msrb.mxu3 %v582_v21 }
  0x36   : > { %1150 = vmatpush.msrb.mxu1 %v584_v24  ;;  %940 = vmatpush.msrb.mxu3 %v584_v24 }
  0x39   : > { %488 = vxpose.xlu0.b32.end [4/4] (short) %v476_v19, 128 }
  0xc5   : > { %v501_v32 = vpop.trf.xlu0 }
  0xc6   : > { %v519_v33 = vsel %vm517_vm0, %v501_v32, 0 }
  0xc7   : > { %v3908_v34 = vand.u32 4294901760, %v519_v33 }
  0xc9   : > { %v3911_v35 = vsub.f32 %v519_v33, %v3908_v34  ;;  %752 = vmatmul.f32.vlgmr.msra.gmra.mxu1 %v3908_v34 }
  0xcb   : > { %v588_v36 = vand.u32 4294901760, %v3911_v35 }
  0xcd   : > { %v502_v37 = vpop.trf.xlu0  ;;  %v589_v38 = vsub.f32 %v3911_v35, %v588_v36 }
  0xce   : > { %v522_v39 = vsel %vm517_vm0, %v502_v37, 0 }
  0xcf   : > { %v3919_v40 = vand.u32 4294901760, %v522_v39  ;;  %v590_v41 = vand.u32 4294901760, %v589_v38 }
  0xd1   : > { %v3922_v42 = vsub.f32 %v522_v39, %v3919_v40  ;;  %591 = vmatmul.f32.vlgmr.msra.gmra.mxu0 %v590_v41  ;;  %756 = vmatmul.f32.gmra.mxu1 %v3919_v40 }
  0xd3   : > { %v596_v43 = vand.u32 4294901760, %v3922_v42 }
  0xd5   : > { %v503_v44 = vpop.trf.xlu0  ;;  %v597_v45 = vsub.f32 %v3922_v42, %v596_v43 }
  0xd6   : > { %v525_v46 = vsel %vm517_vm0, %v503_v44, 0 }
  0xd7   : > { %v3930_v47 = vand.u32 4294901760, %v525_v46  ;;  %v598_v48 = vand.u32 4294901760, %v597_v45 }
  0xd9   : > { %v3933_v49 = vsub.f32 %v525_v46, %v3930_v47  ;;  %599 = vmatmul.f32.gmra.mxu0 %v598_v48  ;;  %760 = vmatmul.f32.gmra.mxu1 %v3930_v47 }
  0xdb   : > { %v604_v50 = vand.u32 4294901760, %v3933_v49 }
  0xdd   : > { %v504_v51 = vpop.trf.xlu0  ;;  %v605_v52 = vsub.f32 %v3933_v49, %v604_v50 }
  0xde   : > { %v528_v53 = vsel %vm517_vm0, %v504_v51, 0 }
  0xdf   : > { %v3941_v54 = vand.u32 4294901760, %v528_v53  ;;  %v606_v55 = vand.u32 4294901760, %v605_v52 }
  0xe1   : > { %v3944_v56 = vsub.f32 %v528_v53, %v3941_v54  ;;  %607 = vmatmul.f32.gmra.mxu0 %v606_v55  ;;  %764 = vmatmul.f32.gmra.mxu1 %v3941_v54 }
  0xe3   : > { %v612_v57 = vand.u32 4294901760, %v3944_v56 }
  0xe5   : > { %v505_v58 = vpop.trf.xlu0  ;;  %v613_v59 = vsub.f32 %v3944_v56, %v612_v57 }
  0xe6   : > { %v531_v60 = vsel %vm517_vm0, %v505_v58, 0 }
  0xe7   : > { %v3952_v61 = vand.u32 4294901760, %v531_v60  ;;  %v614_v62 = vand.u32 4294901760, %v613_v59 }
  0xe9   : > { %v3955_v63 = vsub.f32 %v531_v60, %v3952_v61  ;;  %615 = vmatmul.f32.gmra.mxu0 %v614_v62  ;;  %768 = vmatmul.f32.gmra.mxu1 %v3952_v61 }
  0xeb   : > { %v620_v0 = vand.u32 4294901760, %v3955_v63 }
  0xed   : > { %v506_v1 = vpop.trf.xlu0  ;;  %v621_v2 = vsub.f32 %v3955_v63, %v620_v0 }
  0xee   : > { %v534_v3 = vsel %vm517_vm0, %v506_v1, 0 }
  0xef   : > { %v3963_v4 = vand.u32 4294901760, %v534_v3  ;;  %v622_v5 = vand.u32 4294901760, %v621_v2 }
  0xf1   : > { %v3966_v6 = vsub.f32 %v534_v3, %v3963_v4  ;;  %623 = vmatmul.f32.gmra.mxu0 %v622_v5  ;;  %772 = vmatmul.f32.gmra.mxu1 %v3963_v4 }
  0xf3   : > { %v628_v7 = vand.u32 4294901760, %v3966_v6 }
  0xf5   : > { %v507_v8 = vpop.trf.xlu0  ;;  %v629_v9 = vsub.f32 %v3966_v6, %v628_v7 }
  0xf6   : > { %v537_v10 = vsel %vm517_vm0, %v507_v8, 0 }
  0xf7   : > { %v3974_v11 = vand.u32 4294901760, %v537_v10  ;;  %v630_v12 = vand.u32 4294901760, %v629_v9 }
  0xf9   : > { %v3977_v13 = vsub.f32 %v537_v10, %v3974_v11  ;;  %631 = vmatmul.f32.gmra.mxu0 %v630_v12  ;;  %776 = vmatmul.f32.gmra.mxu1 %v3974_v11 }
  0xfb   : > { %v636_v14 = vand.u32 4294901760, %v3977_v13 }
  0xfd   : > { %v508_v15 = vpop.trf.xlu0  ;;  %v637_v16 = vsub.f32 %v3977_v13, %v636_v14 }
  0xfe   : > { %v540_v17 = vsel %vm517_vm0, %v508_v15, 0 }
  0xff   : > { %v3985_v18 = vand.u32 4294901760, %v540_v17  ;;  %v638_v19 = vand.u32 4294901760, %v637_v16 }
 0x101   : > { %v3988_v20 = vsub.f32 %v540_v17, %v3985_v18  ;;  %639 = vmatmul.f32.gmra.mxu0 %v638_v19  ;;  %780 = vmatmul.f32.gmra.mxu1 %v3985_v18 }
 0x103   : > { %v644_v21 = vand.u32 4294901760, %v3988_v20 }
 0x105   : > { %v509_v22 = vpop.trf.xlu0  ;;  %v645_v23 = vsub.f32 %v3988_v20, %v644_v21 }
 0x106   : > { %v543_v24 = vsel %vm517_vm0, %v509_v22, 0 }
 0x107   : > { %v3996_v25 = vand.u32 4294901760, %v543_v24  ;;  %v646_v26 = vand.u32 4294901760, %v645_v23 }
 0x109   : > { %v3999_v27 = vsub.f32 %v543_v24, %v3996_v25  ;;  %647 = vmatmul.f32.gmra.mxu0 %v646_v26  ;;  %784 = vmatmul.f32.vlgmr.msra.gmra.mxu3 %v3996_v25 }
 0x10a   : > { %1152 = vmatmul.f32.vlgmr.msrb.gmra.mxu1 %v3908_v34 }
 0x10b   : > { %v652_v28 = vand.u32 4294901760, %v3999_v27 }
 0x10d   : > { %v510_v29 = vpop.trf.xlu0  ;;  %v653_v30 = vsub.f32 %v3999_v27, %v652_v28 }
 0x10e   : > { %v546_v31 = vsel %vm517_vm0, %v510_v29, 0 }
 0x10f   : > { %v4008_v32 = vand.u32 4294901760, %v546_v31  ;;  %v654_v33 = vand.u32 4294901760, %v653_v30 }
 0x111   : > { %v4011_v37 = vsub.f32 %v546_v31, %v4008_v32  ;;  %655 = vmatmul.f32.vlgmr.msra.gmra.mxu2 %v654_v33  ;;  %788 = vmatmul.f32.gmra.mxu3 %v4008_v32 }
 0x112   : > { %1067 = vmatmul.f32.vlgmr.msrb.gmra.mxu0 %v3908_v34  ;;  %1156 = vmatmul.f32.gmra.mxu1 %v3919_v40 }
 0x113   : > { %v660_v38 = vand.u32 4294901760, %v4011_v37 }
 0x115   : > { %v511_v39 = vpop.trf.xlu0  ;;  %v661_v41 = vsub.f32 %v4011_v37, %v660_v38 }
 0x116   : > { %v549_v44 = vsel %vm517_vm0, %v511_v39, 0 }
 0x117   : > { %v4021_v45 = vand.u32 4294901760, %v549_v44  ;;  %v662_v46 = vand.u32 4294901760, %v661_v41 }
 0x119   : > { %v4024_v48 = vsub.f32 %v549_v44, %v4021_v45  ;;  %663 = vmatmul.f32.gmra.mxu2 %v662_v46  ;;  %792 = vmatmul.f32.gmra.mxu3 %v4021_v45 }
 0x11a   : > { %1071 = vmatmul.f32.gmra.mxu0 %v3919_v40  ;;  %1160 = vmatmul.f32.gmra.mxu1 %v3930_v47 }
 0x11b   : > { %v668_v34 = vand.u32 4294901760, %v4024_v48 }
 0x11d   : > { %v512_v51 = vpop.trf.xlu0  ;;  %v669_v52 = vsub.f32 %v4024_v48, %v668_v34 }
 0x11e   : > { %v552_v53 = vsel %vm517_vm0, %v512_v51, 0 }
 0x11f   : > { %v4034_v55 = vand.u32 4294901760, %v552_v53  ;;  %v670_v58 = vand.u32 4294901760, %v669_v52 }
 0x121   : > { %v4037_v59 = vsub.f32 %v552_v53, %v4034_v55  ;;  %671 = vmatmul.f32.gmra.mxu2 %v670_v58  ;;  %796 = vmatmul.f32.gmra.mxu3 %v4034_v55 }
 0x122   : > { %1075 = vmatmul.f32.gmra.mxu0 %v3930_v47  ;;  %1164 = vmatmul.f32.gmra.mxu1 %v3941_v54 }
 0x123   : > { %v676_v40 = vand.u32 4294901760, %v4037_v59 }
 0x125   : > { %v513_v60 = vpop.trf.xlu0  ;;  %v677_v62 = vsub.f32 %v4037_v59, %v676_v40 }
 0x126   : > { %v555_v1 = vsel %vm517_vm0, %v513_v60, 0 }
 0x127   : > { %v4047_v2 = vand.u32 4294901760, %v555_v1  ;;  %v678_v3 = vand.u32 4294901760, %v677_v62 }
 0x129   : > { %v4050_v5 = vsub.f32 %v555_v1, %v4047_v2  ;;  %679 = vmatmul.f32.gmra.mxu2 %v678_v3  ;;  %800 = vmatmul.f32.gmra.mxu3 %v4047_v2 }
 0x12a   : > { %1079 = vmatmul.f32.gmra.mxu0 %v3941_v54  ;;  %1168 = vmatmul.f32.gmra.mxu1 %v3952_v61  ;;  %v480_v54 = vld [vmem:[%s5614_s2 + $0x18] sm:$0xff] }
 0x12b   : > { %v684_v47 = vand.u32 4294901760, %v4050_v5  ;;  %v4072_v19 = vand.u32 4294901760, %v480_v54 }
 0x12d   : > { %v514_v8 = vpop.trf.xlu0  ;;  %v685_v9 = vsub.f32 %v4050_v5, %v684_v47  ;;  %1277 = vmatpush.msra.mxu2 %v4072_v19  ;;  %v4079_v24 = vsub.f32 %v480_v54, %v4072_v19  ;;  %1632 = vmatpush.msra.mxu1 %v4072_v19 }
 0x12e   : > { %v558_v10 = vsel %vm517_vm0, %v514_v8, 0 }
 0x12f   : > { %v4060_v12 = vand.u32 4294901760, %v558_v10  ;;  %v686_v15 = vand.u32 4294901760, %v685_v9  ;;  %v1427_v30 = vand.u32 4294901760, %v4079_v24  ;;  %1528 = vmatpush.msra.mxu0 %v4079_v24 }
 0x131   : > { %v4063_v16 = vsub.f32 %v558_v10, %v4060_v12  ;;  %687 = vmatmul.f32.gmra.mxu2 %v686_v15  ;;  %804 = vmatmul.f32.gmra.mxu3 %v4060_v12  ;;  %v1428_v33 = vsub.f32 %v4079_v24, %v1427_v30 }
 0x132   : > { %1083 = vmatmul.f32.gmra.mxu0 %v3952_v61  ;;  %1172 = vmatmul.f32.gmra.mxu1 %v3963_v4 }
 0x133   : > { %v692_v17 = vand.u32 4294901760, %v4063_v16  ;;  %v1429_v41 = vand.u32 4294901760, %v1428_v33 }
 0x135   : > { %v515_v22 = vpop.trf.xlu0  ;;  %v693_v23 = vsub.f32 %v4063_v16, %v692_v17  ;;  %1430 = vmatpush.msra.mxu3 %v1429_v41 }
 0x136   : > { %v561_v61 = vsel %vm517_vm0, %v515_v22, 0 }
 0x137   : > { %v4083_v26 = vand.u32 4294901760, %v561_v61  ;;  %v694_v29 = vand.u32 4294901760, %v693_v23 }
 0x139   : > { %v4088_v31 = vsub.f32 %v561_v61, %v4083_v26  ;;  %695 = vmatmul.f32.gmra.mxu2 %v694_v29  ;;  %808 = vmatmul.f32.gmra.mxu3 %v4083_v26  ;;  %v458_v29 = vld [vmem:[%s4209_s17 + $0x8] sm:$0xff] }
 0x13a   : > { %1087 = vmatmul.f32.gmra.mxu0 %v3963_v4  ;;  %1176 = vmatmul.f32.gmra.mxu1 %v3974_v11 }
 0x13b   : > { %v700_v39 = vand.u32 4294901760, %v4088_v31 }
 0x13d   : > { %v516_v44 = vpop.trf.xlu0  ;;  %v701_v46 = vsub.f32 %v4088_v31, %v700_v39 }
 0x13e   : > { %v564_v51 = vsel %vm517_vm0, %v516_v44, 0 }
 0x13f   : > { %v4101_v52 = vand.u32 4294901760, %v564_v51  ;;  %v702_v53 = vand.u32 4294901760, %v701_v46 }
 0x141   : > { %v4104_v58 = vsub.f32 %v564_v51, %v4101_v52  ;;  %703 = vmatmul.f32.gmra.mxu2 %v702_v53  ;;  %812 = vmatmul.f32.gmra.mxu3 %v4101_v52 }
 0x142   : > { %1091 = vmatmul.f32.gmra.mxu0 %v3974_v11  ;;  %1180 = vmatmul.f32.gmra.mxu1 %v3985_v18  ;;  %v479_v11 = vld [vmem:[%s5614_s2 + $0x10] sm:$0xff] }
 0x143   : > { %v708_v4 = vand.u32 4294901760, %v4104_v58  ;;  %v4125_v1 = vand.u32 4294901760, %v479_v11 }
 0x145   : > { %v709_v60 = vsub.f32 %v4104_v58, %v708_v4  ;;  %1279 = vmatpush.msra.mxu2 %v4125_v1  ;;  %1634 = vmatpush.msra.mxu1 %v4125_v1 }
 0x147   : > { %v710_v62 = vand.u32 4294901760, %v709_v60 }
 0x149   : > { %711 = vmatmul.f32.gmra.mxu2 %v710_v62  ;;  %944 = vmatmul.f32.vlgmr.msrb.gmra.mxu3 %v588_v36  ;;  %v1432_v36 = vsub.f32 %v479_v11, %v4125_v1 }
 0x14a   : > { %1095 = vmatmul.f32.gmra.mxu0 %v3985_v18  ;;  %1184 = vmatmul.f32.gmra.mxu1 %v3996_v25 }
 0x14b   : > { %1531 = vmatpush.msra.mxu0 %v1432_v36 }
 0x151   : > { %842 = vmatmul.f32.vlgmr.msrb.gmra.mxu2 %v3911_v35  ;;  %950 = vmatmul.f32.gmra.mxu3 %v596_v43  ;;  %v1433_v35 = vand.u32 4294901760, %v1432_v36 }
 0x152   : > { %1099 = vmatmul.f32.gmra.mxu0 %v3996_v25  ;;  %1188 = vmatmul.f32.gmra.mxu1 %v4008_v32 }
 0x153   : > { %v1434_v43 = vsub.f32 %v1432_v36, %v1433_v35 }
 0x155   : > { %v1435_v18 = vand.u32 4294901760, %v1434_v43 }
 0x157   : > { %1436 = vmatpush.msra.mxu3 %v1435_v18 }
 0x159   : > { %847 = vmatmul.f32.gmra.mxu2 %v3922_v42  ;;  %956 = vmatmul.f32.gmra.mxu3 %v604_v50  ;;  %v478_v42 = vld [vmem:[%s5614_s2 + $0x8] sm:$0xff] }
 0x15a   : > { %1103 = vmatmul.f32.gmra.mxu0 %v4008_v32  ;;  %1192 = vmatmul.f32.gmra.mxu1 %v4021_v45 }
 0x161   : > { %852 = vmatmul.f32.gmra.mxu2 %v3933_v49  ;;  %962 = vmatmul.f32.gmra.mxu3 %v612_v57  ;;  %v1280_v49 = vand.u32 4294901760, %v478_v42 }
 0x162   : > { %1107 = vmatmul.f32.gmra.mxu0 %v4021_v45  ;;  %1196 = vmatmul.f32.gmra.mxu1 %v4034_v55 }
 0x163   : > { %1281 = vmatpush.msra.mxu2 %v1280_v49  ;;  %v1438_v50 = vsub.f32 %v478_v42, %v1280_v49  ;;  %1636 = vmatpush.msra.mxu1 %v1280_v49 }
 0x165   : > { %1534 = vmatpush.msra.mxu0 %v1438_v50 }
 0x169   : > { %857 = vmatmul.f32.gmra.mxu2 %v3944_v56  ;;  %968 = vmatmul.f32.gmra.mxu3 %v620_v0  ;;  %v1439_v56 = vand.u32 4294901760, %v1438_v50 }
 0x16a   : > { %1111 = vmatmul.f32.gmra.mxu0 %v4034_v55  ;;  %1200 = vmatmul.f32.gmra.mxu1 %v4047_v2 }
 0x16b   : > { %v1440_v57 = vsub.f32 %v1438_v50, %v1439_v56 }
 0x171   : > { %862 = vmatmul.f32.gmra.mxu2 %v3955_v63  ;;  %974 = vmatmul.f32.gmra.mxu3 %v628_v7  ;;  %v1441_v63 = vand.u32 4294901760, %v1440_v57  ;;  %v4169_v7 = vpop.f32.mrf.mxu1 }
 0x172   : > { %1115 = vmatmul.f32.gmra.mxu0 %v4047_v2  ;;  %1204 = vmatmul.f32.gmra.mxu1 %v4060_v12 }
 0x173   : > { %1442 = vmatpush.msra.mxu3 %v1441_v63  ;;  %v461_v63 = vld [vmem:[%s4209_s17 + $0x20] sm:$0xff] }
 0x179   : > { %867 = vmatmul.f32.gmra.mxu2 %v3966_v6  ;;  %980 = vmatmul.f32.gmra.mxu3 %v636_v14  ;;  %v4167_v6 = vpop.f32.mrf.mxu0  ;;  %v4185_v45 = vpop.f32.mrf.mxu1 }
 0x17a   : > { %1119 = vmatmul.f32.gmra.mxu0 %v4060_v12  ;;  %1208 = vmatmul.f32.gmra.mxu1 %v4083_v26 }
 0x181   : > { %872 = vmatmul.f32.gmra.mxu2 %v3977_v13  ;;  %986 = vmatmul.f32.gmra.mxu3 %v644_v21  ;;  %v477_v13 = vld [vmem:[%s5614_s2] sm:$0xff]  ;;  %v4183_v32 = vpop.f32.mrf.mxu0 }
 0x182   : > { %1123 = vmatmul.f32.gmra.mxu0 %v4083_v26  ;;  %1212 = vmatmul.f32.gmra.mxu1 %v4101_v52  ;;  %v1282_v14 = vand.u32 4294901760, %v477_v13 }
 0x184   : > { %1283 = vmatpush.msra.mxu2 %v1282_v14  ;;  %v1444_v25 = vsub.f32 %v477_v13, %v1282_v14  ;;  %1638 = vmatpush.msra.mxu1 %v1282_v14 }
 0x186   : > { %1751 = vmatpush.msrb.mxu2 %v1427_v30  ;;  %1537 = vmatpush.msra.mxu0 %v1444_v25 }
 0x188   : > { %1755 = vmatpush.msrb.mxu2 %v1433_v35  ;;  %v460_v35 = vld [vmem:[%s4209_s17 + $0x18] sm:$0xff] }
 0x189   : > { %877 = vmatmul.f32.gmra.mxu2 %v3988_v20  ;;  %992 = vmatmul.f32.gmra.mxu3 %v652_v28  ;;  %v1226_v18 = vsel %vm517_vm0, %v460_v35, 0 }
 0x18a   : > { %1127 = vmatmul.f32.gmra.mxu0 %v4101_v52  ;;  %1759 = vmatpush.msrb.mxu2 %v1439_v56  ;;  %v459_v52 = vld [vmem:[%s4209_s17 + $0x10] sm:$0xff]  ;;  %v4255_v42 = vand.u32 4294901760, %v1226_v18 }
 0x18c   : > { %v785_v0 = vpop.f32.mrf.mxu3 }
 0x191   : > { %882 = vmatmul.f32.gmra.mxu2 %v3999_v27  ;;  %998 = vmatmul.f32.gmra.mxu3 %v660_v38  ;;  %v1445_v27 = vand.u32 4294901760, %v1444_v25 }
 0x193   : > { %v1446_v38 = vsub.f32 %v1444_v25, %v1445_v27  ;;  %1763 = vmatpush.msrb.mxu2 %v1445_v27 }
 0x194   : > { %v656_v20 = vpop.f32.mrf.mxu2  ;;  %v789_v21 = vpop.f32.mrf.mxu3 }
 0x195   : > { %v4177_v28 = vadd.f32 %v785_v0, %v656_v20  ;;  %v1447_v55 = vand.u32 4294901760, %v1446_v38  ;;  %v1229_v0 = vsel %vm517_vm0, %v461_v63, 0 }
 0x197   : > { %1448 = vmatpush.msra.mxu3 %v1447_v55 }
 0x199   : > { %887 = vmatmul.f32.gmra.mxu2 %v4011_v37  ;;  %1004 = vmatmul.f32.gmra.mxu3 %v668_v34  ;;  %v4197_v37 = vpop.f32.mrf.mxu0  ;;  %v4202_v34 = vpop.f32.mrf.mxu1 }
 0x19a   : > { %1842 = vmatpush.msrb.mxu3 %v4072_v19 }
 0x19c   : > { %v664_v2 = vpop.f32.mrf.mxu2  ;;  %v793_v3 = vpop.f32.mrf.mxu3  ;;  %1844 = vmatpush.msrb.mxu3 %v4125_v1 }
 0x19d   : > { %v4192_v8 = vadd.f32 %v789_v21, %v664_v2  ;;  %v462_v2 = vld [vmem:[%s4209_s17 + $0x28] sm:$0xff] }
 0x19e   : > { %1846 = vmatpush.msrb.mxu3 %v1280_v49 }
 0x1a0   : > { %1848 = vmatpush.msrb.mxu3 %v1282_v14 }
 0x1a1   : > { %892 = vmatmul.f32.gmra.mxu2 %v4024_v48  ;;  %1010 = vmatmul.f32.gmra.mxu3 %v676_v40  ;;  %v457_v48 = vld [vmem:[%s4209_s17] sm:$0xff]  ;;  %v4221_v19 = vpop.f32.mrf.mxu0  ;;  %v4223_v61 = vpop.f32.mrf.mxu1 }
 0x1a2   : > { %v1217_v15 = vsel %vm517_vm0, %v457_v48, 0  ;;  %v754_v48 = vadd.f32 %v4169_v7, %v4167_v6 }
 0x1a3   : > { %v4215_v40 = vand.u32 4294901760, %v1217_v15 }
 0x1a4   : > { %v672_v9 = vpop.f32.mrf.mxu2  ;;  %v797_v10 = vpop.f32.mrf.mxu3 }
 0x1a5   : > { %v4211_v12 = vadd.f32 %v793_v3, %v672_v9  ;;  %v1285_v54 = vsub.f32 %v1217_v15, %v4215_v40 }
 0x1a7   : > { %v1286_v24 = vand.u32 4294901760, %v1285_v54  ;;  %1540 = vmatmul.f32.vlgmr.msra.gmra.mxu0 %v1285_v54 }
 0x1a9   : > { %897 = vmatmul.f32.gmra.mxu2 %v4037_v59  ;;  %1016 = vmatmul.f32.gmra.mxu3 %v684_v47  ;;  %v1220_v59 = vsel %vm517_vm0, %v458_v29, 0  ;;  %v4235_v46 = vpop.f32.mrf.mxu0  ;;  %v4240_v53 = vpop.f32.mrf.mxu1 }
 0x1aa   : > { %1642 = vmatmul.f32.vlgmr.msra.gmra.mxu1 %v1286_v24  ;;  %v4229_v30 = vand.u32 4294901760, %v1220_v59 }
 0x1ac   : > { %v680_v22 = vpop.f32.mrf.mxu2  ;;  %v801_v23 = vpop.f32.mrf.mxu3  ;;  %v1293_v47 = vsub.f32 %v1220_v59, %v4229_v30 }
 0x1ad   : > { %v4225_v26 = vadd.f32 %v797_v10, %v680_v22 }
 0x1ae   : > { %v1294_v44 = vand.u32 4294901760, %v1293_v47 }
 0x1af   : > { %1545 = vmatmul.f32.gmra.mxu0 %v1293_v47 }
 0x1b0   : > { %v1295_v9 = vsub.f32 %v1293_v47, %v1294_v44  ;;  %v463_v47 = vld [vmem:[%s4209_s17 + $0x30] sm:$0xff] }
 0x1b1   : > { %902 = vmatmul.f32.gmra.mxu2 %v4050_v5  ;;  %1022 = vmatmul.f32.gmra.mxu3 %v692_v17  ;;  %v1223_v5 = vsel %vm517_vm0, %v459_v52, 0  ;;  %v4252_v43 = vpop.f32.mrf.mxu0  ;;  %v1235_v6 = vsel %vm517_vm0, %v463_v47, 0  ;;  %v758_v52 = vadd.f32 %v4185_v45, %v4183_v32 }
 0x1b2   : > { %1648 = vmatmul.f32.gmra.mxu1 %v1294_v44  ;;  %v4243_v60 = vand.u32 4294901760, %v1223_v5  ;;  %v1296_v59 = vand.u32 4294901760, %v1295_v9  ;;  %v4310_v7 = vand.u32 4294901760, %v1235_v6  ;;  %v465_v9 = vld [vmem:[%s4209_s17 + $0x40] sm:$0xff] }
 0x1b4   : > { %v688_v33 = vpop.f32.mrf.mxu2  ;;  %v805_v41 = vpop.f32.mrf.mxu3  ;;  %v1301_v17 = vsub.f32 %v1223_v5, %v4243_v60  ;;  %v4314_v44 = vsub.f32 %v1235_v6, %v4310_v7 }
 0x1b5   : > { %v4237_v51 = vadd.f32 %v801_v23, %v688_v33 }
 0x1b6   : > { %v1302_v1 = vand.u32 4294901760, %v1301_v17 }
 0x1b7   : > { %1550 = vmatmul.f32.gmra.mxu0 %v1301_v17 }
 0x1b9   : > { %907 = vmatmul.f32.gmra.mxu2 %v4063_v16  ;;  %1028 = vmatmul.f32.gmra.mxu3 %v700_v39  ;;  %v4257_v16 = vpop.f32.mrf.mxu1  ;;  %v4263_v39 = vsub.f32 %v1226_v18, %v4255_v42  ;;  %v4273_v13 = vpop.f32.mrf.mxu0 }
 0x1ba   : > { %1654 = vmatmul.f32.gmra.mxu1 %v1302_v1 }
 0x1bb   : > { %v1310_v56 = vand.u32 4294901760, %v4263_v39 }
 0x1bc   : > { %v696_v62 = vpop.f32.mrf.mxu2  ;;  %v809_v11 = vpop.f32.mrf.mxu3 }
 0x1bd   : > { %v4249_v36 = vadd.f32 %v805_v41, %v696_v62  ;;  %v1303_v41 = vsub.f32 %v1301_v17, %v1302_v1  ;;  %v1311_v63 = vsub.f32 %v4263_v39, %v1310_v56 }
 0x1bf   : > { %1555 = vmatmul.f32.gmra.mxu0 %v4263_v39 }
 0x1c1   : > { %912 = vmatmul.f32.gmra.mxu2 %v4088_v31  ;;  %1034 = vmatmul.f32.gmra.mxu3 %v708_v4  ;;  %v4271_v31 = vand.u32 4294901760, %v1229_v0  ;;  %v1287_v4 = vsub.f32 %v1285_v54, %v1286_v24  ;;  %v4280_v20 = vpop.f32.mrf.mxu1  ;;  %v4298_v15 = vpop.f32.mrf.mxu0 }
 0x1c2   : > { %1660 = vmatmul.f32.gmra.mxu1 %v1310_v56 }
 0x1c3   : > { %v4278_v14 = vsub.f32 %v1229_v0, %v4271_v31  ;;  %v1288_v55 = vand.u32 4294901760, %v1287_v4  ;;  %v762_v4 = vadd.f32 %v4202_v34, %v4197_v37 }
 0x1c4   : > { %v704_v49 = vpop.f32.mrf.mxu2  ;;  %v813_v50 = vpop.f32.mrf.mxu3 }
 0x1c5   : > { %v4267_v57 = vadd.f32 %v809_v11, %v704_v49  ;;  %v1318_v27 = vand.u32 4294901760, %v4278_v14  ;;  %v1334_v11 = vand.u32 4294901760, %v4314_v44  ;;  %v1304_v49 = vand.u32 4294901760, %v1303_v41 }
 0x1c7   : > { %1560 = vmatmul.f32.gmra.mxu0 %v4278_v14 }
 0x1c9   : > { %917 = vmatmul.f32.gmra.mxu2 %v4104_v58  ;;  %1450 = vmatmul.f32.vlgmr.msra.gmra.mxu3 %v4215_v40  ;;  %v1232_v58 = vsel %vm517_vm0, %v462_v2, 0  ;;  %v4302_v24 = vpop.f32.mrf.mxu1  ;;  %v4320_v35 = vpop.f32.mrf.mxu0 }
 0x1ca   : > { %1666 = vmatmul.f32.gmra.mxu1 %v1318_v27  ;;  %v4290_v3 = vand.u32 4294901760, %v1232_v58 }
 0x1cc   : > { %v712_v21 = vpop.f32.mrf.mxu2  ;;  %v945_v25 = vpop.f32.mrf.mxu3  ;;  %v4294_v10 = vsub.f32 %v1232_v58, %v4290_v3  ;;  %v1312_v58 = vand.u32 4294901760, %v1311_v63 }
 0x1cd   : > { %v4284_v38 = vadd.f32 %v813_v50, %v712_v21  ;;  %v464_v50 = vld [vmem:[%s4209_s17 + $0x38] sm:$0xff] }
 0x1ce   : > { %v1326_v23 = vand.u32 4294901760, %v4294_v10  ;;  %v1238_v32 = vsel %vm517_vm0, %v464_v50, 0 }
 0x1cf   : > { %1565 = vmatmul.f32.gmra.mxu0 %v4294_v10  ;;  %v4330_v45 = vand.u32 4294901760, %v1238_v32 }
 0x1d1   : > { %1289 = vmatmul.f32.vlgmr.msra.gmra.mxu2 %v1288_v55  ;;  %1454 = vmatmul.f32.gmra.mxu3 %v4229_v30  ;;  %v4325_v17 = vpop.f32.mrf.mxu1  ;;  %v4335_v0 = vsub.f32 %v1238_v32, %v4330_v45  ;;  %v4344_v39 = vpop.f32.mrf.mxu0 }
 0x1d2   : > { %1672 = vmatmul.f32.gmra.mxu1 %v1326_v23 }
 0x1d3   : > { %v1342_v55 = vand.u32 4294901760, %v4335_v0 }
 0x1d4   : > { %v843_v54 = vpop.f32.mrf.mxu2  ;;  %v951_v22 = vpop.f32.mrf.mxu3 }
 0x1d5   : > { %v844_v29 = vadd.f32 %v843_v54, %v754_v48  ;;  %v1241_v48 = vsel %vm517_vm0, %v465_v9, 0  ;;  %v1319_v54 = vsub.f32 %v4278_v14, %v1318_v27  ;;  %v774_v9 = vadd.f32 %v4257_v16, %v4252_v43 }
 0x1d6   : > { %v4349_v37 = vand.u32 4294901760, %v1241_v48 }
 0x1d7   : > { %v4307_v33 = vadd.f32 %v945_v25, %v844_v29  ;;  %1570 = vmatmul.f32.gmra.mxu0 %v4314_v44  ;;  %v766_v29 = vadd.f32 %v4223_v61, %v4221_v19  ;;  %v1327_v61 = vsub.f32 %v4294_v10, %v1326_v23 }
 0x1d8   : > { %5633 = vst [vmem:[#allocation3_spill] sm:$0xff] %v4349_v37 }
 0x1d9   : > { %1297 = vmatmul.f32.gmra.mxu2 %v1296_v59  ;;  %1458 = vmatmul.f32.gmra.mxu3 %v4243_v60  ;;  %v4351_v34 = vpop.f32.mrf.mxu1  ;;  %v4372_v19 = vpop.f32.mrf.mxu0 }
 0x1da   : > { %1678 = vmatmul.f32.gmra.mxu1 %v1334_v11 }
 0x1dc   : > { %v848_v5 = vpop.f32.mrf.mxu2  ;;  %v957_v62 = vpop.f32.mrf.mxu3 }
 0x1dd   : > { %v849_v18 = vadd.f32 %v848_v5, %v758_v52  ;;  %v1320_v52 = vand.u32 4294901760, %v1319_v54  ;;  %v466_v5 = vld [vmem:[%s4209_s17 + $0x48] sm:$0xff] }
 0x1de   : > { %v1244_v27 = vsel %vm517_vm0, %v466_v5, 0  ;;  %v1343_v5 = vsub.f32 %v4335_v0, %v1342_v55 }
 0x1df   : > { %v4327_v1 = vadd.f32 %v951_v22, %v849_v18  ;;  %1575 = vmatmul.f32.gmra.mxu0 %v4335_v0  ;;  %v4358_v22 = vsub.f32 %v1241_v48, %v4349_v37 }
 0x1e1   : > { %1305 = vmatmul.f32.gmra.mxu2 %v1304_v49  ;;  %1462 = vmatmul.f32.gmra.mxu3 %v4255_v42  ;;  %v1350_v6 = vand.u32 4294901760, %v4358_v22  ;;  %v770_v49 = vadd.f32 %v4240_v53, %v4235_v46  ;;  %v4383_v50 = vpop.f32.mrf.mxu1  ;;  %v1335_v53 = vsub.f32 %v4314_v44, %v1334_v11  ;;  %v4404_v48 = vpop.f32.mrf.mxu0  ;;  %v468_v11 = vld [vmem:[%s4209_s17 + $0x58] sm:$0xff] }
 0x1e2   : > { %1684 = vmatmul.f32.gmra.mxu1 %v1342_v55  ;;  %v1250_v43 = vsel %vm517_vm0, %v468_v11, 0 }
 0x1e3   : > { %v1336_v44 = vand.u32 4294901760, %v1335_v53  ;;  %v4416_v16 = vand.u32 4294901760, %v1250_v43 }
 0x1e4   : > { %v853_v21 = vpop.f32.mrf.mxu2  ;;  %v963_v25 = vpop.f32.mrf.mxu3 }
 0x1e5   : > { %v854_v2 = vadd.f32 %v853_v21, %v762_v4  ;;  %5636 = vst [vmem:[#allocation6_spill] sm:$0xff] %v4416_v16 }
 0x1e7   : > { %v4346_v56 = vadd.f32 %v957_v62, %v854_v2  ;;  %1580 = vmatmul.f32.gmra.mxu0 %v4358_v22  ;;  %v4370_v62 = vand.u32 4294901760, %v1244_v27  ;;  %v467_v2 = vld [vmem:[%s4209_s17 + $0x50] sm:$0xff] }
 0x1e8   : > { %v1247_v23 = vsel %vm517_vm0, %v467_v2, 0  ;;  %v1344_v2 = vand.u32 4294901760, %v1343_v5  ;;  %v470_v5 = vld [vmem:[%s4209_s17 + $0x68] sm:$0xff] }
 0x1e9   : > { %1313 = vmatmul.f32.gmra.mxu2 %v1312_v58  ;;  %1466 = vmatmul.f32.gmra.mxu3 %v4271_v31  ;;  %5634 = vst [vmem:[#allocation4_spill] sm:$0xff] %v4370_v62  ;;  %v4379_v18 = vsub.f32 %v1244_v27, %v4370_v62  ;;  %v4393_v46 = vand.u32 4294901760, %v1247_v23  ;;  %v4423_v27 = vsub.f32 %v1250_v43, %v4416_v16 }
 0x1ea   : > { %1690 = vmatmul.f32.gmra.mxu1 %v1350_v6 }
 0x1eb   : > { %v1358_v4 = vand.u32 4294901760, %v4379_v18  ;;  %5635 = vst [vmem:[#allocation5_spill] sm:$0xff] %v4393_v46  ;;  %v4400_v58 = vsub.f32 %v1247_v23, %v4393_v46  ;;  %v469_v23 = vld [vmem:[%s4209_s17 + $0x60] sm:$0xff] }
 0x1ec   : > { %v858_v59 = vpop.f32.mrf.mxu2  ;;  %v969_v47 = vpop.f32.mrf.mxu3  ;;  %v1253_v53 = vsel %vm517_vm0, %v469_v23, 0 }
 0x1ed   : > { %v859_v41 = vadd.f32 %v858_v59, %v766_v29  ;;  %v1366_v59 = vand.u32 4294901760, %v4400_v58 }
 0x1ef   : > { %v4367_v14 = vadd.f32 %v963_v25, %v859_v41  ;;  %1585 = vmatmul.f32.gmra.mxu0 %v4379_v18  ;;  %v1328_v25 = vand.u32 4294901760, %v1327_v61  ;;  %v778_v61 = vadd.f32 %v4280_v20, %v4273_v13  ;;  %v4437_v13 = vand.u32 4294901760, %v1253_v53 }
 0x1f0   : > { %v1351_v20 = vsub.f32 %v4358_v22, %v1350_v6  ;;  %v1256_v22 = vsel %vm517_vm0, %v470_v5, 0 }
 0x1f1   : > { %1321 = vmatmul.f32.gmra.mxu2 %v1320_v52  ;;  %1470 = vmatmul.f32.gmra.mxu3 %v4290_v3  ;;  %v4452_v6 = vand.u32 4294901760, %v1256_v22 }
 0x1f2   : > { %1696 = vmatmul.f32.gmra.mxu1 %v1358_v4  ;;  %v1352_v43 = vand.u32 4294901760, %v1351_v20 }
 0x1f4   : > { %v863_v32 = vpop.f32.mrf.mxu2  ;;  %v975_v63 = vpop.f32.mrf.mxu3 }
 0x1f5   : > { %v864_v21 = vadd.f32 %v863_v32, %v770_v49 }
 0x1f7   : > { %v4390_v10 = vadd.f32 %v969_v47, %v864_v21  ;;  %1590 = vmatmul.f32.gmra.mxu0 %v4400_v58  ;;  %v4408_v47 = vpop.f32.mrf.mxu1  ;;  %v4429_v21 = vpop.f32.mrf.mxu0 }
 0x1f9   : > { %1329 = vmatmul.f32.gmra.mxu2 %v1328_v25  ;;  %1474 = vmatmul.f32.gmra.mxu3 %v4310_v7 }
 0x1fa   : > { %1702 = vmatmul.f32.gmra.mxu1 %v1366_v59 }
 0x1fc   : > { %v868_v54 = vpop.f32.mrf.mxu2  ;;  %v981_v29 = vpop.f32.mrf.mxu3 }
 0x1fd   : > { %v869_v41 = vadd.f32 %v868_v54, %v774_v9  ;;  %v1381_v9 = vsub.f32 %v1253_v53, %v4437_v13  ;;  %v782_v54 = vadd.f32 %v4302_v24, %v4298_v15  ;;  %v1359_v15 = vsub.f32 %v4379_v18, %v1358_v4 }
 0x1fe   : > { %v1389_v24 = vsub.f32 %v1256_v22, %v4452_v6  ;;  %v1367_v4 = vsub.f32 %v4400_v58, %v1366_v59 }
 0x1ff   : > { %v4413_v52 = vadd.f32 %v975_v63, %v869_v41  ;;  %v1374_v63 = vand.u32 4294901760, %v4423_v27  ;;  %1595 = vmatmul.f32.gmra.mxu0 %v4423_v27  ;;  %v4432_v0 = vpop.f32.mrf.mxu1  ;;  %v1360_v20 = vand.u32 4294901760, %v1359_v15 }
 0x200   : > { %v1390_v53 = vand.u32 4294901760, %v1389_v24 }
 0x201   : > { %1337 = vmatmul.f32.gmra.mxu2 %v1336_v44  ;;  %1478 = vmatmul.f32.gmra.mxu3 %v4330_v45  ;;  %v1375_v59 = vsub.f32 %v4423_v27, %v1374_v63 }
 0x202   : > { %1708 = vmatmul.f32.gmra.mxu1 %v1374_v63 }
 0x204   : > { %v873_v49 = vpop.f32.mrf.mxu2  ;;  %v987_v32 = vpop.f32.mrf.mxu3 }
 0x205   : > { %v874_v25 = vadd.f32 %v873_v49, %v778_v61  ;;  %v4447_v61 = vpop.f32.mrf.mxu0 }
 0x207   : > { %v4434_v55 = vadd.f32 %v981_v29, %v874_v25  ;;  %v1382_v29 = vand.u32 4294901760, %v1381_v9  ;;  %1600 = vmatmul.f32.gmra.mxu0 %v1381_v9  ;;  %v4454_v25 = vpop.f32.mrf.mxu1 }
 0x209   : > { %1345 = vmatmul.f32.gmra.mxu2 %v1344_v2  ;;  %1482 = vmatmul.f32.gmra.mxu3 %v4349_v37  ;;  %v1383_v27 = vsub.f32 %v1381_v9, %v1382_v29  ;;  %v1391_v37 = vsub.f32 %v1389_v24, %v1390_v53 }
 0x20a   : > { %1714 = vmatmul.f32.gmra.mxu1 %v1382_v29 }
 0x20c   : > { %v878_v41 = vpop.f32.mrf.mxu2  ;;  %v993_v44 = vpop.f32.mrf.mxu3 }
 0x20d   : > { %v879_v11 = vadd.f32 %v878_v41, %v782_v54  ;;  %v471_v54 = vld [vmem:[%s4209_s17 + $0x70] sm:$0xff]  ;;  %v4468_v18 = vpop.f32.mrf.mxu0 }
 0x20f   : > { %v4449_v49 = vadd.f32 %v987_v32, %v879_v11  ;;  %1605 = vmatmul.f32.gmra.mxu0 %v1389_v24  ;;  %v1259_v11 = vsel %vm517_vm0, %v471_v54, 0  ;;  %v4475_v5 = vpop.f32.mrf.mxu1  ;;  %v472_v54 = vld [vmem:[%s4209_s17 + $0x78] sm:$0xff] }
 0x211   : > { %1353 = vmatmul.f32.gmra.mxu2 %v1352_v43  ;;  %1486 = vmatmul.f32.gmra.mxu3 %v4370_v62  ;;  %v4466_v43 = vand.u32 4294901760, %v1259_v11 }
 0x212   : > { %1720 = vmatmul.f32.gmra.mxu1 %v1390_v53 }
 0x214   : > { %v883_v2 = vpop.f32.mrf.mxu2  ;;  %v999_v23 = vpop.f32.mrf.mxu3 }
 0x215   : > { %v884_v32 = vadd.f32 %v883_v2, %v4177_v28  ;;  %v1397_v28 = vsub.f32 %v1259_v11, %v4466_v43 }
 0x217   : > { %v4463_v41 = vadd.f32 %v993_v44, %v884_v32  ;;  %v1398_v15 = vand.u32 4294901760, %v1397_v28  ;;  %1610 = vmatmul.f32.gmra.mxu0 %v1397_v28  ;;  %v1368_v32 = vand.u32 4294901760, %v1367_v4 }
 0x219   : > { %5637 = vst [vmem:[#allocation7_spill] sm:$0xff] %v4463_v41  ;;  %1361 = vmatmul.f32.gmra.mxu2 %v1360_v20  ;;  %1490 = vmatmul.f32.gmra.mxu3 %v4393_v46  ;;  %v1262_v41 = vsel %vm517_vm0, %v472_v54, 0  ;;  %v4487_v46 = vpop.f32.mrf.mxu0  ;;  %v1399_v9 = vsub.f32 %v1397_v28, %v1398_v15 }
 0x21a   : > { %1726 = vmatmul.f32.gmra.mxu1 %v1398_v15  ;;  %v4482_v58 = vand.u32 4294901760, %v1262_v41 }
 0x21c   : > { %v888_v22 = vpop.f32.mrf.mxu2  ;;  %v1005_v44 = vpop.f32.mrf.mxu3  ;;  %v1405_v11 = vsub.f32 %v1262_v41, %v4482_v58 }
 0x21d   : > { %v889_v2 = vadd.f32 %v888_v22, %v4192_v8  ;;  %v1376_v22 = vand.u32 4294901760, %v1375_v59  ;;  %v1392_v59 = vand.u32 4294901760, %v1391_v37 }
 0x21e   : > { %v1406_v4 = vand.u32 4294901760, %v1405_v11 }
 0x21f   : > { %v4479_v20 = vadd.f32 %v999_v23, %v889_v2  ;;  %1615 = vmatmul.f32.gmra.mxu0 %v1405_v11  ;;  %v4490_v2 = vpop.f32.mrf.mxu1 }
 0x220   : > { %v1407_v24 = vsub.f32 %v1405_v11, %v1406_v4  ;;  %v1069_v11 = vadd.f32 %v4320_v35, %v4307_v33 }
 0x221   : > { %5638 = vst [vmem:[#allocation8_spill] sm:$0xff] %v4479_v20  ;;  %1369 = vmatmul.f32.gmra.mxu2 %v1368_v32  ;;  %1494 = vmatmul.f32.gmra.mxu3 %v4416_v16  ;;  %v1384_v20 = vand.u32 4294901760, %v1383_v27 }
 0x222   : > { %1732 = vmatmul.f32.gmra.mxu1 %v1406_v4  ;;  %v1408_v27 = vand.u32 4294901760, %v1407_v24 }
 0x224   : > { %v893_v62 = vpop.f32.mrf.mxu2  ;;  %v1011_v8 = vpop.f32.mrf.mxu3 }
 0x225   : > { %v894_v23 = vadd.f32 %v893_v62, %v4211_v12 }
 0x227   : > { %v4492_v54 = vadd.f32 %v1005_v44, %v894_v23  ;;  %v4549_v24 = vpop.f32.mrf.mxu1 }
 0x229   : > { %1377 = vmatmul.f32.gmra.mxu2 %v1376_v22  ;;  %1498 = vmatmul.f32.gmra.mxu3 %v4437_v13  ;;  %v1400_v22 = vand.u32 4294901760, %v1399_v9 }
 0x22c   : > { %v898_v63 = vpop.f32.mrf.mxu2  ;;  %v1017_v41 = vpop.f32.mrf.mxu3 }
 0x22d   : > { %v899_v32 = vadd.f32 %v898_v63, %v4225_v26 }
 0x22f   : > { %v4496_v16 = vadd.f32 %v1011_v8, %v899_v32 }
 0x231   : > { %1385 = vmatmul.f32.gmra.mxu2 %v1384_v20  ;;  %1502 = vmatmul.f32.gmra.mxu3 %v4452_v6 }
 0x234   : > { %v903_v12 = vpop.f32.mrf.mxu2  ;;  %v1023_v62 = vpop.f32.mrf.mxu3 }
 0x235   : > { %v904_v44 = vadd.f32 %v903_v12, %v4237_v51 }
 0x237   : > { %v4500_v23 = vadd.f32 %v1017_v41, %v904_v44  ;;  %v1073_v44 = vadd.f32 %v4344_v39, %v4327_v1 }
 0x239   : > { %1393 = vmatmul.f32.gmra.mxu2 %v1392_v59  ;;  %1506 = vmatmul.f32.gmra.mxu3 %v4466_v43 }
 0x23c   : > { %v908_v29 = vpop.f32.mrf.mxu2  ;;  %v1029_v26 = vpop.f32.mrf.mxu3 }
 0x23d   : > { %v909_v8 = vadd.f32 %v908_v29, %v4249_v36 }
 0x23f   : > { %v4504_v20 = vadd.f32 %v1023_v62, %v909_v8 }
 0x241   : > { %1401 = vmatmul.f32.gmra.mxu2 %v1400_v22  ;;  %1510 = vmatmul.f32.gmra.mxu3 %v4482_v58  ;;  %v4544_v22 = vpop.f32.mrf.mxu0 }
 0x244   : > { %v913_v53 = vpop.f32.mrf.mxu2  ;;  %v1035_v51 = vpop.f32.mrf.mxu3 }
 0x245   : > { %v914_v37 = vadd.f32 %v913_v53, %v4267_v57  ;;  %v1154_v57 = vadd.f32 %v4325_v17, %v1069_v11  ;;  %v1077_v17 = vadd.f32 %v4372_v19, %v4346_v56 }
 0x247   : > { %v4508_v63 = vadd.f32 %v1029_v26, %v914_v37  ;;  %v1162_v1 = vadd.f32 %v4383_v50, %v1077_v17  ;;  %v1085_v50 = vadd.f32 %v4429_v21, %v4390_v10 }
 0x249   : > { %1409 = vmatmul.f32.gmra.mxu2 %v1408_v27  ;;  %1850 = vmatmul.f32.vlgmr.msrb.gmra.mxu3 %v4215_v40  ;;  %v4557_v10 = vpop.f32.mrf.mxu0  ;;  %v4560_v27 = vpop.f32.mrf.mxu1 }
 0x24c   : > { %v918_v28 = vpop.f32.mrf.mxu2  ;;  %v1451_v15 = vpop.f32.mrf.mxu3 }
 0x24d   : > { %v919_v36 = vadd.f32 %v918_v28, %v4284_v38  ;;  %v1158_v38 = vadd.f32 %v4351_v34, %v1073_v44  ;;  %v1081_v34 = vadd.f32 %v4404_v48, %v4367_v14 }
 0x24f   : > { %v4512_v41 = vadd.f32 %v1035_v51, %v919_v36  ;;  %v1166_v56 = vadd.f32 %v4408_v47, %v1081_v34  ;;  %v1089_v51 = vadd.f32 %v4447_v61, %v4413_v52 }
 0x251   : > { %1765 = vmatmul.f32.vlgmr.msrb.gmra.mxu2 %v4215_v40  ;;  %1854 = vmatmul.f32.gmra.mxu3 %v4229_v30  ;;  %v4569_v36 = vpop.f32.mrf.mxu0 }
 0x254   : > { %v1290_v4 = vpop.f32.mrf.mxu2  ;;  %v1455_v32 = vpop.f32.mrf.mxu3 }
 0x255   : > { %v1291_v12 = vadd.f32 %v1290_v4, %v1154_v57  ;;  %v1097_v57 = vadd.f32 %v4487_v46, %v4449_v49  ;;  %v4575_v4 = vpop.f32.mrf.mxu1 }
 0x257   : > { %v4519_v62 = vadd.f32 %v1451_v15, %v1291_v12  ;;  %v1093_v15 = vadd.f32 %v4468_v18, %v4434_v55  ;;  %v5639_v55 = vld [vmem:[#allocation3_spill] sm:$0xff] }
 0x259   : > { %1769 = vmatmul.f32.gmra.mxu2 %v4229_v30  ;;  %1858 = vmatmul.f32.gmra.mxu3 %v4243_v60  ;;  %v4582_v12 = vpop.f32.mrf.mxu0 }
 0x25c   : > { %v1298_v33 = vpop.f32.mrf.mxu2  ;;  %v1459_v40 = vpop.f32.mrf.mxu3 }
 0x25d   : > { %v1299_v35 = vadd.f32 %v1298_v33, %v1158_v38  ;;  %v5640_v38 = vld [vmem:[#allocation4_spill] sm:$0xff]  ;;  %v4588_v46 = vpop.f32.mrf.mxu1 }
 0x25f   : > { %v4526_v59 = vadd.f32 %v1455_v32, %v1299_v35 }
 0x261   : > { %1773 = vmatmul.f32.gmra.mxu2 %v4243_v60  ;;  %1862 = vmatmul.f32.gmra.mxu3 %v4255_v42  ;;  %v4594_v33 = vpop.f32.mrf.mxu0 }
 0x264   : > { %v1306_v39 = vpop.f32.mrf.mxu2  ;;  %v1463_v30 = vpop.f32.mrf.mxu3 }
 0x265   : > { %v1307_v9 = vadd.f32 %v1306_v39, %v1162_v1  ;;  %v4602_v17 = vpop.f32.mrf.mxu1  ;;  %v5642_v1 = vld [vmem:[#allocation6_spill] sm:$0xff] }
 0x267   : > { %v4533_v29 = vadd.f32 %v1459_v40, %v1307_v9 }
 0x269   : > { %1777 = vmatmul.f32.gmra.mxu2 %v4255_v42  ;;  %1866 = vmatmul.f32.gmra.mxu3 %v4271_v31  ;;  %v1170_v42 = vadd.f32 %v4432_v0, %v1085_v50  ;;  %v4606_v39 = vpop.f32.mrf.mxu0 }
 0x26c   : > { %v1314_v19 = vpop.f32.mrf.mxu2  ;;  %v1467_v60 = vpop.f32.mrf.mxu3 }
 0x26d   : > { %v1315_v26 = vadd.f32 %v1314_v19, %v1166_v56  ;;  %v4612_v34 = vpop.f32.mrf.mxu1 }
 0x26f   : > { %v4540_v8 = vadd.f32 %v1463_v30, %v1315_v26 }
 0x271   : > { %1781 = vmatmul.f32.gmra.mxu2 %v4271_v31  ;;  %1870 = vmatmul.f32.gmra.mxu3 %v4290_v3  ;;  %v1174_v31 = vadd.f32 %v4454_v25, %v1089_v51 }
 0x274   : > { %v1322_v14 = vpop.f32.mrf.mxu2  ;;  %v1471_v48 = vpop.f32.mrf.mxu3 }
 0x275   : > { %v1323_v47 = vadd.f32 %v1322_v14, %v1170_v42  ;;  %v4622_v26 = vpop.f32.mrf.mxu1 }
 0x277   : > { %v4551_v53 = vadd.f32 %v1467_v60, %v1323_v47  ;;  %v4620_v60 = vpop.f32.mrf.mxu0 }
 0x279   : > { %1785 = vmatmul.f32.gmra.mxu2 %v4290_v3  ;;  %1874 = vmatmul.f32.gmra.mxu3 %v4310_v7  ;;  %v1178_v3 = vadd.f32 %v4475_v5, %v1093_v15 }
 0x27c   : > { %v1330_v21 = vpop.f32.mrf.mxu2  ;;  %v1475_v0 = vpop.f32.mrf.mxu3 }
 0x27d   : > { %v1331_v37 = vadd.f32 %v1330_v21, %v1174_v31 }
 0x27f   : > { %v4562_v28 = vadd.f32 %v1471_v48, %v1331_v37  ;;  %v4630_v14 = vpop.f32.mrf.mxu0  ;;  %v4634_v48 = vpop.f32.mrf.mxu1 }
 0x280   : > { %5643 = vst [vmem:[#allocation3_spill] sm:$0xff] %v4634_v48 }
 0x281   : > { %1789 = vmatmul.f32.gmra.mxu2 %v4310_v7  ;;  %1878 = vmatmul.f32.gmra.mxu3 %v4330_v45  ;;  %v1182_v7 = vadd.f32 %v4490_v2, %v1097_v57  ;;  %v5641_v2 = vld [vmem:[#allocation5_spill] sm:$0xff] }
 0x284   : > { %v1338_v52 = vpop.f32.mrf.mxu2  ;;  %v1479_v61 = vpop.f32.mrf.mxu3 }
 0x285   : > { %v1339_v25 = vadd.f32 %v1338_v52, %v1178_v3 }
 0x287   : > { %v4571_v11 = vadd.f32 %v1475_v0, %v1339_v25  ;;  %v1541_v31 = vpop.f32.mrf.mxu0 }
 0x288   : > { %v1542_v52 = vadd.f32 %v1541_v31, %v4519_v62 }
 0x289   : > { %1793 = vmatmul.f32.gmra.mxu2 %v4330_v45  ;;  %1882 = vmatmul.f32.gmra.mxu3 %v5639_v55 }
 0x28c   : > { %v1346_v18 = vpop.f32.mrf.mxu2  ;;  %v4580_v5 = vpop.f32.mrf.mxu3 }
 0x28d   : > { %v1347_v32 = vadd.f32 %v1346_v18, %v1182_v7  ;;  %v4653_v7 = vld [vmem:[%s5616_s4] ss:$0 sm:$0xff] }
 0x28f   : > { %v4584_v44 = vadd.f32 %v1479_v61, %v1347_v32  ;;  %v1546_v37 = vpop.f32.mrf.mxu0 }
 0x290   : > { %v1547_v18 = vadd.f32 %v1546_v37, %v4526_v59 }
 0x291   : > { %1797 = vmatmul.f32.gmra.mxu2 %v5639_v55  ;;  %1886 = vmatmul.f32.gmra.mxu3 %v5640_v38 }
 0x294   : > { %v4590_v49 = vpop.f32.mrf.mxu2  ;;  %v4592_v45 = vpop.f32.mrf.mxu3 }
 0x297   : > { %v1551_v25 = vpop.f32.mrf.mxu0 }
 0x299   : > { %1801 = vmatmul.f32.gmra.mxu2 %v5640_v38  ;;  %1890 = vmatmul.f32.gmra.mxu3 %v5641_v2 }
 0x29c   : > { %v4598_v40 = vpop.f32.mrf.mxu2  ;;  %v4600_v35 = vpop.f32.mrf.mxu3 }
 0x2a1   : > { %1805 = vmatmul.f32.gmra.mxu2 %v5641_v2  ;;  %1894 = vmatmul.f32.gmra.mxu3 %v5642_v1 }
 0x2a4   : > { %v4608_v30 = vpop.f32.mrf.mxu2  ;;  %v4610_v9 = vpop.f32.mrf.mxu3 }
 0x2a9   : > { %1809 = vmatmul.f32.gmra.mxu2 %v5642_v1  ;;  %1898 = vmatmul.f32.gmra.mxu3 %v4437_v13 }
 0x2ac   : > { %v4616_v56 = vpop.f32.mrf.mxu2  ;;  %v4618_v19 = vpop.f32.mrf.mxu3 }
 0x2b1   : > { %1813 = vmatmul.f32.gmra.mxu2 %v4437_v13  ;;  %1902 = vmatmul.f32.gmra.mxu3 %v4452_v6  ;;  %v1643_v13 = vpop.f32.mrf.mxu1 }
 0x2b2   : > { %v1644_v61 = vadd.f32 %v1643_v13, %v1542_v52  ;;  %v1556_v52 = vpop.f32.mrf.mxu0 }
 0x2b4   : > { %v4626_v50 = vpop.f32.mrf.mxu2  ;;  %v4628_v42 = vpop.f32.mrf.mxu3 }
 0x2b9   : > { %1817 = vmatmul.f32.gmra.mxu2 %v4452_v6  ;;  %1906 = vmatmul.f32.gmra.mxu3 %v4466_v43  ;;  %v1649_v3 = vpop.f32.mrf.mxu1 }
 0x2ba   : > { %v1650_v2 = vadd.f32 %v1649_v3, %v1547_v18 }
 0x2bc   : > { %v4636_v47 = vpop.f32.mrf.mxu2  ;;  %v4638_v51 = vpop.f32.mrf.mxu3 }
 0x2bd   : > { %5644 = vst [vmem:[#allocation4_spill] sm:$0xff] %v4638_v51 }
 0x2c1   : > { %1821 = vmatmul.f32.gmra.mxu2 %v4466_v43  ;;  %1910 = vmatmul.f32.gmra.mxu3 %v4482_v58 }
 0x2c4   : > { %v4642_v21 = vpop.f32.mrf.mxu2  ;;  %v4644_v0 = vpop.f32.mrf.mxu3 }
 0x2c5   : > { %5645 = vst [vmem:[#allocation5_spill] sm:$0xff] %v4644_v0 }
 0x2c9   : > { %1825 = vmatmul.f32.gmra.mxu2 %v4482_v58  ;;  %v1655_v58 = vpop.f32.mrf.mxu1 }
 0x2cc   : > { %v4647_v6 = vpop.f32.mrf.mxu2  ;;  %v1851_v15 = vpop.f32.mrf.mxu3 }
 0x2cd   : > { %5646 = vst [vmem:[#allocation6_spill] sm:$0xff] %v4647_v6 }
 0x2d1   : > { %v1661_v37 = vpop.f32.mrf.mxu1 }
 0x2d4   : > { %v1766_v57 = vpop.f32.mrf.mxu2  ;;  %v1855_v43 = vpop.f32.mrf.mxu3 }
 0x2d5   : > { %v1767_v55 = vadd.f32 %v1766_v57, %v1644_v61  ;;  %v1552_v61 = vadd.f32 %v1551_v25, %v4533_v29 }
 0x2d7   : > { %v1852_v32 = vadd.f32 %v1851_v15, %v1767_v55  ;;  %v1656_v15 = vadd.f32 %v1655_v58, %v1552_v61 }
 0x2d9   : > { %v4657_v38 = vadd.f32 %v4653_v7, %v1852_v32 }
 0x2db   : > { %v1937_v62 = vsel %vm1936_vm1, %v4657_v38, 0.0 }
 0x2dc   : > { %v1770_v1 = vpop.f32.mrf.mxu2  ;;  %1938 = vadd.xlane.f32.xlu1 %v1937_v62  ;;  %v1859_v31 = vpop.f32.mrf.mxu3  ;;  %v1557_v62 = vadd.f32 %v1556_v52, %v4540_v8 }
 0x2dd   : > { %v1771_v13 = vadd.f32 %v1770_v1, %v1650_v2  ;;  %v1561_v2 = vpop.f32.mrf.mxu0 }
 0x2de   : > { %v1662_v29 = vadd.f32 %v1661_v37, %v1557_v62  ;;  %v1562_v61 = vadd.f32 %v1561_v2, %v4551_v53 }
 0x2df   : > { %v1856_v57 = vadd.f32 %v1855_v43, %v1771_v13  ;;  %v1667_v43 = vpop.f32.mrf.mxu1 }
 0x2e1   : > { %v4663_v59 = vadd.f32 %v4653_v7, %v1856_v57 }
 0x2e3   : > { %v1940_v55 = vsel %vm1936_vm1, %v4663_v59, 0.0 }
 0x2e4   : > { %v1774_v3 = vpop.f32.mrf.mxu2  ;;  %1941 = vadd.xlane.f32.xlu1 %v1940_v55  ;;  %v1863_v32 = vpop.f32.mrf.mxu3 }
 0x2e5   : > { %v1775_v18 = vadd.f32 %v1774_v3, %v1656_v15  ;;  %v1566_v8 = vpop.f32.mrf.mxu0 }
 0x2e7   : > { %v1860_v0 = vadd.f32 %v1859_v31, %v1775_v18  ;;  %v1668_v31 = vadd.f32 %v1667_v43, %v1562_v61  ;;  %v1673_v3 = vpop.f32.mrf.mxu1  ;;  %v1567_v18 = vadd.f32 %v1566_v8, %v4562_v28 }
 0x2e9   : > { %v4669_v1 = vadd.f32 %v4653_v7, %v1860_v0 }
 0x2eb   : > { %v1943_v25 = vsel %vm1936_vm1, %v4669_v1, 0.0 }
 0x2ec   : > { %v1778_v58 = vpop.f32.mrf.mxu2  ;;  %1944 = vadd.xlane.f32.xlu2 %v1943_v25  ;;  %v1867_v15 = vpop.f32.mrf.mxu3 }
 0x2ed   : > { %v1779_v13 = vadd.f32 %v1778_v58, %v1662_v29  ;;  %v1571_v25 = vpop.f32.mrf.mxu0 }
 0x2ef   : > { %v1864_v57 = vadd.f32 %v1863_v32, %v1779_v13  ;;  %v1674_v32 = vadd.f32 %v1673_v3, %v1567_v18  ;;  %v1572_v13 = vadd.f32 %v1571_v25, %v4571_v11  ;;  %v3796_v18 = vmov 64.0  }
 0x2f0   : > { %3688 = vrcp.f32 %v3796_v18 }
 0x2f1   : > { %v4675_v55 = vadd.f32 %v4653_v7, %v1864_v57  ;;  %v1679_v57 = vpop.f32.mrf.mxu1 }
 0x2f2   : > { %v1680_v28 = vadd.f32 %v1679_v57, %v1572_v13  ;;  %v5648_v57 = vld [vmem:[#allocation7_spill] sm:$0xff] }
 0x2f3   : > { %v1946_v0 = vsel %vm1936_vm1, %v4675_v55, 0.0 }
 0x2f4   : > { %v1782_v52 = vpop.f32.mrf.mxu2  ;;  %1947 = vadd.xlane.f32.xlu2 %v1946_v0  ;;  %v1871_v53 = vpop.f32.mrf.mxu3 }
 0x2f5   : > { %v1783_v37 = vadd.f32 %v1782_v52, %v1668_v31 }
 0x2f7   : > { %v1868_v62 = vadd.f32 %v1867_v15, %v1783_v37 }
 0x2f9   : > { %v4681_v29 = vadd.f32 %v4653_v7, %v1868_v62  ;;  %v1576_v62 = vpop.f32.mrf.mxu0 }
 0x2fb   : > { %v1949_v2 = vsel %vm1936_vm1, %v4681_v29, 0.0 }
 0x2fc   : > { %v1786_v43 = vpop.f32.mrf.mxu2  ;;  %1950 = vadd.xlane.f32.xlu1 %v1949_v2  ;;  %v1875_v0 = vpop.f32.mrf.mxu3 }
 0x2fd   : > { %v1787_v58 = vadd.f32 %v1786_v43, %v1674_v32  ;;  %v1685_v32 = vpop.f32.mrf.mxu1 }
 0x2ff   : > { %v1872_v61 = vadd.f32 %v1871_v53, %v1787_v58  ;;  %v3689_v53 = vpop.eup %3688 }
 0x300   : > { %v1986_v2 = vmul.f32 64.0, %v3689_v53  ;;  %vm1990_vm2 = vweird.f32 %v3689_v53 }
 0x301   : > { %v4687_v31 = vadd.f32 %v4653_v7, %v1872_v61  ;;  %v1581_v58 = vpop.f32.mrf.mxu0 }
 0x302   : > { %v1987_v43 = vsub.f32 1.0, %v1986_v2  ;;  %v5649_v2 = vld [vmem:[#allocation8_spill] sm:$0xff] }
 0x303   : > { %v1952_v15 = vsel %vm1936_vm1, %v4687_v31, 0.0 }
 0x304   : > { %v1790_v8 = vpop.f32.mrf.mxu2  ;;  %1953 = vadd.xlane.f32.xlu2 %v1952_v15  ;;  %v1879_v13 = vpop.f32.mrf.mxu3  ;;  %v1988_v61 = vmul.f32 %v3689_v53, %v1987_v43  ;;  %v1105_v43 = vadd.f32 %v4557_v10, %v5649_v2 }
 0x305   : > { %v1791_v52 = vadd.f32 %v1790_v8, %v1680_v28  ;;  %v1101_v28 = vadd.f32 %v4544_v22, %v5648_v57  ;;  %v1691_v15 = vpop.f32.mrf.mxu1 }
 0x307   : > { %v1876_v37 = vadd.f32 %v1875_v0, %v1791_v52  ;;  %v1989_v0 = vadd.f32 %v3689_v53, %v1988_v61  ;;  %v1186_v52 = vadd.f32 %v4549_v24, %v1101_v28  ;;  %v1190_v24 = vadd.f32 %v4560_v27, %v1105_v43 }
 0x309   : > { %v4692_v3 = vadd.f32 %v4653_v7, %v1876_v37  ;;  %v1577_v37 = vadd.f32 %v1576_v62, %v4584_v44  ;;  %v1586_v18 = vpop.f32.mrf.mxu0 }
 0x30b   : > { %5647 = vst [vmem:[#allocation9_spill] sm:$0xff] %v4692_v3  ;;  %v1955_v11 = vsel %vm1936_vm1, %v4692_v3, 0.0  ;;  %v4701_v3 = vsel %vm1990_vm2, %v3689_v53, %v1989_v0  ;;  %v1686_v51 = vadd.f32 %v1685_v32, %v1577_v37  ;;  %v1363_v53 = vadd.f32 %v4598_v40, %v1190_v24 }
 0x30c   : > { %1956 = vadd.xlane.f32.xlu2 %v1955_v11  ;;  %v1794_v25 = vpop.f32.mrf.mxu2  ;;  %v1355_v11 = vadd.f32 %v4590_v49, %v1186_v52  ;;  %v1883_v6 = vpop.f32.mrf.mxu3  ;;  %v1109_v32 = vadd.f32 %v4569_v36, %v4492_v54 }
 0x30d   : > { %v1697_v57 = vpop.f32.mrf.mxu1  ;;  %v1795_v28 = vadd.f32 %v1794_v25, %v1686_v51 }
 0x30e   : > { %v1484_v22 = vadd.f32 %v4580_v5, %v1355_v11  ;;  %v1194_v40 = vadd.f32 %v4575_v4, %v1109_v32 }
 0x30f   : > { %v1880_v0 = vadd.f32 %v1879_v13, %v1795_v28 }
 0x310   : > { %v1582_v62 = vadd.f32 %v1581_v58, %v1484_v22  ;;  %v1371_v11 = vadd.f32 %v4608_v30, %v1194_v40 }
 0x311   : > { %v1591_v5 = vpop.f32.mrf.mxu0  ;;  %v4724_v54 = vadd.f32 %v4653_v7, %v1880_v0 }
 0x312   : > { %v1692_v51 = vadd.f32 %v1691_v15, %v1582_v62 }
 0x313   : > { %v1958_v4 = vsel %vm1936_vm1, %v4724_v54, 0.0 }
 0x314   : > { %v1798_v8 = vpop.f32.mrf.mxu2  ;;  %v1887_v52 = vpop.f32.mrf.mxu3 }
 0x315   : > { %v1799_v58 = vadd.f32 %v1798_v8, %v1692_v51  ;;  %v1703_v36 = vpop.f32.mrf.mxu1 }
 0x317   : > { %v1884_v43 = vadd.f32 %v1883_v6, %v1799_v58 }
 0x319   : > { %v1596_v30 = vpop.f32.mrf.mxu0 }
 0x31c   : > { %v1802_v49 = vpop.f32.mrf.mxu2  ;;  %v1891_v24 = vpop.f32.mrf.mxu3 }
 0x321   : > { %v1601_v51 = vpop.f32.mrf.mxu0 }
 0x324   : > { %v1806_v2 = vpop.f32.mrf.mxu2 }
 0x34f   : > { %v1939_v48 = vpop.xlane.xlu1 %1938 }
 0x350   : > { %v1992_v61 = vmul.f32 %v4701_v3, %v1939_v48 }
 0x352   : > { %v4709_v44 = vsub.f32 %v4657_v38, %v1992_v61  ;;  %v1488_v38 = vadd.f32 %v4592_v45, %v1363_v53  ;;  %v1113_v45 = vadd.f32 %v4582_v12, %v4496_v16  ;;  %v4741_v12 = vadd.f32 %v4653_v7, %v1884_v43 }
 0x354   : > { %v2024_v10 = vmul.f32 %v4709_v44, %v4709_v44  ;;  %v1587_v13 = vadd.f32 %v1586_v18, %v1488_v38  ;;  %v1492_v18 = vadd.f32 %v4600_v35, %v1371_v11  ;;  %v1198_v28 = vadd.f32 %v4588_v46, %v1113_v45  ;;  %v1709_v35 = vpop.f32.mrf.mxu1 }
 0x356   : > { %v2040_v48 = vsel %vm1936_vm1, %v2024_v10, 0.0  ;;  %v1698_v22 = vadd.f32 %v1697_v57, %v1587_v13  ;;  %v1592_v6 = vadd.f32 %v1591_v5, %v1492_v18  ;;  %v1379_v53 = vadd.f32 %v4616_v56, %v1198_v28 }
 0x357   : > { %2041 = vadd.xlane.f32.xlu1 %v2040_v48  ;;  %v1942_v27 = vpop.xlane.xlu1 %1941  ;;  %v1117_v10 = vadd.f32 %v4594_v33, %v4500_v23 }
 0x358   : > { %v1993_v25 = vmul.f32 %v4701_v3, %v1942_v27  ;;  %v1803_v62 = vadd.f32 %v1802_v49, %v1698_v22  ;;  %v1810_v49 = vpop.f32.mrf.mxu2  ;;  %v1704_v5 = vadd.f32 %v1703_v36, %v1592_v6  ;;  %v1496_v56 = vadd.f32 %v4610_v9, %v1379_v53 }
 0x359   : > { %v1202_v27 = vadd.f32 %v4602_v17, %v1117_v10  ;;  %v1121_v9 = vadd.f32 %v4606_v39, %v4504_v20 }
 0x35a   : > { %v4721_v37 = vsub.f32 %v4663_v59, %v1993_v25  ;;  %v1888_v32 = vadd.f32 %v1887_v52, %v1803_v62  ;;  %v1807_v38 = vadd.f32 %v1806_v2, %v1704_v5  ;;  %v1895_v25 = vpop.f32.mrf.mxu3  ;;  %v1597_v40 = vadd.f32 %v1596_v30, %v1496_v56 }
 0x35b   : > { %v1387_v52 = vadd.f32 %v4626_v50, %v1202_v27  ;;  %v1206_v43 = vadd.f32 %v4612_v34, %v1121_v9  ;;  %v1125_v30 = vadd.f32 %v4620_v60, %v4508_v63 }
 0x35c   : > { %v2025_v15 = vmul.f32 %v4721_v37, %v4721_v37  ;;  %v4758_v33 = vadd.f32 %v4653_v7, %v1888_v32  ;;  %v1892_v36 = vadd.f32 %v1891_v24, %v1807_v38  ;;  %v1715_v11 = vpop.f32.mrf.mxu1 }
 0x35d   : > { %v1500_v13 = vadd.f32 %v4618_v19, %v1387_v52  ;;  %v1395_v19 = vadd.f32 %v4636_v47, %v1206_v43 }
 0x35e   : > { %v2043_v59 = vsel %vm1936_vm1, %v2025_v15, 0.0  ;;  %v1710_v15 = vadd.f32 %v1709_v35, %v1597_v40  ;;  %v4775_v39 = vadd.f32 %v4653_v7, %v1892_v36  ;;  %v5652_v40 = vld [vmem:[#allocation9_spill] sm:$0xff] }
 0x35f   : > { %v1945_v8 = vpop.xlane.xlu2 %1944  ;;  %1959 = vadd.xlane.f32.xlu1 %v1958_v4  ;;  %2044 = vadd.xlane.f32.xlu0 %v2043_v59  ;;  %v1602_v59 = vadd.f32 %v1601_v51, %v1500_v13  ;;  %v1504_v47 = vadd.f32 %v4628_v42, %v1395_v19  ;;  %v1129_v42 = vadd.f32 %v4630_v14, %v4512_v41  ;;  %v5651_v51 = vld [vmem:[#allocation3_spill] sm:$0xff]  ;;  %v5654_v19 = vld [vmem:[#allocation5_spill] sm:$0xff] }
 0x360   : > { %v1994_v61 = vmul.f32 %v4701_v3, %v1945_v8  ;;  %v1814_v45 = vpop.f32.mrf.mxu2  ;;  %v1811_v4 = vadd.f32 %v1810_v49, %v1710_v15  ;;  %v1606_v8 = vpop.f32.mrf.mxu0  ;;  %v1967_v34 = vsel %vm1936_vm1, %v4775_v39, 0.0 }
 0x361   : > { %v1716_v24 = vadd.f32 %v1715_v11, %v1602_v59  ;;  %v1607_v10 = vadd.f32 %v1606_v8, %v1504_v47  ;;  %v1214_v38 = vadd.f32 %v5651_v51, %v1129_v42 }
 0x362   : > { %v4738_v16 = vsub.f32 %v4669_v1, %v1994_v61  ;;  %v1961_v1 = vsel %vm1936_vm1, %v4741_v12, 0.0  ;;  %v1899_v18 = vpop.f32.mrf.mxu3  ;;  %v1896_v61 = vadd.f32 %v1895_v25, %v1811_v4 }
 0x363   : > { %v1815_v53 = vadd.f32 %v1814_v45, %v1716_v24 }
 0x364   : > { %v2026_v57 = vmul.f32 %v4738_v16, %v4738_v16  ;;  %v1721_v6 = vpop.f32.mrf.mxu1  ;;  %v4792_v60 = vadd.f32 %v4653_v7, %v1896_v61 }
 0x365   : > { %v1722_v56 = vadd.f32 %v1721_v6, %v1607_v10 }
 0x366   : > { %v2046_v46 = vsel %vm1936_vm1, %v2026_v57, 0.0  ;;  %v1210_v57 = vadd.f32 %v4622_v26, %v1125_v30  ;;  %v1970_v26 = vsel %vm1936_vm1, %v4792_v60, 0.0 }
 0x367   : > { %2047 = vadd.xlane.f32.xlu2 %v2046_v46  ;;  %v1948_v0 = vpop.xlane.xlu2 %1947  ;;  %1962 = vadd.xlane.f32.xlu1 %v1961_v1  ;;  %v1900_v1 = vadd.f32 %v1899_v18, %v1815_v53 }
 0x368   : > { %v1995_v48 = vmul.f32 %v4701_v3, %v1948_v0  ;;  %v1818_v35 = vpop.f32.mrf.mxu2  ;;  %v1403_v32 = vadd.f32 %v4642_v21, %v1210_v57  ;;  %v1611_v49 = vpop.f32.mrf.mxu0  ;;  %v2357_v21 = vld [vmem:[%s5619_s7 + $0x38] sm:$0xff] }
 0x369   : > { %v4807_v14 = vand.u32 4294901760, %v2357_v21  ;;  %v4811_v52 = vadd.f32 %v4653_v7, %v1900_v1  ;;  %v1819_v25 = vadd.f32 %v1818_v35, %v1722_v56  ;;  %v2356_v1 = vld [vmem:[%s5619_s7 + $0x30] sm:$0xff] }
 0x36a   : > { %v4755_v23 = vsub.f32 %v4675_v55, %v1995_v48  ;;  %v1964_v55 = vsel %vm1936_vm1, %v4758_v33, 0.0  ;;  %v1903_v0 = vpop.f32.mrf.mxu3  ;;  %v5650_v48 = vld [vmem:[#allocation4_spill] sm:$0xff] }
 0x36b   : > { %v1508_v27 = vadd.f32 %v5650_v48, %v1403_v32  ;;  %2419 = vmatpush.msrb.mxu0 %v4807_v14  ;;  %v4818_v9 = vsub.f32 %v2357_v21, %v4807_v14  ;;  %2806 = vmatpush.msra.mxu3 %v4807_v14  ;;  %v1973_v45 = vsel %vm1936_vm1, %v4811_v52, 0.0  ;;  %v2353_v48 = vld [vmem:[%s5619_s7 + $0x18] sm:$0xff] }
 0x36c   : > { %v2027_v58 = vmul.f32 %v4755_v23, %v4755_v23  ;;  %v1727_v36 = vpop.f32.mrf.mxu1 }
 0x36d   : > { %2694 = vmatpush.msra.mxu2 %v4818_v9 }
 0x36e   : > { %v2049_v17 = vsel %vm1936_vm1, %v2027_v58, 0.0 }
 0x36f   : > { %2050 = vadd.xlane.f32.xlu2 %v2049_v17  ;;  %1965 = vadd.xlane.f32.xlu1 %v1964_v55  ;;  %v1951_v50 = vpop.xlane.xlu1 %1950  ;;  %v1612_v17 = vadd.f32 %v1611_v49, %v1508_v27  ;;  %v5653_v55 = vld [vmem:[#allocation6_spill] sm:$0xff]  ;;  %v4851_v49 = vand.u32 4294901760, %v2356_v1 }
 0x370   : > { %v1996_v2 = vmul.f32 %v4701_v3, %v1951_v50  ;;  %v1411_v13 = vadd.f32 %v5653_v55, %v1214_v38  ;;  %v2573_v50 = vand.u32 4294901760, %v4818_v9  ;;  %v1822_v15 = vpop.f32.mrf.mxu2  ;;  %v1616_v18 = vpop.f32.mrf.mxu0  ;;  %v4882_v38 = vand.u32 4294901760, %v2353_v48 }
 0x371   : > { %v1728_v59 = vadd.f32 %v1727_v36, %v1612_v17  ;;  %2421 = vmatpush.msrb.mxu0 %v4851_v49  ;;  %2808 = vmatpush.msra.mxu3 %v4851_v49 }
 0x372   : > { %v4772_v20 = vsub.f32 %v4681_v29, %v1996_v2  ;;  %v1904_v2 = vadd.f32 %v1903_v0, %v1819_v25  ;;  %v2574_v4 = vsub.f32 %v4818_v9, %v2573_v50  ;;  %v1512_v8 = vadd.f32 %v5654_v19, %v1411_v13  ;;  %v1907_v30 = vpop.f32.mrf.mxu3  ;;  %v2354_v0 = vld [vmem:[%s5619_s7 + $0x20] sm:$0xff]  ;;  %v2352_v25 = vld [vmem:[%s5619_s7 + $0x10] sm:$0xff] }
 0x373   : > { %v1823_v61 = vadd.f32 %v1822_v15, %v1728_v59  ;;  %v4872_v56 = vand.u32 4294901760, %v2354_v0  ;;  %v2596_v55 = vsub.f32 %v2353_v48, %v4882_v38  ;;  %v4892_v13 = vand.u32 4294901760, %v2352_v25  ;;  %v2350_v59 = vld [vmem:[%s5619_s7] sm:$0xff] }
 0x374   : > { %v2028_v22 = vmul.f32 %v4772_v20, %v4772_v20  ;;  %v1733_v24 = vpop.f32.mrf.mxu1 }
 0x375   : > { %v2590_v51 = vsub.f32 %v2354_v0, %v4872_v56 }
 0x376   : > { %v2052_v29 = vsel %vm1936_vm1, %v2028_v22, 0.0  ;;  %v2575_v22 = vand.u32 4294901760, %v2574_v4  ;;  %v2602_v4 = vsub.f32 %v2352_v25, %v4892_v13 }
 0x377   : > { %v1954_v28 = vpop.xlane.xlu2 %1953  ;;  %1968 = vadd.xlane.f32.xlu1 %v1967_v34  ;;  %2053 = vadd.xlane.f32.xlu2 %v2052_v29  ;;  %v4834_v34 = vadd.f32 %v4653_v7, %v1904_v2  ;;  %v1617_v29 = vadd.f32 %v1616_v18, %v1512_v8  ;;  %v2591_v17 = vand.u32 4294901760, %v2590_v51  ;;  %v2432_v18 = vand.u32 4294901760, %v2350_v59 }
 0x378   : > { %v1997_v62 = vmul.f32 %v4701_v3, %v1954_v28  ;;  %2576 = vmatpush.msrb.mxu1 %v2575_v22  ;;  %v1908_v28 = vadd.f32 %v1907_v30, %v1823_v61  ;;  %v2603_v30 = vand.u32 4294901760, %v2602_v4 }
 0x379   : > { %v1976_v47 = vsel %vm1936_vm1, %v4834_v34, 0.0  ;;  %v1734_v6 = vadd.f32 %v1733_v24, %v1617_v29  ;;  %v2592_v2 = vsub.f32 %v2590_v51, %v2591_v17  ;;  %v2614_v24 = vsub.f32 %v2350_v59, %v2432_v18 }
 0x37a   : > { %v4789_v63 = vsub.f32 %v4687_v31, %v1997_v62  ;;  %v1826_v62 = vpop.f32.mrf.mxu2  ;;  %v4839_v57 = vadd.f32 %v4653_v7, %v1908_v28  ;;  %v1911_v35 = vpop.f32.mrf.mxu3  ;;  %v2604_v28 = vsub.f32 %v2602_v4, %v2603_v30 }
 0x37b   : > { %v1827_v53 = vadd.f32 %v1826_v62, %v1734_v6  ;;  %v2593_v19 = vand.u32 4294901760, %v2592_v2  ;;  %v2615_v62 = vand.u32 4294901760, %v2614_v24 }
 0x37c   : > { %v2029_v46 = vmul.f32 %v4789_v63, %v4789_v63  ;;  %v1979_v32 = vsel %vm1936_vm1, %v4839_v57, 0.0  ;;  %v2605_v6 = vand.u32 4294901760, %v2604_v28 }
 0x37d   : > { %v1912_v10 = vadd.f32 %v1911_v35, %v1827_v53  ;;  %v2616_v35 = vsub.f32 %v2614_v24, %v2615_v62 }
 0x37e   : > { %v2055_v31 = vsel %vm1936_vm1, %v2029_v46, 0.0 }
 0x37f   : > { %v1957_v5 = vpop.xlane.xlu2 %1956  ;;  %1971 = vadd.xlane.f32.xlu1 %v1970_v26  ;;  %2056 = vadd.xlane.f32.xlu2 %v2055_v31  ;;  %v4844_v46 = vadd.f32 %v4653_v7, %v1912_v10  ;;  %v2355_v26 = vld [vmem:[%s5619_s7 + $0x28] sm:$0xff]  ;;  %v4858_v31 = vsub.f32 %v2356_v1, %v4851_v49 }
 0x380   : > { %v1998_v41 = vmul.f32 %v4701_v3, %v1957_v5  ;;  %v4860_v7 = vand.u32 4294901760, %v2355_v26 }
 0x381   : > { %v1982_v42 = vsel %vm1936_vm1, %v4844_v46, 0.0  ;;  %v2579_v5 = vand.u32 4294901760, %v4858_v31  ;;  %2697 = vmatpush.msra.mxu2 %v4858_v31 }
 0x382   : > { %v4814_v58 = vsub.f32 %v5652_v40, %v1998_v41  ;;  %2423 = vmatpush.msrb.mxu0 %v4860_v7  ;;  %v4869_v21 = vsub.f32 %v2355_v26, %v4860_v7  ;;  %2810 = vmatpush.msra.mxu3 %v4860_v7 }
 0x383   : > { %v2580_v27 = vsub.f32 %v4858_v31, %v2579_v5 }
 0x384   : > { %v2030_v11 = vmul.f32 %v4814_v58, %v4814_v58  ;;  %v2585_v41 = vand.u32 4294901760, %v4869_v21  ;;  %2700 = vmatpush.msra.mxu2 %v4869_v21  ;;  %2425 = vmatpush.msrb.mxu0 %v4872_v56 }
 0x385   : > { %2812 = vmatpush.msra.mxu3 %v4872_v56  ;;  %v2581_v40 = vand.u32 4294901760, %v2580_v27 }
 0x386   : > { %v2058_v43 = vsel %vm1936_vm1, %v2030_v11, 0.0  ;;  %v2586_v36 = vsub.f32 %v4869_v21, %v2585_v41  ;;  %2703 = vmatpush.msra.mxu2 %v2590_v51  ;;  %2427 = vmatpush.msrb.mxu0 %v4882_v38  ;;  %v2351_v11 = vld [vmem:[%s5619_s7 + $0x8] sm:$0xff] }
 0x387   : > { %1974 = vadd.xlane.f32.xlu1 %v1973_v45  ;;  %2059 = vadd.xlane.f32.xlu2 %v2058_v43  ;;  %v2597_v45 = vand.u32 4294901760, %v2596_v55  ;;  %v4898_v43 = vand.u32 4294901760, %v2351_v11 }
 0x388   : > { %2814 = vmatpush.msra.mxu3 %v4882_v38  ;;  %2582 = vmatpush.msrb.mxu1 %v2581_v40  ;;  %v2587_v15 = vand.u32 4294901760, %v2586_v36 }
 0x389   : > { %2706 = vmatpush.msra.mxu2 %v2596_v55  ;;  %2429 = vmatpush.msrb.mxu0 %v4892_v13  ;;  %v2598_v8 = vsub.f32 %v2596_v55, %v2597_v45  ;;  %v2608_v22 = vsub.f32 %v2351_v11, %v4898_v43 }
 0x38a   : > { %2816 = vmatpush.msra.mxu3 %v4892_v13  ;;  %2588 = vmatpush.msrb.mxu1 %v2587_v15 }
 0x38b   : > { %2709 = vmatpush.msra.mxu2 %v2602_v4  ;;  %v2599_v61 = vand.u32 4294901760, %v2598_v8  ;;  %v2609_v29 = vand.u32 4294901760, %v2608_v22  ;;  %2431 = vmatpush.msrb.mxu0 %v4898_v43 }
 0x38c   : > { %2818 = vmatpush.msra.mxu3 %v4898_v43  ;;  %2594 = vmatpush.msrb.mxu1 %v2593_v19 }
 0x38d   : > { %2712 = vmatpush.msra.mxu2 %v2608_v22  ;;  %2433 = vmatpush.msrb.mxu0 %v2432_v18 }
 0x38e   : > { %2820 = vmatpush.msra.mxu3 %v2432_v18  ;;  %2600 = vmatpush.msrb.mxu1 %v2599_v61 }
 0x38f   : > { %1977 = vadd.xlane.f32.xlu1 %v1976_v47  ;;  %v2610_v47 = vsub.f32 %v2608_v22, %v2609_v29  ;;  %2715 = vmatpush.msra.mxu2 %v2614_v24 }
 0x390   : > { %2929 = vmatpush.msra.mxu0 %v2573_v50  ;;  %2606 = vmatpush.msrb.mxu1 %v2605_v6 }
 0x391   : > { %v2611_v53 = vand.u32 4294901760, %v2610_v47 }
 0x392   : > { %2933 = vmatpush.msra.mxu0 %v2579_v5 }
 0x393   : > { %2612 = vmatpush.msrb.mxu1 %v2611_v53 }
 0x394   : > { %2937 = vmatpush.msra.mxu0 %v2585_v41 }
 0x396   : > { %2941 = vmatpush.msra.mxu0 %v2591_v17 }
 0x397   : > { %1980 = vadd.xlane.f32.xlu1 %v1979_v32  ;;  %v2617_v32 = vand.u32 4294901760, %v2616_v35 }
 0x398   : > { %2945 = vmatpush.msra.mxu0 %v2597_v45 }
 0x399   : > { %2618 = vmatpush.msrb.mxu1 %v2617_v32 }
 0x39a   : > { %2949 = vmatpush.msra.mxu0 %v2603_v30 }
 0x39b   : > { %3032 = vmatpush.msra.mxu1 %v4807_v14 }
 0x39c   : > { %2953 = vmatpush.msra.mxu0 %v2609_v29 }
 0x39d   : > { %3034 = vmatpush.msra.mxu1 %v4851_v49 }
 0x39e   : > { %2957 = vmatpush.msra.mxu0 %v2615_v62 }
 0x39f   : > { %1983 = vadd.xlane.f32.xlu1 %v1982_v42  ;;  %3036 = vmatpush.msra.mxu1 %v4860_v7 }
 0x3a1   : > { %3038 = vmatpush.msra.mxu1 %v4872_v56 }
 0x3a3   : > { %3040 = vmatpush.msra.mxu1 %v4882_v38 }
 0x3a5   : > { %3042 = vmatpush.msra.mxu1 %v4892_v13  ;;  %v4935_v13 = vld [vmem:[%s5617_s5] ss:$0 sm:$0xff] }
 0x3a7   : > { %3044 = vmatpush.msra.mxu1 %v4898_v43 }
 0x3a9   : > { %3046 = vmatpush.msra.mxu1 %v2432_v18 }
 0x3ca   : > { %v2042_v10 = vpop.xlane.xlu1 %2041 }
 0x3cb   : > { %v2088_v42 = vmul.f32 %v2042_v10, %v4701_v3 }
 0x3cd   : > { %v2104_v1 = vadd.f32 1e-05, %v2088_v42 }
 0x3cf   : > { %3690 = vrsqrt.f32 %v2104_v1  ;;  %vm2126_vm4 = vweird.f32 %v2104_v1 }
 0x3d2   : > { %v2045_v9 = vpop.xlane.xlu0 %2044  ;;  %v1960_v50 = vpop.xlane.xlu1 %1959 }
 0x3d3   : > { %v2089_v26 = vmul.f32 %v2045_v9, %v4701_v3  ;;  %v1999_v31 = vmul.f32 %v4701_v3, %v1960_v50 }
 0x3d5   : > { %v3691_v0 = vpop.eup %3690  ;;  %v2105_v5 = vadd.f32 1e-05, %v2089_v26  ;;  %v4919_v14 = vsub.f32 %v4724_v54, %v1999_v31 }
 0x3d6   : > { %v2121_v21 = vmul.f32 %v3691_v0, %v2104_v1  ;;  %vm2127_vm3 = vweird.f32 %v3691_v0 }
 0x3d7   : > { %3692 = vrsqrt.f32 %v2105_v5  ;;  %v2031_v49 = vmul.f32 %v4919_v14, %v4919_v14  ;;  %vm2128_vm5 = vmor %vm2126_vm4, %vm2127_vm3  ;;  %vm2136_vm7 = vweird.f32 %v2105_v5 }
 0x3d8   : > { %v2122_v7 = vmul.f32 %v3691_v0, %v2121_v21 }
 0x3d9   : > { %v2061_v48 = vsel %vm1936_vm1, %v2031_v49, 0.0 }
 0x3da   : > { %v2123_v27 = vmul.f32 0.5, %v2122_v7  ;;  %v2048_v56 = vpop.xlane.xlu2 %2047  ;;  %2062 = vadd.xlane.f32.xlu2 %v2061_v48  ;;  %v1963_v41 = vpop.xlane.xlu1 %1962 }
 0x3db   : > { %v2090_v54 = vmul.f32 %v2048_v56, %v4701_v3  ;;  %v2000_v51 = vmul.f32 %v4701_v3, %v1963_v41 }
 0x3dc   : > { %v2124_v38 = vsub.f32 1.5, %v2123_v27 }
 0x3dd   : > { %v3693_v25 = vpop.eup %3692  ;;  %v2106_v40 = vadd.f32 1e-05, %v2090_v54  ;;  %v4930_v36 = vsub.f32 %v4741_v12, %v2000_v51  ;;  %v4942_v12 = vld [vmem:[%s5618_s6] ss:$0 sm:$0xff] }
 0x3de   : > { %v2125_v17 = vmul.f32 %v3691_v0, %v2124_v38  ;;  %v2131_v55 = vmul.f32 %v3693_v25, %v2105_v5  ;;  %vm2137_vm6 = vweird.f32 %v3693_v25 }
 0x3df   : > { %3694 = vrsqrt.f32 %v2106_v40  ;;  %v2032_v11 = vmul.f32 %v4930_v36, %v4930_v36  ;;  %vm2138_vm8 = vmor %vm2136_vm7, %vm2137_vm6  ;;  %vm2146_vm10 = vweird.f32 %v2106_v40 }
 0x3e0   : > { %v2129_v15 = vsel %vm2128_vm5, %v3691_v0, %v2125_v17  ;;  %v2132_v2 = vmul.f32 %v3693_v25, %v2131_v55 }
 0x3e1   : > { %v2280_v45 = vmul.f32 %v2129_v15, %v4709_v44  ;;  %v2064_v43 = vsel %vm1936_vm1, %v2032_v11, 0.0 }
 0x3e2   : > { %v2133_v4 = vmul.f32 0.5, %v2132_v2  ;;  %v2051_v59 = vpop.xlane.xlu2 %2050  ;;  %2065 = vadd.xlane.f32.xlu2 %v2064_v43  ;;  %v1966_v19 = vpop.xlane.xlu1 %1965 }
 0x3e3   : > { %v2299_v8 = vmul.f32 %v4935_v13, %v2280_v45  ;;  %v2091_v22 = vmul.f32 %v2051_v59, %v4701_v3  ;;  %v2001_v18 = vmul.f32 %v4701_v3, %v1966_v19 }
 0x3e4   : > { %v2134_v30 = vsub.f32 1.5, %v2133_v4 }
 0x3e5   : > { %v3695_v61 = vpop.eup %3694  ;;  %v2318_v29 = vadd.f32 %v4942_v12, %v2299_v8  ;;  %v4950_v24 = vadd.f32 1e-05, %v2091_v22  ;;  %v4953_v44 = vsub.f32 %v4758_v33, %v2001_v18 }
 0x3e6   : > { %v2135_v28 = vmul.f32 %v3693_v25, %v2134_v30  ;;  %v2141_v47 = vmul.f32 %v3695_v61, %v2106_v40  ;;  %vm2147_vm9 = vweird.f32 %v3695_v61 }
 0x3e7   : > { %v2334_v62 = vmax.f32 %v2318_v29, 0.0  ;;  %3696 = vrsqrt.f32 %v4950_v24  ;;  %v2033_v6 = vmul.f32 %v4953_v44, %v4953_v44  ;;  %vm2148_vm11 = vmor %vm2146_vm10, %vm2147_vm9  ;;  %vm2156_vm13 = vweird.f32 %v4950_v24 }
 0x3e8   : > { %v2139_v53 = vsel %vm2138_vm8, %v3693_v25, %v2135_v28  ;;  %v2142_v35 = vmul.f32 %v3695_v61, %v2141_v47 }
 0x3e9   : > { %v2281_v10 = vmul.f32 %v2139_v53, %v4721_v37  ;;  %v2067_v32 = vsel %vm1936_vm1, %v2033_v6, 0.0  ;;  %v2363_v42 = vsel %vm1936_vm1, %v2334_v62, 0 }
 0x3ea   : > { %v2143_v33 = vmul.f32 0.5, %v2142_v35  ;;  %v2054_v1 = vpop.xlane.xlu2 %2053  ;;  %2068 = vadd.xlane.f32.xlu2 %v2067_v32  ;;  %v1969_v9 = vpop.xlane.xlu1 %1968  ;;  %v4961_v50 = vand.u32 4294901760, %v2363_v42 }
 0x3eb   : > { %v2300_v26 = vmul.f32 %v4935_v13, %v2281_v10  ;;  %v2092_v31 = vmul.f32 %v2054_v1, %v4701_v3  ;;  %v2002_v0 = vmul.f32 %v4701_v3, %v1969_v9 }
 0x3ec   : > { %v2144_v5 = vsub.f32 1.5, %v2143_v33  ;;  %2620 = vmatmul.f32.vlgmr.msrb.gmra.mxu1 %v4961_v50  ;;  %v2435_v37 = vsub.f32 %v2363_v42, %v4961_v50 }
 0x3ed   : > { %v3697_v21 = vpop.eup %3696  ;;  %v4968_v49 = vadd.f32 1e-05, %v2092_v31  ;;  %v4971_v7 = vsub.f32 %v4775_v39, %v2002_v0  ;;  %v2319_v48 = vadd.f32 %v4942_v12, %v2300_v26 }
 0x3ee   : > { %v2145_v27 = vmul.f32 %v3695_v61, %v2144_v5  ;;  %v2151_v56 = vmul.f32 %v3697_v21, %v4950_v24  ;;  %2718 = vmatmul.f32.vlgmr.msra.gmra.mxu2 %v2435_v37  ;;  %v2436_v41 = vand.u32 4294901760, %v2435_v37  ;;  %vm2157_vm12 = vweird.f32 %v3697_v21 }
 0x3ef   : > { %3698 = vrsqrt.f32 %v4968_v49  ;;  %v2034_v54 = vmul.f32 %v4971_v7, %v4971_v7  ;;  %v2335_v51 = vmax.f32 %v2319_v48, 0.0  ;;  %vm2158_vm14 = vmor %vm2156_vm13, %vm2157_vm12  ;;  %vm2166_vm2 = vweird.f32 %v4968_v49 }
 0x3f0   : > { %v2149_v38 = vsel %vm2148_vm11, %v3695_v61, %v2145_v27  ;;  %v2152_v25 = vmul.f32 %v3697_v21, %v2151_v56  ;;  %2824 = vmatmul.f32.vlgmr.msra.gmra.mxu3 %v2436_v41  ;;  %v2437_v39 = vsub.f32 %v2435_v37, %v2436_v41 }
 0x3f1   : > { %v2282_v17 = vmul.f32 %v2149_v38, %v4738_v16  ;;  %v2070_v55 = vsel %vm1936_vm1, %v2034_v54, 0.0  ;;  %v2366_v40 = vsel %vm1936_vm1, %v2335_v51, 0 }
 0x3f2   : > { %v2153_v11 = vmul.f32 0.5, %v2152_v25  ;;  %v2057_v15 = vpop.xlane.xlu2 %2056  ;;  %2071 = vadd.xlane.f32.xlu2 %v2070_v55  ;;  %v1972_v2 = vpop.xlane.xlu1 %1971  ;;  %v2438_v45 = vand.u32 4294901760, %v2437_v39  ;;  %v4981_v43 = vand.u32 4294901760, %v2366_v40 }
 0x3f3   : > { %v2301_v4 = vmul.f32 %v4935_v13, %v2282_v17  ;;  %v2093_v59 = vmul.f32 %v2057_v15, %v4701_v3  ;;  %v2003_v19 = vmul.f32 %v4701_v3, %v1972_v2 }
 0x3f4   : > { %v2154_v8 = vsub.f32 1.5, %v2153_v11  ;;  %2439 = vmatmul.f32.vlgmr.msrb.gmra.mxu0 %v2438_v45  ;;  %2624 = vmatmul.f32.gmra.mxu1 %v4981_v43  ;;  %v2443_v16 = vsub.f32 %v2366_v40, %v4981_v43 }
 0x3f5   : > { %v3699_v22 = vpop.eup %3698  ;;  %v4988_v18 = vadd.f32 1e-05, %v2093_v59  ;;  %v4991_v30 = vsub.f32 %v4792_v60, %v2003_v19  ;;  %v2320_v61 = vadd.f32 %v4942_v12, %v2301_v4 }
 0x3f6   : > { %v2155_v29 = vmul.f32 %v3697_v21, %v2154_v8  ;;  %v2161_v28 = vmul.f32 %v3699_v22, %v4968_v49  ;;  %2723 = vmatmul.f32.gmra.mxu2 %v2443_v16  ;;  %v2444_v47 = vand.u32 4294901760, %v2443_v16  ;;  %vm2167_vm15 = vweird.f32 %v3699_v22 }
 0x3f7   : > { %3700 = vrsqrt.f32 %v4988_v18  ;;  %v2035_v62 = vmul.f32 %v4991_v30, %v4991_v30  ;;  %v2336_v6 = vmax.f32 %v2320_v61, 0.0  ;;  %vm2168_vm3 = vmor %vm2166_vm2, %vm2167_vm15  ;;  %vm2176_vm5 = vweird.f32 %v4988_v18 }
 0x3f8   : > { %v2159_v53 = vsel %vm2158_vm14, %v3697_v21, %v2155_v29  ;;  %v2162_v35 = vmul.f32 %v3699_v22, %v2161_v28  ;;  %2830 = vmatmul.f32.gmra.mxu3 %v2444_v47  ;;  %v2445_v60 = vsub.f32 %v2443_v16, %v2444_v47 }
 0x3f9   : > { %v2283_v10 = vmul.f32 %v2159_v53, %v4755_v23  ;;  %v2073_v32 = vsel %vm1936_vm1, %v2035_v62, 0.0  ;;  %v2369_v24 = vsel %vm1936_vm1, %v2336_v6, 0 }
 0x3fa   : > { %v2163_v42 = vmul.f32 0.5, %v2162_v35  ;;  %v2060_v33 = vpop.xlane.xlu2 %2059  ;;  %v1975_v1 = vpop.xlane.xlu1 %1974  ;;  %2074 = vadd.xlane.f32.xlu1 %v2073_v32  ;;  %v2446_v9 = vand.u32 4294901760, %v2445_v60  ;;  %v5002_v26 = vand.u32 4294901760, %v2369_v24 }
 0x3fb   : > { %v2302_v31 = vmul.f32 %v4935_v13, %v2283_v10  ;;  %v2094_v0 = vmul.f32 %v2060_v33, %v4701_v3  ;;  %v2004_v5 = vmul.f32 %v4701_v3, %v1975_v1 }
 0x3fc   : > { %v2164_v37 = vsub.f32 1.5, %v2163_v42  ;;  %2447 = vmatmul.f32.gmra.mxu0 %v2446_v9  ;;  %2628 = vmatmul.f32.gmra.mxu1 %v5002_v26  ;;  %v2451_v23 = vsub.f32 %v2369_v24, %v5002_v26 }
 0x3fd   : > { %v3701_v21 = vpop.eup %3700  ;;  %v5009_v48 = vadd.f32 1e-05, %v2094_v0  ;;  %v5012_v27 = vsub.f32 %v4811_v52, %v2004_v5  ;;  %v2321_v56 = vadd.f32 %v4942_v12, %v2302_v31 }
 0x3fe   : > { %v2165_v41 = vmul.f32 %v3699_v22, %v2164_v37  ;;  %v2171_v54 = vmul.f32 %v3701_v21, %v4988_v18  ;;  %2728 = vmatmul.f32.gmra.mxu2 %v2451_v23  ;;  %v2452_v51 = vand.u32 4294901760, %v2451_v23  ;;  %vm2177_vm4 = vweird.f32 %v3701_v21 }
 0x3ff   : > { %3702 = vrsqrt.f32 %v5009_v48  ;;  %v2036_v38 = vmul.f32 %v5012_v27, %v5012_v27  ;;  %v2337_v25 = vmax.f32 %v2321_v56, 0.0  ;;  %vm2178_vm6 = vmor %vm2176_vm5, %vm2177_vm4  ;;  %vm2186_vm8 = vweird.f32 %v5009_v48 }
 0x400   : > { %v2169_v39 = vsel %vm2168_vm3, %v3699_v22, %v2165_v41  ;;  %v2172_v17 = vmul.f32 %v3701_v21, %v2171_v54  ;;  %2836 = vmatmul.f32.gmra.mxu3 %v2452_v51  ;;  %v2453_v52 = vsub.f32 %v2451_v23, %v2452_v51 }
 0x401   : > { %v2284_v55 = vmul.f32 %v2169_v39, %v4772_v20  ;;  %v2076_v40 = vsel %vm1936_vm1, %v2036_v38, 0.0  ;;  %v2372_v49 = vsel %vm1936_vm1, %v2337_v25, 0 }
 0x402   : > { %v2173_v11 = vmul.f32 0.5, %v2172_v17  ;;  %2077 = vadd.xlane.f32.xlu2 %v2076_v40  ;;  %v1978_v15 = vpop.xlane.xlu1 %1977  ;;  %v2454_v2 = vand.u32 4294901760, %v2453_v52  ;;  %v5023_v45 = vand.u32 4294901760, %v2372_v49 }
 0x403   : > { %v2303_v4 = vmul.f32 %v4935_v13, %v2284_v55  ;;  %v2005_v59 = vmul.f32 %v4701_v3, %v1978_v15 }
 0x404   : > { %v2174_v19 = vsub.f32 1.5, %v2173_v11  ;;  %2455 = vmatmul.f32.gmra.mxu0 %v2454_v2  ;;  %2632 = vmatmul.f32.gmra.mxu1 %v5023_v45  ;;  %v2459_v20 = vsub.f32 %v2372_v49, %v5023_v45 }
 0x405   : > { %v3703_v8 = vpop.eup %3702  ;;  %v5030_v16 = vsub.f32 %v4834_v34, %v2005_v59  ;;  %v2322_v22 = vadd.f32 %v4942_v12, %v2303_v4 }
 0x406   : > { %v2175_v61 = vmul.f32 %v3701_v21, %v2174_v19  ;;  %v2181_v29 = vmul.f32 %v3703_v8, %v5009_v48  ;;  %2733 = vmatmul.f32.gmra.mxu2 %v2459_v20  ;;  %v2460_v28 = vand.u32 4294901760, %v2459_v20  ;;  %vm2187_vm7 = vweird.f32 %v3703_v8 }
 0x407   : > { %v2037_v47 = vmul.f32 %v5030_v16, %v5030_v16  ;;  %v2338_v62 = vmax.f32 %v2322_v22, 0.0  ;;  %vm2188_vm9 = vmor %vm2186_vm8, %vm2187_vm7 }
 0x408   : > { %v2179_v6 = vsel %vm2178_vm6, %v3701_v21, %v2175_v61  ;;  %v2182_v53 = vmul.f32 %v3703_v8, %v2181_v29  ;;  %2842 = vmatmul.f32.gmra.mxu3 %v2460_v28  ;;  %v2461_v35 = vsub.f32 %v2459_v20, %v2460_v28 }
 0x409   : > { %v2285_v34 = vmul.f32 %v2179_v6, %v4789_v63  ;;  %v2079_v60 = vsel %vm1936_vm1, %v2037_v47, 0.0  ;;  %v2375_v10 = vsel %vm1936_vm1, %v2338_v62, 0 }
 0x40a   : > { %v2183_v18 = vmul.f32 0.5, %v2182_v53  ;;  %v1981_v32 = vpop.xlane.xlu1 %1980  ;;  %2080 = vadd.xlane.f32.xlu1 %v2079_v60  ;;  %v2462_v24 = vand.u32 4294901760, %v2461_v35  ;;  %v5040_v42 = vand.u32 4294901760, %v2375_v10 }
 0x40b   : > { %v2304_v33 = vmul.f32 %v4935_v13, %v2285_v34  ;;  %v2006_v1 = vmul.f32 %v4701_v3, %v1981_v32 }
 0x40c   : > { %v2184_v9 = vsub.f32 1.5, %v2183_v18  ;;  %2463 = vmatmul.f32.gmra.mxu0 %v2462_v24  ;;  %2636 = vmatmul.f32.gmra.mxu1 %v5040_v42  ;;  %v2467_v63 = vsub.f32 %v2375_v10, %v5040_v42 }
 0x40d   : > { %v5047_v31 = vsub.f32 %v4839_v57, %v2006_v1  ;;  %v2323_v0 = vadd.f32 %v4942_v12, %v2304_v33 }
 0x40e   : > { %v2185_v5 = vmul.f32 %v3703_v8, %v2184_v9  ;;  %2738 = vmatmul.f32.gmra.mxu2 %v2467_v63  ;;  %v2468_v37 = vand.u32 4294901760, %v2467_v63 }
 0x40f   : > { %v2038_v23 = vmul.f32 %v5047_v31, %v5047_v31  ;;  %v2339_v21 = vmax.f32 %v2323_v0, 0.0 }
 0x410   : > { %v2189_v56 = vsel %vm2188_vm9, %v3703_v8, %v2185_v5  ;;  %2848 = vmatmul.f32.gmra.mxu3 %v2468_v37  ;;  %v2469_v41 = vsub.f32 %v2467_v63, %v2468_v37 }
 0x411   : > { %v2286_v54 = vmul.f32 %v2189_v56, %v4814_v58  ;;  %v2082_v57 = vsel %vm1936_vm1, %v2038_v23, 0.0  ;;  %v2378_v51 = vsel %vm1936_vm1, %v2339_v21, 0 }
 0x412   : > { %2083 = vadd.xlane.f32.xlu2 %v2082_v57  ;;  %v1984_v38 = vpop.xlane.xlu1 %1983  ;;  %v2470_v25 = vand.u32 4294901760, %v2469_v41  ;;  %v5056_v48 = vand.u32 4294901760, %v2378_v51 }
 0x413   : > { %v2305_v39 = vmul.f32 %v4935_v13, %v2286_v54  ;;  %v2007_v17 = vmul.f32 %v4701_v3, %v1984_v38 }
 0x414   : > { %2471 = vmatmul.f32.gmra.mxu0 %v2470_v25  ;;  %2640 = vmatmul.f32.gmra.mxu1 %v5056_v48  ;;  %v2475_v52 = vsub.f32 %v2378_v51, %v5056_v48 }
 0x415   : > { %v5063_v58 = vsub.f32 %v4844_v46, %v2007_v17  ;;  %v2324_v55 = vadd.f32 %v4942_v12, %v2305_v39 }
 0x416   : > { %2743 = vmatmul.f32.gmra.mxu2 %v2475_v52  ;;  %v2476_v40 = vand.u32 4294901760, %v2475_v52 }
 0x417   : > { %v2039_v49 = vmul.f32 %v5063_v58, %v5063_v58  ;;  %v2340_v11 = vmax.f32 %v2324_v55, 0.0 }
 0x418   : > { %2854 = vmatmul.f32.gmra.mxu3 %v2476_v40  ;;  %v2477_v15 = vsub.f32 %v2475_v52, %v2476_v40 }
 0x419   : > { %v2085_v2 = vsel %vm1936_vm1, %v2039_v49, 0.0  ;;  %v2381_v4 = vsel %vm1936_vm1, %v2340_v11, 0 }
 0x41a   : > { %2086 = vadd.xlane.f32.xlu1 %v2085_v2  ;;  %v2478_v59 = vand.u32 4294901760, %v2477_v15  ;;  %v5070_v19 = vand.u32 4294901760, %v2381_v4 }
 0x41c   : > { %2479 = vmatmul.f32.gmra.mxu0 %v2478_v59  ;;  %2644 = vmatmul.f32.gmra.mxu1 %v5070_v19  ;;  %v2483_v46 = vsub.f32 %v2381_v4, %v5070_v19 }
 0x41e   : > { %2748 = vmatmul.f32.gmra.mxu2 %v2483_v46  ;;  %v2484_v20 = vand.u32 4294901760, %v2483_v46 }
 0x420   : > { %2860 = vmatmul.f32.gmra.mxu3 %v2484_v20  ;;  %v2485_v8 = vsub.f32 %v2483_v46, %v2484_v20 }
 0x422   : > { %v2486_v22 = vand.u32 4294901760, %v2485_v8 }
 0x424   : > { %2487 = vmatmul.f32.gmra.mxu0 %v2486_v22 }
 0x44d   : > { %v2063_v61 = vpop.xlane.xlu2 %2062 }
 0x44e   : > { %v2095_v29 = vmul.f32 %v2063_v61, %v4701_v3 }
 0x450   : > { %v2111_v28 = vadd.f32 1e-05, %v2095_v29 }
 0x452   : > { %3704 = vrsqrt.f32 %v2111_v28  ;;  %vm2196_vm11 = vweird.f32 %v2111_v28 }
 0x455   : > { %v2066_v47 = vpop.xlane.xlu2 %2065 }
 0x456   : > { %v2096_v62 = vmul.f32 %v2066_v47, %v4701_v3 }
 0x458   : > { %v3705_v6 = vpop.eup %3704  ;;  %v2112_v53 = vadd.f32 1e-05, %v2096_v62 }
 0x459   : > { %v2191_v35 = vmul.f32 %v3705_v6, %v2111_v28  ;;  %vm2197_vm10 = vweird.f32 %v3705_v6 }
 0x45a   : > { %3706 = vrsqrt.f32 %v2112_v53  ;;  %vm2198_vm12 = vmor %vm2196_vm11, %vm2197_vm10  ;;  %vm2206_vm14 = vweird.f32 %v2112_v53 }
 0x45b   : > { %v2192_v34 = vmul.f32 %v3705_v6, %v2191_v35 }
 0x45d   : > { %v2193_v60 = vmul.f32 0.5, %v2192_v34  ;;  %v2069_v10 = vpop.xlane.xlu2 %2068 }
 0x45e   : > { %v2097_v18 = vmul.f32 %v2069_v10, %v4701_v3 }
 0x45f   : > { %v2194_v32 = vsub.f32 1.5, %v2193_v60 }
 0x460   : > { %v3707_v24 = vpop.eup %3706  ;;  %v2113_v33 = vadd.f32 1e-05, %v2097_v18 }
 0x461   : > { %v2195_v1 = vmul.f32 %v3705_v6, %v2194_v32  ;;  %v2201_v9 = vmul.f32 %v3707_v24, %v2112_v53  ;;  %vm2207_vm13 = vweird.f32 %v3707_v24 }
 0x462   : > { %3708 = vrsqrt.f32 %v2113_v33  ;;  %vm2208_vm15 = vmor %vm2206_vm14, %vm2207_vm13  ;;  %vm2216_vm3 = vweird.f32 %v2113_v33 }
 0x463   : > { %v2199_v63 = vsel %vm2198_vm12, %v3705_v6, %v2195_v1  ;;  %v2202_v0 = vmul.f32 %v3707_v24, %v2201_v9 }
 0x464   : > { %v2287_v5 = vmul.f32 %v2199_v63, %v4919_v14 }
 0x465   : > { %v2203_v37 = vmul.f32 0.5, %v2202_v0  ;;  %v2072_v23 = vpop.xlane.xlu2 %2071 }
 0x466   : > { %v2306_v21 = vmul.f32 %v4935_v13, %v2287_v5  ;;  %v2098_v56 = vmul.f32 %v2072_v23, %v4701_v3 }
 0x467   : > { %v2204_v41 = vsub.f32 1.5, %v2203_v37 }
 0x468   : > { %v3709_v54 = vpop.eup %3708  ;;  %v2114_v57 = vadd.f32 1e-05, %v2098_v56  ;;  %v2325_v51 = vadd.f32 %v4942_v12, %v2306_v21 }
 0x469   : > { %v2205_v38 = vmul.f32 %v3707_v24, %v2204_v41  ;;  %v2211_v25 = vmul.f32 %v3709_v54, %v2113_v33  ;;  %vm2217_vm2 = vweird.f32 %v3709_v54 }
 0x46a   : > { %3710 = vrsqrt.f32 %v2114_v57  ;;  %v2341_v39 = vmax.f32 %v2325_v51, 0.0  ;;  %vm2218_vm4 = vmor %vm2216_vm3, %vm2217_vm2  ;;  %vm2226_vm6 = vweird.f32 %v2114_v57 }
 0x46b   : > { %v2209_v17 = vsel %vm2208_vm15, %v3707_v24, %v2205_v38  ;;  %v2212_v14 = vmul.f32 %v3709_v54, %v2211_v25 }
 0x46c   : > { %v2288_v52 = vmul.f32 %v2209_v17, %v4930_v36  ;;  %v2384_v55 = vsel %vm1936_vm1, %v2341_v39, 0 }
 0x46d   : > { %v2213_v40 = vmul.f32 0.5, %v2212_v14  ;;  %v2075_v49 = vpop.xlane.xlu1 %2074  ;;  %v5083_v11 = vand.u32 4294901760, %v2384_v55 }
 0x46e   : > { %v2307_v15 = vmul.f32 %v4935_v13, %v2288_v52  ;;  %v2099_v2 = vmul.f32 %v2075_v49, %v4701_v3 }
 0x46f   : > { %v2214_v4 = vsub.f32 1.5, %v2213_v40  ;;  %2648 = vmatmul.f32.gmra.mxu1 %v5083_v11  ;;  %v2491_v59 = vsub.f32 %v2384_v55, %v5083_v11 }
 0x470   : > { %v3711_v46 = vpop.eup %3710  ;;  %v5089_v20 = vadd.f32 1e-05, %v2099_v2  ;;  %v2326_v36 = vadd.f32 %v4942_v12, %v2307_v15 }
 0x471   : > { %v2215_v8 = vmul.f32 %v3709_v54, %v2214_v4  ;;  %v2221_v22 = vmul.f32 %v3711_v46, %v2114_v57  ;;  %2753 = vmatmul.f32.gmra.mxu2 %v2491_v59  ;;  %v2492_v61 = vand.u32 4294901760, %v2491_v59  ;;  %vm2227_vm5 = vweird.f32 %v3711_v46 }
 0x472   : > { %3712 = vrsqrt.f32 %v5089_v20  ;;  %v2342_v29 = vmax.f32 %v2326_v36, 0.0  ;;  %vm2228_vm7 = vmor %vm2226_vm6, %vm2227_vm5  ;;  %vm2236_vm9 = vweird.f32 %v5089_v20 }
 0x473   : > { %v2219_v28 = vsel %vm2218_vm4, %v3709_v54, %v2215_v8  ;;  %v2222_v47 = vmul.f32 %v3711_v46, %v2221_v22  ;;  %2866 = vmatmul.f32.gmra.mxu3 %v2492_v61  ;;  %v2493_v62 = vsub.f32 %v2491_v59, %v2492_v61 }
 0x474   : > { %v2289_v6 = vmul.f32 %v2219_v28, %v4953_v44  ;;  %v2387_v53 = vsel %vm1936_vm1, %v2342_v29, 0 }
 0x475   : > { %v2223_v35 = vmul.f32 0.5, %v2222_v47  ;;  %v2078_v34 = vpop.xlane.xlu2 %2077  ;;  %v2494_v60 = vand.u32 4294901760, %v2493_v62  ;;  %v5095_v10 = vand.u32 4294901760, %v2387_v53 }
 0x476   : > { %v2308_v18 = vmul.f32 %v4935_v13, %v2289_v6  ;;  %v2100_v32 = vmul.f32 %v2078_v34, %v4701_v3 }
 0x477   : > { %v2224_v24 = vsub.f32 1.5, %v2223_v35  ;;  %2495 = vmatmul.f32.gmra.mxu0 %v2494_v60  ;;  %2652 = vmatmul.f32.gmra.mxu1 %v5095_v10  ;;  %v2499_v33 = vsub.f32 %v2387_v53, %v5095_v10 }
 0x478   : > { %v3713_v1 = vpop.eup %3712  ;;  %v5101_v44 = vadd.f32 1e-05, %v2100_v32  ;;  %v2327_v9 = vadd.f32 %v4942_v12, %v2308_v18 }
 0x479   : > { %v2225_v63 = vmul.f32 %v3711_v46, %v2224_v24  ;;  %v2231_v0 = vmul.f32 %v3713_v1, %v5089_v20  ;;  %2758 = vmatmul.f32.gmra.mxu2 %v2499_v33  ;;  %v2500_v5 = vand.u32 4294901760, %v2499_v33  ;;  %vm2237_vm8 = vweird.f32 %v3713_v1 }
 0x47a   : > { %3714 = vrsqrt.f32 %v5101_v44  ;;  %v2343_v37 = vmax.f32 %v2327_v9, 0.0  ;;  %vm2238_vm10 = vmor %vm2236_vm9, %vm2237_vm8  ;;  %vm2246_vm12 = vweird.f32 %v5101_v44 }
 0x47b   : > { %v2229_v23 = vsel %vm2228_vm7, %v3711_v46, %v2225_v63  ;;  %v2232_v21 = vmul.f32 %v3713_v1, %v2231_v0  ;;  %2872 = vmatmul.f32.gmra.mxu3 %v2500_v5  ;;  %v2501_v56 = vsub.f32 %v2499_v33, %v2500_v5 }
 0x47c   : > { %v2290_v41 = vmul.f32 %v2229_v23, %v4971_v7  ;;  %v2390_v54 = vsel %vm1936_vm1, %v2343_v37, 0 }
 0x47d   : > { %v2233_v51 = vmul.f32 0.5, %v2232_v21  ;;  %v2081_v38 = vpop.xlane.xlu1 %2080  ;;  %v2502_v25 = vand.u32 4294901760, %v2501_v56  ;;  %v5108_v57 = vand.u32 4294901760, %v2390_v54 }
 0x47e   : > { %v2309_v39 = vmul.f32 %v4935_v13, %v2290_v41  ;;  %v2101_v17 = vmul.f32 %v2081_v38, %v4701_v3 }
 0x47f   : > { %v2234_v14 = vsub.f32 1.5, %v2233_v51  ;;  %2503 = vmatmul.f32.gmra.mxu0 %v2502_v25  ;;  %2656 = vmatmul.f32.gmra.mxu1 %v5108_v57  ;;  %v2507_v52 = vsub.f32 %v2390_v54, %v5108_v57 }
 0x480   : > { %v3715_v55 = vpop.eup %3714  ;;  %v5114_v7 = vadd.f32 1e-05, %v2101_v17  ;;  %v2328_v40 = vadd.f32 %v4942_v12, %v2309_v39 }
 0x481   : > { %v2235_v49 = vmul.f32 %v3713_v1, %v2234_v14  ;;  %v2241_v15 = vmul.f32 %v3715_v55, %v5101_v44  ;;  %2763 = vmatmul.f32.gmra.mxu2 %v2507_v52  ;;  %v2508_v2 = vand.u32 4294901760, %v2507_v52  ;;  %vm2247_vm11 = vweird.f32 %v3715_v55 }
 0x482   : > { %3716 = vrsqrt.f32 %v5114_v7  ;;  %v2344_v4 = vmax.f32 %v2328_v40, 0.0  ;;  %vm2248_vm13 = vmor %vm2246_vm12, %vm2247_vm11  ;;  %vm2256_vm15 = vweird.f32 %v5114_v7 }
 0x483   : > { %v2239_v59 = vsel %vm2238_vm10, %v3713_v1, %v2235_v49  ;;  %v2242_v46 = vmul.f32 %v3715_v55, %v2241_v15  ;;  %2878 = vmatmul.f32.gmra.mxu3 %v2508_v2  ;;  %v2509_v36 = vsub.f32 %v2507_v52, %v2508_v2 }
 0x484   : > { %v2291_v8 = vmul.f32 %v2239_v59, %v4991_v30  ;;  %v2393_v22 = vsel %vm1936_vm1, %v2344_v4, 0 }
 0x485   : > { %v2243_v61 = vmul.f32 0.5, %v2242_v46  ;;  %v2084_v29 = vpop.xlane.xlu2 %2083  ;;  %v2510_v28 = vand.u32 4294901760, %v2509_v36  ;;  %v5122_v20 = vand.u32 4294901760, %v2393_v22 }
 0x486   : > { %v2310_v47 = vmul.f32 %v4935_v13, %v2291_v8  ;;  %v2102_v62 = vmul.f32 %v2084_v29, %v4701_v3 }
 0x487   : > { %v2244_v6 = vsub.f32 1.5, %v2243_v61  ;;  %2511 = vmatmul.f32.gmra.mxu0 %v2510_v28  ;;  %2660 = vmatmul.f32.gmra.mxu1 %v5122_v20  ;;  %v2515_v53 = vsub.f32 %v2393_v22, %v5122_v20 }
 0x488   : > { %v3717_v35 = vpop.eup %3716  ;;  %v2118_v30 = vadd.f32 1e-05, %v2102_v62  ;;  %v2329_v34 = vadd.f32 %v4942_v12, %v2310_v47 }
 0x489   : > { %v2245_v60 = vmul.f32 %v3715_v55, %v2244_v6  ;;  %v2251_v18 = vmul.f32 %v3717_v35, %v5114_v7  ;;  %2768 = vmatmul.f32.gmra.mxu2 %v2515_v53  ;;  %v2516_v32 = vand.u32 4294901760, %v2515_v53  ;;  %vm2257_vm14 = vweird.f32 %v3717_v35 }
 0x48a   : > { %3718 = vrsqrt.f32 %v2118_v30  ;;  %v2345_v24 = vmax.f32 %v2329_v34, 0.0  ;;  %vm2258_vm2 = vmor %vm2256_vm15, %vm2257_vm14  ;;  %vm2266_vm4 = vweird.f32 %v2118_v30 }
 0x48b   : > { %v2249_v33 = vsel %vm2248_vm13, %v3715_v55, %v2245_v60  ;;  %v2252_v1 = vmul.f32 %v3717_v35, %v2251_v18  ;;  %2884 = vmatmul.f32.gmra.mxu3 %v2516_v32  ;;  %v2517_v9 = vsub.f32 %v2515_v53, %v2516_v32 }
 0x48c   : > { %v2292_v63 = vmul.f32 %v2249_v33, %v5012_v27  ;;  %v2396_v0 = vsel %vm1936_vm1, %v2345_v24, 0 }
 0x48d   : > { %v2253_v5 = vmul.f32 0.5, %v2252_v1  ;;  %v2087_v37 = vpop.xlane.xlu1 %2086  ;;  %v2518_v23 = vand.u32 4294901760, %v2517_v9  ;;  %v5133_v21 = vand.u32 4294901760, %v2396_v0 }
 0x48e   : > { %v2311_v44 = vmul.f32 %v4935_v13, %v2292_v63  ;;  %v2103_v56 = vmul.f32 %v2087_v37, %v4701_v3 }
 0x48f   : > { %v2254_v41 = vsub.f32 1.5, %v2253_v5  ;;  %2519 = vmatmul.f32.gmra.mxu0 %v2518_v23  ;;  %2664 = vmatmul.f32.gmra.mxu1 %v5133_v21  ;;  %v2523_v54 = vsub.f32 %v2396_v0, %v5133_v21 }
 0x490   : > { %v3719_v51 = vpop.eup %3718  ;;  %v2119_v27 = vadd.f32 1e-05, %v2103_v56  ;;  %v2330_v38 = vadd.f32 %v4942_v12, %v2311_v44 }
 0x491   : > { %v2255_v25 = vmul.f32 %v3717_v35, %v2254_v41  ;;  %v2261_v39 = vmul.f32 %v3719_v51, %v2118_v30  ;;  %2773 = vmatmul.f32.gmra.mxu2 %v2523_v54  ;;  %v2524_v17 = vand.u32 4294901760, %v2523_v54  ;;  %vm2267_vm3 = vweird.f32 %v3719_v51  ;;  %v5164_v41 = vpop.f32.mrf.mxu1 }
 0x492   : > { %3720 = vrsqrt.f32 %v2119_v27  ;;  %v2346_v3 = vmax.f32 %v2330_v38, 0.0  ;;  %vm2268_vm5 = vmor %vm2266_vm4, %vm2267_vm3  ;;  %vm2276_vm7 = vweird.f32 %v2119_v27 }
 0x493   : > { %v2259_v14 = vsel %vm2258_vm2, %v3717_v35, %v2255_v25  ;;  %v2262_v52 = vmul.f32 %v3719_v51, %v2261_v39  ;;  %2890 = vmatmul.f32.gmra.mxu3 %v2524_v17  ;;  %v2525_v55 = vsub.f32 %v2523_v54, %v2524_v17  ;;  %v5172_v17 = vpop.f32.mrf.mxu0 }
 0x494   : > { %v2293_v40 = vmul.f32 %v2259_v14, %v5030_v16  ;;  %v2399_v49 = vsel %vm1936_vm1, %v2346_v3, 0 }
 0x495   : > { %v2263_v15 = vmul.f32 0.5, %v2262_v52  ;;  %v2526_v2 = vand.u32 4294901760, %v2525_v55  ;;  %v5143_v4 = vand.u32 4294901760, %v2399_v49 }
 0x496   : > { %v2312_v7 = vmul.f32 %v4935_v13, %v2293_v40 }
 0x497   : > { %v2264_v59 = vsub.f32 1.5, %v2263_v15  ;;  %2527 = vmatmul.f32.gmra.mxu0 %v2526_v2  ;;  %2668 = vmatmul.f32.gmra.mxu1 %v5143_v4  ;;  %v2531_v46 = vsub.f32 %v2399_v49, %v5143_v4 }
 0x498   : > { %v3721_v36 = vpop.eup %3720  ;;  %v2331_v8 = vadd.f32 %v4942_v12, %v2312_v7 }
 0x499   : > { %v2265_v22 = vmul.f32 %v3719_v51, %v2264_v59  ;;  %v2271_v16 = vmul.f32 %v3721_v36, %v2119_v27  ;;  %2778 = vmatmul.f32.gmra.mxu2 %v2531_v46  ;;  %v2532_v61 = vand.u32 4294901760, %v2531_v46  ;;  %vm2277_vm6 = vweird.f32 %v3721_v36 }
 0x49a   : > { %v2347_v29 = vmax.f32 %v2331_v8, 0.0  ;;  %vm2278_vm8 = vmor %vm2276_vm7, %vm2277_vm6 }
 0x49b   : > { %v2269_v28 = vsel %vm2268_vm5, %v3719_v51, %v2265_v22  ;;  %v2272_v47 = vmul.f32 %v3721_v36, %v2271_v16  ;;  %2896 = vmatmul.f32.gmra.mxu3 %v2532_v61  ;;  %v2533_v62 = vsub.f32 %v2531_v46, %v2532_v61  ;;  %v5177_v55 = vpop.f32.mrf.mxu0 }
 0x49c   : > { %v2294_v6 = vmul.f32 %v2269_v28, %v5047_v31  ;;  %v2402_v53 = vsel %vm1936_vm1, %v2347_v29, 0 }
 0x49d   : > { %v2273_v35 = vmul.f32 0.5, %v2272_v47  ;;  %v2534_v34 = vand.u32 4294901760, %v2533_v62  ;;  %v5151_v60 = vand.u32 4294901760, %v2402_v53 }
 0x49e   : > { %v2313_v18 = vmul.f32 %v4935_v13, %v2294_v6 }
 0x49f   : > { %v2274_v30 = vsub.f32 1.5, %v2273_v35  ;;  %2535 = vmatmul.f32.gmra.mxu0 %v2534_v34  ;;  %2672 = vmatmul.f32.gmra.mxu1 %v5151_v60  ;;  %v2539_v32 = vsub.f32 %v2402_v53, %v5151_v60 }
 0x4a0   : > { %v2332_v24 = vadd.f32 %v4942_v12, %v2313_v18 }
 0x4a1   : > { %v2275_v33 = vmul.f32 %v3721_v36, %v2274_v30  ;;  %2783 = vmatmul.f32.gmra.mxu2 %v2539_v32  ;;  %v2540_v31 = vand.u32 4294901760, %v2539_v32 }
 0x4a2   : > { %v2348_v1 = vmax.f32 %v2332_v24, 0.0  ;;  %v2825_v24 = vpop.f32.mrf.mxu3 }
 0x4a3   : > { %v2279_v9 = vsel %vm2278_vm8, %v3721_v36, %v2275_v33  ;;  %2902 = vmatmul.f32.gmra.mxu3 %v2540_v31  ;;  %v2541_v63 = vsub.f32 %v2539_v32, %v2540_v31  ;;  %v5183_v49 = vpop.f32.mrf.mxu0 }
 0x4a4   : > { %v2295_v0 = vmul.f32 %v2279_v9, %v5063_v58  ;;  %v2405_v5 = vsel %vm1936_vm1, %v2348_v1, 0 }
 0x4a5   : > { %v2542_v37 = vand.u32 4294901760, %v2541_v63  ;;  %v5159_v23 = vand.u32 4294901760, %v2405_v5 }
 0x4a6   : > { %v2314_v44 = vmul.f32 %v4935_v13, %v2295_v0 }
 0x4a7   : > { %2543 = vmatmul.f32.gmra.mxu0 %v2542_v37  ;;  %2676 = vmatmul.f32.gmra.mxu1 %v5159_v23  ;;  %v2547_v56 = vsub.f32 %v2405_v5, %v5159_v23 }
 0x4a8   : > { %v2333_v54 = vadd.f32 %v4942_v12, %v2314_v44  ;;  %v5174_v12 = vpop.f32.mrf.mxu1 }
 0x4a9   : > { %2788 = vmatmul.f32.gmra.mxu2 %v2547_v56  ;;  %v2548_v51 = vand.u32 4294901760, %v2547_v56 }
 0x4aa   : > { %v2349_v27 = vmax.f32 %v2333_v54, 0.0 }
 0x4ab   : > { %2908 = vmatmul.f32.gmra.mxu3 %v2548_v51  ;;  %v2549_v58 = vsub.f32 %v2547_v56, %v2548_v51  ;;  %v5189_v2 = vpop.f32.mrf.mxu0 }
 0x4ac   : > { %v2408_v38 = vsel %vm1936_vm1, %v2349_v27, 0 }
 0x4ad   : > { %v2550_v25 = vand.u32 4294901760, %v2549_v58  ;;  %v5168_v39 = vand.u32 4294901760, %v2408_v38 }
 0x4af   : > { %2551 = vmatmul.f32.gmra.mxu0 %v2550_v25  ;;  %2680 = vmatmul.f32.gmra.mxu1 %v5168_v39  ;;  %v2555_v13 = vsub.f32 %v2408_v38, %v5168_v39 }
 0x4b0   : > { %v5179_v40 = vpop.f32.mrf.mxu1 }
 0x4b1   : > { %2793 = vmatmul.f32.gmra.mxu2 %v2555_v13  ;;  %v2556_v3 = vand.u32 4294901760, %v2555_v13 }
 0x4b3   : > { %2914 = vmatmul.f32.gmra.mxu3 %v2556_v3  ;;  %v2557_v14 = vsub.f32 %v2555_v13, %v2556_v3 }
 0x4b5   : > { %v2558_v52 = vand.u32 4294901760, %v2557_v14 }
 0x4b7   : > { %2559 = vmatmul.f32.gmra.mxu0 %v2558_v52  ;;  %3048 = vmatmul.f32.vlgmr.msra.gmra.mxu1 %v4961_v50 }
 0x4b8   : > { %v5185_v15 = vpop.f32.mrf.mxu1 }
 0x4bf   : > { %2959 = vmatmul.f32.vlgmr.msra.gmra.mxu0 %v4961_v50  ;;  %3052 = vmatmul.f32.gmra.mxu1 %v4981_v43  ;;  %v5197_v50 = vpop.f32.mrf.mxu0 }
 0x4c0   : > { %v5193_v7 = vpop.f32.mrf.mxu1 }
 0x4c7   : > { %2963 = vmatmul.f32.gmra.mxu0 %v4981_v43  ;;  %3056 = vmatmul.f32.gmra.mxu1 %v5002_v26  ;;  %v5203_v43 = vpop.f32.mrf.mxu0 }
 0x4c8   : > { %v5199_v59 = vpop.f32.mrf.mxu1 }
 0x4cf   : > { %2967 = vmatmul.f32.gmra.mxu0 %v5002_v26  ;;  %3060 = vmatmul.f32.gmra.mxu1 %v5023_v45  ;;  %v5209_v26 = vpop.f32.mrf.mxu0 }
 0x4d0   : > { %v5205_v46 = vpop.f32.mrf.mxu1 }
 0x4d7   : > { %2971 = vmatmul.f32.gmra.mxu0 %v5023_v45  ;;  %3064 = vmatmul.f32.gmra.mxu1 %v5040_v42 }
 0x4df   : > { %2975 = vmatmul.f32.gmra.mxu0 %v5040_v42  ;;  %3068 = vmatmul.f32.gmra.mxu1 %v5056_v48 }
 0x4e7   : > { %2979 = vmatmul.f32.gmra.mxu0 %v5056_v48  ;;  %3072 = vmatmul.f32.gmra.mxu1 %v5070_v19  ;;  %v5222_v48 = vld [vmem:[%s5620_s8] ss:$0 sm:$0xff] }
 0x4e8   : > { %v2449_v13 = vadd.f32 %v5222_v48, %v5177_v55 }
 0x4ec   : > { %v5211_v45 = vpop.f32.mrf.mxu1 }
 0x4ef   : > { %2983 = vmatmul.f32.gmra.mxu0 %v5070_v19  ;;  %3076 = vmatmul.f32.gmra.mxu1 %v5083_v11 }
 0x4f4   : > { %v5215_v36 = vpop.f32.mrf.mxu0  ;;  %v2653_v42 = vpop.f32.mrf.mxu1 }
 0x4f7   : > { %2987 = vmatmul.f32.gmra.mxu0 %v5083_v11  ;;  %3080 = vmatmul.f32.gmra.mxu1 %v5095_v10 }
 0x4fc   : > { %v2504_v8 = vpop.f32.mrf.mxu0  ;;  %v2657_v22 = vpop.f32.mrf.mxu1 }
 0x4fd   : > { %v2505_v16 = vadd.f32 %v5222_v48, %v2504_v8 }
 0x4ff   : > { %v5225_v61 = vadd.f32 %v2653_v42, %v2505_v16  ;;  %2991 = vmatmul.f32.gmra.mxu0 %v5095_v10  ;;  %3084 = vmatmul.f32.gmra.mxu1 %v5108_v57  ;;  %v2457_v16 = vadd.f32 %v5222_v48, %v5183_v49 }
 0x504   : > { %v2512_v19 = vpop.f32.mrf.mxu0  ;;  %v2661_v29 = vpop.f32.mrf.mxu1 }
 0x505   : > { %v2513_v11 = vadd.f32 %v5222_v48, %v2512_v19 }
 0x507   : > { %v5230_v28 = vadd.f32 %v2657_v22, %v2513_v11  ;;  %2995 = vmatmul.f32.gmra.mxu0 %v5108_v57  ;;  %3088 = vmatmul.f32.gmra.mxu1 %v5122_v20  ;;  %v2719_v57 = vpop.f32.mrf.mxu2 }
 0x50c   : > { %v2520_v47 = vpop.f32.mrf.mxu0  ;;  %v2665_v62 = vpop.f32.mrf.mxu1 }
 0x50d   : > { %v2521_v6 = vadd.f32 %v5222_v48, %v2520_v47 }
 0x50f   : > { %v5235_v53 = vadd.f32 %v2661_v29, %v2521_v6  ;;  %2999 = vmatmul.f32.gmra.mxu0 %v5122_v20  ;;  %3092 = vmatmul.f32.gmra.mxu1 %v5133_v21  ;;  %v2724_v20 = vpop.f32.mrf.mxu2 }
 0x514   : > { %v2528_v10 = vpop.f32.mrf.mxu0  ;;  %v2669_v35 = vpop.f32.mrf.mxu1 }
 0x515   : > { %v2529_v34 = vadd.f32 %v5222_v48, %v2528_v10 }
 0x517   : > { %v5240_v18 = vadd.f32 %v2665_v62, %v2529_v34  ;;  %3003 = vmatmul.f32.gmra.mxu0 %v5133_v21  ;;  %3096 = vmatmul.f32.gmra.mxu1 %v5143_v4  ;;  %v2831_v21 = vpop.f32.mrf.mxu3  ;;  %v2729_v44 = vpop.f32.mrf.mxu2 }
 0x51c   : > { %v2536_v30 = vpop.f32.mrf.mxu0  ;;  %v2673_v32 = vpop.f32.mrf.mxu1 }
 0x51d   : > { %v2537_v33 = vadd.f32 %v5222_v48, %v2536_v30 }
 0x51f   : > { %v5245_v31 = vadd.f32 %v2669_v35, %v2537_v33  ;;  %3007 = vmatmul.f32.gmra.mxu0 %v5143_v4  ;;  %3100 = vmatmul.f32.gmra.mxu1 %v5151_v60  ;;  %v2441_v4 = vadd.f32 %v5222_v48, %v5172_v17  ;;  %v2837_v51 = vpop.f32.mrf.mxu3  ;;  %v2734_v3 = vpop.f32.mrf.mxu2  ;;  %v2465_v35 = vadd.f32 %v5222_v48, %v5189_v2 }
 0x521   : > { %v2622_v27 = vadd.f32 %v5164_v41, %v2441_v4  ;;  %v2634_v30 = vadd.f32 %v5185_v15, %v2465_v35 }
 0x523   : > { %v2720_v25 = vadd.f32 %v2719_v57, %v2622_v27 }
 0x524   : > { %v2544_v1 = vpop.f32.mrf.mxu0  ;;  %v2677_v9 = vpop.f32.mrf.mxu1 }
 0x525   : > { %v2545_v63 = vadd.f32 %v5222_v48, %v2544_v1  ;;  %v2826_v17 = vadd.f32 %v2825_v24, %v2720_v25  ;;  %v2473_v1 = vadd.f32 %v5222_v48, %v5197_v50 }
 0x527   : > { %v5250_v0 = vadd.f32 %v2673_v32, %v2545_v63  ;;  %3011 = vmatmul.f32.gmra.mxu0 %v5151_v60  ;;  %3104 = vmatmul.f32.gmra.mxu1 %v5159_v23  ;;  %v2843_v52 = vpop.f32.mrf.mxu3  ;;  %v2739_v29 = vpop.f32.mrf.mxu2 }
 0x52c   : > { %v2552_v5 = vpop.f32.mrf.mxu0  ;;  %v2681_v37 = vpop.f32.mrf.mxu1 }
 0x52d   : > { %v2553_v56 = vadd.f32 %v5222_v48, %v2552_v5  ;;  %v2638_v5 = vadd.f32 %v5193_v7, %v2473_v1 }
 0x52f   : > { %v5257_v54 = vadd.f32 %v2677_v9, %v2553_v56  ;;  %3015 = vmatmul.f32.gmra.mxu0 %v5159_v23  ;;  %3108 = vmatmul.f32.gmra.mxu1 %v5168_v39  ;;  %v2626_v23 = vadd.f32 %v5174_v12, %v2449_v13  ;;  %v2849_v62 = vpop.f32.mrf.mxu3  ;;  %v2744_v32 = vpop.f32.mrf.mxu2  ;;  %v2740_v4 = vadd.f32 %v2739_v29, %v2638_v5 }
 0x531   : > { %v2725_v22 = vadd.f32 %v2724_v20, %v2626_v23  ;;  %v2735_v20 = vadd.f32 %v2734_v3, %v2634_v30  ;;  %v2489_v23 = vadd.f32 %v5222_v48, %v5209_v26 }
 0x533   : > { %v2832_v11 = vadd.f32 %v2831_v21, %v2725_v22  ;;  %v2844_v21 = vadd.f32 %v2843_v52, %v2735_v20 }
 0x534   : > { %v2560_v60 = vpop.f32.mrf.mxu0  ;;  %v3049_v58 = vpop.f32.mrf.mxu1 }
 0x535   : > { %v2561_v38 = vadd.f32 %v5222_v48, %v2560_v60 }
 0x537   : > { %v5265_v14 = vadd.f32 %v2681_v37, %v2561_v38  ;;  %3019 = vmatmul.f32.gmra.mxu0 %v5168_v39  ;;  %v2630_v39 = vadd.f32 %v5179_v40, %v2457_v16  ;;  %v2855_v9 = vpop.f32.mrf.mxu3 }
 0x539   : > { %v2730_v10 = vadd.f32 %v2729_v44, %v2630_v39  ;;  %v2749_v44 = vpop.f32.mrf.mxu2 }
 0x53b   : > { %v2838_v57 = vadd.f32 %v2837_v51, %v2730_v10  ;;  %v2481_v51 = vadd.f32 %v5222_v48, %v5203_v43 }
 0x53c   : > { %v2960_v42 = vpop.f32.mrf.mxu0  ;;  %v3053_v8 = vpop.f32.mrf.mxu1 }
 0x53d   : > { %v2961_v41 = vadd.f32 %v2960_v42, %v2826_v17  ;;  %v2642_v38 = vadd.f32 %v5199_v59, %v2481_v51 }
 0x53f   : > { %v5271_v19 = vadd.f32 %v3049_v58, %v2961_v41  ;;  %v2861_v50 = vpop.f32.mrf.mxu3  ;;  %v2850_v58 = vadd.f32 %v2849_v62, %v2740_v4  ;;  %v2745_v17 = vadd.f32 %v2744_v32, %v2642_v38  ;;  %v2646_v41 = vadd.f32 %v5205_v46, %v2489_v23 }
 0x541   : > { %v3114_v55 = vsel %vm517_vm0, %v5271_v19, 0.0  ;;  %v2754_v13 = vpop.f32.mrf.mxu2  ;;  %v2750_v29 = vadd.f32 %v2749_v44, %v2646_v41 }
 0x542   : > { %3115 = vadd.xlane.f32.xlu2 %v3114_v55  ;;  %v2497_v55 = vadd.f32 %v5222_v48, %v5215_v36 }
 0x544   : > { %v2964_v47 = vpop.f32.mrf.mxu0  ;;  %v3057_v12 = vpop.f32.mrf.mxu1 }
 0x545   : > { %v2965_v6 = vadd.f32 %v2964_v47, %v2832_v11  ;;  %v2862_v47 = vadd.f32 %v2861_v50, %v2750_v29 }
 0x547   : > { %v5278_v34 = vadd.f32 %v3053_v8, %v2965_v6  ;;  %v2867_v43 = vpop.f32.mrf.mxu3  ;;  %v2856_v8 = vadd.f32 %v2855_v9, %v2745_v17 }
 0x549   : > { %v3117_v49 = vsel %vm517_vm0, %v5278_v34, 0.0  ;;  %v2759_v11 = vpop.f32.mrf.mxu2 }
 0x54a   : > { %3118 = vadd.xlane.f32.xlu1 %v3117_v49 }
 0x54c   : > { %v2968_v24 = vpop.f32.mrf.mxu0  ;;  %v3061_v40 = vpop.f32.mrf.mxu1 }
 0x54d   : > { %v2969_v33 = vadd.f32 %v2968_v24, %v2838_v57 }
 0x54f   : > { %v5285_v63 = vadd.f32 %v3057_v12, %v2969_v33  ;;  %v2650_v12 = vadd.f32 %v5211_v45, %v2497_v55  ;;  %v2873_v62 = vpop.f32.mrf.mxu3  ;;  %v2760_v33 = vadd.f32 %v2759_v11, %v5225_v61 }
 0x551   : > { %v3120_v2 = vsel %vm517_vm0, %v5285_v63, 0.0  ;;  %v2755_v35 = vadd.f32 %v2754_v13, %v2650_v12  ;;  %v2764_v57 = vpop.f32.mrf.mxu2  ;;  %v2874_v1 = vadd.f32 %v2873_v62, %v2760_v33 }
 0x552   : > { %3121 = vadd.xlane.f32.xlu2 %v3120_v2 }
 0x553   : > { %v2868_v48 = vadd.f32 %v2867_v43, %v2755_v35 }
 0x554   : > { %v2972_v37 = vpop.f32.mrf.mxu0  ;;  %v3065_v15 = vpop.f32.mrf.mxu1 }
 0x555   : > { %v2973_v56 = vadd.f32 %v2972_v37, %v2844_v21  ;;  %v2765_v37 = vadd.f32 %v2764_v57, %v5230_v28 }
 0x557   : > { %v5292_v27 = vadd.f32 %v3061_v40, %v2973_v56  ;;  %v2879_v40 = vpop.f32.mrf.mxu3 }
 0x558   : > { %v2880_v61 = vadd.f32 %v2879_v40, %v2765_v37 }
 0x559   : > { %v3123_v60 = vsel %vm517_vm0, %v5292_v27, 0.0  ;;  %v2769_v9 = vpop.f32.mrf.mxu2 }
 0x55a   : > { %3124 = vadd.xlane.f32.xlu1 %v3123_v60 }
 0x55c   : > { %v2976_v25 = vpop.f32.mrf.mxu0  ;;  %v3069_v7 = vpop.f32.mrf.mxu1 }
 0x55d   : > { %v2977_v3 = vadd.f32 %v2976_v25, %v2850_v58  ;;  %v2770_v58 = vadd.f32 %v2769_v9, %v5235_v53 }
 0x55f   : > { %v5299_v52 = vadd.f32 %v3065_v15, %v2977_v3  ;;  %v2885_v44 = vpop.f32.mrf.mxu3 }
 0x561   : > { %v3126_v42 = vsel %vm517_vm0, %v5299_v52, 0.0  ;;  %v2774_v60 = vpop.f32.mrf.mxu2 }
 0x562   : > { %3127 = vadd.xlane.f32.xlu2 %v3126_v42  ;;  %v2775_v23 = vadd.f32 %v2774_v60, %v5240_v18 }
 0x564   : > { %v2980_v22 = vpop.f32.mrf.mxu0  ;;  %v3073_v59 = vpop.f32.mrf.mxu1 }
 0x565   : > { %v2981_v16 = vadd.f32 %v2980_v22, %v2856_v8 }
 0x567   : > { %v5306_v39 = vadd.f32 %v3069_v7, %v2981_v16  ;;  %v2891_v28 = vpop.f32.mrf.mxu3  ;;  %v2886_v7 = vadd.f32 %v2885_v44, %v2770_v58 }
 0x568   : > { %v2892_v53 = vadd.f32 %v2891_v28, %v2775_v23 }
 0x569   : > { %v3129_v26 = vsel %vm517_vm0, %v5306_v39, 0.0  ;;  %v2779_v42 = vpop.f32.mrf.mxu2 }
 0x56a   : > { %3130 = vadd.xlane.f32.xlu1 %v3129_v26  ;;  %v2780_v16 = vadd.f32 %v2779_v42, %v5245_v31  ;;  %v3797_v26 = vmov 32.0  }
 0x56b   : > { %3722 = vrcp.f32 %v3797_v26 }
 0x56c   : > { %v2984_v6 = vpop.f32.mrf.mxu0  ;;  %v3077_v46 = vpop.f32.mrf.mxu1 }
 0x56d   : > { %v2985_v10 = vadd.f32 %v2984_v6, %v2862_v47 }
 0x56f   : > { %v5311_v49 = vadd.f32 %v3073_v59, %v2985_v10  ;;  %v2897_v41 = vpop.f32.mrf.mxu3 }
 0x570   : > { %v2898_v47 = vadd.f32 %v2897_v41, %v2780_v16 }
 0x571   : > { %v3132_v36 = vsel %vm517_vm0, %v5311_v49, 0.0  ;;  %v2784_v18 = vpop.f32.mrf.mxu2  ;;  %v3723_v35 = vpop.eup %3722 }
 0x572   : > { %3133 = vadd.xlane.f32.xlu2 %v3132_v36  ;;  %vm3167_vm1 = vweird.f32 %v3723_v35 }
 0x574   : > { %v2988_v30 = vpop.f32.mrf.mxu0  ;;  %v3081_v32 = vpop.f32.mrf.mxu1 }
 0x575   : > { %v2989_v24 = vadd.f32 %v2988_v30, %v2868_v48  ;;  %v3163_v48 = vmul.f32 32.0, %v3723_v35 }
 0x577   : > { %v5316_v45 = vadd.f32 %v3077_v46, %v2989_v24  ;;  %v2903_v6 = vpop.f32.mrf.mxu3  ;;  %v2785_v46 = vadd.f32 %v2784_v18, %v5250_v0 }
 0x579   : > { %v3135_v20 = vsel %vm517_vm0, %v5316_v45, 0.0  ;;  %v2904_v36 = vadd.f32 %v2903_v6, %v2785_v46  ;;  %v2789_v30 = vpop.f32.mrf.mxu2 }
 0x57a   : > { %3136 = vadd.xlane.f32.xlu1 %v3135_v20  ;;  %v2790_v40 = vadd.f32 %v2789_v30, %v5257_v54  ;;  %v3164_v20 = vsub.f32 1.0, %v3163_v48 }
 0x57c   : > { %v2992_v2 = vpop.f32.mrf.mxu0  ;;  %v3085_v21 = vpop.f32.mrf.mxu1 }
 0x57d   : > { %v2993_v5 = vadd.f32 %v2992_v2, %v2874_v1  ;;  %v3165_v2 = vmul.f32 %v3723_v35, %v3164_v20 }
 0x57f   : > { %v5321_v15 = vadd.f32 %v3081_v32, %v2993_v5  ;;  %v2909_v1 = vpop.f32.mrf.mxu3 }
 0x580   : > { %v2910_v9 = vadd.f32 %v2909_v1, %v2790_v40 }
 0x581   : > { %v3138_v56 = vsel %vm517_vm0, %v5321_v15, 0.0  ;;  %v2794_v44 = vpop.f32.mrf.mxu2 }
 0x582   : > { %3139 = vadd.xlane.f32.xlu2 %v3138_v56  ;;  %v2795_v56 = vadd.f32 %v2794_v44, %v5265_v14 }
 0x584   : > { %v2996_v4 = vpop.f32.mrf.mxu0  ;;  %v3089_v51 = vpop.f32.mrf.mxu1 }
 0x585   : > { %v2997_v50 = vadd.f32 %v2996_v4, %v2880_v61  ;;  %v3166_v4 = vadd.f32 %v3723_v35, %v3165_v2 }
 0x587   : > { %v5326_v38 = vadd.f32 %v3085_v21, %v2997_v50  ;;  %v5355_v60 = vsel %vm3167_vm1, %v3723_v35, %v3166_v4 }
 0x589   : > { %v3141_v25 = vsel %vm517_vm0, %v5326_v38, 0.0 }
 0x58a   : > { %3142 = vadd.xlane.f32.xlu1 %v3141_v25 }
 0x58c   : > { %v3000_v13 = vpop.f32.mrf.mxu0  ;;  %v3093_v17 = vpop.f32.mrf.mxu1 }
 0x58d   : > { %v3001_v3 = vadd.f32 %v3000_v13, %v2886_v7 }
 0x58f   : > { %v5331_v43 = vadd.f32 %v3089_v51, %v3001_v3  ;;  %v2915_v51 = vpop.f32.mrf.mxu3 }
 0x590   : > { %v2916_v50 = vadd.f32 %v2915_v51, %v2795_v56 }
 0x591   : > { %v3144_v8 = vsel %vm517_vm0, %v5331_v43, 0.0 }
 0x592   : > { %3145 = vadd.xlane.f32.xlu2 %v3144_v8 }
 0x594   : > { %v3004_v22 = vpop.f32.mrf.mxu0  ;;  %v3097_v55 = vpop.f32.mrf.mxu1 }
 0x595   : > { %v3005_v59 = vadd.f32 %v3004_v22, %v2892_v53 }
 0x597   : > { %v5336_v29 = vadd.f32 %v3093_v17, %v3005_v59 }
 0x599   : > { %v3147_v11 = vsel %vm517_vm0, %v5336_v29, 0.0 }
 0x59a   : > { %3148 = vadd.xlane.f32.xlu1 %v3147_v11 }
 0x59c   : > { %v3008_v12 = vpop.f32.mrf.mxu0  ;;  %v3101_v57 = vpop.f32.mrf.mxu1 }
 0x59d   : > { %v3009_v62 = vadd.f32 %v3008_v12, %v2898_v47 }
 0x59f   : > { %v5341_v10 = vadd.f32 %v3097_v55, %v3009_v62 }
 0x5a1   : > { %v3150_v31 = vsel %vm517_vm0, %v5341_v10, 0.0 }
 0x5a2   : > { %3151 = vadd.xlane.f32.xlu2 %v3150_v31 }
 0x5a4   : > { %v3012_v32 = vpop.f32.mrf.mxu0  ;;  %v3105_v21 = vpop.f32.mrf.mxu1 }
 0x5a5   : > { %v3013_v24 = vadd.f32 %v3012_v32, %v2904_v36 }
 0x5a7   : > { %v5346_v33 = vadd.f32 %v3101_v57, %v3013_v24 }
 0x5a9   : > { %v3153_v0 = vsel %vm517_vm0, %v5346_v33, 0.0 }
 0x5aa   : > { %3154 = vadd.xlane.f32.xlu1 %v3153_v0 }
 0x5ac   : > { %v3016_v5 = vpop.f32.mrf.mxu0  ;;  %v3109_v7 = vpop.f32.mrf.mxu1 }
 0x5ad   : > { %v3017_v37 = vadd.f32 %v3016_v5, %v2910_v9 }
 0x5af   : > { %v5351_v61 = vadd.f32 %v3105_v21, %v3017_v37 }
 0x5b1   : > { %v3156_v54 = vsel %vm517_vm0, %v5351_v61, 0.0 }
 0x5b2   : > { %3157 = vadd.xlane.f32.xlu2 %v3156_v54 }
 0x5b4   : > { %v3020_v58 = vpop.f32.mrf.mxu0 }
 0x5b5   : > { %v3021_v25 = vadd.f32 %v3020_v58, %v2916_v50  ;;  %v3116_v28 = vpop.xlane.xlu2 %3115 }
 0x5b6   : > { %v3169_v13 = vmul.f32 %v5355_v60, %v3116_v28 }
 0x5b7   : > { %v5358_v3 = vadd.f32 %v3109_v7, %v3021_v25 }
 0x5b8   : > { %v5361_v14 = vsub.f32 %v5271_v19, %v3169_v13 }
 0x5b9   : > { %v3159_v17 = vsel %vm517_vm0, %v5358_v3, 0.0 }
 0x5ba   : > { %3160 = vadd.xlane.f32.xlu1 %v3159_v17  ;;  %v3201_v23 = vmul.f32 %v5361_v14, %v5361_v14 }
 0x5bc   : > { %v3217_v42 = vsel %vm517_vm0, %v3201_v23, 0.0 }
 0x5bd   : > { %v3119_v8 = vpop.xlane.xlu1 %3118  ;;  %3218 = vadd.xlane.f32.xlu2 %v3217_v42 }
 0x5be   : > { %v3170_v53 = vmul.f32 %v5355_v60, %v3119_v8 }
 0x5c0   : > { %v5370_v41 = vsub.f32 %v5278_v34, %v3170_v53 }
 0x5c2   : > { %v3202_v19 = vmul.f32 %v5370_v41, %v5370_v41 }
 0x5c4   : > { %v3220_v22 = vsel %vm517_vm0, %v3202_v19, 0.0 }
 0x5c5   : > { %v3122_v59 = vpop.xlane.xlu2 %3121  ;;  %3221 = vadd.xlane.f32.xlu1 %v3220_v22 }
 0x5c6   : > { %v3171_v16 = vmul.f32 %v5355_v60, %v3122_v59 }
 0x5c8   : > { %v5377_v55 = vsub.f32 %v5285_v63, %v3171_v16 }
 0x5ca   : > { %v3203_v11 = vmul.f32 %v5377_v55, %v5377_v55 }
 0x5cc   : > { %v3223_v18 = vsel %vm517_vm0, %v3203_v11, 0.0 }
 0x5cd   : > { %v3125_v26 = vpop.xlane.xlu1 %3124  ;;  %3224 = vadd.xlane.f32.xlu2 %v3223_v18 }
 0x5ce   : > { %v3172_v34 = vmul.f32 %v5355_v60, %v3125_v26 }
 0x5d0   : > { %v5384_v47 = vsub.f32 %v5292_v27, %v3172_v34 }
 0x5d2   : > { %v3204_v12 = vmul.f32 %v5384_v47, %v5384_v47 }
 0x5d4   : > { %v3226_v62 = vsel %vm517_vm0, %v3204_v12, 0.0 }
 0x5d5   : > { %v3128_v6 = vpop.xlane.xlu2 %3127  ;;  %3227 = vadd.xlane.f32.xlu1 %v3226_v62 }
 0x5d6   : > { %v3173_v63 = vmul.f32 %v5355_v60, %v3128_v6 }
 0x5d8   : > { %v5391_v46 = vsub.f32 %v5299_v52, %v3173_v63 }
 0x5da   : > { %v3205_v35 = vmul.f32 %v5391_v46, %v5391_v46 }
 0x5dc   : > { %v3229_v31 = vsel %vm517_vm0, %v3205_v35, 0.0 }
 0x5dd   : > { %v3131_v57 = vpop.xlane.xlu1 %3130  ;;  %3230 = vadd.xlane.f32.xlu2 %v3229_v31 }
 0x5de   : > { %v3174_v27 = vmul.f32 %v5355_v60, %v3131_v57 }
 0x5e0   : > { %v5398_v36 = vsub.f32 %v5306_v39, %v3174_v27 }
 0x5e2   : > { %v3206_v48 = vmul.f32 %v5398_v36, %v5398_v36 }
 0x5e4   : > { %v3232_v30 = vsel %vm517_vm0, %v3206_v48, 0.0 }
 0x5e5   : > { %v3134_v32 = vpop.xlane.xlu2 %3133  ;;  %3233 = vadd.xlane.f32.xlu1 %v3232_v30 }
 0x5e6   : > { %v3175_v52 = vmul.f32 %v5355_v60, %v3134_v32 }
 0x5e8   : > { %v5405_v24 = vsub.f32 %v5311_v49, %v3175_v52 }
 0x5ea   : > { %v3207_v40 = vmul.f32 %v5405_v24, %v5405_v24 }
 0x5ec   : > { %v3235_v20 = vsel %vm517_vm0, %v3207_v40, 0.0 }
 0x5ed   : > { %v3137_v1 = vpop.xlane.xlu1 %3136  ;;  %3236 = vadd.xlane.f32.xlu2 %v3235_v20 }
 0x5ee   : > { %v3176_v39 = vmul.f32 %v5355_v60, %v3137_v1 }
 0x5f0   : > { %v5412_v0 = vsub.f32 %v5316_v45, %v3176_v39 }
 0x5f2   : > { %v3208_v9 = vmul.f32 %v5412_v0, %v5412_v0 }
 0x5f4   : > { %v3238_v2 = vsel %vm517_vm0, %v3208_v9, 0.0 }
 0x5f5   : > { %v3140_v21 = vpop.xlane.xlu2 %3139  ;;  %3239 = vadd.xlane.f32.xlu1 %v3238_v2 }
 0x5f6   : > { %v3177_v49 = vmul.f32 %v5355_v60, %v3140_v21 }
 0x5f8   : > { %v5419_v5 = vsub.f32 %v5321_v15, %v3177_v49 }
 0x5fa   : > { %v3209_v37 = vmul.f32 %v5419_v5, %v5419_v5 }
 0x5fc   : > { %v3241_v44 = vsel %vm517_vm0, %v3209_v37, 0.0  ;;  %v5479_v37 = vld [vmem:[%s5621_s9] ss:$0 sm:$0xff] }
 0x5fd   : > { %v3143_v56 = vpop.xlane.xlu1 %3142  ;;  %3242 = vadd.xlane.f32.xlu2 %v3241_v44 }
 0x5fe   : > { %v3178_v45 = vmul.f32 %v5355_v60, %v3143_v56 }
 0x600   : > { %v5426_v4 = vsub.f32 %v5326_v38, %v3178_v45  ;;  %v5484_v45 = vld [vmem:[%s5622_s10] ss:$0 sm:$0xff] }
 0x602   : > { %v3210_v54 = vmul.f32 %v5426_v4, %v5426_v4 }
 0x604   : > { %v3244_v51 = vsel %vm517_vm0, %v3210_v54, 0.0 }
 0x605   : > { %v3146_v50 = vpop.xlane.xlu2 %3145  ;;  %3245 = vadd.xlane.f32.xlu1 %v3244_v51 }
 0x606   : > { %v3179_v15 = vmul.f32 %v5355_v60, %v3146_v50 }
 0x608   : > { %v5433_v58 = vsub.f32 %v5331_v43, %v3179_v15 }
 0x60a   : > { %v3211_v25 = vmul.f32 %v5433_v58, %v5433_v58 }
 0x60c   : > { %v3247_v28 = vsel %vm517_vm0, %v3211_v25, 0.0 }
 0x60d   : > { %v3149_v7 = vpop.xlane.xlu1 %3148  ;;  %3248 = vadd.xlane.f32.xlu2 %v3247_v28 }
 0x60e   : > { %v3180_v38 = vmul.f32 %v5355_v60, %v3149_v7 }
 0x610   : > { %v5440_v13 = vsub.f32 %v5336_v29, %v3180_v38 }
 0x612   : > { %v3212_v17 = vmul.f32 %v5440_v13, %v5440_v13 }
 0x614   : > { %v3250_v23 = vsel %vm517_vm0, %v3212_v17, 0.0 }
 0x615   : > { %v3152_v42 = vpop.xlane.xlu2 %3151  ;;  %3251 = vadd.xlane.f32.xlu1 %v3250_v23 }
 0x616   : > { %v3181_v43 = vmul.f32 %v5355_v60, %v3152_v42 }
 0x618   : > { %v5447_v8 = vsub.f32 %v5341_v10, %v3181_v43 }
 0x61a   : > { %v3213_v53 = vmul.f32 %v5447_v8, %v5447_v8 }
 0x61c   : > { %v3253_v19 = vsel %vm517_vm0, %v3213_v53, 0.0 }
 0x61d   : > { %v3155_v22 = vpop.xlane.xlu1 %3154  ;;  %3254 = vadd.xlane.f32.xlu2 %v3253_v19  ;;  %v3756_v19 = vld [vmem:[%s4209_s17] sm:$0xff] }
 0x61e   : > { %v3182_v29 = vmul.f32 %v5355_v60, %v3155_v22 }
 0x620   : > { %v5454_v59 = vsub.f32 %v5346_v33, %v3182_v29 }
 0x622   : > { %v3214_v16 = vmul.f32 %v5454_v59, %v5454_v59 }
 0x624   : > { %v3256_v11 = vsel %vm517_vm0, %v3214_v16, 0.0 }
 0x625   : > { %v3158_v18 = vpop.xlane.xlu2 %3157  ;;  %3257 = vadd.xlane.f32.xlu1 %v3256_v11 }
 0x626   : > { %v3183_v10 = vmul.f32 %v5355_v60, %v3158_v18 }
 0x628   : > { %v5461_v26 = vsub.f32 %v5351_v61, %v3183_v10 }
 0x62a   : > { %v3215_v34 = vmul.f32 %v5461_v26, %v5461_v26 }
 0x62c   : > { %v3259_v12 = vsel %vm517_vm0, %v3215_v34, 0.0 }
 0x62d   : > { %3260 = vadd.xlane.f32.xlu2 %v3259_v12  ;;  %v3161_v33 = vpop.xlane.xlu1 %3160 }
 0x62e   : > { %v3184_v62 = vmul.f32 %v5355_v60, %v3161_v33 }
 0x630   : > { %v5468_v6 = vsub.f32 %v5358_v3, %v3184_v62  ;;  %v3219_v63 = vpop.xlane.xlu2 %3218 }
 0x631   : > { %v3265_v35 = vmul.f32 %v3219_v63, %v5355_v60 }
 0x632   : > { %v3216_v31 = vmul.f32 %v5468_v6, %v5468_v6 }
 0x633   : > { %v3281_v61 = vadd.f32 1e-05, %v3265_v35 }
 0x634   : > { %v3262_v57 = vsel %vm517_vm0, %v3216_v31, 0.0 }
 0x635   : > { %3724 = vrsqrt.f32 %v3281_v61  ;;  %3263 = vadd.xlane.f32.xlu0 %v3262_v57  ;;  %vm3303_vm10 = vweird.f32 %v3281_v61  ;;  %v3757_v57 = vld [vmem:[%s4209_s17 + $0x8] sm:$0xff] }
 0x638   : > { %v3222_v27 = vpop.xlane.xlu1 %3221 }
 0x639   : > { %v3266_v48 = vmul.f32 %v3222_v27, %v5355_v60 }
 0x63b   : > { %v3725_v30 = vpop.eup %3724  ;;  %v3282_v32 = vadd.f32 1e-05, %v3266_v48 }
 0x63c   : > { %v3298_v52 = vmul.f32 %v3725_v30, %v3281_v61  ;;  %vm3304_vm9 = vweird.f32 %v3725_v30 }
 0x63d   : > { %3726 = vrsqrt.f32 %v3282_v32  ;;  %vm3305_vm11 = vmor %vm3303_vm10, %vm3304_vm9  ;;  %vm3313_vm13 = vweird.f32 %v3282_v32 }
 0x63e   : > { %v3299_v3 = vmul.f32 %v3725_v30, %v3298_v52 }
 0x640   : > { %v3300_v40 = vmul.f32 0.5, %v3299_v3  ;;  %v3225_v20 = vpop.xlane.xlu2 %3224 }
 0x641   : > { %v3267_v1 = vmul.f32 %v3225_v20, %v5355_v60 }
 0x642   : > { %v3301_v39 = vsub.f32 1.5, %v3300_v40 }
 0x643   : > { %v3727_v9 = vpop.eup %3726  ;;  %v3283_v2 = vadd.f32 1e-05, %v3267_v1 }
 0x644   : > { %v3302_v21 = vmul.f32 %v3725_v30, %v3301_v39  ;;  %v3308_v49 = vmul.f32 %v3727_v9, %v3282_v32  ;;  %vm3314_vm12 = vweird.f32 %v3727_v9 }
 0x645   : > { %3728 = vrsqrt.f32 %v3283_v2  ;;  %vm3315_vm14 = vmor %vm3313_vm13, %vm3314_vm12  ;;  %vm3323_vm2 = vweird.f32 %v3283_v2 }
 0x646   : > { %v3306_v44 = vsel %vm3305_vm11, %v3725_v30, %v3302_v21  ;;  %v3309_v56 = vmul.f32 %v3727_v9, %v3308_v49 }
 0x647   : > { %v3457_v54 = vmul.f32 %v3306_v44, %v5361_v14  ;;  %v3758_v44 = vld [vmem:[%s4209_s17 + $0x10] sm:$0xff] }
 0x648   : > { %v3310_v51 = vmul.f32 0.5, %v3309_v56  ;;  %v3228_v50 = vpop.xlane.xlu1 %3227 }
 0x649   : > { %v3476_v15 = vmul.f32 %v5479_v37, %v3457_v54  ;;  %v3268_v25 = vmul.f32 %v3228_v50, %v5355_v60 }
 0x64a   : > { %v3311_v28 = vsub.f32 1.5, %v3310_v51 }
 0x64b   : > { %v3729_v7 = vpop.eup %3728  ;;  %v3495_v38 = vadd.f32 %v5484_v45, %v3476_v15  ;;  %v3284_v17 = vadd.f32 1e-05, %v3268_v25 }
 0x64c   : > { %v3312_v23 = vmul.f32 %v3727_v9, %v3311_v28  ;;  %v3318_v42 = vmul.f32 %v3729_v7, %v3283_v2  ;;  %vm3324_vm15 = vweird.f32 %v3729_v7 }
 0x64d   : > { %v3511_v43 = vmax.f32 %v3495_v38, 0.0  ;;  %3730 = vrsqrt.f32 %v3284_v17  ;;  %vm3325_vm3 = vmor %vm3323_vm2, %vm3324_vm15  ;;  %vm3333_vm5 = vweird.f32 %v3284_v17 }
 0x64e   : > { %v3316_v14 = vsel %vm3315_vm14, %v3727_v9, %v3312_v23  ;;  %v3319_v53 = vmul.f32 %v3729_v7, %v3318_v42 }
 0x64f   : > { %v3527_v22 = vadd.f32 %v3756_v19, %v3511_v43  ;;  %v3458_v29 = vmul.f32 %v3316_v14, %v5370_v41 }
 0x650   : > { %v3320_v16 = vmul.f32 0.5, %v3319_v53  ;;  %v3231_v11 = vpop.xlane.xlu2 %3230  ;;  %v3759_v53 = vld [vmem:[%s4209_s17 + $0x18] sm:$0xff] }
 0x651   : > { %3543 = vst.msk [vmem:[%s5495_s30] sm:$0xff] %vm517_vm0, %v3527_v22  ;;  %v3477_v18 = vmul.f32 %v5479_v37, %v3458_v29  ;;  %v3269_v10 = vmul.f32 %v3231_v11, %v5355_v60 }
 0x652   : > { %v3321_v34 = vsub.f32 1.5, %v3320_v16 }
 0x653   : > { %v3731_v12 = vpop.eup %3730  ;;  %v3496_v33 = vadd.f32 %v5484_v45, %v3477_v18  ;;  %v3285_v62 = vadd.f32 1e-05, %v3269_v10 }
 0x654   : > { %v3322_v63 = vmul.f32 %v3729_v7, %v3321_v34  ;;  %v3328_v35 = vmul.f32 %v3731_v12, %v3284_v17  ;;  %vm3334_vm4 = vweird.f32 %v3731_v12 }
 0x655   : > { %v3512_v41 = vmax.f32 %v3496_v33, 0.0  ;;  %3732 = vrsqrt.f32 %v3285_v62  ;;  %vm3335_vm6 = vmor %vm3333_vm5, %vm3334_vm4  ;;  %vm3343_vm8 = vweird.f32 %v3285_v62 }
 0x656   : > { %v3326_v31 = vsel %vm3325_vm3, %v3729_v7, %v3322_v63  ;;  %v3329_v61 = vmul.f32 %v3731_v12, %v3328_v35 }
 0x657   : > { %v3528_v27 = vadd.f32 %v3757_v57, %v3512_v41  ;;  %v3459_v48 = vmul.f32 %v3326_v31, %v5377_v55  ;;  %v3760_v31 = vld [vmem:[%s4209_s17 + $0x20] sm:$0xff] }
 0x658   : > { %v3330_v30 = vmul.f32 0.5, %v3329_v61  ;;  %v3234_v32 = vpop.xlane.xlu1 %3233 }
 0x659   : > { %3544 = vst.msk [vmem:[%s5495_s30 + $0x8] sm:$0xff] %vm517_vm0, %v3528_v27  ;;  %v3478_v52 = vmul.f32 %v5479_v37, %v3459_v48  ;;  %v3270_v3 = vmul.f32 %v3234_v32, %v5355_v60 }
 0x65a   : > { %v3331_v40 = vsub.f32 1.5, %v3330_v30 }
 0x65b   : > { %v3733_v20 = vpop.eup %3732  ;;  %v3497_v1 = vadd.f32 %v5484_v45, %v3478_v52  ;;  %v3286_v39 = vadd.f32 1e-05, %v3270_v3 }
 0x65c   : > { %v3332_v9 = vmul.f32 %v3731_v12, %v3331_v40  ;;  %v3338_v2 = vmul.f32 %v3733_v20, %v3285_v62  ;;  %vm3344_vm7 = vweird.f32 %v3733_v20 }
 0x65d   : > { %v3513_v55 = vmax.f32 %v3497_v1, 0.0  ;;  %3734 = vrsqrt.f32 %v3286_v39  ;;  %vm3345_vm1 = vmor %vm3343_vm8, %vm3344_vm7  ;;  %vm3353_vm10 = vweird.f32 %v3286_v39 }
 0x65e   : > { %v3336_v21 = vsel %vm3335_vm6, %v3731_v12, %v3332_v9  ;;  %v3339_v49 = vmul.f32 %v3733_v20, %v3338_v2 }
 0x65f   : > { %v3529_v56 = vadd.f32 %v3758_v44, %v3513_v55  ;;  %v3460_v54 = vmul.f32 %v3336_v21, %v5384_v47  ;;  %v3761_v55 = vld [vmem:[%s4209_s17 + $0x28] sm:$0xff] }
 0x660   : > { %v3340_v51 = vmul.f32 0.5, %v3339_v49  ;;  %v3237_v50 = vpop.xlane.xlu2 %3236 }
 0x661   : > { %3545 = vst.msk [vmem:[%s5495_s30 + $0x10] sm:$0xff] %vm517_vm0, %v3529_v56  ;;  %v3479_v15 = vmul.f32 %v5479_v37, %v3460_v54  ;;  %v3271_v25 = vmul.f32 %v3237_v50, %v5355_v60 }
 0x662   : > { %v3341_v28 = vsub.f32 1.5, %v3340_v51 }
 0x663   : > { %v3735_v7 = vpop.eup %3734  ;;  %v3498_v38 = vadd.f32 %v5484_v45, %v3479_v15  ;;  %v3287_v17 = vadd.f32 1e-05, %v3271_v25 }
 0x664   : > { %v3342_v23 = vmul.f32 %v3733_v20, %v3341_v28  ;;  %v3348_v42 = vmul.f32 %v3735_v7, %v3286_v39  ;;  %vm3354_vm9 = vweird.f32 %v3735_v7 }
 0x665   : > { %v3514_v47 = vmax.f32 %v3498_v38, 0.0  ;;  %3736 = vrsqrt.f32 %v3287_v17  ;;  %vm3355_vm11 = vmor %vm3353_vm10, %vm3354_vm9  ;;  %vm3363_vm13 = vweird.f32 %v3287_v17 }
 0x666   : > { %v3346_v43 = vsel %vm3345_vm1, %v3733_v20, %v3342_v23  ;;  %v3349_v14 = vmul.f32 %v3735_v7, %v3348_v42  ;;  %v3762_v42 = vld [vmem:[%s4209_s17 + $0x30] sm:$0xff] }
 0x667   : > { %v3530_v19 = vadd.f32 %v3759_v53, %v3514_v47  ;;  %v3461_v22 = vmul.f32 %v3346_v43, %v5391_v46 }
 0x668   : > { %v3350_v29 = vmul.f32 0.5, %v3349_v14  ;;  %v3240_v16 = vpop.xlane.xlu1 %3239 }
 0x669   : > { %3546 = vst.msk [vmem:[%s5495_s30 + $0x18] sm:$0xff] %vm517_vm0, %v3530_v19  ;;  %v3480_v11 = vmul.f32 %v5479_v37, %v3461_v22  ;;  %v3272_v18 = vmul.f32 %v3240_v16, %v5355_v60 }
 0x66a   : > { %v3351_v10 = vsub.f32 1.5, %v3350_v29 }
 0x66b   : > { %v3737_v34 = vpop.eup %3736  ;;  %v3499_v12 = vadd.f32 %v5484_v45, %v3480_v11  ;;  %v3288_v33 = vadd.f32 1e-05, %v3272_v18 }
 0x66c   : > { %v3352_v62 = vmul.f32 %v3735_v7, %v3351_v10  ;;  %v3358_v63 = vmul.f32 %v3737_v34, %v3287_v17  ;;  %vm3364_vm12 = vweird.f32 %v3737_v34 }
 0x66d   : > { %v3515_v46 = vmax.f32 %v3499_v12, 0.0  ;;  %3738 = vrsqrt.f32 %v3288_v33  ;;  %vm3365_vm14 = vmor %vm3363_vm13, %vm3364_vm12  ;;  %vm3373_vm2 = vweird.f32 %v3288_v33 }
 0x66e   : > { %v3356_v35 = vsel %vm3355_vm11, %v3735_v7, %v3352_v62  ;;  %v3359_v41 = vmul.f32 %v3737_v34, %v3358_v63  ;;  %v3763_v62 = vld [vmem:[%s4209_s17 + $0x38] sm:$0xff] }
 0x66f   : > { %v3531_v61 = vadd.f32 %v3760_v31, %v3515_v46  ;;  %v3462_v57 = vmul.f32 %v3356_v35, %v5398_v36 }
 0x670   : > { %v3360_v27 = vmul.f32 0.5, %v3359_v41  ;;  %v3243_v48 = vpop.xlane.xlu2 %3242 }
 0x671   : > { %3547 = vst.msk [vmem:[%s5495_s30 + $0x20] sm:$0xff] %vm517_vm0, %v3531_v61  ;;  %v3481_v30 = vmul.f32 %v5479_v37, %v3462_v57  ;;  %v3273_v32 = vmul.f32 %v3243_v48, %v5355_v60 }
 0x672   : > { %v3361_v52 = vsub.f32 1.5, %v3360_v27 }
 0x673   : > { %v3739_v3 = vpop.eup %3738  ;;  %v3500_v40 = vadd.f32 %v5484_v45, %v3481_v30  ;;  %v3289_v20 = vadd.f32 1e-05, %v3273_v32 }
 0x674   : > { %v3362_v1 = vmul.f32 %v3737_v34, %v3361_v52  ;;  %v3368_v39 = vmul.f32 %v3739_v3, %v3288_v33  ;;  %vm3374_vm15 = vweird.f32 %v3739_v3 }
 0x675   : > { %v3516_v36 = vmax.f32 %v3500_v40, 0.0  ;;  %3740 = vrsqrt.f32 %v3289_v20  ;;  %vm3375_vm3 = vmor %vm3373_vm2, %vm3374_vm15  ;;  %vm3383_vm5 = vweird.f32 %v3289_v20 }
 0x676   : > { %v3366_v9 = vsel %vm3365_vm14, %v3737_v34, %v3362_v1  ;;  %v3369_v2 = vmul.f32 %v3739_v3, %v3368_v39 }
 0x677   : > { %v3532_v21 = vadd.f32 %v3761_v55, %v3516_v36  ;;  %v3463_v49 = vmul.f32 %v3366_v9, %v5405_v24 }
 0x678   : > { %v3370_v44 = vmul.f32 0.5, %v3369_v2  ;;  %v3246_v56 = vpop.xlane.xlu1 %3245 }
 0x679   : > { %3548 = vst.msk [vmem:[%s5495_s30 + $0x28] sm:$0xff] %vm517_vm0, %v3532_v21  ;;  %v3482_v54 = vmul.f32 %v5479_v37, %v3463_v49  ;;  %v3274_v51 = vmul.f32 %v3246_v56, %v5355_v60 }
 0x67a   : > { %v3371_v50 = vsub.f32 1.5, %v3370_v44 }
 0x67b   : > { %v3741_v15 = vpop.eup %3740  ;;  %v3501_v25 = vadd.f32 %v5484_v45, %v3482_v54  ;;  %v3290_v28 = vadd.f32 1e-05, %v3274_v51 }
 0x67c   : > { %v3372_v7 = vmul.f32 %v3739_v3, %v3371_v50  ;;  %v3378_v38 = vmul.f32 %v3741_v15, %v3289_v20  ;;  %vm3384_vm4 = vweird.f32 %v3741_v15  ;;  %v3764_v20 = vld [vmem:[%s4209_s17 + $0x40] sm:$0xff] }
 0x67d   : > { %v3517_v24 = vmax.f32 %v3501_v25, 0.0  ;;  %3742 = vrsqrt.f32 %v3290_v28  ;;  %vm3385_vm6 = vmor %vm3383_vm5, %vm3384_vm4  ;;  %vm3393_vm8 = vweird.f32 %v3290_v28  ;;  %v3765_v25 = vld [vmem:[%s4209_s17 + $0x48] sm:$0xff] }
 0x67e   : > { %v3376_v17 = vsel %vm3375_vm3, %v3739_v3, %v3372_v7  ;;  %v3379_v23 = vmul.f32 %v3741_v15, %v3378_v38 }
 0x67f   : > { %v3533_v47 = vadd.f32 %v3762_v42, %v3517_v24  ;;  %v3464_v43 = vmul.f32 %v3376_v17, %v5412_v0 }
 0x680   : > { %v3380_v14 = vmul.f32 0.5, %v3379_v23  ;;  %v3249_v53 = vpop.xlane.xlu2 %3248 }
 0x681   : > { %3549 = vst.msk [vmem:[%s5495_s30 + $0x30] sm:$0xff] %vm517_vm0, %v3533_v47  ;;  %v3483_v19 = vmul.f32 %v5479_v37, %v3464_v43  ;;  %v3275_v22 = vmul.f32 %v3249_v53, %v5355_v60 }
 0x682   : > { %v3381_v29 = vsub.f32 1.5, %v3380_v14 }
 0x683   : > { %v3743_v16 = vpop.eup %3742  ;;  %v3502_v11 = vadd.f32 %v5484_v45, %v3483_v19  ;;  %v3291_v18 = vadd.f32 1e-05, %v3275_v22 }
 0x684   : > { %v3382_v10 = vmul.f32 %v3741_v15, %v3381_v29  ;;  %v3388_v34 = vmul.f32 %v3743_v16, %v3290_v28  ;;  %vm3394_vm7 = vweird.f32 %v3743_v16 }
 0x685   : > { %v3518_v0 = vmax.f32 %v3502_v11, 0.0  ;;  %3744 = vrsqrt.f32 %v3291_v18  ;;  %vm3395_vm1 = vmor %vm3393_vm8, %vm3394_vm7  ;;  %vm3403_vm10 = vweird.f32 %v3291_v18 }
 0x686   : > { %v3386_v12 = vsel %vm3385_vm6, %v3741_v15, %v3382_v10  ;;  %v3389_v33 = vmul.f32 %v3743_v16, %v3388_v34 }
 0x687   : > { %v3534_v63 = vadd.f32 %v3763_v62, %v3518_v0  ;;  %v3465_v46 = vmul.f32 %v3386_v12, %v5419_v5 }
 0x688   : > { %v3390_v35 = vmul.f32 0.5, %v3389_v33  ;;  %v3252_v41 = vpop.xlane.xlu1 %3251 }
 0x689   : > { %3550 = vst.msk [vmem:[%s5495_s30 + $0x38] sm:$0xff] %vm517_vm0, %v3534_v63  ;;  %v3484_v31 = vmul.f32 %v5479_v37, %v3465_v46  ;;  %v3276_v61 = vmul.f32 %v3252_v41, %v5355_v60 }
 0x68a   : > { %v3391_v57 = vsub.f32 1.5, %v3390_v35 }
 0x68b   : > { %v3745_v27 = vpop.eup %3744  ;;  %v3503_v48 = vadd.f32 %v5484_v45, %v3484_v31  ;;  %v3292_v30 = vadd.f32 1e-05, %v3276_v61 }
 0x68c   : > { %v3392_v32 = vmul.f32 %v3743_v16, %v3391_v57  ;;  %v3398_v52 = vmul.f32 %v3745_v27, %v3291_v18  ;;  %vm3404_vm9 = vweird.f32 %v3745_v27  ;;  %v3767_v57 = vld [vmem:[%s4209_s17 + $0x58] sm:$0xff] }
 0x68d   : > { %v3519_v5 = vmax.f32 %v3503_v48, 0.0  ;;  %3746 = vrsqrt.f32 %v3292_v30  ;;  %vm3405_vm11 = vmor %vm3403_vm10, %vm3404_vm9  ;;  %vm3413_vm13 = vweird.f32 %v3292_v30 }
 0x68e   : > { %v3396_v3 = vsel %vm3395_vm1, %v3743_v16, %v3392_v32  ;;  %v3399_v40 = vmul.f32 %v3745_v27, %v3398_v52  ;;  %v3766_v16 = vld [vmem:[%s4209_s17 + $0x50] sm:$0xff] }
 0x68f   : > { %v3535_v1 = vadd.f32 %v3764_v20, %v3519_v5  ;;  %v3466_v39 = vmul.f32 %v3396_v3, %v5426_v4 }
 0x690   : > { %v3400_v36 = vmul.f32 0.5, %v3399_v40  ;;  %v3255_v9 = vpop.xlane.xlu2 %3254 }
 0x691   : > { %3551 = vst.msk [vmem:[%s5495_s30 + $0x40] sm:$0xff] %vm517_vm0, %v3535_v1  ;;  %v3485_v2 = vmul.f32 %v5479_v37, %v3466_v39  ;;  %v3277_v55 = vmul.f32 %v3255_v9, %v5355_v60 }
 0x692   : > { %v3401_v21 = vsub.f32 1.5, %v3400_v36 }
 0x693   : > { %v3747_v49 = vpop.eup %3746  ;;  %v3504_v44 = vadd.f32 %v5484_v45, %v3485_v2  ;;  %v3293_v56 = vadd.f32 1e-05, %v3277_v55  ;;  %v3768_v55 = vld [vmem:[%s4209_s17 + $0x60] sm:$0xff] }
 0x694   : > { %v3402_v54 = vmul.f32 %v3745_v27, %v3401_v21  ;;  %v3408_v51 = vmul.f32 %v3747_v49, %v3292_v30  ;;  %vm3414_vm12 = vweird.f32 %v3747_v49 }
 0x695   : > { %v3520_v4 = vmax.f32 %v3504_v44, 0.0  ;;  %3748 = vrsqrt.f32 %v3293_v56  ;;  %vm3415_vm14 = vmor %vm3413_vm13, %vm3414_vm12  ;;  %vm3423_vm2 = vweird.f32 %v3293_v56 }
 0x696   : > { %v3406_v50 = vsel %vm3405_vm11, %v3745_v27, %v3402_v54  ;;  %v3409_v15 = vmul.f32 %v3747_v49, %v3408_v51 }
 0x697   : > { %v3536_v28 = vadd.f32 %v3765_v25, %v3520_v4  ;;  %v3467_v7 = vmul.f32 %v3406_v50, %v5433_v58 }
 0x698   : > { %v3410_v38 = vmul.f32 0.5, %v3409_v15  ;;  %v3258_v24 = vpop.xlane.xlu1 %3257 }
 0x699   : > { %3552 = vst.msk [vmem:[%s5495_s30 + $0x48] sm:$0xff] %vm517_vm0, %v3536_v28  ;;  %v3486_v17 = vmul.f32 %v5479_v37, %v3467_v7  ;;  %v3278_v23 = vmul.f32 %v3258_v24, %v5355_v60 }
 0x69a   : > { %v3411_v42 = vsub.f32 1.5, %v3410_v38 }
 0x69b   : > { %v3749_v47 = vpop.eup %3748  ;;  %v3505_v43 = vadd.f32 %v5484_v45, %v3486_v17  ;;  %v3294_v14 = vadd.f32 1e-05, %v3278_v23 }
 0x69c   : > { %v3412_v53 = vmul.f32 %v3747_v49, %v3411_v42  ;;  %v3418_v19 = vmul.f32 %v3749_v47, %v3293_v56  ;;  %vm3424_vm15 = vweird.f32 %v3749_v47 }
 0x69d   : > { %v3521_v58 = vmax.f32 %v3505_v43, 0.0  ;;  %3750 = vrsqrt.f32 %v3294_v14  ;;  %vm3425_vm3 = vmor %vm3423_vm2, %vm3424_vm15  ;;  %vm3433_vm5 = vweird.f32 %v3294_v14 }
 0x69e   : > { %v3416_v22 = vsel %vm3415_vm14, %v3747_v49, %v3412_v53  ;;  %v3419_v29 = vmul.f32 %v3749_v47, %v3418_v19  ;;  %v3770_v53 = vld [vmem:[%s4209_s17 + $0x70] sm:$0xff] }
 0x69f   : > { %v3537_v11 = vadd.f32 %v3766_v16, %v3521_v58  ;;  %v3468_v18 = vmul.f32 %v3416_v22, %v5440_v13  ;;  %v3771_v16 = vld [vmem:[%s4209_s17 + $0x78] sm:$0xff] }
 0x6a0   : > { %v3420_v10 = vmul.f32 0.5, %v3419_v29  ;;  %v3261_v34 = vpop.xlane.xlu2 %3260 }
 0x6a1   : > { %3553 = vst.msk [vmem:[%s5495_s30 + $0x50] sm:$0xff] %vm517_vm0, %v3537_v11  ;;  %v3487_v0 = vmul.f32 %v5479_v37, %v3468_v18  ;;  %v3279_v12 = vmul.f32 %v3261_v34, %v5355_v60 }
 0x6a2   : > { %v3421_v33 = vsub.f32 1.5, %v3420_v10 }
 0x6a3   : > { %v3751_v62 = vpop.eup %3750  ;;  %v3506_v63 = vadd.f32 %v5484_v45, %v3487_v0  ;;  %v3295_v46 = vadd.f32 1e-05, %v3279_v12 }
 0x6a4   : > { %v3422_v35 = vmul.f32 %v3749_v47, %v3421_v33  ;;  %v3428_v41 = vmul.f32 %v3751_v62, %v3294_v14  ;;  %vm3434_vm4 = vweird.f32 %v3751_v62 }
 0x6a5   : > { %v3522_v13 = vmax.f32 %v3506_v63, 0.0  ;;  %3752 = vrsqrt.f32 %v3295_v46  ;;  %vm3435_vm6 = vmor %vm3433_vm5, %vm3434_vm4  ;;  %vm3443_vm8 = vweird.f32 %v3295_v46 }
 0x6a6   : > { %v3426_v31 = vsel %vm3425_vm3, %v3749_v47, %v3422_v35  ;;  %v3429_v61 = vmul.f32 %v3751_v62, %v3428_v41 }
 0x6a7   : > { %v3538_v27 = vadd.f32 %v3767_v57, %v3522_v13  ;;  %v3469_v48 = vmul.f32 %v3426_v31, %v5447_v8 }
 0x6a8   : > { %v3430_v30 = vmul.f32 0.5, %v3429_v61  ;;  %v3264_v32 = vpop.xlane.xlu0 %3263 }
 0x6a9   : > { %3554 = vst.msk [vmem:[%s5495_s30 + $0x58] sm:$0xff] %vm517_vm0, %v3538_v27  ;;  %v3488_v52 = vmul.f32 %v5479_v37, %v3469_v48  ;;  %v3280_v5 = vmul.f32 %v3264_v32, %v5355_v60 }
 0x6aa   : > { %v3431_v3 = vsub.f32 1.5, %v3430_v30 }
 0x6ab   : > { %v3753_v40 = vpop.eup %3752  ;;  %v3507_v20 = vadd.f32 %v5484_v45, %v3488_v52  ;;  %v3296_v1 = vadd.f32 1e-05, %v3280_v5 }
 0x6ac   : > { %v3432_v39 = vmul.f32 %v3751_v62, %v3431_v3  ;;  %v3438_v36 = vmul.f32 %v3753_v40, %v3295_v46  ;;  %vm3444_vm7 = vweird.f32 %v3753_v40 }
 0x6ad   : > { %v3523_v8 = vmax.f32 %v3507_v20, 0.0  ;;  %3754 = vrsqrt.f32 %v3296_v1  ;;  %vm3445_vm1 = vmor %vm3443_vm8, %vm3444_vm7  ;;  %vm3453_vm10 = vweird.f32 %v3296_v1 }
 0x6ae   : > { %v3436_v9 = vsel %vm3435_vm6, %v3751_v62, %v3432_v39  ;;  %v3439_v2 = vmul.f32 %v3753_v40, %v3438_v36 }
 0x6af   : > { %v3539_v21 = vadd.f32 %v3768_v55, %v3523_v8  ;;  %v3470_v60 = vmul.f32 %v3436_v9, %v5454_v59  ;;  %v3769_v59 = vld [vmem:[%s4209_s17 + $0x68] sm:$0xff] }
 0x6b0   : > { %v3440_v49 = vmul.f32 0.5, %v3439_v2 }
 0x6b1   : > { %3555 = vst.msk [vmem:[%s5495_s30 + $0x60] sm:$0xff] %vm517_vm0, %v3539_v21  ;;  %v3489_v44 = vmul.f32 %v5479_v37, %v3470_v60 }
 0x6b2   : > { %v3441_v56 = vsub.f32 1.5, %v3440_v49 }
 0x6b3   : > { %v3755_v54 = vpop.eup %3754  ;;  %v3508_v51 = vadd.f32 %v5484_v45, %v3489_v44 }
 0x6b4   : > { %v3442_v4 = vmul.f32 %v3753_v40, %v3441_v56  ;;  %v3448_v50 = vmul.f32 %v3755_v54, %v3296_v1  ;;  %vm3454_vm9 = vweird.f32 %v3755_v54 }
 0x6b5   : > { %v3524_v15 = vmax.f32 %v3508_v51, 0.0  ;;  %vm3455_vm11 = vmor %vm3453_vm10, %vm3454_vm9 }
 0x6b6   : > { %v3446_v25 = vsel %vm3445_vm1, %v3753_v40, %v3442_v4  ;;  %v3449_v28 = vmul.f32 %v3755_v54, %v3448_v50 }
 0x6b7   : > { %v3540_v7 = vadd.f32 %v3769_v59, %v3524_v15  ;;  %v3471_v38 = vmul.f32 %v3446_v25, %v5461_v26 }
 0x6b8   : > { %v3450_v24 = vmul.f32 0.5, %v3449_v28 }
 0x6b9   : > { %3556 = vst.msk [vmem:[%s5495_s30 + $0x68] sm:$0xff] %vm517_vm0, %v3540_v7  ;;  %v3490_v17 = vmul.f32 %v5479_v37, %v3471_v38 }
 0x6ba   : > { %v3451_v23 = vsub.f32 1.5, %v3450_v24 }
 0x6bb   : > { %v3509_v42 = vadd.f32 %v5484_v45, %v3490_v17 }
 0x6bc   : > { %v3452_v47 = vmul.f32 %v3755_v54, %v3451_v23 }
 0x6bd   : > { %v3525_v43 = vmax.f32 %v3509_v42, 0.0 }
 0x6be   : > { %v3456_v14 = vsel %vm3455_vm11, %v3755_v54, %v3452_v47 }
 0x6bf   : > { %v3541_v19 = vadd.f32 %v3770_v53, %v3525_v43  ;;  %v3472_v26 = vmul.f32 %v3456_v14, %v5468_v6 }
 0x6c1   : > { %3557 = vst.msk [vmem:[%s5495_s30 + $0x70] sm:$0xff] %vm517_vm0, %v3541_v19  ;;  %v3491_v58 = vmul.f32 %v5479_v37, %v3472_v26 }
 0x6c3   : > { %v3510_v22 = vadd.f32 %v5484_v45, %v3491_v58 }
 0x6c5   : > { %v3526_v29 = vmax.f32 %v3510_v22, 0.0 }
 0x6c7   : > { %v3542_v11 = vadd.f32 %v3771_v16, %v3526_v29 }
 0x6c9   : > { %3558 = vst.msk [vmem:[%s5495_s30 + $0x78] sm:$0xff] %vm517_vm0, %v3542_v11 }
 0x6ca PF: > { %p18_p9 = scmp.ge.s32.totalorder %s3875_s21, 4   ;;  %s5655_s17 = smov %s3790_s18 }
 0x6cb   : > { %s5656_s18 = smov %s3884_s24  ;;  %s5657_s19 = smov %s3875_s21 }
 0x6cc   :  { %20 = sbr.rel (!%p18_p9) target bundleno = 2 (0x2), region = 140 }

// kernel: interaction_gnn_cell.5
= control target key start
LH: loop header
LB: loop body
LE: loop exit
PB: predicated region body
PF: predicated region fallthrough
CT: control target
= control target key end

     0   :  { %s7075_s0 = inlined_call_operand.vmem [shape: f32[320,32], index: 0, kind: input, shape index: {}]   ;;  %s7076_s1 = inlined_call_operand.vmem [shape: f32[320,32], index: 1, kind: input, shape index: {}]   ;;  %s7077_s2 = inlined_call_operand.vmem [shape: f32[320,32], index: 2, kind: input, shape index: {}]   ;;  %s7078_s3 = inlined_call_operand.vmem [shape: f32[32,64], index: 3, kind: input, shape index: {}]   ;;  %s7079_s4 = inlined_call_operand.vmem [shape: f32[32,64], index: 4, kind: input, shape index: {}]   ;;  %s7080_s5 = inlined_call_operand.vmem [shape: f32[32,64], index: 5, kind: input, shape index: {}]   ;;  %s7081_s6 = inlined_call_operand.vmem [shape: f32[1,64], index: 6, kind: input, shape index: {}]   ;;  %s7082_s7 = inlined_call_operand.vmem [shape: f32[1,64], index: 7, kind: input, shape index: {}]   ;;  %s7083_s8 = inlined_call_operand.vmem [shape: f32[1,64], index: 8, kind: input, shape index: {}]   ;;  %s7084_s9 = inlined_call_operand.vmem [shape: f32[64,32], index: 9, kind: input, shape index: {}]   ;;  %s7085_s10 = inlined_call_operand.vmem [shape: f32[1,32], index: 10, kind: input, shape index: {}]   ;;  %s7086_s11 = inlined_call_operand.vmem [shape: f32[1,32], index: 11, kind: input, shape index: {}]   ;;  %s7087_s12 = inlined_call_operand.vmem [shape: f32[1,32], index: 12, kind: input, shape index: {}]   ;;  %s7088_s13 = inlined_call_operand.vmem [shape: f32[320,32], index: 13, kind: output, shape index: {}]  }
   0x1   :  { %7106 = sst [smem:[#allocation18_spill]] %s7075_s0 }
   0x2   :  { %7107 = sst [smem:[#allocation19_spill]] %s7076_s1 }
   0x3   :  { %s5065_s25 = smov 0   ;;  %s5067_s26 = smov 0  }
   0x4   :  { %s5069_s27 = smov 0  }
   0x5 LB: > { %s5078_s28 = sadd.s32 4294967295, %s4959_s27   ;;  %s5080_s29 = sadd.s32 1, %s4959_s27   ;;  %s4959_s27 = sphi %s5069_s27, %s7165_s27   ;;  %s4955_s26 = sphi %s5067_s26, %s7164_s26   ;;  %s4951_s25 = sphi %s5065_s25, %s7163_s25  }
   0x6   : > { %s315_s30 = ssub.s32 %s4959_s27, %s5080_s29  ;;  %s318_s14 = sadd.s32 1, %s4955_s26 }
   0x7   : > { %p316_p0 = scmp.eq.s32.totalorder %s315_s30, 0  ;;  %p328_p1 = scmp.ne.s32.totalorder %s4955_s26, %s4951_s25 }
   0x8   : > { %p329_p2 = scmp.eq.s32.totalorder %s5078_s28, 2  ;;  %p4665_p3 = scmp.ge.s32.totalorder %s4959_s27, 1 }
   0x9   : > { %s5088_s15 = scalar_select %p316_p0, %s4955_s26, %s318_s14  }
   0xa   : > { %p5090_p4 = por %p329_p2, %p328_p1  ;;  %p434_p5 = scmp.lt.s32.totalorder %s4959_s27, 4 }
   0xc   : > { %p435_p6 = pnand %p4665_p3, %p434_p5 }
   0xe   : > { %438 = sbr.rel (%p435_p6) target bundleno = 1826 (0x722), region = 72 }
  0x13   : > { %v601_v0 = vld [vmem:[%s7079_s4 + $0x18] sm:$0xff]  ;;  %v600_v1 = vld [vmem:[%s7079_s4 + $0x10] sm:$0xff]  ;;  %v599_v2 = vld [vmem:[%s7079_s4 + $0x8] sm:$0xff]  ;;  %s5104_s23 = sshll.u32 %s5078_s28, 4  ;;  %vm602_vm0 = vcmask 261120   ;;  %s7109_s1 = sld [smem:[#allocation19_spill]] }
  0x14   : > { %v5106_v3 = vand.u32 4294901760, %v601_v0  ;;  %v5108_v4 = vand.u32 4294901760, %v600_v1  ;;  %v5110_v5 = vand.u32 4294901760, %v599_v2  ;;  %v598_v6 = vld [vmem:[%s7079_s4] sm:$0xff]  ;;  %p504_p7 = scmp.lt.s32.totalorder %s5104_s23, 39  ;;  %s7110_s0 = sld [smem:[#allocation18_spill]] }
  0x15   : > { %v5116_v7 = vand.u32 4294901760, %v598_v6  ;;  %vm2739_vm1 = vcmask 523264   ;;  %s496_s27 = sand.u32 1, %s4951_s25   ;;  %s4370_s17 = ssub.s32 (%p5090_p4), 40, %s5104_s23 }
  0x16   : > { %v813_v8 = vsub.f32 %v601_v0, %v5106_v3  ;;  %v819_v9 = vsub.f32 %v600_v1, %v5108_v4  ;;  %1019 = vmatpush.msra.mxu3 %v5106_v3  ;;  %664 = vmatpush.msra.mxu0 %v5106_v3  ;;  %v825_v10 = vsub.f32 %v599_v2, %v5110_v5  ;;  %s505_s30 = scalar_select %p504_p7, %s5104_s23, 39 }
  0x17   : > { %v831_v11 = vsub.f32 %v598_v6, %v5116_v7  ;;  %s4690_s18 = sshll.u32 (%p5090_p4), %s5078_s28, 7  ;;  %p4371_p8 = scmp.lt.s32.totalorder (%p5090_p4), %s4370_s17, 16 }
  0x18   : > { %915 = vmatpush.msra.mxu2 %v813_v8  ;;  %v814_v12 = vand.u32 4294901760, %v813_v8  ;;  %1021 = vmatpush.msra.mxu3 %v5108_v4  ;;  %v820_v13 = vand.u32 4294901760, %v819_v9  ;;  %s5126_s14 = sshll.u32 %s505_s30, 3  ;;  %v826_v14 = vand.u32 4294901760, %v825_v10  ;;  %s4666_s30 = sshll.u32 %s496_s27, 7 }
  0x19   : > { %666 = vmatpush.msra.mxu0 %v5108_v4  ;;  %s5133_s19 = scalar_lea.vmem %s7109_s1, %s5126_s14  ;;  %v832_v15 = vand.u32 4294901760, %v831_v11  ;;  %s5689_s24 = scalar_lea.vmem %s7077_s2, %s5126_s14 }
  0x1a   : > { %918 = vmatpush.msra.mxu2 %v819_v9  ;;  %v815_v16 = vsub.f32 %v813_v8, %v814_v12  ;;  %v821_v17 = vsub.f32 %v819_v9, %v820_v13  ;;  %1023 = vmatpush.msra.mxu3 %v5110_v5  ;;  %v562_v18 = vld [vmem:[%s5133_s19] sm:$0xff]  ;;  %v827_v19 = vsub.f32 %v825_v10, %v826_v14  ;;  %v563_v20 = vld [vmem:[%s5133_s19 + $0x8] sm:$0xff]  ;;  %v564_v27 = vld [vmem:[%s5133_s19 + $0x10] sm:$0xff]  ;;  %s5255_s22 = scalar_lea.vmem %s7110_s0, %s5126_s14  ;;  %s6869_s25 = scalar_lea.vmem [#allocation2], %s4666_s30  }
  0x1b   : > { %v604_v21 = vsel %vm602_vm0, %v562_v18, 0  ;;  %668 = vmatpush.msra.mxu0 %v5110_v5  ;;  %v607_v22 = vsel %vm602_vm0, %v563_v20, 0  ;;  %v833_v26 = vsub.f32 %v831_v11, %v832_v15  ;;  %v610_v32 = vsel %vm602_vm0, %v564_v27, 0  ;;  %v565_v39 = vld [vmem:[%s5133_s19 + $0x18] sm:$0xff]  ;;  %v566_v46 = vld [vmem:[%s5133_s19 + $0x20] sm:$0xff]  ;;  %v567_v53 = vld [vmem:[%s5133_s19 + $0x28] sm:$0xff] }
  0x1c   : > { %v816_v23 = vand.u32 4294901760, %v815_v16  ;;  %921 = vmatpush.msra.mxu2 %v825_v10  ;;  %v822_v24 = vand.u32 4294901760, %v821_v17  ;;  %v5141_v25 = vand.u32 4294901760, %v604_v21  ;;  %1025 = vmatpush.msra.mxu3 %v5116_v7  ;;  %v5146_v28 = vand.u32 4294901760, %v607_v22  ;;  %v568_v60 = vld [vmem:[%s5133_s19 + $0x30] sm:$0xff]  ;;  %v570_v10 = vld [vmem:[%s5133_s19 + $0x40] sm:$0xff] }
  0x1d   : > { %670 = vmatpush.msra.mxu0 %v5116_v7  ;;  %v828_v30 = vand.u32 4294901760, %v827_v19  ;;  %v834_v34 = vand.u32 4294901760, %v833_v26  ;;  %v5151_v37 = vand.u32 4294901760, %v610_v32  ;;  %v613_v42 = vsel %vm602_vm0, %v565_v39, 0  ;;  %v571_v17 = vld [vmem:[%s5133_s19 + $0x48] sm:$0xff] }
  0x1e   : > { %817 = vmatpush.msra.mxu1 %v816_v23  ;;  %924 = vmatpush.msra.mxu2 %v831_v11  ;;  %v672_v29 = vsub.f32 %v604_v21, %v5141_v25  ;;  %v680_v31 = vsub.f32 %v607_v22, %v5146_v28  ;;  %v5159_v45 = vand.u32 4294901760, %v613_v42  ;;  %v616_v49 = vsel %vm602_vm0, %v566_v46, 0 }
  0x1f   : > { %1138 = vmatpush.msrb.mxu0 %v814_v12  ;;  %v688_v41 = vsub.f32 %v610_v32, %v5151_v37  ;;  %v5167_v52 = vand.u32 4294901760, %v616_v49  ;;  %v619_v56 = vsel %vm602_vm0, %v567_v53, 0  ;;  %v622_v63 = vsel %vm602_vm0, %v568_v60, 0  ;;  %v596_v53 = vld [vmem:[%s7078_s3 + $0x10] sm:$0xff] }
  0x20   : > { %823 = vmatpush.msra.mxu1 %v822_v24  ;;  %927 = vmatmul.f32.vlgmr.msra.gmra.mxu2 %v672_v29  ;;  %v673_v33 = vand.u32 4294901760, %v672_v29  ;;  %v681_v36 = vand.u32 4294901760, %v680_v31  ;;  %v696_v48 = vsub.f32 %v613_v42, %v5159_v45  ;;  %v5173_v59 = vand.u32 4294901760, %v619_v56  ;;  %v572_v24 = vld [vmem:[%s5133_s19 + $0x50] sm:$0xff] }
  0x21   : > { %1142 = vmatpush.msrb.mxu0 %v820_v13  ;;  %v689_v44 = vand.u32 4294901760, %v688_v41  ;;  %v704_v55 = vsub.f32 %v616_v49, %v5167_v52  ;;  %v5179_v2 = vand.u32 4294901760, %v622_v63  ;;  %v628_v13 = vsel %vm602_vm0, %v570_v10, 0  ;;  %v597_v49 = vld [vmem:[%s7078_s3 + $0x18] sm:$0xff] }
  0x22   : > { %829 = vmatpush.msra.mxu1 %v828_v30  ;;  %1029 = vmatmul.f32.vlgmr.msra.gmra.mxu3 %v673_v33  ;;  %v674_v35 = vsub.f32 %v672_v29, %v673_v33  ;;  %v682_v40 = vsub.f32 %v680_v31, %v681_v36  ;;  %v697_v51 = vand.u32 4294901760, %v696_v48  ;;  %v712_v62 = vsub.f32 %v619_v56, %v5173_v59  ;;  %v573_v33 = vld [vmem:[%s5133_s19 + $0x58] sm:$0xff] }
  0x23   : > { %1146 = vmatpush.msrb.mxu0 %v826_v14  ;;  %v690_v47 = vsub.f32 %v688_v41, %v689_v44  ;;  %v705_v58 = vand.u32 4294901760, %v704_v55  ;;  %v5191_v16 = vand.u32 4294901760, %v628_v13  ;;  %v631_v20 = vsel %vm602_vm0, %v571_v17, 0 }
  0x24   : > { %835 = vmatpush.msra.mxu1 %v834_v34  ;;  %v675_v38 = vand.u32 4294901760, %v674_v35  ;;  %v683_v43 = vand.u32 4294901760, %v682_v40  ;;  %v698_v54 = vsub.f32 %v696_v48, %v697_v51  ;;  %v713_v1 = vand.u32 4294901760, %v712_v62 }
  0x25   : > { %837 = vmatmul.f32.vlgmr.msra.gmra.mxu1 %v5141_v25  ;;  %1150 = vmatpush.msrb.mxu0 %v832_v15  ;;  %v691_v50 = vand.u32 4294901760, %v690_v47  ;;  %v706_v61 = vsub.f32 %v704_v55, %v705_v58  ;;  %v736_v19 = vsub.f32 %v628_v13, %v5191_v16  ;;  %v5197_v23 = vand.u32 4294901760, %v631_v20 }
  0x26   : > { %676 = vmatmul.f32.vlgmr.msra.gmra.mxu0 %v675_v38  ;;  %1229 = vmatpush.msrb.mxu1 %v5106_v3  ;;  %v699_v57 = vand.u32 4294901760, %v698_v54  ;;  %v569_v3 = vld [vmem:[%s5133_s19 + $0x38] sm:$0xff]  ;;  %v634_v29 = vsel %vm602_vm0, %v572_v24, 0  ;;  %v5228_v54 = vand.u32 4294901760, %v596_v53 }
  0x27   : > { %v707_v0 = vand.u32 4294901760, %v706_v61  ;;  %v625_v6 = vsel %vm602_vm0, %v569_v3, 0  ;;  %v737_v22 = vand.u32 4294901760, %v736_v19  ;;  %v744_v27 = vsub.f32 %v631_v20, %v5197_v23 }
  0x28   : > { %932 = vmatmul.f32.gmra.mxu2 %v680_v31  ;;  %1231 = vmatpush.msrb.mxu1 %v5108_v4  ;;  %v714_v4 = vsub.f32 %v712_v62, %v713_v1  ;;  %v5185_v9 = vand.u32 4294901760, %v625_v6  ;;  %v5203_v32 = vand.u32 4294901760, %v634_v29 }
  0x29   : > { %v738_v26 = vsub.f32 %v736_v19, %v737_v22  ;;  %v745_v31 = vand.u32 4294901760, %v744_v27 }
  0x2a   : > { %1035 = vmatmul.f32.gmra.mxu3 %v681_v36  ;;  %1233 = vmatpush.msrb.mxu1 %v5110_v5  ;;  %v720_v5 = vsub.f32 %v622_v63, %v5179_v2  ;;  %v728_v12 = vsub.f32 %v625_v6, %v5185_v9  ;;  %v752_v35 = vsub.f32 %v634_v29, %v5203_v32  ;;  %v637_v36 = vsel %vm602_vm0, %v573_v33, 0 }
  0x2b   : > { %v739_v30 = vand.u32 4294901760, %v738_v26  ;;  %v746_v34 = vsub.f32 %v744_v27, %v745_v31  ;;  %v5209_v40 = vand.u32 4294901760, %v637_v36  ;;  %v1517_v63 = vsub.f32 %v596_v53, %v5228_v54 }
  0x2c   : > { %1235 = vmatpush.msrb.mxu1 %v5116_v7  ;;  %v715_v7 = vand.u32 4294901760, %v714_v4  ;;  %v721_v8 = vand.u32 4294901760, %v720_v5  ;;  %v729_v15 = vand.u32 4294901760, %v728_v12  ;;  %v753_v39 = vand.u32 4294901760, %v752_v35 }
  0x2d   : > { %841 = vmatmul.f32.gmra.mxu1 %v5146_v28  ;;  %v747_v38 = vand.u32 4294901760, %v746_v34  ;;  %v1518_v3 = vand.u32 4294901760, %v1517_v63 }
  0x2e   : > { %684 = vmatmul.f32.gmra.mxu0 %v683_v43  ;;  %v722_v11 = vsub.f32 %v720_v5, %v721_v8  ;;  %v730_v18 = vsub.f32 %v728_v12, %v729_v15  ;;  %v754_v42 = vsub.f32 %v752_v35, %v753_v39  ;;  %v760_v43 = vsub.f32 %v637_v36, %v5209_v40 }
  0x30   : > { %937 = vmatmul.f32.gmra.mxu2 %v688_v41  ;;  %v723_v14 = vand.u32 4294901760, %v722_v11  ;;  %v731_v21 = vand.u32 4294901760, %v730_v18  ;;  %v574_v41 = vld [vmem:[%s5133_s19 + $0x60] sm:$0xff]  ;;  %v755_v46 = vand.u32 4294901760, %v754_v42  ;;  %v761_v47 = vand.u32 4294901760, %v760_v43 }
  0x31   : > { %v1519_v11 = vsub.f32 %v1517_v63, %v1518_v3 }
  0x32   : > { %1041 = vmatmul.f32.gmra.mxu3 %v689_v44  ;;  %v640_v44 = vsel %vm602_vm0, %v574_v41, 0  ;;  %v762_v56 = vsub.f32 %v760_v43, %v761_v47 }
  0x34   : > { %v763_v6 = vand.u32 4294901760, %v762_v56 }
  0x35   : > { %845 = vmatmul.f32.gmra.mxu1 %v5151_v37 }
  0x36   : > { %692 = vmatmul.f32.gmra.mxu0 %v691_v50  ;;  %v5220_v50 = vand.u32 4294901760, %v597_v49 }
  0x38   : > { %942 = vmatmul.f32.gmra.mxu2 %v696_v48  ;;  %v5215_v48 = vand.u32 4294901760, %v640_v44  ;;  %1717 = vmatpush.msra.mxu1 %v5220_v50 }
  0x39   : > { %1362 = vmatpush.msrb.mxu2 %v5220_v50 }
  0x3a   : > { %1047 = vmatmul.f32.gmra.mxu3 %v697_v51  ;;  %v575_v51 = vld [vmem:[%s5133_s19 + $0x68] sm:$0xff]  ;;  %1719 = vmatpush.msra.mxu1 %v5228_v54 }
  0x3b   : > { %v643_v60 = vsel %vm602_vm0, %v575_v51, 0  ;;  %1364 = vmatpush.msrb.mxu2 %v5228_v54 }
  0x3d   : > { %849 = vmatmul.f32.gmra.mxu1 %v5159_v45 }
  0x3e   : > { %700 = vmatmul.f32.gmra.mxu0 %v699_v57  ;;  %v768_v57 = vsub.f32 %v640_v44, %v5215_v48 }
  0x40   : > { %947 = vmatmul.f32.gmra.mxu2 %v704_v55  ;;  %v1511_v55 = vsub.f32 %v597_v49, %v5220_v50 }
  0x42   : > { %1053 = vmatmul.f32.gmra.mxu3 %v705_v58  ;;  %v595_v58 = vld [vmem:[%s7078_s3 + $0x8] sm:$0xff]  ;;  %v1512_v61 = vand.u32 4294901760, %v1511_v55  ;;  %1613 = vmatpush.msra.mxu0 %v1511_v55 }
  0x44   : > { %1616 = vmatpush.msra.mxu0 %v1517_v63 }
  0x45   : > { %853 = vmatmul.f32.gmra.mxu1 %v5167_v52 }
  0x46   : > { %708 = vmatmul.f32.gmra.mxu0 %v707_v0  ;;  %v594_v0 = vld [vmem:[%s7078_s3] sm:$0xff] }
  0x47   : > { %v1367_v4 = vand.u32 4294901760, %v594_v0 }
  0x48   : > { %952 = vmatmul.f32.gmra.mxu2 %v712_v62  ;;  %v1365_v62 = vand.u32 4294901760, %v595_v58 }
  0x49   : > { %v1529_v13 = vsub.f32 %v594_v0, %v1367_v4 }
  0x4a   : > { %1059 = vmatmul.f32.gmra.mxu3 %v713_v1  ;;  %v1513_v1 = vsub.f32 %v1511_v55, %v1512_v61  ;;  %1366 = vmatpush.msrb.mxu2 %v1365_v62 }
  0x4b   : > { %1721 = vmatpush.msra.mxu1 %v1365_v62  ;;  %v1530_v18 = vand.u32 4294901760, %v1529_v13 }
  0x4c   : > { %v1514_v10 = vand.u32 4294901760, %v1513_v1  ;;  %1368 = vmatpush.msrb.mxu2 %v1367_v4 }
  0x4d   : > { %857 = vmatmul.f32.gmra.mxu1 %v5173_v59  ;;  %v1531_v24 = vsub.f32 %v1529_v13, %v1530_v18 }
  0x4e   : > { %716 = vmatmul.f32.gmra.mxu0 %v715_v7  ;;  %v769_v7 = vand.u32 4294901760, %v768_v57  ;;  %1723 = vmatpush.msra.mxu1 %v1367_v4 }
  0x4f   : > { %1836 = vmatpush.msra.mxu2 %v1512_v61  ;;  %1515 = vmatpush.msrb.mxu3 %v1514_v10  ;;  %v1532_v26 = vand.u32 4294901760, %v1531_v24 }
  0x50   : > { %957 = vmatmul.f32.gmra.mxu2 %v720_v5  ;;  %v1523_v5 = vsub.f32 %v595_v58, %v1365_v62 }
  0x51   : > { %1840 = vmatpush.msra.mxu2 %v1518_v3  ;;  %v549_v3 = vld [vmem:[%s5255_s22 + $0x18] sm:$0xff] }
  0x52   : > { %1065 = vmatmul.f32.gmra.mxu3 %v721_v8  ;;  %v5243_v8 = vand.u32 4294901760, %v643_v60  ;;  %1619 = vmatpush.msra.mxu0 %v1523_v5 }
  0x54   : > { %v776_v20 = vsub.f32 %v643_v60, %v5243_v8  ;;  %1622 = vmatpush.msra.mxu0 %v1529_v13 }
  0x55   : > { %861 = vmatmul.f32.gmra.mxu1 %v5179_v2 }
  0x56   : > { %724 = vmatmul.f32.gmra.mxu0 %v723_v14  ;;  %v576_v14 = vld [vmem:[%s5133_s19 + $0x70] sm:$0xff]  ;;  %v777_v29 = vand.u32 4294901760, %v776_v20 }
  0x58   : > { %962 = vmatmul.f32.gmra.mxu2 %v728_v12  ;;  %v1524_v12 = vand.u32 4294901760, %v1523_v5  ;;  %v778_v33 = vsub.f32 %v776_v20, %v777_v29 }
  0x5a   : > { %1071 = vmatmul.f32.gmra.mxu3 %v729_v15  ;;  %v1520_v15 = vand.u32 4294901760, %v1519_v11  ;;  %v1525_v17 = vsub.f32 %v1523_v5, %v1524_v12  ;;  %1844 = vmatpush.msra.mxu2 %v1524_v12 }
  0x5c   : > { %1521 = vmatpush.msrb.mxu3 %v1520_v15  ;;  %1848 = vmatpush.msra.mxu2 %v1530_v18 }
  0x5d   : > { %865 = vmatmul.f32.gmra.mxu1 %v5185_v9 }
  0x5e   : > { %732 = vmatmul.f32.gmra.mxu0 %v731_v21  ;;  %v646_v21 = vsel %vm602_vm0, %v576_v14, 0 }
  0x60   : > { %967 = vmatmul.f32.gmra.mxu2 %v736_v19  ;;  %v770_v19 = vsub.f32 %v768_v57, %v769_v7 }
  0x62   : > { %1077 = vmatmul.f32.gmra.mxu3 %v737_v22  ;;  %v1526_v22 = vand.u32 4294901760, %v1525_v17 }
  0x64   : > { %1527 = vmatpush.msrb.mxu3 %v1526_v22 }
  0x65   : > { %869 = vmatmul.f32.gmra.mxu1 %v5191_v16 }
  0x66   : > { %740 = vmatmul.f32.gmra.mxu0 %v739_v30  ;;  %v5249_v30 = vand.u32 4294901760, %v646_v21  ;;  %1533 = vmatpush.msrb.mxu3 %v1532_v26 }
  0x68   : > { %972 = vmatmul.f32.gmra.mxu2 %v744_v27  ;;  %v771_v27 = vand.u32 4294901760, %v770_v19  ;;  %1927 = vmatpush.msra.mxu3 %v5220_v50  ;;  %v784_v34 = vsub.f32 %v646_v21, %v5249_v30  ;;  %v550_v19 = vld [vmem:[%s5255_s22 + $0x20] sm:$0xff] }
  0x69   : > { %v1314_v24 = vsel %vm602_vm0, %v550_v19, 0 }
  0x6a   : > { %1083 = vmatmul.f32.gmra.mxu3 %v745_v31  ;;  %v577_v31 = vld [vmem:[%s5133_s19 + $0x78] sm:$0xff]  ;;  %v785_v41 = vand.u32 4294901760, %v784_v34 }
  0x6b   : > { %1929 = vmatpush.msra.mxu3 %v5228_v54  ;;  %v649_v36 = vsel %vm602_vm0, %v577_v31, 0 }
  0x6c   : > { %v5265_v42 = vand.u32 4294901760, %v649_v36  ;;  %v786_v44 = vsub.f32 %v784_v34, %v785_v41 }
  0x6d   : > { %873 = vmatmul.f32.gmra.mxu1 %v5197_v23  ;;  %1931 = vmatpush.msra.mxu3 %v1365_v62 }
  0x6e   : > { %748 = vmatmul.f32.gmra.mxu0 %v747_v38  ;;  %v787_v51 = vand.u32 4294901760, %v786_v44 }
  0x6f   : > { %1933 = vmatpush.msra.mxu3 %v1367_v4 }
  0x70   : > { %977 = vmatmul.f32.gmra.mxu2 %v752_v35  ;;  %v546_v35 = vld [vmem:[%s5255_s22] sm:$0xff] }
  0x71   : > { %v1302_v38 = vsel %vm602_vm0, %v546_v35, 0 }
  0x72   : > { %1089 = vmatmul.f32.gmra.mxu3 %v753_v39  ;;  %v779_v39 = vand.u32 4294901760, %v778_v33 }
  0x75   : > { %877 = vmatmul.f32.gmra.mxu1 %v5203_v32 }
  0x76   : > { %756 = vmatmul.f32.gmra.mxu0 %v755_v46  ;;  %v792_v46 = vsub.f32 %v649_v36, %v5265_v42 }
  0x78   : > { %982 = vmatmul.f32.gmra.mxu2 %v760_v43  ;;  %v5267_v43 = vand.u32 4294901760, %v1302_v38  ;;  %v793_v53 = vand.u32 4294901760, %v792_v46 }
  0x7a   : > { %1095 = vmatmul.f32.gmra.mxu3 %v761_v47  ;;  %v547_v47 = vld [vmem:[%s5255_s22 + $0x8] sm:$0xff]  ;;  %v5273_v49 = vsub.f32 %v1302_v38, %v5267_v43  ;;  %v794_v56 = vsub.f32 %v792_v46, %v793_v53 }
  0x7b   : > { %v1305_v50 = vsel %vm602_vm0, %v547_v47, 0  ;;  %v551_v38 = vld [vmem:[%s5255_s22 + $0x28] sm:$0xff] }
  0x7c   : > { %v7103_v54 = vand.u32 4294901760, %v5273_v49  ;;  %v5277_v55 = vand.u32 4294901760, %v1305_v50  ;;  %v795_v62 = vand.u32 4294901760, %v794_v56 }
  0x7d   : > { %881 = vmatmul.f32.gmra.mxu1 %v5209_v40 }
  0x7e   : > { %764 = vmatmul.f32.gmra.mxu0 %v763_v6  ;;  %v1372_v58 = vsub.f32 %v5273_v49, %v7103_v54  ;;  %v5285_v60 = vsub.f32 %v1305_v50, %v5277_v55  ;;  %v1311_v6 = vsel %vm602_vm0, %v549_v3, 0 }
  0x7f   : > { %v5302_v15 = vand.u32 4294901760, %v1311_v6 }
  0x80   : > { %987 = vmatmul.f32.gmra.mxu2 %v768_v57  ;;  %v548_v57 = vld [vmem:[%s5255_s22 + $0x10] sm:$0xff]  ;;  %v1373_v63 = vand.u32 4294901760, %v1372_v58  ;;  %v7102_v0 = vand.u32 4294901760, %v5285_v60 }
  0x81   : > { %v1308_v61 = vsel %vm602_vm0, %v548_v57, 0  ;;  %v5313_v22 = vsub.f32 %v1311_v6, %v5302_v15 }
  0x82   : > { %1101 = vmatmul.f32.gmra.mxu3 %v769_v7  ;;  %v5289_v1 = vand.u32 4294901760, %v1308_v61  ;;  %v1380_v4 = vsub.f32 %v5285_v60, %v7102_v0 }
  0x83   : > { %v7100_v33 = vand.u32 4294901760, %v5313_v22 }
  0x84   : > { %v5297_v5 = vsub.f32 %v1308_v61, %v5289_v1  ;;  %v1381_v13 = vand.u32 4294901760, %v1380_v4 }
  0x85   : > { %885 = vmatmul.f32.gmra.mxu1 %v5215_v48 }
  0x86   : > { %772 = vmatmul.f32.gmra.mxu0 %v771_v27  ;;  %v7101_v14 = vand.u32 4294901760, %v5297_v5 }
  0x88   : > { %992 = vmatmul.f32.gmra.mxu2 %v776_v20  ;;  %v1388_v21 = vsub.f32 %v5297_v5, %v7101_v14 }
  0x8a   : > { %1107 = vmatmul.f32.gmra.mxu3 %v777_v29  ;;  %v1389_v31 = vand.u32 4294901760, %v1388_v21  ;;  %v553_v21 = vld [vmem:[%s5255_s22 + $0x38] sm:$0xff] }
  0x8d   : > { %889 = vmatmul.f32.gmra.mxu1 %v5243_v8 }
  0x8e   : > { %780 = vmatmul.f32.gmra.mxu0 %v779_v39 }
  0x90   : > { %997 = vmatmul.f32.gmra.mxu2 %v784_v34  ;;  %v5318_v34 = vand.u32 4294901760, %v1314_v24 }
  0x92   : > { %1113 = vmatmul.f32.gmra.mxu3 %v785_v41  ;;  %v1396_v41 = vsub.f32 %v5313_v22, %v7100_v33  ;;  %v5329_v44 = vsub.f32 %v1314_v24, %v5318_v34 }
  0x94   : > { %v7098_v56 = vand.u32 4294901760, %v5329_v44 }
  0x95   : > { %893 = vmatmul.f32.gmra.mxu1 %v5249_v30 }
  0x96   : > { %788 = vmatmul.f32.gmra.mxu0 %v787_v51  ;;  %v1404_v3 = vsub.f32 %v5329_v44, %v7098_v56 }
  0x98   : > { %1002 = vmatmul.f32.gmra.mxu2 %v792_v46  ;;  %v1317_v46 = vsel %vm602_vm0, %v551_v38, 0 }
  0x99   : > { %v5334_v57 = vand.u32 4294901760, %v1317_v46 }
  0x9a   : > { %1119 = vmatmul.f32.gmra.mxu3 %v793_v53  ;;  %v1397_v53 = vand.u32 4294901760, %v1396_v41 }
  0x9b   : > { %v5345_v4 = vsub.f32 %v1317_v46, %v5334_v57 }
  0x9d   : > { %897 = vmatmul.f32.gmra.mxu1 %v5265_v42 }
  0x9e   : > { %796 = vmatmul.f32.gmra.mxu0 %v795_v62  ;;  %v552_v62 = vld [vmem:[%s5255_s22 + $0x30] sm:$0xff] }
  0x9f   : > { %v1320_v6 = vsel %vm602_vm0, %v552_v62, 0 }
  0xa0   : > { %1374 = vmatmul.f32.vlgmr.msrb.gmra.mxu2 %v1373_v63 }
  0xa2   : > { %v838_v7 = vpop.f32.mrf.mxu1  ;;  %1535 = vmatmul.f32.vlgmr.msrb.gmra.mxu3 %v5267_v43 }
  0xa3   : > { %v677_v10 = vpop.f32.mrf.mxu0  ;;  %v928_v11 = vpop.f32.mrf.mxu2 }
  0xa4   : > { %v839_v12 = vadd.f32 %v838_v7, %v677_v10 }
  0xa5   : > { %1237 = vmatmul.f32.vlgmr.msrb.gmra.mxu1 %v5141_v25  ;;  %v1030_v17 = vpop.f32.mrf.mxu3 }
  0xa6   : > { %v929_v18 = vadd.f32 %v928_v11, %v839_v12  ;;  %1152 = vmatmul.f32.vlgmr.msrb.gmra.mxu0 %v5141_v25  ;;  %v1405_v12 = vand.u32 4294901760, %v1404_v3 }
  0xa8   : > { %v5307_v20 = vadd.f32 %v1030_v17, %v929_v18  ;;  %1382 = vmatmul.f32.gmra.mxu2 %v1381_v13  ;;  %v7096_v13 = vand.u32 4294901760, %v5345_v4  ;;  %v5350_v17 = vand.u32 4294901760, %v1320_v6 }
  0xaa   : > { %v842_v26 = vpop.f32.mrf.mxu1  ;;  %1539 = vmatmul.f32.gmra.mxu3 %v5277_v55 }
  0xab   : > { %v685_v27 = vpop.f32.mrf.mxu0  ;;  %v933_v29 = vpop.f32.mrf.mxu2 }
  0xac   : > { %v843_v25 = vadd.f32 %v842_v26, %v685_v27  ;;  %v1412_v26 = vsub.f32 %v5345_v4, %v7096_v13  ;;  %v5361_v27 = vsub.f32 %v1320_v6, %v5350_v17 }
  0xad   : > { %1241 = vmatmul.f32.gmra.mxu1 %v5146_v28  ;;  %v1036_v35 = vpop.f32.mrf.mxu3 }
  0xae   : > { %v934_v36 = vadd.f32 %v933_v29, %v843_v25  ;;  %1156 = vmatmul.f32.gmra.mxu0 %v5146_v28  ;;  %v1323_v29 = vsel %vm602_vm0, %v553_v21, 0  ;;  %v7095_v38 = vand.u32 4294901760, %v5361_v27 }
  0xaf   : > { %v5366_v41 = vand.u32 4294901760, %v1323_v29 }
  0xb0   : > { %v5323_v39 = vadd.f32 %v1036_v35, %v934_v36  ;;  %1390 = vmatmul.f32.gmra.mxu2 %v1389_v31  ;;  %v1413_v36 = vand.u32 4294901760, %v1412_v26 }
  0xb2   : > { %v846_v47 = vpop.f32.mrf.mxu1  ;;  %1543 = vmatmul.f32.gmra.mxu3 %v5289_v1 }
  0xb3   : > { %v693_v50 = vpop.f32.mrf.mxu0  ;;  %v938_v51 = vpop.f32.mrf.mxu2 }
  0xb4   : > { %v847_v28 = vadd.f32 %v846_v47, %v693_v50  ;;  %v554_v50 = vld [vmem:[%s5255_s22 + $0x40] sm:$0xff] }
  0xb5   : > { %1245 = vmatmul.f32.gmra.mxu1 %v5151_v37  ;;  %v1042_v58 = vpop.f32.mrf.mxu3 }
  0xb6   : > { %v939_v61 = vadd.f32 %v938_v51, %v847_v28  ;;  %1160 = vmatmul.f32.gmra.mxu0 %v5151_v37  ;;  %v1420_v28 = vsub.f32 %v5361_v27, %v7095_v38 }
  0xb8   : > { %v5339_v63 = vadd.f32 %v1042_v58, %v939_v61  ;;  %1398 = vmatmul.f32.gmra.mxu2 %v1397_v53  ;;  %v5377_v53 = vsub.f32 %v1323_v29, %v5366_v41  ;;  %v1326_v58 = vsel %vm602_vm0, %v554_v50, 0  ;;  %v1421_v6 = vand.u32 4294901760, %v1420_v28  ;;  %v556_v50 = vld [vmem:[%s5255_s22 + $0x50] sm:$0xff] }
  0xba   : > { %v850_v7 = vpop.f32.mrf.mxu1  ;;  %1547 = vmatmul.f32.gmra.mxu3 %v5302_v15 }
  0xbb   : > { %v701_v10 = vpop.f32.mrf.mxu0  ;;  %v943_v11 = vpop.f32.mrf.mxu2 }
  0xbc   : > { %v851_v37 = vadd.f32 %v850_v7, %v701_v10  ;;  %v7093_v7 = vand.u32 4294901760, %v5377_v53  ;;  %v5382_v10 = vand.u32 4294901760, %v1326_v58 }
  0xbd   : > { %1249 = vmatmul.f32.gmra.mxu1 %v5159_v45  ;;  %v1048_v18 = vpop.f32.mrf.mxu3 }
  0xbe   : > { %v944_v19 = vadd.f32 %v943_v11, %v851_v37  ;;  %1164 = vmatmul.f32.gmra.mxu0 %v5159_v45  ;;  %v5393_v21 = vsub.f32 %v1326_v58, %v5382_v10 }
  0xc0   : > { %v5355_v24 = vadd.f32 %v1048_v18, %v944_v19  ;;  %1406 = vmatmul.f32.gmra.mxu2 %v1405_v12  ;;  %v555_v12 = vld [vmem:[%s5255_s22 + $0x48] sm:$0xff]  ;;  %v1428_v19 = vsub.f32 %v5377_v53, %v7093_v7 }
  0xc1   : > { %v1329_v26 = vsel %vm602_vm0, %v555_v12, 0 }
  0xc2   : > { %v854_v25 = vpop.f32.mrf.mxu1  ;;  %1551 = vmatmul.f32.gmra.mxu3 %v5318_v34 }
  0xc3   : > { %v709_v31 = vpop.f32.mrf.mxu0  ;;  %v948_v35 = vpop.f32.mrf.mxu2 }
  0xc4   : > { %v855_v45 = vadd.f32 %v854_v25, %v709_v31 }
  0xc5   : > { %1253 = vmatmul.f32.gmra.mxu1 %v5167_v52  ;;  %v1054_v46 = vpop.f32.mrf.mxu3 }
  0xc6   : > { %v949_v47 = vadd.f32 %v948_v35, %v855_v45  ;;  %1168 = vmatmul.f32.gmra.mxu0 %v5167_v52  ;;  %v1429_v35 = vand.u32 4294901760, %v1428_v19  ;;  %v7092_v45 = vand.u32 4294901760, %v5393_v21 }
  0xc8   : > { %v5371_v51 = vadd.f32 %v1054_v46, %v949_v47  ;;  %1414 = vmatmul.f32.gmra.mxu2 %v1413_v36  ;;  %v5398_v36 = vand.u32 4294901760, %v1329_v26  ;;  %v1436_v58 = vsub.f32 %v5393_v21, %v7092_v45 }
  0xca   : > { %v858_v61 = vpop.f32.mrf.mxu1  ;;  %1555 = vmatmul.f32.gmra.mxu3 %v5334_v57 }
  0xcb   : > { %v717_v62 = vpop.f32.mrf.mxu0  ;;  %v953_v3 = vpop.f32.mrf.mxu2 }
  0xcc   : > { %v859_v52 = vadd.f32 %v858_v61, %v717_v62  ;;  %v5409_v61 = vsub.f32 %v1329_v26, %v5398_v36  ;;  %v1332_v62 = vsel %vm602_vm0, %v556_v50, 0  ;;  %v557_v26 = vld [vmem:[%s5255_s22 + $0x58] sm:$0xff] }
  0xcd   : > { %1257 = vmatmul.f32.gmra.mxu1 %v5173_v59  ;;  %v1060_v11 = vpop.f32.mrf.mxu3  ;;  %v5414_v12 = vand.u32 4294901760, %v1332_v62 }
  0xce   : > { %v954_v37 = vadd.f32 %v953_v3, %v859_v52  ;;  %1172 = vmatmul.f32.gmra.mxu0 %v5173_v59 }
  0xd0   : > { %v5387_v18 = vadd.f32 %v1060_v11, %v954_v37  ;;  %1422 = vmatmul.f32.gmra.mxu2 %v1421_v6  ;;  %v1437_v11 = vand.u32 4294901760, %v1436_v58  ;;  %v7090_v37 = vand.u32 4294901760, %v5409_v61 }
  0xd2   : > { %v862_v29 = vpop.f32.mrf.mxu1  ;;  %1559 = vmatmul.f32.gmra.mxu3 %v5350_v17 }
  0xd3   : > { %v725_v25 = vpop.f32.mrf.mxu0  ;;  %v958_v31 = vpop.f32.mrf.mxu2 }
  0xd4   : > { %v863_v59 = vadd.f32 %v862_v29, %v725_v25 }
  0xd5   : > { %1261 = vmatmul.f32.gmra.mxu1 %v5179_v2  ;;  %v1066_v46 = vpop.f32.mrf.mxu3 }
  0xd6   : > { %v959_v47 = vadd.f32 %v958_v31, %v863_v59  ;;  %1176 = vmatmul.f32.gmra.mxu0 %v5179_v2  ;;  %v1444_v31 = vsub.f32 %v5409_v61, %v7090_v37  ;;  %v5425_v59 = vsub.f32 %v1332_v62, %v5414_v12  ;;  %v558_v62 = vld [vmem:[%s5255_s22 + $0x60] sm:$0xff] }
  0xd8   : > { %v5403_v28 = vadd.f32 %v1066_v46, %v959_v47  ;;  %1430 = vmatmul.f32.gmra.mxu2 %v1429_v35  ;;  %v1335_v35 = vsel %vm602_vm0, %v557_v26, 0  ;;  %v1445_v58 = vand.u32 4294901760, %v1444_v31  ;;  %v1338_v26 = vsel %vm602_vm0, %v558_v62, 0 }
  0xda   : > { %v866_v3 = vpop.f32.mrf.mxu1  ;;  %1563 = vmatmul.f32.gmra.mxu3 %v5366_v41 }
  0xdb   : > { %v733_v52 = vpop.f32.mrf.mxu0  ;;  %v963_v6 = vpop.f32.mrf.mxu2 }
  0xdc   : > { %v867_v2 = vadd.f32 %v866_v3, %v733_v52  ;;  %v7089_v3 = vand.u32 4294901760, %v5425_v59  ;;  %v5430_v52 = vand.u32 4294901760, %v1335_v35 }
  0xdd   : > { %1265 = vmatmul.f32.gmra.mxu1 %v5185_v9  ;;  %v1072_v19 = vpop.f32.mrf.mxu3 }
  0xde   : > { %v964_v29 = vadd.f32 %v963_v6, %v867_v2  ;;  %1180 = vmatmul.f32.gmra.mxu0 %v5185_v9 }
  0xe0   : > { %v5419_v25 = vadd.f32 %v1072_v19, %v964_v29  ;;  %1438 = vmatmul.f32.gmra.mxu2 %v1437_v11  ;;  %v1452_v19 = vsub.f32 %v5425_v59, %v7089_v3  ;;  %v5441_v29 = vsub.f32 %v1335_v35, %v5430_v52  ;;  %v559_v35 = vld [vmem:[%s5255_s22 + $0x68] sm:$0xff] }
  0xe2   : > { %v870_v46 = vpop.f32.mrf.mxu1  ;;  %1567 = vmatmul.f32.gmra.mxu3 %v5382_v10 }
  0xe3   : > { %v741_v47 = vpop.f32.mrf.mxu0  ;;  %v968_v50 = vpop.f32.mrf.mxu2 }
  0xe4   : > { %v871_v9 = vadd.f32 %v870_v46, %v741_v47 }
  0xe5   : > { %1269 = vmatmul.f32.gmra.mxu1 %v5191_v16  ;;  %v1078_v6 = vpop.f32.mrf.mxu3 }
  0xe6   : > { %v969_v2 = vadd.f32 %v968_v50, %v871_v9  ;;  %1184 = vmatmul.f32.gmra.mxu0 %v5191_v16  ;;  %v1453_v50 = vand.u32 4294901760, %v1452_v19  ;;  %v7091_v9 = vand.u32 4294901760, %v5441_v29 }
  0xe8   : > { %v5435_v11 = vadd.f32 %v1078_v6, %v969_v2  ;;  %1446 = vmatmul.f32.gmra.mxu2 %v1445_v58  ;;  %v5446_v58 = vand.u32 4294901760, %v1338_v26  ;;  %v1460_v62 = vsub.f32 %v5441_v29, %v7091_v9 }
  0xea   : > { %v874_v31 = vpop.f32.mrf.mxu1  ;;  %1571 = vmatmul.f32.gmra.mxu3 %v5398_v36  ;;  %v5457_v19 = vsub.f32 %v1338_v26, %v5446_v58  ;;  %v1461_v37 = vand.u32 4294901760, %v1460_v62  ;;  %v560_v26 = vld [vmem:[%s5255_s22 + $0x70] sm:$0xff] }
  0xeb   : > { %v749_v46 = vpop.f32.mrf.mxu0  ;;  %v973_v47 = vpop.f32.mrf.mxu2 }
  0xec   : > { %v875_v16 = vadd.f32 %v874_v31, %v749_v46  ;;  %v1341_v31 = vsel %vm602_vm0, %v559_v35, 0 }
  0xed   : > { %1273 = vmatmul.f32.gmra.mxu1 %v5197_v23  ;;  %v1084_v6 = vpop.f32.mrf.mxu3 }
  0xee   : > { %v974_v2 = vadd.f32 %v973_v47, %v875_v16  ;;  %1188 = vmatmul.f32.gmra.mxu0 %v5197_v23 }
  0xf0   : > { %v5451_v3 = vadd.f32 %v1084_v6, %v974_v2  ;;  %1454 = vmatmul.f32.gmra.mxu2 %v1453_v50  ;;  %v7094_v6 = vand.u32 4294901760, %v5457_v19  ;;  %v5462_v50 = vand.u32 4294901760, %v1341_v31 }
  0xf2   : > { %v878_v46 = vpop.f32.mrf.mxu1  ;;  %1575 = vmatmul.f32.gmra.mxu3 %v5414_v12  ;;  %v1468_v35 = vsub.f32 %v5457_v19, %v7094_v6  ;;  %v5473_v62 = vsub.f32 %v1341_v31, %v5462_v50  ;;  %v561_v31 = vld [vmem:[%s5255_s22 + $0x78] sm:$0xff]  ;;  %s6978_s22 = scalar_lea.vmem (%p5090_p4), %s7088_s13, %s4690_s18  }
  0xf3   : > { %v757_v47 = vpop.f32.mrf.mxu0  ;;  %v978_v16 = vpop.f32.mrf.mxu2 }
  0xf4   : > { %v879_v23 = vadd.f32 %v878_v46, %v757_v47  ;;  %v1344_v46 = vsel %vm602_vm0, %v560_v26, 0  ;;  %v1469_v7 = vand.u32 4294901760, %v1468_v35 }
  0xf5   : > { %1277 = vmatmul.f32.gmra.mxu1 %v5203_v32  ;;  %v1090_v2 = vpop.f32.mrf.mxu3 }
  0xf6   : > { %v979_v9 = vadd.f32 %v978_v16, %v879_v23  ;;  %1192 = vmatmul.f32.gmra.mxu0 %v5203_v32 }
  0xf8   : > { %v5467_v45 = vadd.f32 %v1090_v2, %v979_v9  ;;  %1462 = vmatmul.f32.gmra.mxu2 %v1461_v37  ;;  %v7097_v9 = vand.u32 4294901760, %v5473_v62  ;;  %v5478_v37 = vand.u32 4294901760, %v1344_v46 }
  0xfa   : > { %v882_v47 = vpop.f32.mrf.mxu1  ;;  %1579 = vmatmul.f32.gmra.mxu3 %v5430_v52  ;;  %v1476_v26 = vsub.f32 %v5473_v62, %v7097_v9  ;;  %v5489_v35 = vsub.f32 %v1344_v46, %v5478_v37 }
  0xfb   : > { %v765_v16 = vpop.f32.mrf.mxu0  ;;  %v983_v23 = vpop.f32.mrf.mxu2 }
  0xfc   : > { %v883_v32 = vadd.f32 %v882_v47, %v765_v16  ;;  %v1347_v47 = vsel %vm602_vm0, %v561_v31, 0 }
  0xfd   : > { %1281 = vmatmul.f32.gmra.mxu1 %v5209_v40  ;;  %v1096_v2 = vpop.f32.mrf.mxu3 }
  0xfe   : > { %v984_v6 = vadd.f32 %v983_v23, %v883_v32  ;;  %1196 = vmatmul.f32.gmra.mxu0 %v5209_v40  ;;  %v1477_v40 = vand.u32 4294901760, %v1476_v26  ;;  %v2002_v26 = vld [vmem:[%s7080_s5 + $0x18] sm:$0xff] }
 0x100   : > { %v5483_v38 = vadd.f32 %v1096_v2, %v984_v6  ;;  %1470 = vmatmul.f32.gmra.mxu2 %v1469_v7  ;;  %v7099_v6 = vand.u32 4294901760, %v5489_v35  ;;  %v5494_v2 = vand.u32 4294901760, %v1347_v47 }
 0x102   : > { %v886_v16 = vpop.f32.mrf.mxu1  ;;  %1583 = vmatmul.f32.gmra.mxu3 %v5446_v58  ;;  %v1484_v31 = vsub.f32 %v5489_v35, %v7099_v6 }
 0x103   : > { %v773_v13 = vpop.f32.mrf.mxu0  ;;  %v988_v23 = vpop.f32.mrf.mxu2 }
 0x104   : > { %v887_v32 = vadd.f32 %v886_v16, %v773_v13  ;;  %v5504_v13 = vsub.f32 %v1347_v47, %v5494_v2  ;;  %v5509_v16 = vand.u32 4294901760, %v2002_v26 }
 0x105   : > { %1285 = vmatmul.f32.gmra.mxu1 %v5215_v48  ;;  %v1102_v7 = vpop.f32.mrf.mxu3 }
 0x106   : > { %v989_v9 = vadd.f32 %v988_v23, %v887_v32  ;;  %1200 = vmatmul.f32.gmra.mxu0 %v5215_v48  ;;  %v5514_v23 = vsub.f32 %v2002_v26, %v5509_v16  ;;  %2419 = vmatpush.msrb.mxu3 %v5509_v16  ;;  %v1485_v32 = vand.u32 4294901760, %v1484_v31 }
 0x107   : > { %2064 = vmatpush.msrb.mxu0 %v5509_v16 }
 0x108   : > { %v5498_v46 = vadd.f32 %v1102_v7, %v989_v9  ;;  %1478 = vmatmul.f32.gmra.mxu2 %v1477_v40  ;;  %v7105_v40 = vand.u32 4294901760, %v5504_v13  ;;  %v7104_v6 = vand.u32 4294901760, %v5514_v23 }
 0x109   : > { %2315 = vmatpush.msrb.mxu2 %v5514_v23 }
 0x10a   : > { %v890_v56 = vpop.f32.mrf.mxu1  ;;  %1587 = vmatmul.f32.gmra.mxu3 %v5462_v50  ;;  %v2215_v26 = vsub.f32 %v5514_v23, %v7104_v6 }
 0x10b   : > { %v781_v48 = vpop.f32.mrf.mxu0  ;;  %v993_v9 = vpop.f32.mrf.mxu2 }
 0x10c   : > { %v891_v47 = vadd.f32 %v890_v56, %v781_v48  ;;  %v1492_v56 = vsub.f32 %v5504_v13, %v7105_v40  ;;  %v2216_v31 = vand.u32 4294901760, %v2215_v26 }
 0x10d   : > { %1289 = vmatmul.f32.gmra.mxu1 %v5243_v8  ;;  %v1108_v7 = vpop.f32.mrf.mxu3 }
 0x10e   : > { %v994_v33 = vadd.f32 %v993_v9, %v891_v47  ;;  %1204 = vmatmul.f32.gmra.mxu0 %v5243_v8  ;;  %2217 = vmatpush.msrb.mxu1 %v2216_v31  ;;  %v1493_v8 = vand.u32 4294901760, %v1492_v56 }
 0x110   : > { %v5525_v14 = vadd.f32 %v1108_v7, %v994_v33  ;;  %1486 = vmatmul.f32.gmra.mxu2 %v1485_v32 }
 0x112   : > { %v894_v48 = vpop.f32.mrf.mxu1  ;;  %1591 = vmatmul.f32.gmra.mxu3 %v5478_v37 }
 0x113   : > { %v789_v0 = vpop.f32.mrf.mxu0  ;;  %v998_v54 = vpop.f32.mrf.mxu2 }
 0x114   : > { %v895_v9 = vadd.f32 %v894_v48, %v789_v0 }
 0x115   : > { %1293 = vmatmul.f32.gmra.mxu1 %v5249_v30  ;;  %v1114_v47 = vpop.f32.mrf.mxu3 }
 0x116   : > { %v999_v6 = vadd.f32 %v998_v54, %v895_v9  ;;  %1208 = vmatmul.f32.gmra.mxu0 %v5249_v30  ;;  %v7111_v9 = vand.u32 4294901760, %v5273_v49 }
 0x118   : > { %v5533_v33 = vadd.f32 %v1114_v47, %v999_v6  ;;  %1494 = vmatmul.f32.gmra.mxu2 %v1493_v8 }
 0x11a   : > { %v898_v32 = vpop.f32.mrf.mxu1  ;;  %1595 = vmatmul.f32.gmra.mxu3 %v5494_v2 }
 0x11b   : > { %v797_v7 = vpop.f32.mrf.mxu0  ;;  %v1003_v26 = vpop.f32.mrf.mxu2 }
 0x11c   : > { %v899_v40 = vadd.f32 %v898_v32, %v797_v7 }
 0x11d   : > { %1297 = vmatmul.f32.gmra.mxu1 %v5265_v42  ;;  %v1120_v31 = vpop.f32.mrf.mxu3 }
 0x11e   : > { %v1004_v0 = vadd.f32 %v1003_v26, %v899_v40  ;;  %1212 = vmatmul.f32.gmra.mxu0 %v5265_v42  ;;  %v2001_v42 = vld [vmem:[%s7080_s5 + $0x10] sm:$0xff] }
 0x11f   : > { %v5550_v32 = vand.u32 4294901760, %v2001_v42 }
 0x120   : > { %v5538_v56 = vadd.f32 %v1120_v31, %v1004_v0  ;;  %1850 = vmatmul.f32.vlgmr.msra.gmra.mxu2 %v5267_v43  ;;  %v7112_v0 = vand.u32 4294901760, %v5285_v60 }
 0x121   : > { %2066 = vmatpush.msrb.mxu0 %v5550_v32  ;;  %2421 = vmatpush.msrb.mxu3 %v5550_v32 }
 0x122   : > { %v1238_v30 = vpop.f32.mrf.mxu1  ;;  %1935 = vmatmul.f32.vlgmr.msra.gmra.mxu3 %v5267_v43 }
 0x123   : > { %v1153_v54 = vpop.f32.mrf.mxu0  ;;  %v1375_v6 = vpop.f32.mrf.mxu2 }
 0x124   : > { %v1154_v48 = vadd.f32 %v1153_v54, %v5307_v20 }
 0x125   : > { %1727 = vmatmul.f32.vlgmr.msra.gmra.mxu1 %v7111_v9  ;;  %v1536_v8 = vpop.f32.mrf.mxu3 }
 0x126   : > { %v1239_v47 = vadd.f32 %v1238_v30, %v1154_v48  ;;  %1625 = vmatmul.f32.vlgmr.msra.gmra.mxu0 %v5273_v49  ;;  %v5557_v49 = vsub.f32 %v2001_v42, %v5550_v32 }
 0x128   : > { %v1376_v40 = vadd.f32 %v1375_v6, %v1239_v47  ;;  %1854 = vmatmul.f32.gmra.mxu2 %v5277_v55  ;;  %v2220_v54 = vand.u32 4294901760, %v5557_v49 }
 0x129   : > { %2318 = vmatpush.msrb.mxu2 %v5557_v49 }
 0x12a   : > { %v5552_v43 = vadd.f32 %v1536_v8, %v1376_v40  ;;  %v1242_v7 = vpop.f32.mrf.mxu1  ;;  %1939 = vmatmul.f32.gmra.mxu3 %v5277_v55  ;;  %v2221_v6 = vsub.f32 %v5557_v49, %v2220_v54  ;;  %v7122_v49 = vand.u32 4294901760, %v5425_v59 }
 0x12b   : > { %v1157_v20 = vpop.f32.mrf.mxu0  ;;  %v1383_v26 = vpop.f32.mrf.mxu2 }
 0x12c   : > { %v1158_v31 = vadd.f32 %v1157_v20, %v5323_v39  ;;  %v2222_v9 = vand.u32 4294901760, %v2221_v6 }
 0x12d   : > { %1733 = vmatmul.f32.gmra.mxu1 %v7112_v0  ;;  %v1540_v30 = vpop.f32.mrf.mxu3 }
 0x12e   : > { %v1243_v55 = vadd.f32 %v1242_v7, %v1158_v31  ;;  %1630 = vmatmul.f32.gmra.mxu0 %v5285_v60  ;;  %2223 = vmatpush.msrb.mxu1 %v2222_v9  ;;  %v7113_v60 = vand.u32 4294901760, %v5297_v5 }
 0x130   : > { %v1384_v48 = vadd.f32 %v1383_v26, %v1243_v55  ;;  %1858 = vmatmul.f32.gmra.mxu2 %v5289_v1 }
 0x132   : > { %v5570_v39 = vadd.f32 %v1540_v30, %v1384_v48  ;;  %v1246_v8 = vpop.f32.mrf.mxu1  ;;  %1943 = vmatmul.f32.gmra.mxu3 %v5289_v1 }
 0x133   : > { %v1161_v47 = vpop.f32.mrf.mxu0  ;;  %v1391_v40 = vpop.f32.mrf.mxu2 }
 0x134   : > { %v1162_v42 = vadd.f32 %v1161_v47, %v5339_v63  ;;  %v7114_v63 = vand.u32 4294901760, %v5313_v22 }
 0x135   : > { %1739 = vmatmul.f32.gmra.mxu1 %v7113_v60  ;;  %v1544_v7 = vpop.f32.mrf.mxu3 }
 0x136   : > { %v1247_v20 = vadd.f32 %v1246_v8, %v1162_v42  ;;  %1635 = vmatmul.f32.gmra.mxu0 %v5297_v5 }
 0x138   : > { %v1392_v26 = vadd.f32 %v1391_v40, %v1247_v20  ;;  %1862 = vmatmul.f32.gmra.mxu2 %v5302_v15 }
 0x13a   : > { %v5578_v31 = vadd.f32 %v1544_v7, %v1392_v26  ;;  %v1250_v0 = vpop.f32.mrf.mxu1  ;;  %1947 = vmatmul.f32.gmra.mxu3 %v5302_v15  ;;  %v2000_v7 = vld [vmem:[%s7080_s5 + $0x8] sm:$0xff] }
 0x13b   : > { %v1165_v1 = vpop.f32.mrf.mxu0  ;;  %v1399_v30 = vpop.f32.mrf.mxu2  ;;  %v5597_v20 = vand.u32 4294901760, %v2000_v7 }
 0x13c   : > { %v1166_v55 = vadd.f32 %v1165_v1, %v5355_v24  ;;  %v7115_v24 = vand.u32 4294901760, %v5329_v44 }
 0x13d   : > { %1745 = vmatmul.f32.gmra.mxu1 %v7114_v63  ;;  %v1548_v6 = vpop.f32.mrf.mxu3  ;;  %2068 = vmatpush.msrb.mxu0 %v5597_v20 }
 0x13e   : > { %v1251_v48 = vadd.f32 %v1250_v0, %v1166_v55  ;;  %1640 = vmatmul.f32.gmra.mxu0 %v5313_v22  ;;  %2423 = vmatpush.msrb.mxu3 %v5597_v20 }
 0x140   : > { %v1400_v5 = vadd.f32 %v1399_v30, %v1251_v48  ;;  %1866 = vmatmul.f32.gmra.mxu2 %v5318_v34  ;;  %v7116_v30 = vand.u32 4294901760, %v5345_v4 }
 0x142   : > { %v5586_v9 = vadd.f32 %v1548_v6, %v1400_v5  ;;  %v1254_v8 = vpop.f32.mrf.mxu1  ;;  %1951 = vmatmul.f32.gmra.mxu3 %v5318_v34 }
 0x143   : > { %v1169_v15 = vpop.f32.mrf.mxu0  ;;  %v1407_v47 = vpop.f32.mrf.mxu2 }
 0x144   : > { %v1170_v40 = vadd.f32 %v1169_v15, %v5371_v51 }
 0x145   : > { %1751 = vmatmul.f32.gmra.mxu1 %v7115_v24  ;;  %v1552_v42 = vpop.f32.mrf.mxu3 }
 0x146   : > { %v1255_v60 = vadd.f32 %v1254_v8, %v1170_v40  ;;  %1645 = vmatmul.f32.gmra.mxu0 %v5329_v44  ;;  %v5604_v44 = vsub.f32 %v2000_v7, %v5597_v20 }
 0x148   : > { %v1408_v22 = vadd.f32 %v1407_v47, %v1255_v60  ;;  %1870 = vmatmul.f32.gmra.mxu2 %v5334_v57  ;;  %v2226_v63 = vand.u32 4294901760, %v5604_v44 }
 0x149   : > { %2321 = vmatpush.msrb.mxu2 %v5604_v44 }
 0x14a   : > { %v5599_v34 = vadd.f32 %v1552_v42, %v1408_v22  ;;  %v1258_v26 = vpop.f32.mrf.mxu1  ;;  %1955 = vmatmul.f32.gmra.mxu3 %v5334_v57  ;;  %v2227_v6 = vsub.f32 %v5604_v44, %v2226_v63 }
 0x14b   : > { %v1173_v51 = vpop.f32.mrf.mxu0  ;;  %v1415_v0 = vpop.f32.mrf.mxu2 }
 0x14c   : > { %v1174_v1 = vadd.f32 %v1173_v51, %v5387_v18  ;;  %v2228_v5 = vand.u32 4294901760, %v2227_v6 }
 0x14d   : > { %1757 = vmatmul.f32.gmra.mxu1 %v7116_v30  ;;  %v1556_v55 = vpop.f32.mrf.mxu3 }
 0x14e   : > { %v1259_v57 = vadd.f32 %v1258_v26, %v1174_v1  ;;  %1650 = vmatmul.f32.gmra.mxu0 %v5345_v4  ;;  %2229 = vmatpush.msrb.mxu1 %v2228_v5  ;;  %v7117_v4 = vand.u32 4294901760, %v5361_v27 }
 0x150   : > { %v1416_v48 = vadd.f32 %v1415_v0, %v1259_v57  ;;  %1874 = vmatmul.f32.gmra.mxu2 %v5350_v17 }
 0x152   : > { %v5617_v18 = vadd.f32 %v1556_v55, %v1416_v48  ;;  %v1262_v8 = vpop.f32.mrf.mxu1  ;;  %1959 = vmatmul.f32.gmra.mxu3 %v5350_v17 }
 0x153   : > { %v1177_v15 = vpop.f32.mrf.mxu0  ;;  %v1423_v47 = vpop.f32.mrf.mxu2 }
 0x154   : > { %v1178_v40 = vadd.f32 %v1177_v15, %v5403_v28  ;;  %v7118_v28 = vand.u32 4294901760, %v5377_v53 }
 0x155   : > { %1763 = vmatmul.f32.gmra.mxu1 %v7117_v4  ;;  %v1560_v24 = vpop.f32.mrf.mxu3 }
 0x156   : > { %v1263_v42 = vadd.f32 %v1262_v8, %v1178_v40  ;;  %1655 = vmatmul.f32.gmra.mxu0 %v5361_v27  ;;  %v1999_v8 = vld [vmem:[%s7080_s5] sm:$0xff] }
 0x157   : > { %v2069_v15 = vand.u32 4294901760, %v1999_v8 }
 0x158   : > { %v1424_v60 = vadd.f32 %v1423_v47, %v1263_v42  ;;  %1878 = vmatmul.f32.gmra.mxu2 %v5366_v41  ;;  %v7121_v42 = vand.u32 4294901760, %v5409_v61 }
 0x159   : > { %2070 = vmatpush.msrb.mxu0 %v2069_v15  ;;  %v2231_v4 = vsub.f32 %v1999_v8, %v2069_v15  ;;  %2425 = vmatpush.msrb.mxu3 %v2069_v15 }
 0x15a   : > { %v5625_v22 = vadd.f32 %v1560_v24, %v1424_v60  ;;  %v1266_v7 = vpop.f32.mrf.mxu1  ;;  %1963 = vmatmul.f32.gmra.mxu3 %v5366_v41  ;;  %v7120_v24 = vand.u32 4294901760, %v5514_v23 }
 0x15b   : > { %v1181_v17 = vpop.f32.mrf.mxu0  ;;  %v1431_v26 = vpop.f32.mrf.mxu2  ;;  %2324 = vmatpush.msrb.mxu2 %v2231_v4 }
 0x15c   : > { %v1182_v51 = vadd.f32 %v1181_v17, %v5419_v25  ;;  %v7119_v25 = vand.u32 4294901760, %v5393_v21  ;;  %2538 = vmatpush.msra.mxu0 %v7120_v24 }
 0x15d   : > { %1769 = vmatmul.f32.gmra.mxu1 %v7118_v28  ;;  %v1564_v0 = vpop.f32.mrf.mxu3 }
 0x15e   : > { %v1267_v1 = vadd.f32 %v1266_v7, %v1182_v51  ;;  %1660 = vmatmul.f32.gmra.mxu0 %v5377_v53  ;;  %v2232_v7 = vand.u32 4294901760, %v2231_v4 }
 0x15f   : > { %2542 = vmatpush.msra.mxu0 %v2220_v54 }
 0x160   : > { %v1432_v27 = vadd.f32 %v1431_v26, %v1267_v1  ;;  %1882 = vmatmul.f32.gmra.mxu2 %v5382_v10 }
 0x161   : > { %2546 = vmatpush.msra.mxu0 %v2226_v63 }
 0x162   : > { %v5633_v30 = vadd.f32 %v1564_v0, %v1432_v27  ;;  %v1270_v55 = vpop.f32.mrf.mxu1  ;;  %1967 = vmatmul.f32.gmra.mxu3 %v5382_v10 }
 0x163   : > { %v1185_v41 = vpop.f32.mrf.mxu0  ;;  %v1439_v57 = vpop.f32.mrf.mxu2  ;;  %2550 = vmatpush.msra.mxu0 %v2232_v7 }
 0x164   : > { %v1186_v6 = vadd.f32 %v1185_v41, %v5435_v11 }
 0x165   : > { %1775 = vmatmul.f32.gmra.mxu1 %v7119_v25  ;;  %v1568_v48 = vpop.f32.mrf.mxu3  ;;  %v7124_v25 = vand.u32 4294901760, %v5457_v19 }
 0x166   : > { %v1271_v5 = vadd.f32 %v1270_v55, %v1186_v6  ;;  %1665 = vmatmul.f32.gmra.mxu0 %v5393_v21  ;;  %v7123_v55 = vand.u32 4294901760, %v5441_v29 }
 0x168   : > { %v1440_v53 = vadd.f32 %v1439_v57, %v1271_v5  ;;  %1886 = vmatmul.f32.gmra.mxu2 %v5398_v36 }
 0x16a   : > { %v5644_v10 = vadd.f32 %v1568_v48, %v1440_v53  ;;  %v1274_v47 = vpop.f32.mrf.mxu1  ;;  %1971 = vmatmul.f32.gmra.mxu3 %v5398_v36  ;;  %v2233_v36 = vsub.f32 %v2231_v4, %v2232_v7 }
 0x16b   : > { %v1189_v11 = vpop.f32.mrf.mxu0  ;;  %v1447_v40 = vpop.f32.mrf.mxu2 }
 0x16c   : > { %v1190_v21 = vadd.f32 %v1189_v11, %v5451_v3  ;;  %v2234_v3 = vand.u32 4294901760, %v2233_v36  ;;  %v7126_v36 = vand.u32 4294901760, %v5489_v35 }
 0x16d   : > { %1781 = vmatmul.f32.gmra.mxu1 %v7121_v42  ;;  %v1572_v60 = vpop.f32.mrf.mxu3 }
 0x16e   : > { %v1275_v17 = vadd.f32 %v1274_v47, %v1190_v21  ;;  %1670 = vmatmul.f32.gmra.mxu0 %v5409_v61  ;;  %2235 = vmatpush.msrb.mxu1 %v2234_v3  ;;  %v7125_v47 = vand.u32 4294901760, %v5473_v62 }
 0x170   : > { %v1448_v26 = vadd.f32 %v1447_v40, %v1275_v17  ;;  %1890 = vmatmul.f32.gmra.mxu2 %v5414_v12  ;;  %2629 = vmatpush.msra.mxu1 %v5509_v16  ;;  %v579_v17 = vld [vmem:[%s5689_s24 + $0x8] sm:$0xff] }
 0x172   : > { %v5658_v23 = vadd.f32 %v1572_v60, %v1448_v26  ;;  %v1278_v51 = vpop.f32.mrf.mxu1  ;;  %1975 = vmatmul.f32.gmra.mxu3 %v5414_v12  ;;  %2631 = vmatpush.msra.mxu1 %v5550_v32 }
 0x173   : > { %v1193_v28 = vpop.f32.mrf.mxu0  ;;  %v1455_v0 = vpop.f32.mrf.mxu2 }
 0x174   : > { %v1194_v61 = vadd.f32 %v1193_v28, %v5467_v45  ;;  %2633 = vmatpush.msra.mxu1 %v5597_v20 }
 0x175   : > { %1787 = vmatmul.f32.gmra.mxu1 %v7122_v49  ;;  %v1576_v54 = vpop.f32.mrf.mxu3 }
 0x176   : > { %v1279_v1 = vadd.f32 %v1278_v51, %v1194_v61  ;;  %1675 = vmatmul.f32.gmra.mxu0 %v5425_v59  ;;  %2635 = vmatpush.msra.mxu1 %v2069_v15  ;;  %v2007_v51 = vsel %vm602_vm0, %v579_v17, 0 }
 0x177   : > { %v5717_v61 = vand.u32 4294901760, %v2007_v51 }
 0x178   : > { %v1456_v44 = vadd.f32 %v1455_v0, %v1279_v1  ;;  %1894 = vmatmul.f32.gmra.mxu2 %v5430_v52 }
 0x17a   : > { %v5669_v12 = vadd.f32 %v1576_v54, %v1456_v44  ;;  %v1282_v63 = vpop.f32.mrf.mxu1  ;;  %1979 = vmatmul.f32.gmra.mxu3 %v5430_v52  ;;  %v7127_v44 = vand.u32 4294901760, %v5504_v13 }
 0x17b   : > { %v1197_v45 = vpop.f32.mrf.mxu0  ;;  %v1463_v16 = vpop.f32.mrf.mxu2 }
 0x17c   : > { %v1198_v27 = vadd.f32 %v1197_v45, %v5483_v38 }
 0x17d   : > { %1793 = vmatmul.f32.gmra.mxu1 %v7123_v55  ;;  %v1580_v59 = vpop.f32.mrf.mxu3 }
 0x17e   : > { %v1283_v32 = vadd.f32 %v1282_v63, %v1198_v27  ;;  %1680 = vmatmul.f32.gmra.mxu0 %v5441_v29  ;;  %v2080_v27 = vsub.f32 %v2007_v51, %v5717_v61 }
 0x180   : > { %v1464_v41 = vadd.f32 %v1463_v16, %v1283_v32  ;;  %1898 = vmatmul.f32.gmra.mxu2 %v5446_v58 }
 0x182   : > { %v5677_v20 = vadd.f32 %v1580_v59, %v1464_v41  ;;  %v1286_v57 = vpop.f32.mrf.mxu1  ;;  %1983 = vmatmul.f32.gmra.mxu3 %v5446_v58  ;;  %v2081_v41 = vand.u32 4294901760, %v2080_v27 }
 0x183   : > { %v1201_v52 = vpop.f32.mrf.mxu0  ;;  %v1471_v6 = vpop.f32.mrf.mxu2 }
 0x184   : > { %v1202_v38 = vadd.f32 %v1201_v52, %v5498_v46 }
 0x185   : > { %1799 = vmatmul.f32.gmra.mxu1 %v7124_v25  ;;  %v1584_v48 = vpop.f32.mrf.mxu3 }
 0x186   : > { %v1287_v5 = vadd.f32 %v1286_v57, %v1202_v38  ;;  %1685 = vmatmul.f32.gmra.mxu0 %v5457_v19  ;;  %v578_v19 = vld [vmem:[%s5689_s24] sm:$0xff] }
 0x187   : > { %v2004_v4 = vsel %vm602_vm0, %v578_v19, 0 }
 0x188   : > { %v1472_v29 = vadd.f32 %v1471_v6, %v1287_v5  ;;  %1902 = vmatmul.f32.gmra.mxu2 %v5462_v50  ;;  %v2082_v5 = vsub.f32 %v2080_v27, %v2081_v41 }
 0x18a   : > { %v5691_v58 = vadd.f32 %v1584_v48, %v1472_v29  ;;  %v1290_v53 = vpop.f32.mrf.mxu1  ;;  %1987 = vmatmul.f32.gmra.mxu3 %v5462_v50  ;;  %v2083_v19 = vand.u32 4294901760, %v2082_v5 }
 0x18b   : > { %v1205_v46 = vpop.f32.mrf.mxu0  ;;  %v1479_v8 = vpop.f32.mrf.mxu2 }
 0x18c   : > { %v1206_v15 = vadd.f32 %v1205_v46, %v5525_v14  ;;  %v5704_v14 = vand.u32 4294901760, %v2004_v4 }
 0x18d   : > { %1805 = vmatmul.f32.gmra.mxu1 %v7125_v47  ;;  %v1588_v11 = vpop.f32.mrf.mxu3 }
 0x18e   : > { %v1291_v40 = vadd.f32 %v1290_v53, %v1206_v15  ;;  %1690 = vmatmul.f32.gmra.mxu0 %v5473_v62  ;;  %v2072_v3 = vsub.f32 %v2004_v4, %v5704_v14 }
 0x190   : > { %v1480_v21 = vadd.f32 %v1479_v8, %v1291_v40  ;;  %1906 = vmatmul.f32.gmra.mxu2 %v5478_v37 }
 0x192   : > { %v5701_v24 = vadd.f32 %v1588_v11, %v1480_v21  ;;  %v1294_v50 = vpop.f32.mrf.mxu1  ;;  %1991 = vmatmul.f32.gmra.mxu3 %v5478_v37  ;;  %v582_v21 = vld [vmem:[%s5689_s24 + $0x20] sm:$0xff] }
 0x193   : > { %v1209_v42 = vpop.f32.mrf.mxu0  ;;  %v1487_v60 = vpop.f32.mrf.mxu2  ;;  %v2016_v17 = vsel %vm602_vm0, %v582_v21, 0 }
 0x194   : > { %v1210_v7 = vadd.f32 %v1209_v42, %v5533_v33  ;;  %v2073_v33 = vand.u32 4294901760, %v2072_v3  ;;  %v5746_v51 = vand.u32 4294901760, %v2016_v17 }
 0x195   : > { %1811 = vmatmul.f32.gmra.mxu1 %v7126_v36  ;;  %v1592_v62 = vpop.f32.mrf.mxu3 }
 0x196   : > { %v1295_v26 = vadd.f32 %v1294_v50, %v1210_v7  ;;  %1695 = vmatmul.f32.gmra.mxu0 %v5489_v35  ;;  %v580_v35 = vld [vmem:[%s5689_s24 + $0x10] sm:$0xff]  ;;  %v2074_v16 = vsub.f32 %v2072_v3, %v2073_v33 }
 0x198   : > { %v1488_v37 = vadd.f32 %v1487_v60, %v1295_v26  ;;  %1910 = vmatmul.f32.gmra.mxu2 %v5494_v2 }
 0x19a   : > { %v5714_v28 = vadd.f32 %v1592_v62, %v1488_v37  ;;  %v1298_v0 = vpop.f32.mrf.mxu1  ;;  %1995 = vmatmul.f32.gmra.mxu3 %v5494_v2  ;;  %v2010_v2 = vsel %vm602_vm0, %v580_v35, 0 }
 0x19b   : > { %v1213_v49 = vpop.f32.mrf.mxu0  ;;  %v1495_v54 = vpop.f32.mrf.mxu2  ;;  %v5728_v57 = vand.u32 4294901760, %v2010_v2 }
 0x19c   : > { %v1214_v1 = vadd.f32 %v1213_v49, %v5538_v56  ;;  %v2075_v56 = vand.u32 4294901760, %v2074_v16  ;;  %v583_v49 = vld [vmem:[%s5689_s24 + $0x28] sm:$0xff] }
 0x19d   : > { %1817 = vmatmul.f32.gmra.mxu1 %v7127_v44  ;;  %v1596_v63 = vpop.f32.mrf.mxu3  ;;  %v2088_v29 = vsub.f32 %v2010_v2, %v5728_v57  ;;  %v2104_v44 = vsub.f32 %v2016_v17, %v5746_v51 }
 0x19e   : > { %v1299_v45 = vadd.f32 %v1298_v0, %v1214_v1  ;;  %1700 = vmatmul.f32.gmra.mxu0 %v5504_v13  ;;  %v581_v13 = vld [vmem:[%s5689_s24 + $0x18] sm:$0xff] }
 0x19f   : > { %v2013_v53 = vsel %vm602_vm0, %v581_v13, 0 }
 0x1a0   : > { %v1496_v55 = vadd.f32 %v1495_v54, %v1299_v45  ;;  %2327 = vmatmul.f32.vlgmr.msrb.gmra.mxu2 %v2072_v3  ;;  %v5737_v47 = vand.u32 4294901760, %v2013_v53 }
 0x1a2   : > { %v5726_v59 = vadd.f32 %v1596_v63, %v1496_v55  ;;  %v1728_v32 = vpop.f32.mrf.mxu1  ;;  %2429 = vmatmul.f32.vlgmr.msrb.gmra.mxu3 %v2073_v33  ;;  %v2096_v7 = vsub.f32 %v2013_v53, %v5737_v47  ;;  %v2019_v63 = vsel %vm602_vm0, %v583_v49, 0 }
 0x1a3   : > { %v1626_v52 = vpop.f32.mrf.mxu0  ;;  %v1851_v6 = vpop.f32.mrf.mxu2  ;;  %v5755_v55 = vand.u32 4294901760, %v2019_v63 }
 0x1a4   : > { %v1627_v38 = vadd.f32 %v1626_v52, %v5552_v43  ;;  %v2089_v43 = vand.u32 4294901760, %v2088_v29  ;;  %v584_v52 = vld [vmem:[%s5689_s24 + $0x30] sm:$0xff] }
 0x1a5   : > { %2237 = vmatmul.f32.vlgmr.msrb.gmra.mxu1 %v5704_v14  ;;  %v1936_v25 = vpop.f32.mrf.mxu3 }
 0x1a6   : > { %v1729_v48 = vadd.f32 %v1728_v32, %v1627_v38  ;;  %2076 = vmatmul.f32.vlgmr.msrb.gmra.mxu0 %v2075_v56  ;;  %v2090_v60 = vsub.f32 %v2088_v29, %v2089_v43 }
 0x1a8   : > { %v1852_v46 = vadd.f32 %v1851_v6, %v1729_v48  ;;  %2332 = vmatmul.f32.gmra.mxu2 %v2080_v27  ;;  %v2091_v3 = vand.u32 4294901760, %v2090_v60  ;;  %v2022_v48 = vsel %vm602_vm0, %v584_v52, 0 }
 0x1aa   : > { %v5735_v8 = vadd.f32 %v1936_v25, %v1852_v46  ;;  %v1734_v15 = vpop.f32.mrf.mxu1  ;;  %2435 = vmatmul.f32.gmra.mxu3 %v2081_v41  ;;  %v2112_v25 = vsub.f32 %v2019_v63, %v5755_v55 }
 0x1ab   : > { %v1631_v11 = vpop.f32.mrf.mxu0  ;;  %v1855_v40 = vpop.f32.mrf.mxu2 }
 0x1ac   : > { %v1632_v4 = vadd.f32 %v1631_v11, %v5570_v39  ;;  %v2097_v39 = vand.u32 4294901760, %v2096_v7 }
 0x1ad   : > { %2241 = vmatmul.f32.gmra.mxu1 %v5717_v61  ;;  %v1940_v50 = vpop.f32.mrf.mxu3 }
 0x1ae   : > { %v1735_v42 = vadd.f32 %v1734_v15, %v1632_v4  ;;  %2084 = vmatmul.f32.gmra.mxu0 %v2083_v19  ;;  %v2098_v35 = vsub.f32 %v2096_v7, %v2097_v39  ;;  %v5764_v15 = vand.u32 4294901760, %v2022_v48 }
 0x1b0   : > { %v1856_v36 = vadd.f32 %v1855_v40, %v1735_v42  ;;  %2337 = vmatmul.f32.gmra.mxu2 %v2088_v29  ;;  %v2099_v2 = vand.u32 4294901760, %v2098_v35  ;;  %v585_v40 = vld [vmem:[%s5689_s24 + $0x38] sm:$0xff]  ;;  %v2120_v42 = vsub.f32 %v2022_v48, %v5764_v15 }
 0x1b1   : > { %v2025_v60 = vsel %vm602_vm0, %v585_v40, 0  ;;  %v588_v40 = vld [vmem:[%s5689_s24 + $0x50] sm:$0xff] }
 0x1b2   : > { %v5744_v62 = vadd.f32 %v1940_v50, %v1856_v36  ;;  %v1740_v26 = vpop.f32.mrf.mxu1  ;;  %2441 = vmatmul.f32.gmra.mxu3 %v2089_v43 }
 0x1b3   : > { %v1636_v37 = vpop.f32.mrf.mxu0  ;;  %v1859_v0 = vpop.f32.mrf.mxu2 }
 0x1b4   : > { %v1637_v33 = vadd.f32 %v1636_v37, %v5578_v31  ;;  %v2105_v31 = vand.u32 4294901760, %v2104_v44 }
 0x1b5   : > { %2245 = vmatmul.f32.gmra.mxu1 %v5728_v57  ;;  %v1944_v54 = vpop.f32.mrf.mxu3 }
 0x1b6   : > { %v1741_v1 = vadd.f32 %v1740_v26, %v1637_v33  ;;  %2092 = vmatmul.f32.gmra.mxu0 %v2091_v3  ;;  %v2106_v13 = vsub.f32 %v2104_v44, %v2105_v31  ;;  %v5773_v3 = vand.u32 4294901760, %v2025_v60  ;;  %v586_v33 = vld [vmem:[%s5689_s24 + $0x40] sm:$0xff] }
 0x1b8   : > { %v1860_v45 = vadd.f32 %v1859_v0, %v1741_v1  ;;  %2342 = vmatmul.f32.gmra.mxu2 %v2096_v7  ;;  %v2107_v46 = vand.u32 4294901760, %v2106_v13  ;;  %v2128_v35 = vsub.f32 %v2025_v60, %v5773_v3  ;;  %v2034_v60 = vsel %vm602_vm0, %v588_v40, 0 }
 0x1ba   : > { %v5753_v16 = vadd.f32 %v1944_v54, %v1860_v45  ;;  %v1746_v27 = vpop.f32.mrf.mxu1  ;;  %2447 = vmatmul.f32.gmra.mxu3 %v2097_v39 }
 0x1bb   : > { %v1641_v32 = vpop.f32.mrf.mxu0  ;;  %v1863_v56 = vpop.f32.mrf.mxu2 }
 0x1bc   : > { %v1642_v41 = vadd.f32 %v1641_v32, %v5586_v9  ;;  %v2113_v9 = vand.u32 4294901760, %v2112_v25 }
 0x1bd   : > { %2249 = vmatmul.f32.gmra.mxu1 %v5737_v47  ;;  %v1948_v6 = vpop.f32.mrf.mxu3 }
 0x1be   : > { %v1747_v38 = vadd.f32 %v1746_v27, %v1642_v41  ;;  %2100 = vmatmul.f32.gmra.mxu0 %v2099_v2  ;;  %v2114_v50 = vsub.f32 %v2112_v25, %v2113_v9  ;;  %v587_v41 = vld [vmem:[%s5689_s24 + $0x48] sm:$0xff] }
 0x1bf   : > { %v2031_v48 = vsel %vm602_vm0, %v587_v41, 0 }
 0x1c0   : > { %v1864_v5 = vadd.f32 %v1863_v56, %v1747_v38  ;;  %2347 = vmatmul.f32.gmra.mxu2 %v2104_v44  ;;  %v2115_v26 = vand.u32 4294901760, %v2114_v50  ;;  %v2028_v44 = vsel %vm602_vm0, %v586_v33, 0 }
 0x1c2   : > { %v5762_v29 = vadd.f32 %v1948_v6, %v1864_v5  ;;  %v1752_v53 = vpop.f32.mrf.mxu1  ;;  %2453 = vmatmul.f32.gmra.mxu3 %v2105_v31  ;;  %v5782_v31 = vand.u32 4294901760, %v2028_v44 }
 0x1c3   : > { %v1646_v19 = vpop.f32.mrf.mxu0  ;;  %v1867_v43 = vpop.f32.mrf.mxu2 }
 0x1c4   : > { %v1647_v11 = vadd.f32 %v1646_v19, %v5599_v34  ;;  %v2121_v34 = vand.u32 4294901760, %v2120_v42  ;;  %v2136_v13 = vsub.f32 %v2028_v44, %v5782_v31  ;;  %v5791_v19 = vand.u32 4294901760, %v2031_v48 }
 0x1c5   : > { %2253 = vmatmul.f32.gmra.mxu1 %v5746_v51  ;;  %v1952_v4 = vpop.f32.mrf.mxu3 }
 0x1c6   : > { %v1753_v21 = vadd.f32 %v1752_v53, %v1647_v11  ;;  %2108 = vmatmul.f32.gmra.mxu0 %v2107_v46  ;;  %v2122_v1 = vsub.f32 %v2120_v42, %v2121_v34  ;;  %v2144_v50 = vsub.f32 %v2031_v48, %v5791_v19 }
 0x1c8   : > { %v1868_v7 = vadd.f32 %v1867_v43, %v1753_v21  ;;  %2352 = vmatmul.f32.gmra.mxu2 %v2112_v25  ;;  %v2123_v2 = vand.u32 4294901760, %v2122_v1 }
 0x1ca   : > { %v5771_v17 = vadd.f32 %v1952_v4, %v1868_v7  ;;  %v1758_v36 = vpop.f32.mrf.mxu1  ;;  %2459 = vmatmul.f32.gmra.mxu3 %v2113_v9  ;;  %v2137_v9 = vand.u32 4294901760, %v2136_v13 }
 0x1cb   : > { %v1651_v39 = vpop.f32.mrf.mxu0  ;;  %v1871_v37 = vpop.f32.mrf.mxu2 }
 0x1cc   : > { %v1652_v0 = vadd.f32 %v1651_v39, %v5617_v18  ;;  %v2129_v18 = vand.u32 4294901760, %v2128_v35  ;;  %v2138_v21 = vsub.f32 %v2136_v13, %v2137_v9  ;;  %v2145_v39 = vand.u32 4294901760, %v2144_v50 }
 0x1cd   : > { %2257 = vmatmul.f32.gmra.mxu1 %v5755_v55  ;;  %v1956_v49 = vpop.f32.mrf.mxu3 }
 0x1ce   : > { %v1759_v54 = vadd.f32 %v1758_v36, %v1652_v0  ;;  %2116 = vmatmul.f32.gmra.mxu0 %v2115_v26  ;;  %v2130_v38 = vsub.f32 %v2128_v35, %v2129_v18  ;;  %v2146_v1 = vsub.f32 %v2144_v50, %v2145_v39 }
 0x1d0   : > { %v1872_v63 = vadd.f32 %v1871_v37, %v1759_v54  ;;  %2357 = vmatmul.f32.gmra.mxu2 %v2120_v42  ;;  %v5800_v37 = vand.u32 4294901760, %v2034_v60 }
 0x1d2   : > { %v5780_v45 = vadd.f32 %v1956_v49, %v1872_v63  ;;  %v1764_v27 = vpop.f32.mrf.mxu1  ;;  %2465 = vmatmul.f32.gmra.mxu3 %v2121_v34  ;;  %v589_v49 = vld [vmem:[%s5689_s24 + $0x58] sm:$0xff] }
 0x1d3   : > { %v1656_v32 = vpop.f32.mrf.mxu0  ;;  %v1875_v52 = vpop.f32.mrf.mxu2  ;;  %v2037_v44 = vsel %vm602_vm0, %v589_v49, 0 }
 0x1d4   : > { %v1657_v56 = vadd.f32 %v1656_v32, %v5625_v22  ;;  %v2131_v22 = vand.u32 4294901760, %v2130_v38 }
 0x1d5   : > { %2261 = vmatmul.f32.gmra.mxu1 %v5764_v15  ;;  %v1960_v25 = vpop.f32.mrf.mxu3 }
 0x1d6   : > { %v1765_v6 = vadd.f32 %v1764_v27, %v1657_v56  ;;  %2124 = vmatmul.f32.gmra.mxu0 %v2123_v2  ;;  %v2147_v27 = vand.u32 4294901760, %v2146_v1  ;;  %v590_v56 = vld [vmem:[%s5689_s24 + $0x60] sm:$0xff] }
 0x1d7   : > { %v2040_v38 = vsel %vm602_vm0, %v590_v56, 0 }
 0x1d8   : > { %v1876_v5 = vadd.f32 %v1875_v52, %v1765_v6  ;;  %2362 = vmatmul.f32.gmra.mxu2 %v2128_v35  ;;  %v2152_v35 = vsub.f32 %v2034_v60, %v5800_v37 }
 0x1da   : > { %v5789_v53 = vadd.f32 %v1960_v25, %v1876_v5  ;;  %v1770_v46 = vpop.f32.mrf.mxu1  ;;  %2471 = vmatmul.f32.gmra.mxu3 %v2129_v18  ;;  %v2153_v2 = vand.u32 4294901760, %v2152_v35  ;;  %v5809_v18 = vand.u32 4294901760, %v2037_v44  ;;  %v5818_v5 = vand.u32 4294901760, %v2040_v38 }
 0x1db   : > { %v1661_v43 = vpop.f32.mrf.mxu0  ;;  %v1879_v42 = vpop.f32.mrf.mxu2 }
 0x1dc   : > { %v1662_v11 = vadd.f32 %v1661_v43, %v5633_v30  ;;  %v2139_v30 = vand.u32 4294901760, %v2138_v21  ;;  %v2154_v52 = vsub.f32 %v2152_v35, %v2153_v2  ;;  %v2160_v6 = vsub.f32 %v2037_v44, %v5809_v18  ;;  %v593_v44 = vld [vmem:[%s5689_s24 + $0x78] sm:$0xff] }
 0x1dd   : > { %2265 = vmatmul.f32.gmra.mxu1 %v5773_v3  ;;  %v1964_v36 = vpop.f32.mrf.mxu3 }
 0x1de   : > { %v1771_v4 = vadd.f32 %v1770_v46, %v1662_v11  ;;  %2132 = vmatmul.f32.gmra.mxu0 %v2131_v22  ;;  %v2155_v25 = vand.u32 4294901760, %v2154_v52  ;;  %v2161_v48 = vand.u32 4294901760, %v2160_v6  ;;  %v591_v22 = vld [vmem:[%s5689_s24 + $0x68] sm:$0xff]  ;;  %v2168_v11 = vsub.f32 %v2040_v38, %v5818_v5 }
 0x1df   : > { %v2043_v40 = vsel %vm602_vm0, %v591_v22, 0 }
 0x1e0   : > { %v1880_v7 = vadd.f32 %v1879_v42, %v1771_v4  ;;  %2367 = vmatmul.f32.gmra.mxu2 %v2136_v13  ;;  %v2162_v43 = vsub.f32 %v2160_v6, %v2161_v48  ;;  %v5827_v42 = vand.u32 4294901760, %v2043_v40 }
 0x1e2   : > { %v5798_v26 = vadd.f32 %v1964_v36, %v1880_v7  ;;  %v1776_v34 = vpop.f32.mrf.mxu1  ;;  %2477 = vmatmul.f32.gmra.mxu3 %v2137_v9  ;;  %v2163_v21 = vand.u32 4294901760, %v2162_v43  ;;  %v592_v7 = vld [vmem:[%s5689_s24 + $0x70] sm:$0xff] }
 0x1e3   : > { %v1666_v0 = vpop.f32.mrf.mxu0 }
 0x1e4   : > { %v1667_v33 = vadd.f32 %v1666_v0, %v5644_v10 }
 0x1e5   : > { %2269 = vmatmul.f32.gmra.mxu1 %v5782_v31 }
 0x1e6   : > { %v5805_v54 = vadd.f32 %v1776_v34, %v1667_v33  ;;  %2140 = vmatmul.f32.gmra.mxu0 %v2139_v30  ;;  %v2176_v30 = vsub.f32 %v2043_v40, %v5827_v42 }
 0x1e8   : > { %2372 = vmatmul.f32.gmra.mxu2 %v2144_v50  ;;  %v2169_v50 = vand.u32 4294901760, %v2168_v11  ;;  %v2177_v49 = vand.u32 4294901760, %v2176_v30 }
 0x1ea   : > { %v1782_v63 = vpop.f32.mrf.mxu1  ;;  %2483 = vmatmul.f32.gmra.mxu3 %v2145_v39  ;;  %v2170_v34 = vsub.f32 %v2168_v11, %v2169_v50  ;;  %v2046_v39 = vsel %vm602_vm0, %v592_v7, 0 }
 0x1eb   : > { %v1671_v10 = vpop.f32.mrf.mxu0  ;;  %v5836_v1 = vand.u32 4294901760, %v2046_v39 }
 0x1ec   : > { %v1672_v32 = vadd.f32 %v1671_v10, %v5658_v23  ;;  %v2171_v33 = vand.u32 4294901760, %v2170_v34  ;;  %v2049_v10 = vsel %vm602_vm0, %v593_v44, 0 }
 0x1ed   : > { %2273 = vmatmul.f32.gmra.mxu1 %v5791_v19 }
 0x1ee   : > { %v5814_v41 = vadd.f32 %v1782_v63, %v1672_v32  ;;  %2148 = vmatmul.f32.gmra.mxu0 %v2147_v27  ;;  %v2178_v27 = vsub.f32 %v2176_v30, %v2177_v49 }
 0x1f0   : > { %2377 = vmatmul.f32.gmra.mxu2 %v2152_v35  ;;  %v2179_v56 = vand.u32 4294901760, %v2178_v27 }
 0x1f2   : > { %v1788_v13 = vpop.f32.mrf.mxu1  ;;  %2489 = vmatmul.f32.gmra.mxu3 %v2153_v2  ;;  %v2184_v2 = vsub.f32 %v2046_v39, %v5836_v1 }
 0x1f3   : > { %v1676_v23 = vpop.f32.mrf.mxu0 }
 0x1f4   : > { %v1677_v46 = vadd.f32 %v1676_v23, %v5669_v12  ;;  %v2185_v52 = vand.u32 4294901760, %v2184_v2 }
 0x1f5   : > { %2277 = vmatmul.f32.gmra.mxu1 %v5800_v37 }
 0x1f6   : > { %v5823_v9 = vadd.f32 %v1788_v13, %v1677_v46  ;;  %2156 = vmatmul.f32.gmra.mxu0 %v2155_v25  ;;  %v2186_v25 = vsub.f32 %v2184_v2, %v2185_v52 }
 0x1f8   : > { %2382 = vmatmul.f32.gmra.mxu2 %v2160_v6  ;;  %v5845_v6 = vand.u32 4294901760, %v2049_v10  ;;  %v2187_v46 = vand.u32 4294901760, %v2186_v25 }
 0x1fa   : > { %v1794_v4 = vpop.f32.mrf.mxu1  ;;  %2495 = vmatmul.f32.gmra.mxu3 %v2161_v48  ;;  %v2192_v48 = vsub.f32 %v2049_v10, %v5845_v6 }
 0x1fb   : > { %v1681_v12 = vpop.f32.mrf.mxu0 }
 0x1fc   : > { %v1682_v60 = vadd.f32 %v1681_v12, %v5677_v20  ;;  %v2193_v22 = vand.u32 4294901760, %v2192_v48 }
 0x1fd   : > { %2281 = vmatmul.f32.gmra.mxu1 %v5809_v18 }
 0x1fe   : > { %v5832_v36 = vadd.f32 %v1794_v4, %v1682_v60  ;;  %2164 = vmatmul.f32.gmra.mxu0 %v2163_v21 }
 0x200   : > { %2387 = vmatmul.f32.gmra.mxu2 %v2168_v11 }
 0x202   : > { %v1800_v0 = vpop.f32.mrf.mxu1  ;;  %2501 = vmatmul.f32.gmra.mxu3 %v2169_v50 }
 0x203   : > { %v1686_v20 = vpop.f32.mrf.mxu0 }
 0x204   : > { %v1687_v35 = vadd.f32 %v1686_v20, %v5691_v58 }
 0x205   : > { %2285 = vmatmul.f32.gmra.mxu1 %v5818_v5 }
 0x206   : > { %v5841_v63 = vadd.f32 %v1800_v0, %v1687_v35  ;;  %2172 = vmatmul.f32.gmra.mxu0 %v2171_v33 }
 0x208   : > { %7128 = vst [vmem:[#allocation3_spill] sm:$0xff] %v5841_v63  ;;  %2392 = vmatmul.f32.gmra.mxu2 %v2176_v30 }
 0x20a   : > { %v1806_v32 = vpop.f32.mrf.mxu1  ;;  %2507 = vmatmul.f32.gmra.mxu3 %v2177_v49 }
 0x20b   : > { %v1691_v38 = vpop.f32.mrf.mxu0 }
 0x20c   : > { %v1692_v58 = vadd.f32 %v1691_v38, %v5701_v24  ;;  %v2194_v24 = vsub.f32 %v2192_v48, %v2193_v22 }
 0x20d   : > { %2289 = vmatmul.f32.gmra.mxu1 %v5827_v42 }
 0x20e   : > { %v5849_v13 = vadd.f32 %v1806_v32, %v1692_v58  ;;  %2180 = vmatmul.f32.gmra.mxu0 %v2179_v56  ;;  %v2195_v21 = vand.u32 4294901760, %v2194_v24 }
 0x210   : > { %7129 = vst [vmem:[#allocation4_spill] sm:$0xff] %v5849_v13  ;;  %2397 = vmatmul.f32.gmra.mxu2 %v2184_v2 }
 0x212   : > { %v1812_v23 = vpop.f32.mrf.mxu1  ;;  %2513 = vmatmul.f32.gmra.mxu3 %v2185_v52 }
 0x213   : > { %v1696_v43 = vpop.f32.mrf.mxu0 }
 0x214   : > { %v1697_v11 = vadd.f32 %v1696_v43, %v5714_v28 }
 0x215   : > { %2293 = vmatmul.f32.gmra.mxu1 %v5836_v1 }
 0x216   : > { %v5854_v40 = vadd.f32 %v1812_v23, %v1697_v11  ;;  %2188 = vmatmul.f32.gmra.mxu0 %v2187_v46 }
 0x218   : > { %7130 = vst [vmem:[#allocation5_spill] sm:$0xff] %v5854_v40  ;;  %2402 = vmatmul.f32.gmra.mxu2 %v2192_v48 }
 0x21a   : > { %v1818_v4 = vpop.f32.mrf.mxu1  ;;  %2519 = vmatmul.f32.gmra.mxu3 %v2193_v22 }
 0x21b   : > { %v1701_v50 = vpop.f32.mrf.mxu0 }
 0x21c   : > { %v1702_v12 = vadd.f32 %v1701_v50, %v5726_v59 }
 0x21d   : > { %2297 = vmatmul.f32.gmra.mxu1 %v5845_v6 }
 0x21e   : > { %v5858_v60 = vadd.f32 %v1818_v4, %v1702_v12  ;;  %2196 = vmatmul.f32.gmra.mxu0 %v2195_v21 }
 0x220   : > { %7131 = vst [vmem:[#allocation6_spill] sm:$0xff] %v5858_v60 }
 0x222   : > { %v5860_v7 = vpop.f32.mrf.mxu1 }
 0x223   : > { %v5862_v28 = vpop.f32.mrf.mxu0 }
 0x225   : > { %2637 = vmatmul.f32.vlgmr.msra.gmra.mxu1 %v5704_v14 }
 0x226   : > { %2552 = vmatmul.f32.vlgmr.msra.gmra.mxu0 %v5704_v14  ;;  %v5884_v14 = vpop.f32.mrf.mxu2 }
 0x22a   : > { %v5866_v34 = vpop.f32.mrf.mxu1 }
 0x22b   : > { %v5868_v30 = vpop.f32.mrf.mxu0 }
 0x22d   : > { %2641 = vmatmul.f32.gmra.mxu1 %v5717_v61 }
 0x22e   : > { %2556 = vmatmul.f32.gmra.mxu0 %v5717_v61  ;;  %v5888_v61 = vpop.f32.mrf.mxu3 }
 0x232   : > { %v5872_v59 = vpop.f32.mrf.mxu1 }
 0x233   : > { %v5874_v39 = vpop.f32.mrf.mxu0 }
 0x235   : > { %2645 = vmatmul.f32.gmra.mxu1 %v5728_v57 }
 0x236   : > { %2560 = vmatmul.f32.gmra.mxu0 %v5728_v57  ;;  %v5894_v57 = vpop.f32.mrf.mxu2  ;;  %v5900_v27 = vpop.f32.mrf.mxu3 }
 0x23a   : > { %v5878_v0 = vpop.f32.mrf.mxu1 }
 0x23b   : > { %v5880_v33 = vpop.f32.mrf.mxu0 }
 0x23d   : > { %2649 = vmatmul.f32.gmra.mxu1 %v5737_v47 }
 0x23e   : > { %2564 = vmatmul.f32.gmra.mxu0 %v5737_v47  ;;  %v5906_v2 = vpop.f32.mrf.mxu2 }
 0x242   : > { %v5886_v49 = vpop.f32.mrf.mxu1 }
 0x243   : > { %v5890_v20 = vpop.f32.mrf.mxu0 }
 0x245   : > { %2653 = vmatmul.f32.gmra.mxu1 %v5746_v51 }
 0x246   : > { %2568 = vmatmul.f32.gmra.mxu0 %v5746_v51  ;;  %v5912_v51 = vpop.f32.mrf.mxu3  ;;  %v5918_v52 = vpop.f32.mrf.mxu2 }
 0x24a   : > { %v5896_v35 = vpop.f32.mrf.mxu1 }
 0x24b   : > { %v5898_v44 = vpop.f32.mrf.mxu0 }
 0x24d   : > { %2657 = vmatmul.f32.gmra.mxu1 %v5755_v55 }
 0x24e   : > { %2572 = vmatmul.f32.gmra.mxu0 %v5755_v55  ;;  %v5922_v55 = vpop.f32.mrf.mxu3 }
 0x252   : > { %v5904_v47 = vpop.f32.mrf.mxu1 }
 0x253   : > { %v5908_v10 = vpop.f32.mrf.mxu0 }
 0x255   : > { %2661 = vmatmul.f32.gmra.mxu1 %v5764_v15 }
 0x256   : > { %2576 = vmatmul.f32.gmra.mxu0 %v5764_v15  ;;  %v5930_v15 = vpop.f32.mrf.mxu2  ;;  %v5934_v48 = vpop.f32.mrf.mxu3 }
 0x257   : > { %7132 = vst [vmem:[#allocation7_spill] sm:$0xff] %v5930_v15 }
 0x258   : > { %7133 = vst [vmem:[#allocation8_spill] sm:$0xff] %v5934_v48 }
 0x25a   : > { %v5914_v32 = vpop.f32.mrf.mxu1 }
 0x25b   : > { %v5916_v56 = vpop.f32.mrf.mxu0 }
 0x25d   : > { %2665 = vmatmul.f32.gmra.mxu1 %v5773_v3 }
 0x25e   : > { %2580 = vmatmul.f32.gmra.mxu0 %v5773_v3  ;;  %v5940_v3 = vpop.f32.mrf.mxu2  ;;  %v5946_v43 = vpop.f32.mrf.mxu3 }
 0x25f   : > { %7134 = vst [vmem:[#allocation9_spill] sm:$0xff] %v5940_v3 }
 0x260   : > { %7135 = vst [vmem:[#allocation10_spill] sm:$0xff] %v5946_v43 }
 0x262   : > { %v5924_v38 = vpop.f32.mrf.mxu1 }
 0x263   : > { %v5926_v58 = vpop.f32.mrf.mxu0 }
 0x265   : > { %2669 = vmatmul.f32.gmra.mxu1 %v5782_v31 }
 0x266   : > { %2584 = vmatmul.f32.gmra.mxu0 %v5782_v31  ;;  %v5952_v11 = vpop.f32.mrf.mxu2 }
 0x267   : > { %7136 = vst [vmem:[#allocation11_spill] sm:$0xff] %v5952_v11 }
 0x26a   : > { %v5932_v25 = vpop.f32.mrf.mxu1 }
 0x26b   : > { %v5936_v23 = vpop.f32.mrf.mxu0 }
 0x26d   : > { %2673 = vmatmul.f32.gmra.mxu1 %v5791_v19 }
 0x26e   : > { %2588 = vmatmul.f32.gmra.mxu0 %v5791_v19  ;;  %v5958_v19 = vpop.f32.mrf.mxu3  ;;  %v5964_v50 = vpop.f32.mrf.mxu2 }
 0x26f   : > { %7137 = vst [vmem:[#allocation12_spill] sm:$0xff] %v5958_v19 }
 0x270   : > { %7138 = vst [vmem:[#allocation13_spill] sm:$0xff] %v5964_v50 }
 0x272   : > { %v5942_v46 = vpop.f32.mrf.mxu1 }
 0x273   : > { %v5944_v22 = vpop.f32.mrf.mxu0 }
 0x275   : > { %2677 = vmatmul.f32.gmra.mxu1 %v5800_v37 }
 0x276   : > { %2592 = vmatmul.f32.gmra.mxu0 %v5800_v37  ;;  %v5968_v37 = vpop.f32.mrf.mxu3 }
 0x277   : > { %7139 = vst [vmem:[#allocation14_spill] sm:$0xff] %v5968_v37  ;;  %v2239_v37 = vadd.f32 %v5860_v7, %v5862_v28  ;;  %v5995_v28 = vld [vmem:[%s7081_s6] ss:$0 sm:$0xff] }
 0x27a   : > { %v5950_v31 = vpop.f32.mrf.mxu1 }
 0x27b   : > { %v5954_v24 = vpop.f32.mrf.mxu0 }
 0x27d   : > { %2681 = vmatmul.f32.gmra.mxu1 %v5809_v18 }
 0x27e   : > { %2596 = vmatmul.f32.gmra.mxu0 %v5809_v18  ;;  %v2328_v18 = vpop.f32.mrf.mxu2  ;;  %v2430_v11 = vpop.f32.mrf.mxu3 }
 0x282   : > { %v5960_v4 = vpop.f32.mrf.mxu1 }
 0x283   : > { %v5962_v21 = vpop.f32.mrf.mxu0 }
 0x285   : > { %2685 = vmatmul.f32.gmra.mxu1 %v5818_v5 }
 0x286   : > { %2600 = vmatmul.f32.gmra.mxu0 %v5818_v5  ;;  %v2333_v5 = vpop.f32.mrf.mxu2  ;;  %v2436_v3 = vpop.f32.mrf.mxu3 }
 0x28a   : > { %v5970_v12 = vpop.f32.mrf.mxu1 }
 0x28b   : > { %v5972_v60 = vpop.f32.mrf.mxu0 }
 0x28d   : > { %2689 = vmatmul.f32.gmra.mxu1 %v5827_v42 }
 0x28e   : > { %2604 = vmatmul.f32.gmra.mxu0 %v5827_v42  ;;  %v2329_v42 = vadd.f32 %v2328_v18, %v2239_v37 }
 0x292   : > { %v5976_v19 = vpop.f32.mrf.mxu1 }
 0x293   : > { %7140 = vst [vmem:[#allocation15_spill] sm:$0xff] %v5976_v19  ;;  %v5978_v40 = vpop.f32.mrf.mxu0  ;;  %v2431_v19 = vadd.f32 %v2430_v11, %v2329_v42  ;;  %v2247_v11 = vadd.f32 %v5872_v59, %v5874_v39  ;;  %v2251_v59 = vadd.f32 %v5878_v0, %v5880_v33 }
 0x294   : > { %7141 = vst [vmem:[#allocation16_spill] sm:$0xff] %v5978_v40  ;;  %v2243_v40 = vadd.f32 %v5866_v34, %v5868_v30 }
 0x295   : > { %2693 = vmatmul.f32.gmra.mxu1 %v5836_v1 }
 0x296   : > { %2608 = vmatmul.f32.gmra.mxu0 %v5836_v1  ;;  %v2338_v1 = vpop.f32.mrf.mxu2  ;;  %v2334_v63 = vadd.f32 %v2333_v5, %v2243_v40 }
 0x29a   : > { %v5984_v50 = vpop.f32.mrf.mxu1 }
 0x29b   : > { %7142 = vst [vmem:[#allocation17_spill] sm:$0xff] %v5984_v50  ;;  %v5986_v43 = vpop.f32.mrf.mxu0  ;;  %v2442_v50 = vpop.f32.mrf.mxu3 }
 0x29d   : > { %2697 = vmatmul.f32.gmra.mxu1 %v5845_v6 }
 0x29e   : > { %2612 = vmatmul.f32.gmra.mxu0 %v5845_v6  ;;  %v2437_v6 = vadd.f32 %v2436_v3, %v2334_v63 }
 0x2a2   : > { %v2638_v13 = vpop.f32.mrf.mxu1 }
 0x2a3   : > { %v2553_v48 = vpop.f32.mrf.mxu0  ;;  %v2448_v5 = vpop.f32.mrf.mxu3 }
 0x2a4   : > { %v2554_v15 = vadd.f32 %v2553_v48, %v2431_v19  ;;  %v2339_v19 = vadd.f32 %v2338_v1, %v2247_v11 }
 0x2a6   : > { %v2639_v7 = vadd.f32 %v2638_v13, %v2554_v15  ;;  %v2343_v15 = vpop.f32.mrf.mxu2  ;;  %v2443_v63 = vadd.f32 %v2442_v50, %v2339_v19  ;;  %v2255_v50 = vadd.f32 %v5886_v49, %v5890_v20  ;;  %v2259_v49 = vadd.f32 %v5896_v35, %v5898_v44 }
 0x2a8   : > { %v2701_v37 = vadd.f32 %v2639_v7, %v5735_v8 }
 0x2aa   : > { %v2642_v34 = vpop.f32.mrf.mxu1  ;;  %v6001_v30 = vadd.f32 %v5995_v28, %v2701_v37 }
 0x2ab   : > { %v2557_v48 = vpop.f32.mrf.mxu0 }
 0x2ac   : > { %v2558_v40 = vadd.f32 %v2557_v48, %v2437_v6  ;;  %v2740_v13 = vsel %vm2739_vm1, %v6001_v30, 0.0  ;;  %v2344_v6 = vadd.f32 %v2343_v15, %v2251_v59  ;;  %v2454_v48 = vpop.f32.mrf.mxu3 }
 0x2ad   : > { %2741 = vadd.xlane.f32.xlu0 %v2740_v13 }
 0x2ae   : > { %v2643_v18 = vadd.f32 %v2642_v34, %v2558_v40  ;;  %v2348_v11 = vpop.f32.mrf.mxu2  ;;  %v2449_v34 = vadd.f32 %v2448_v5, %v2344_v6 }
 0x2af   : > { %v2349_v15 = vadd.f32 %v2348_v11, %v2255_v50  ;;  %v2263_v11 = vadd.f32 %v5904_v47, %v5908_v10 }
 0x2b0   : > { %v2702_v8 = vadd.f32 %v2643_v18, %v5744_v62 }
 0x2b1   : > { %v2455_v5 = vadd.f32 %v2454_v48, %v2349_v15 }
 0x2b2   : > { %v2646_v39 = vpop.f32.mrf.mxu1  ;;  %v6009_v3 = vadd.f32 %v5995_v28, %v2702_v8 }
 0x2b3   : > { %v2561_v42 = vpop.f32.mrf.mxu0 }
 0x2b4   : > { %v2562_v7 = vadd.f32 %v2561_v42, %v2443_v63  ;;  %v2743_v37 = vsel %vm2739_vm1, %v6009_v3, 0.0 }
 0x2b5   : > { %2744 = vadd.xlane.f32.xlu0 %v2743_v37 }
 0x2b6   : > { %v2647_v1 = vadd.f32 %v2646_v39, %v2562_v7  ;;  %v2460_v7 = vpop.f32.mrf.mxu3 }
 0x2b8   : > { %v2703_v62 = vadd.f32 %v2647_v1, %v5753_v16  ;;  %v2353_v16 = vpop.f32.mrf.mxu2 }
 0x2b9   : > { %v2354_v37 = vadd.f32 %v2353_v16, %v2259_v49 }
 0x2ba   : > { %v2650_v0 = vpop.f32.mrf.mxu1  ;;  %v6017_v33 = vadd.f32 %v5995_v28, %v2703_v62 }
 0x2bb   : > { %v2565_v40 = vpop.f32.mrf.mxu0  ;;  %v2461_v1 = vadd.f32 %v2460_v7, %v2354_v37 }
 0x2bc   : > { %v2566_v13 = vadd.f32 %v2565_v40, %v2449_v34  ;;  %v2746_v19 = vsel %vm2739_vm1, %v6017_v33, 0.0 }
 0x2bd   : > { %2747 = vadd.xlane.f32.xlu1 %v2746_v19 }
 0x2be   : > { %v2651_v18 = vadd.f32 %v2650_v0, %v2566_v13  ;;  %v2466_v13 = vpop.f32.mrf.mxu3 }
 0x2c0   : > { %v2704_v8 = vadd.f32 %v2651_v18, %v5762_v29  ;;  %v2358_v62 = vpop.f32.mrf.mxu2 }
 0x2c1   : > { %v2359_v48 = vadd.f32 %v2358_v62, %v2263_v11 }
 0x2c2   : > { %v2654_v20 = vpop.f32.mrf.mxu1  ;;  %v6025_v63 = vadd.f32 %v5995_v28, %v2704_v8 }
 0x2c3   : > { %v2569_v59 = vpop.f32.mrf.mxu0  ;;  %v2467_v19 = vadd.f32 %v2466_v13, %v2359_v48  ;;  %v2271_v48 = vadd.f32 %v5924_v38, %v5926_v58 }
 0x2c4   : > { %v2570_v39 = vadd.f32 %v2569_v59, %v2455_v5  ;;  %v2749_v42 = vsel %vm2739_vm1, %v6025_v63, 0.0 }
 0x2c5   : > { %2750 = vadd.xlane.f32.xlu1 %v2749_v42 }
 0x2c6   : > { %v2655_v6 = vadd.f32 %v2654_v20, %v2570_v39  ;;  %v4993_v20 = vmov 64.0   ;;  %v2472_v42 = vpop.f32.mrf.mxu3 }
 0x2c7   : > { %4789 = vrcp.f32 %v4993_v20 }
 0x2c8   : > { %v2705_v29 = vadd.f32 %v2655_v6, %v5771_v17  ;;  %v2363_v59 = vpop.f32.mrf.mxu2 }
 0x2ca   : > { %v2658_v35 = vpop.f32.mrf.mxu1  ;;  %v6033_v44 = vadd.f32 %v5995_v28, %v2705_v29 }
 0x2cb   : > { %v2573_v34 = vpop.f32.mrf.mxu0 }
 0x2cc   : > { %v2574_v50 = vadd.f32 %v2573_v34, %v2461_v1  ;;  %v2752_v0 = vsel %vm2739_vm1, %v6033_v44, 0.0 }
 0x2cd   : > { %2753 = vadd.xlane.f32.xlu2 %v2752_v0  ;;  %v4790_v39 = vpop.eup %4789 }
 0x2ce   : > { %v2659_v40 = vadd.f32 %v2658_v35, %v2574_v50  ;;  %v2789_v7 = vmul.f32 64.0, %v4790_v39  ;;  %v2478_v35 = vpop.f32.mrf.mxu3  ;;  %vm2793_vm2 = vweird.f32 %v4790_v39 }
 0x2d0   : > { %v2706_v17 = vadd.f32 %v2659_v40, %v5780_v45  ;;  %v2790_v6 = vsub.f32 1.0, %v2789_v7  ;;  %v2368_v29 = vpop.f32.mrf.mxu2 }
 0x2d2   : > { %v6039_v15 = vadd.f32 %v5995_v28, %v2706_v17  ;;  %v2662_v10 = vpop.f32.mrf.mxu1  ;;  %v2791_v11 = vmul.f32 %v4790_v39, %v2790_v6 }
 0x2d3   : > { %v2577_v47 = vpop.f32.mrf.mxu0 }
 0x2d4   : > { %v2578_v18 = vadd.f32 %v2577_v47, %v2467_v19  ;;  %v2755_v8 = vsel %vm2739_vm1, %v6039_v15, 0.0  ;;  %v2792_v50 = vadd.f32 %v4790_v39, %v2791_v11  ;;  %v2279_v11 = vadd.f32 %v5942_v46, %v5944_v22 }
 0x2d5   : > { %2756 = vadd.xlane.f32.xlu2 %v2755_v8 }
 0x2d6   : > { %v2663_v16 = vadd.f32 %v2662_v10, %v2578_v18  ;;  %v6053_v17 = vsel %vm2793_vm2, %v4790_v39, %v2792_v50  ;;  %v2369_v10 = vadd.f32 %v2368_v29, %v2271_v48 }
 0x2d8   : > { %v2707_v5 = vadd.f32 %v2663_v16, %v5789_v53  ;;  %v2267_v53 = vadd.f32 %v5914_v32, %v5916_v56  ;;  %v2373_v40 = vpop.f32.mrf.mxu2  ;;  %v2484_v32 = vpop.f32.mrf.mxu3 }
 0x2da   : > { %v6045_v49 = vadd.f32 %v5995_v28, %v2707_v5  ;;  %v2666_v1 = vpop.f32.mrf.mxu1  ;;  %v2364_v62 = vadd.f32 %v2363_v59, %v2267_v53  ;;  %v2479_v5 = vadd.f32 %v2478_v35, %v2369_v10 }
 0x2db   : > { %v2581_v37 = vpop.f32.mrf.mxu0 }
 0x2dc   : > { %v2758_v45 = vsel %vm2739_vm1, %v6045_v49, 0.0  ;;  %v2473_v0 = vadd.f32 %v2472_v42, %v2364_v62 }
 0x2dd   : > { %2759 = vadd.xlane.f32.xlu1 %v2758_v45  ;;  %v2275_v45 = vadd.f32 %v5932_v25, %v5936_v23 }
 0x2de   : > { %v2582_v19 = vadd.f32 %v2581_v37, %v2473_v0 }
 0x2df   : > { %v2374_v37 = vadd.f32 %v2373_v40, %v2275_v45 }
 0x2e0   : > { %v2667_v56 = vadd.f32 %v2666_v1, %v2582_v19  ;;  %v2378_v58 = vpop.f32.mrf.mxu2 }
 0x2e1   : > { %v2485_v53 = vadd.f32 %v2484_v32, %v2374_v37  ;;  %v2379_v0 = vadd.f32 %v2378_v58, %v2279_v11 }
 0x2e2   : > { %v2670_v13 = vpop.f32.mrf.mxu1  ;;  %v2708_v20 = vadd.f32 %v2667_v56, %v5798_v26  ;;  %v2490_v26 = vpop.f32.mrf.mxu3 }
 0x2e3   : > { %v2585_v34 = vpop.f32.mrf.mxu0  ;;  %v2491_v10 = vadd.f32 %v2490_v26, %v2379_v0 }
 0x2e4   : > { %v2586_v59 = vadd.f32 %v2585_v34, %v2479_v5  ;;  %v6072_v23 = vadd.f32 %v5995_v28, %v2708_v20 }
 0x2e6   : > { %v2671_v29 = vadd.f32 %v2670_v13, %v2586_v59 }
 0x2e8   : > { %v2383_v22 = vpop.f32.mrf.mxu2 }
 0x2ea   : > { %v2674_v42 = vpop.f32.mrf.mxu1 }
 0x2eb   : > { %v2589_v16 = vpop.f32.mrf.mxu0 }
 0x2ec   : > { %v2590_v62 = vadd.f32 %v2589_v16, %v2485_v53 }
 0x2ee   : > { %v2675_v40 = vadd.f32 %v2674_v42, %v2590_v62  ;;  %v2291_v62 = vadd.f32 %v5970_v12, %v5972_v60 }
 0x2f0   : > { %v2388_v59 = vpop.f32.mrf.mxu2 }
 0x2f2   : > { %v2678_v48 = vpop.f32.mrf.mxu1 }
 0x320   : > { %v2742_v47 = vpop.xlane.xlu0 %2741 }
 0x321   : > { %v2795_v18 = vmul.f32 %v6053_v17, %v2742_v47 }
 0x323   : > { %v6057_v8 = vsub.f32 %v6001_v30, %v2795_v18  ;;  %v1884_v30 = vadd.f32 %v5884_v14, %v5805_v54  ;;  %v2593_v14 = vpop.f32.mrf.mxu0  ;;  %v2283_v18 = vadd.f32 %v5950_v31, %v5954_v24 }
 0x324   : > { %v2594_v56 = vadd.f32 %v2593_v14, %v2491_v10 }
 0x325   : > { %v2827_v38 = vmul.f32 %v6057_v8, %v6057_v8  ;;  %v1969_v1 = vadd.f32 %v5888_v61, %v1884_v30  ;;  %v1888_v61 = vadd.f32 %v5894_v57, %v5814_v41  ;;  %v2496_v57 = vpop.f32.mrf.mxu3  ;;  %v2287_v30 = vadd.f32 %v5960_v4, %v5962_v21 }
 0x326   : > { %v2679_v24 = vadd.f32 %v2678_v48, %v2594_v56 }
 0x327   : > { %v2843_v39 = vsel %vm2739_vm1, %v2827_v38, 0.0  ;;  %v2709_v35 = vadd.f32 %v2671_v29, %v1969_v1  ;;  %v1973_v47 = vadd.f32 %v5900_v27, %v1888_v61  ;;  %v1892_v27 = vadd.f32 %v5906_v2, %v5823_v9 }
 0x328   : > { %2844 = vadd.xlane.f32.xlu0 %v2843_v39  ;;  %v2745_v7 = vpop.xlane.xlu0 %2744  ;;  %v2384_v38 = vadd.f32 %v2383_v22, %v2283_v18  ;;  %v2682_v39 = vpop.f32.mrf.mxu1  ;;  %v2389_v1 = vadd.f32 %v2388_v59, %v2287_v30  ;;  %v7148_v30 = vld [vmem:[#allocation10_spill] sm:$0xff] }
 0x329   : > { %v2796_v6 = vmul.f32 %v6053_v17, %v2745_v7  ;;  %v6089_v19 = vadd.f32 %v5995_v28, %v2709_v35  ;;  %v2710_v32 = vadd.f32 %v2675_v40, %v1973_v47  ;;  %v1977_v42 = vadd.f32 %v5912_v51, %v1892_v27 }
 0x32a   : > { %v2497_v7 = vadd.f32 %v2496_v57, %v2384_v38  ;;  %v1896_v51 = vadd.f32 %v5918_v52, %v5832_v36  ;;  %v2393_v52 = vpop.f32.mrf.mxu2  ;;  %v7146_v38 = vld [vmem:[#allocation4_spill] sm:$0xff] }
 0x32b   : > { %v6069_v25 = vsub.f32 %v6009_v3, %v2796_v6  ;;  %v2761_v3 = vsel %vm2739_vm1, %v6072_v23, 0.0  ;;  %v2597_v5 = vpop.f32.mrf.mxu0  ;;  %v6106_v20 = vadd.f32 %v5995_v28, %v2710_v32  ;;  %v2711_v2 = vadd.f32 %v2679_v24, %v1977_v42 }
 0x32c   : > { %v2598_v37 = vadd.f32 %v2597_v5, %v2497_v7  ;;  %v1981_v14 = vadd.f32 %v5922_v55, %v1896_v51  ;;  %v7143_v55 = vld [vmem:[#allocation3_spill] sm:$0xff]  ;;  %v2394_v48 = vadd.f32 %v2393_v52, %v2291_v62 }
 0x32d   : > { %v2828_v54 = vmul.f32 %v6069_v25, %v6069_v25  ;;  %v2502_v29 = vpop.f32.mrf.mxu3 }
 0x32e   : > { %v2683_v53 = vadd.f32 %v2682_v39, %v2598_v37  ;;  %v2503_v35 = vadd.f32 %v2502_v29, %v2389_v1  ;;  %v3159_v1 = vld [vmem:[%s7084_s9 + $0x30] sm:$0xff] }
 0x32f   : > { %v2846_v34 = vsel %vm2739_vm1, %v2828_v54, 0.0  ;;  %v6123_v54 = vadd.f32 %v5995_v28, %v2711_v2 }
 0x330   : > { %v2748_v50 = vpop.xlane.xlu1 %2747  ;;  %2762 = vadd.xlane.f32.xlu0 %v2761_v3  ;;  %2847 = vadd.xlane.f32.xlu2 %v2846_v34  ;;  %v2686_v3 = vpop.f32.mrf.mxu1  ;;  %v2712_v34 = vadd.f32 %v2683_v53, %v1981_v14  ;;  %v3158_v53 = vld [vmem:[%s7084_s9 + $0x28] sm:$0xff] }
 0x331   : > { %v2797_v46 = vmul.f32 %v6053_v17, %v2748_v50  ;;  %v6191_v62 = vand.u32 4294901760, %v3158_v53 }
 0x332   : > { %v6140_v10 = vadd.f32 %v5995_v28, %v2712_v34 }
 0x333   : > { %v6086_v13 = vsub.f32 %v6017_v33, %v2797_v46  ;;  %v2764_v33 = vsel %vm2739_vm1, %v6089_v19, 0.0  ;;  %v2601_v21 = vpop.f32.mrf.mxu0  ;;  %v7144_v46 = vld [vmem:[#allocation7_spill] sm:$0xff]  ;;  %v6203_v34 = vsub.f32 %v3158_v53, %v6191_v62 }
 0x334   : > { %v2602_v50 = vadd.f32 %v2601_v21, %v2503_v35  ;;  %v1900_v22 = vadd.f32 %v7144_v46, %v7143_v55  ;;  %v6179_v21 = vand.u32 4294901760, %v3159_v1 }
 0x335   : > { %v2829_v41 = vmul.f32 %v6086_v13, %v6086_v13  ;;  %v2508_v12 = vpop.f32.mrf.mxu3  ;;  %v3388_v55 = vand.u32 4294901760, %v6203_v34 }
 0x336   : > { %v2687_v40 = vadd.f32 %v2686_v3, %v2602_v50  ;;  %v2509_v32 = vadd.f32 %v2508_v12, %v2394_v48  ;;  %v6188_v35 = vsub.f32 %v3159_v1, %v6179_v21  ;;  %v3155_v48 = vld [vmem:[%s7084_s9 + $0x10] sm:$0xff] }
 0x337   : > { %v2849_v16 = vsel %vm2739_vm1, %v2829_v41, 0.0  ;;  %v7145_v41 = vld [vmem:[#allocation8_spill] sm:$0xff]  ;;  %v3389_v12 = vsub.f32 %v6203_v34, %v3388_v55 }
 0x338   : > { %2850 = vadd.xlane.f32.xlu1 %v2849_v16  ;;  %v2751_v45 = vpop.xlane.xlu1 %2750  ;;  %2765 = vadd.xlane.f32.xlu2 %v2764_v33  ;;  %v1985_v57 = vadd.f32 %v7145_v41, %v1900_v22  ;;  %v2690_v27 = vpop.f32.mrf.mxu1  ;;  %v3382_v3 = vand.u32 4294901760, %v6188_v35 }
 0x339   : > { %v2798_v31 = vmul.f32 %v6053_v17, %v2751_v45  ;;  %v2773_v45 = vsel %vm2739_vm1, %v6140_v10, 0.0 }
 0x33a   : > { %v2713_v16 = vadd.f32 %v2687_v40, %v1985_v57  ;;  %v3154_v57 = vld [vmem:[%s7084_s9 + $0x8] sm:$0xff] }
 0x33b   : > { %v6103_v58 = vsub.f32 %v6025_v63, %v2798_v31  ;;  %v2767_v63 = vsel %vm2739_vm1, %v6106_v20, 0.0  ;;  %v2605_v18 = vpop.f32.mrf.mxu0  ;;  %v7147_v31 = vld [vmem:[#allocation9_spill] sm:$0xff] }
 0x33c   : > { %v2606_v33 = vadd.f32 %v2605_v18, %v2509_v32  ;;  %v1904_v24 = vadd.f32 %v7147_v31, %v7146_v38  ;;  %v6155_v7 = vadd.f32 %v5995_v28, %v2713_v16  ;;  %v6231_v18 = vand.u32 4294901760, %v3155_v48 }
 0x33d   : > { %v2830_v9 = vmul.f32 %v6103_v58, %v6103_v58  ;;  %v3390_v32 = vand.u32 4294901760, %v3389_v12 }
 0x33e   : > { %v2691_v39 = vadd.f32 %v2690_v27, %v2606_v33  ;;  %v3405_v16 = vsub.f32 %v3155_v48, %v6231_v18  ;;  %v6241_v33 = vand.u32 4294901760, %v3154_v57 }
 0x33f   : > { %v2852_v6 = vsel %vm2739_vm1, %v2830_v9, 0.0  ;;  %v1989_v9 = vadd.f32 %v7148_v30, %v1904_v24 }
 0x340   : > { %v2754_v26 = vpop.xlane.xlu2 %2753  ;;  %2768 = vadd.xlane.f32.xlu1 %v2767_v63  ;;  %2853 = vadd.xlane.f32.xlu0 %v2852_v6  ;;  %v2776_v63 = vsel %vm2739_vm1, %v6155_v7, 0.0  ;;  %v3411_v38 = vsub.f32 %v3154_v57, %v6241_v33  ;;  %v2694_v12 = vpop.f32.mrf.mxu1 }
 0x341   : > { %v2799_v4 = vmul.f32 %v6053_v17, %v2754_v26  ;;  %v2714_v37 = vadd.f32 %v2691_v39, %v1989_v9  ;;  %v3160_v26 = vld [vmem:[%s7084_s9 + $0x38] sm:$0xff] }
 0x342   : > { %v6171_v51 = vand.u32 4294901760, %v3160_v26  ;;  %v3412_v39 = vand.u32 4294901760, %v3411_v38 }
 0x343   : > { %v6120_v11 = vsub.f32 %v6033_v44, %v2799_v4  ;;  %v2770_v44 = vsel %vm2739_vm1, %v6123_v54, 0.0  ;;  %v6164_v29 = vadd.f32 %v5995_v28, %v2714_v37 }
 0x344   : > { %v6177_v4 = vsub.f32 %v3160_v26, %v6171_v51  ;;  %3609 = vmatpush.msrb.mxu1 %v6171_v51  ;;  %3222 = vmatpush.msra.mxu2 %v6171_v51  ;;  %v3413_v37 = vsub.f32 %v3411_v38, %v3412_v39  ;;  %v7150_v26 = vld [vmem:[#allocation15_spill] sm:$0xff] }
 0x345   : > { %v2831_v36 = vmul.f32 %v6120_v11, %v6120_v11 }
 0x346   : > { %v3376_v14 = vand.u32 4294901760, %v6177_v4  ;;  %3497 = vmatpush.msrb.mxu0 %v6177_v4  ;;  %3611 = vmatpush.msrb.mxu1 %v6179_v21  ;;  %v3414_v53 = vand.u32 4294901760, %v3413_v37 }
 0x347   : > { %v2855_v61 = vsel %vm2739_vm1, %v2831_v36, 0.0  ;;  %v3157_v36 = vld [vmem:[%s7084_s9 + $0x20] sm:$0xff]  ;;  %3224 = vmatpush.msra.mxu2 %v6179_v21 }
 0x348   : > { %v2757_v0 = vpop.xlane.xlu2 %2756  ;;  %2771 = vadd.xlane.f32.xlu0 %v2770_v44  ;;  %2856 = vadd.xlane.f32.xlu2 %v2855_v61  ;;  %v3377_v52 = vsub.f32 %v6177_v4, %v3376_v14  ;;  %v6206_v50 = vand.u32 4294901760, %v3157_v36  ;;  %v3156_v44 = vld [vmem:[%s7084_s9 + $0x18] sm:$0xff] }
 0x349   : > { %v2800_v60 = vmul.f32 %v6053_v17, %v2757_v0  ;;  %3500 = vmatpush.msrb.mxu0 %v6188_v35  ;;  %3613 = vmatpush.msrb.mxu1 %v6191_v62  ;;  %v3383_v0 = vsub.f32 %v6188_v35, %v3382_v3  ;;  %v6222_v22 = vand.u32 4294901760, %v3156_v44 }
 0x34a   : > { %3226 = vmatpush.msra.mxu2 %v6191_v62  ;;  %v3378_v61 = vand.u32 4294901760, %v3377_v52  ;;  %v6218_v46 = vsub.f32 %v3157_v36, %v6206_v50 }
 0x34b   : > { %v6137_v47 = vsub.f32 %v6039_v15, %v2800_v60  ;;  %3503 = vmatpush.msrb.mxu0 %v6203_v34  ;;  %3615 = vmatpush.msrb.mxu1 %v6206_v50  ;;  %v3384_v60 = vand.u32 4294901760, %v3383_v0  ;;  %v3399_v41 = vsub.f32 %v3156_v44, %v6222_v22  ;;  %v2514_v34 = vpop.f32.mrf.mxu3 }
 0x34c   : > { %3228 = vmatpush.msra.mxu2 %v6206_v50  ;;  %3379 = vmatpush.msra.mxu3 %v3378_v61  ;;  %v3394_v40 = vand.u32 4294901760, %v6218_v46 }
 0x34d   : > { %v2832_v56 = vmul.f32 %v6137_v47, %v6137_v47  ;;  %3506 = vmatpush.msrb.mxu0 %v6218_v46  ;;  %3617 = vmatpush.msrb.mxu1 %v6222_v22 }
 0x34e   : > { %3230 = vmatpush.msra.mxu2 %v6222_v22  ;;  %3385 = vmatpush.msra.mxu3 %v3384_v60 }
 0x34f   : > { %v2858_v5 = vsel %vm2739_vm1, %v2832_v56, 0.0  ;;  %v3395_v56 = vsub.f32 %v6218_v46, %v3394_v40  ;;  %3509 = vmatpush.msrb.mxu0 %v3399_v41  ;;  %3619 = vmatpush.msrb.mxu1 %v6231_v18  ;;  %v2609_v46 = vpop.f32.mrf.mxu0 }
 0x350   : > { %2859 = vadd.xlane.f32.xlu1 %v2858_v5  ;;  %v2760_v15 = vpop.xlane.xlu1 %2759  ;;  %2774 = vadd.xlane.f32.xlu2 %v2773_v45  ;;  %v3400_v5 = vand.u32 4294901760, %v3399_v41  ;;  %v3153_v45 = vld [vmem:[%s7084_s9] sm:$0xff] }
 0x351   : > { %v2801_v59 = vmul.f32 %v6053_v17, %v2760_v15  ;;  %3391 = vmatpush.msra.mxu3 %v3390_v32  ;;  %v3396_v27 = vand.u32 4294901760, %v3395_v56  ;;  %v3406_v15 = vand.u32 4294901760, %v3405_v16  ;;  %v6248_v31 = vand.u32 4294901760, %v3153_v45  ;;  %3232 = vmatpush.msra.mxu2 %v6231_v18 }
 0x352   : > { %v3401_v24 = vsub.f32 %v3399_v41, %v3400_v5  ;;  %3512 = vmatpush.msrb.mxu0 %v3405_v16  ;;  %3621 = vmatpush.msrb.mxu1 %v6241_v33  ;;  %v7153_v41 = vld [vmem:[#allocation11_spill] sm:$0xff] }
 0x353   : > { %v6152_v42 = vsub.f32 %v6045_v49, %v2801_v59  ;;  %v2779_v49 = vsel %vm2739_vm1, %v6164_v29, 0.0  ;;  %3397 = vmatpush.msra.mxu3 %v3396_v27  ;;  %v3407_v59 = vsub.f32 %v3405_v16, %v3406_v15  ;;  %v3417_v30 = vsub.f32 %v3153_v45, %v6248_v31  ;;  %3234 = vmatpush.msra.mxu2 %v6241_v33 }
 0x354   : > { %v3402_v9 = vand.u32 4294901760, %v3401_v24  ;;  %3515 = vmatpush.msrb.mxu0 %v3411_v38  ;;  %3623 = vmatpush.msrb.mxu1 %v6248_v31  ;;  %v7154_v38 = vld [vmem:[#allocation12_spill] sm:$0xff] }
 0x355   : > { %v2833_v2 = vmul.f32 %v6152_v42, %v6152_v42  ;;  %3236 = vmatpush.msra.mxu2 %v6248_v31 }
 0x356   : > { %3403 = vmatpush.msra.mxu3 %v3402_v9  ;;  %3518 = vmatpush.msrb.mxu0 %v3417_v30 }
 0x357   : > { %v2861_v6 = vsel %vm2739_vm1, %v2833_v2, 0.0  ;;  %v3408_v2 = vand.u32 4294901760, %v3407_v59  ;;  %3732 = vmatpush.msrb.mxu2 %v3376_v14  ;;  %v7151_v14 = vld [vmem:[#allocation17_spill] sm:$0xff]  ;;  %v2613_v27 = vpop.f32.mrf.mxu0 }
 0x358   : > { %2777 = vadd.xlane.f32.xlu1 %v2776_v63  ;;  %2862 = vadd.xlane.f32.xlu0 %v2861_v6  ;;  %v3418_v63 = vand.u32 4294901760, %v3417_v30  ;;  %v2398_v6 = vpop.f32.mrf.mxu2  ;;  %v2299_v60 = vadd.f32 %v7151_v14, %v5986_v43 }
 0x359   : > { %3409 = vmatpush.msra.mxu3 %v3408_v2  ;;  %3736 = vmatpush.msrb.mxu2 %v3382_v3 }
 0x35a   : > { %v3419_v36 = vsub.f32 %v3417_v30, %v3418_v63 }
 0x35b   : > { %3415 = vmatpush.msra.mxu3 %v3414_v53  ;;  %3740 = vmatpush.msrb.mxu2 %v3388_v55  ;;  %v7152_v55 = vld [vmem:[#allocation5_spill] sm:$0xff] }
 0x35c   : > { %v3420_v52 = vand.u32 4294901760, %v3419_v36  ;;  %v1908_v57 = vadd.f32 %v7153_v41, %v7152_v55 }
 0x35d   : > { %3744 = vmatpush.msrb.mxu2 %v3394_v40 }
 0x35e   : > { %3421 = vmatpush.msra.mxu3 %v3420_v52  ;;  %v1993_v24 = vadd.f32 %v7154_v38, %v1908_v57 }
 0x35f   : > { %3748 = vmatpush.msrb.mxu2 %v3400_v5 }
 0x360   : > { %2780 = vadd.xlane.f32.xlu0 %v2779_v49  ;;  %v7149_v49 = vld [vmem:[#allocation16_spill] sm:$0xff]  ;;  %3835 = vmatpush.msrb.mxu3 %v6171_v51  ;;  %v2403_v35 = vpop.f32.mrf.mxu2 }
 0x361   : > { %v2295_v1 = vadd.f32 %v7150_v26, %v7149_v49  ;;  %3752 = vmatpush.msrb.mxu2 %v3406_v15  ;;  %v2404_v40 = vadd.f32 %v2403_v35, %v2299_v60  ;;  %v7156_v49 = vld [vmem:[#allocation13_spill] sm:$0xff] }
 0x362   : > { %3837 = vmatpush.msrb.mxu3 %v6179_v21  ;;  %v2520_v21 = vpop.f32.mrf.mxu3 }
 0x363   : > { %v2399_v61 = vadd.f32 %v2398_v6, %v2295_v1  ;;  %3756 = vmatpush.msrb.mxu2 %v3412_v39  ;;  %v2521_v59 = vadd.f32 %v2520_v21, %v2404_v40  ;;  %v7155_v6 = vld [vmem:[#allocation6_spill] sm:$0xff] }
 0x364   : > { %3839 = vmatpush.msrb.mxu3 %v6191_v62  ;;  %v1912_v26 = vadd.f32 %v7156_v49, %v7155_v6 }
 0x365   : > { %v2515_v4 = vadd.f32 %v2514_v34, %v2399_v61  ;;  %3760 = vmatpush.msrb.mxu2 %v3418_v63  ;;  %v2614_v9 = vadd.f32 %v2613_v27, %v2521_v59 }
 0x366   : > { %3841 = vmatpush.msrb.mxu3 %v6206_v50 }
 0x367   : > { %v2610_v3 = vadd.f32 %v2609_v46, %v2515_v4  ;;  %v7157_v46 = vld [vmem:[#allocation14_spill] sm:$0xff] }
 0x368   : > { %3843 = vmatpush.msrb.mxu3 %v6222_v22  ;;  %v1997_v4 = vadd.f32 %v7157_v46, %v1912_v26 }
 0x369   : > { %v2695_v5 = vadd.f32 %v2694_v12, %v2610_v3 }
 0x36a   : > { %3845 = vmatpush.msrb.mxu3 %v6231_v18 }
 0x36b   : > { %v2715_v30 = vadd.f32 %v2695_v5, %v1993_v24 }
 0x36c   : > { %3847 = vmatpush.msrb.mxu3 %v6241_v33 }
 0x36e   : > { %3849 = vmatpush.msrb.mxu3 %v6248_v31  ;;  %v6304_v31 = vld [vmem:[%s7082_s7] ss:$0 sm:$0xff] }
 0x39b   : > { %v2845_v44 = vpop.xlane.xlu0 %2844 }
 0x39c   : > { %v2891_v0 = vmul.f32 %v2845_v44, %v6053_v17  ;;  %v6297_v44 = vadd.f32 %v5995_v28, %v2715_v30 }
 0x39e   : > { %v2907_v48 = vadd.f32 1e-05, %v2891_v0  ;;  %v2782_v55 = vsel %vm2739_vm1, %v6297_v44, 0.0 }
 0x3a0   : > { %4791 = vrsqrt.f32 %v2907_v48  ;;  %vm2929_vm4 = vweird.f32 %v2907_v48 }
 0x3a3   : > { %v2848_v32 = vpop.xlane.xlu2 %2847  ;;  %v2763_v51 = vpop.xlane.xlu0 %2762 }
 0x3a4   : > { %v2892_v56 = vmul.f32 %v2848_v32, %v6053_v17  ;;  %v2802_v43 = vmul.f32 %v6053_v17, %v2763_v51 }
 0x3a6   : > { %v4792_v16 = vpop.eup %4791  ;;  %v6273_v45 = vadd.f32 1e-05, %v2892_v56  ;;  %v6276_v62 = vsub.f32 %v6072_v23, %v2802_v43  ;;  %v2698_v23 = vpop.f32.mrf.mxu1 }
 0x3a7   : > { %v2924_v15 = vmul.f32 %v4792_v16, %v2907_v48  ;;  %vm2930_vm3 = vweird.f32 %v4792_v16  ;;  %v2699_v52 = vadd.f32 %v2698_v23, %v2614_v9  ;;  %v6312_v48 = vld [vmem:[%s7083_s8] ss:$0 sm:$0xff] }
 0x3a8   : > { %4793 = vrsqrt.f32 %v6273_v45  ;;  %v2834_v50 = vmul.f32 %v6276_v62, %v6276_v62  ;;  %vm2931_vm5 = vmor %vm2929_vm4, %vm2930_vm3  ;;  %vm2939_vm7 = vweird.f32 %v6273_v45 }
 0x3a9   : > { %v2925_v39 = vmul.f32 %v4792_v16, %v2924_v15  ;;  %v2716_v12 = vadd.f32 %v2699_v52, %v1997_v4 }
 0x3aa   : > { %v2864_v2 = vsel %vm2739_vm1, %v2834_v50, 0.0 }
 0x3ab   : > { %v2926_v22 = vmul.f32 0.5, %v2925_v39  ;;  %v2851_v37 = vpop.xlane.xlu1 %2850  ;;  %v2766_v63 = vpop.xlane.xlu2 %2765  ;;  %2865 = vadd.xlane.f32.xlu2 %v2864_v2  ;;  %v6328_v27 = vadd.f32 %v5995_v28, %v2716_v12 }
 0x3ac   : > { %v2893_v1 = vmul.f32 %v2851_v37, %v6053_v17  ;;  %v2803_v53 = vmul.f32 %v6053_v17, %v2766_v63 }
 0x3ad   : > { %v2927_v18 = vsub.f32 1.5, %v2926_v22  ;;  %v2785_v28 = vsel %vm2739_vm1, %v6328_v27, 0.0 }
 0x3ae   : > { %v4794_v36 = vpop.eup %4793  ;;  %v6291_v34 = vadd.f32 1e-05, %v2893_v1  ;;  %v6294_v33 = vsub.f32 %v6089_v19, %v2803_v53 }
 0x3af   : > { %v2928_v61 = vmul.f32 %v4792_v16, %v2927_v18  ;;  %v2934_v0 = vmul.f32 %v4794_v36, %v6273_v45  ;;  %vm2940_vm6 = vweird.f32 %v4794_v36 }
 0x3b0   : > { %4795 = vrsqrt.f32 %v6291_v34  ;;  %v2835_v19 = vmul.f32 %v6294_v33, %v6294_v33  ;;  %vm2941_vm8 = vmor %vm2939_vm7, %vm2940_vm6  ;;  %vm2949_vm10 = vweird.f32 %v6291_v34 }
 0x3b1   : > { %v2932_v14 = vsel %vm2931_vm5, %v4792_v16, %v2928_v61  ;;  %v2935_v60 = vmul.f32 %v4794_v36, %v2934_v0 }
 0x3b2   : > { %v3083_v35 = vmul.f32 %v2932_v14, %v6057_v8  ;;  %v2867_v3 = vsel %vm2739_vm1, %v2835_v19, 0.0 }
 0x3b3   : > { %v2936_v41 = vmul.f32 0.5, %v2935_v60  ;;  %v2769_v57 = vpop.xlane.xlu1 %2768  ;;  %2868 = vadd.xlane.f32.xlu1 %v2867_v3  ;;  %2783 = vadd.xlane.f32.xlu2 %v2782_v55  ;;  %v2854_v32 = vpop.xlane.xlu0 %2853 }
 0x3b4   : > { %v3102_v51 = vmul.f32 %v6304_v31, %v3083_v35  ;;  %v2804_v40 = vmul.f32 %v6053_v17, %v2769_v57  ;;  %v2894_v56 = vmul.f32 %v2854_v32, %v6053_v17 }
 0x3b5   : > { %v2937_v43 = vsub.f32 1.5, %v2936_v41 }
 0x3b6   : > { %v4796_v21 = vpop.eup %4795  ;;  %v3121_v8 = vadd.f32 %v6312_v48, %v3102_v51  ;;  %v6323_v16 = vsub.f32 %v6106_v20, %v2804_v40  ;;  %v6325_v5 = vadd.f32 1e-05, %v2894_v56 }
 0x3b7   : > { %v2938_v15 = vmul.f32 %v4794_v36, %v2937_v43  ;;  %v2944_v38 = vmul.f32 %v4796_v21, %v6291_v34  ;;  %vm2950_vm9 = vweird.f32 %v4796_v21 }
 0x3b8   : > { %v3137_v24 = vmax.f32 %v3121_v8, 0.0  ;;  %4797 = vrsqrt.f32 %v6325_v5  ;;  %v2836_v59 = vmul.f32 %v6323_v16, %v6323_v16  ;;  %vm2951_vm11 = vmor %vm2949_vm10, %vm2950_vm9  ;;  %vm2959_vm13 = vweird.f32 %v6325_v5 }
 0x3b9   : > { %v2942_v50 = vsel %vm2941_vm8, %v4794_v36, %v2938_v15  ;;  %v2945_v20 = vmul.f32 %v4796_v21, %v2944_v38 }
 0x3ba   : > { %v3084_v39 = vmul.f32 %v2942_v50, %v6069_v25  ;;  %v2870_v30 = vsel %vm2739_vm1, %v2836_v59, 0.0  ;;  %v3166_v45 = vsel %vm2739_vm1, %v3137_v24, 0 }
 0x3bb   : > { %v2946_v9 = vmul.f32 0.5, %v2945_v20  ;;  %2871 = vadd.xlane.f32.xlu0 %v2870_v30  ;;  %2786 = vadd.xlane.f32.xlu1 %v2785_v28  ;;  %v2857_v23 = vpop.xlane.xlu2 %2856  ;;  %v2772_v2 = vpop.xlane.xlu0 %2771  ;;  %v6340_v22 = vand.u32 4294901760, %v3166_v45 }
 0x3bc   : > { %v3103_v37 = vmul.f32 %v6304_v31, %v3084_v39  ;;  %v2895_v63 = vmul.f32 %v2857_v23, %v6053_v17  ;;  %v2805_v25 = vmul.f32 %v6053_v17, %v2772_v2 }
 0x3bd   : > { %v2947_v6 = vsub.f32 1.5, %v2946_v9  ;;  %3423 = vmatmul.f32.vlgmr.msra.gmra.mxu3 %v6340_v22  ;;  %v3238_v49 = vsub.f32 %v3166_v45, %v6340_v22 }
 0x3be   : > { %v4798_v26 = vpop.eup %4797  ;;  %v6347_v1 = vadd.f32 1e-05, %v2895_v63  ;;  %v6350_v53 = vsub.f32 %v6123_v54, %v2805_v25  ;;  %v3122_v18 = vadd.f32 %v6312_v48, %v3103_v37 }
 0x3bf   : > { %v2948_v36 = vmul.f32 %v4796_v21, %v2947_v6  ;;  %v2954_v52 = vmul.f32 %v4798_v26, %v6325_v5  ;;  %3521 = vmatmul.f32.vlgmr.msrb.gmra.mxu0 %v3238_v49  ;;  %v3239_v61 = vand.u32 4294901760, %v3238_v49  ;;  %vm2960_vm12 = vweird.f32 %v4798_v26 }
 0x3c0   : > { %4799 = vrsqrt.f32 %v6347_v1  ;;  %v2837_v0 = vmul.f32 %v6350_v53, %v6350_v53  ;;  %v3138_v46 = vmax.f32 %v3122_v18, 0.0  ;;  %vm2961_vm14 = vmor %vm2959_vm13, %vm2960_vm12  ;;  %vm2969_vm2 = vweird.f32 %v6347_v1 }
 0x3c1   : > { %v2952_v4 = vsel %vm2951_vm11, %v4796_v21, %v2948_v36  ;;  %v2955_v19 = vmul.f32 %v4798_v26, %v2954_v52  ;;  %3627 = vmatmul.f32.vlgmr.msrb.gmra.mxu1 %v3239_v61  ;;  %v3240_v54 = vsub.f32 %v3238_v49, %v3239_v61 }
 0x3c2   : > { %v3085_v14 = vmul.f32 %v2952_v4, %v6086_v13  ;;  %v2873_v60 = vsel %vm2739_vm1, %v2837_v0, 0.0  ;;  %v3169_v34 = vsel %vm2739_vm1, %v3138_v46, 0 }
 0x3c3   : > { %v2956_v12 = vmul.f32 0.5, %v2955_v19  ;;  %v2860_v35 = vpop.xlane.xlu1 %2859  ;;  %v2775_v3 = vpop.xlane.xlu2 %2774  ;;  %2874 = vadd.xlane.f32.xlu2 %v2873_v60  ;;  %v3241_v55 = vand.u32 4294901760, %v3240_v54  ;;  %v6361_v41 = vand.u32 4294901760, %v3169_v34 }
 0x3c4   : > { %v3104_v57 = vmul.f32 %v6304_v31, %v3085_v14  ;;  %v2896_v32 = vmul.f32 %v2860_v35, %v6053_v17  ;;  %v2806_v51 = vmul.f32 %v6053_v17, %v2775_v3 }
 0x3c5   : > { %v2957_v40 = vsub.f32 1.5, %v2956_v12  ;;  %3242 = vmatmul.f32.vlgmr.msra.gmra.mxu2 %v3241_v55  ;;  %3427 = vmatmul.f32.gmra.mxu3 %v6361_v41  ;;  %v3246_v13 = vsub.f32 %v3169_v34, %v6361_v41 }
 0x3c6   : > { %v4800_v56 = vpop.eup %4799  ;;  %v6368_v43 = vadd.f32 1e-05, %v2896_v32  ;;  %v6371_v21 = vsub.f32 %v6140_v10, %v2806_v51  ;;  %v3123_v8 = vadd.f32 %v6312_v48, %v3104_v57 }
 0x3c7   : > { %v2958_v15 = vmul.f32 %v4798_v26, %v2957_v40  ;;  %v2964_v38 = vmul.f32 %v4800_v56, %v6347_v1  ;;  %3526 = vmatmul.f32.gmra.mxu0 %v3246_v13  ;;  %v3247_v24 = vand.u32 4294901760, %v3246_v13  ;;  %vm2970_vm15 = vweird.f32 %v4800_v56 }
 0x3c8   : > { %4801 = vrsqrt.f32 %v6368_v43  ;;  %v2838_v59 = vmul.f32 %v6371_v21, %v6371_v21  ;;  %v3139_v50 = vmax.f32 %v3123_v8, 0.0  ;;  %vm2971_vm3 = vmor %vm2969_vm2, %vm2970_vm15  ;;  %vm2979_vm5 = vweird.f32 %v6368_v43 }
 0x3c9   : > { %v2962_v20 = vsel %vm2961_vm14, %v4798_v26, %v2958_v15  ;;  %v2965_v39 = vmul.f32 %v4800_v56, %v2964_v38  ;;  %3633 = vmatmul.f32.gmra.mxu1 %v3247_v24  ;;  %v3248_v10 = vsub.f32 %v3246_v13, %v3247_v24 }
 0x3ca   : > { %v3086_v30 = vmul.f32 %v2962_v20, %v6103_v58  ;;  %v2876_v28 = vsel %vm2739_vm1, %v2838_v59, 0.0  ;;  %v3172_v5 = vsel %vm2739_vm1, %v3139_v50, 0 }
 0x3cb   : > { %v2966_v45 = vmul.f32 0.5, %v2965_v39  ;;  %v2778_v9 = vpop.xlane.xlu1 %2777  ;;  %2877 = vadd.xlane.f32.xlu0 %v2876_v28  ;;  %v2863_v23 = vpop.xlane.xlu0 %2862  ;;  %v3249_v2 = vand.u32 4294901760, %v3248_v10  ;;  %v6382_v37 = vand.u32 4294901760, %v3172_v5 }
 0x3cc   : > { %v3105_v63 = vmul.f32 %v6304_v31, %v3086_v30  ;;  %v2807_v25 = vmul.f32 %v6053_v17, %v2778_v9  ;;  %v2897_v6 = vmul.f32 %v2863_v23, %v6053_v17 }
 0x3cd   : > { %v2967_v49 = vsub.f32 1.5, %v2966_v45  ;;  %3250 = vmatmul.f32.gmra.mxu2 %v3249_v2  ;;  %3431 = vmatmul.f32.gmra.mxu3 %v6382_v37  ;;  %v3254_v58 = vsub.f32 %v3172_v5, %v6382_v37 }
 0x3ce   : > { %v4802_v26 = vpop.eup %4801  ;;  %v6390_v18 = vsub.f32 %v6155_v7, %v2807_v25  ;;  %v6392_v36 = vadd.f32 1e-05, %v2897_v6  ;;  %v3124_v52 = vadd.f32 %v6312_v48, %v3105_v63 }
 0x3cf   : > { %v2968_v61 = vmul.f32 %v4800_v56, %v2967_v49  ;;  %v2974_v0 = vmul.f32 %v4802_v26, %v6368_v43  ;;  %3531 = vmatmul.f32.gmra.mxu0 %v3254_v58  ;;  %v3255_v46 = vand.u32 4294901760, %v3254_v58  ;;  %vm2980_vm4 = vweird.f32 %v4802_v26 }
 0x3d0   : > { %4803 = vrsqrt.f32 %v6392_v36  ;;  %v2839_v4 = vmul.f32 %v6390_v18, %v6390_v18  ;;  %v3140_v19 = vmax.f32 %v3124_v52, 0.0  ;;  %vm2981_vm6 = vmor %vm2979_vm5, %vm2980_vm4  ;;  %vm2989_vm8 = vweird.f32 %v6392_v36 }
 0x3d1   : > { %v2972_v7 = vsel %vm2971_vm3, %v4800_v56, %v2968_v61  ;;  %v2975_v54 = vmul.f32 %v4802_v26, %v2974_v0  ;;  %3639 = vmatmul.f32.gmra.mxu1 %v3255_v46  ;;  %v3256_v14 = vsub.f32 %v3254_v58, %v3255_v46 }
 0x3d2   : > { %v3087_v60 = vmul.f32 %v2972_v7, %v6120_v11  ;;  %v2879_v34 = vsel %vm2739_vm1, %v2839_v4, 0.0  ;;  %v3175_v1 = vsel %vm2739_vm1, %v3140_v19, 0 }
 0x3d3   : > { %v2976_v12 = vmul.f32 0.5, %v2975_v54  ;;  %2880 = vadd.xlane.f32.xlu1 %v2879_v34  ;;  %v2781_v35 = vpop.xlane.xlu0 %2780  ;;  %v3257_v3 = vand.u32 4294901760, %v3256_v14  ;;  %v6403_v55 = vand.u32 4294901760, %v3175_v1 }
 0x3d4   : > { %v3106_v57 = vmul.f32 %v6304_v31, %v3087_v60  ;;  %v2808_v32 = vmul.f32 %v6053_v17, %v2781_v35 }
 0x3d5   : > { %v2977_v51 = vsub.f32 1.5, %v2976_v12  ;;  %3258 = vmatmul.f32.gmra.mxu2 %v3257_v3  ;;  %3435 = vmatmul.f32.gmra.mxu3 %v6403_v55  ;;  %v3262_v11 = vsub.f32 %v3175_v1, %v6403_v55 }
 0x3d6   : > { %v4804_v40 = vpop.eup %4803  ;;  %v6410_v13 = vsub.f32 %v6164_v29, %v2808_v32  ;;  %v3125_v56 = vadd.f32 %v6312_v48, %v3106_v57 }
 0x3d7   : > { %v2978_v8 = vmul.f32 %v4802_v26, %v2977_v51  ;;  %v2984_v15 = vmul.f32 %v4804_v40, %v6392_v36  ;;  %3536 = vmatmul.f32.gmra.mxu0 %v3262_v11  ;;  %v3263_v38 = vand.u32 4294901760, %v3262_v11  ;;  %vm2990_vm7 = vweird.f32 %v4804_v40 }
 0x3d8   : > { %v2840_v24 = vmul.f32 %v6410_v13, %v6410_v13  ;;  %v3141_v59 = vmax.f32 %v3125_v56, 0.0  ;;  %vm2991_vm9 = vmor %vm2989_vm8, %vm2990_vm7 }
 0x3d9   : > { %v2982_v50 = vsel %vm2981_vm6, %v4802_v26, %v2978_v8  ;;  %v2985_v20 = vmul.f32 %v4804_v40, %v2984_v15  ;;  %3645 = vmatmul.f32.gmra.mxu1 %v3263_v38  ;;  %v3264_v39 = vsub.f32 %v3262_v11, %v3263_v38 }
 0x3da   : > { %v3088_v29 = vmul.f32 %v2982_v50, %v6137_v47  ;;  %v2882_v10 = vsel %vm2739_vm1, %v2840_v24, 0.0  ;;  %v3178_v30 = vsel %vm2739_vm1, %v3141_v59, 0 }
 0x3db   : > { %v2986_v43 = vmul.f32 0.5, %v2985_v20  ;;  %2883 = vadd.xlane.f32.xlu2 %v2882_v10  ;;  %v3265_v28 = vand.u32 4294901760, %v3264_v39  ;;  %v6420_v5 = vand.u32 4294901760, %v3178_v30 }
 0x3dc   : > { %v3107_v45 = vmul.f32 %v6304_v31, %v3088_v29 }
 0x3dd   : > { %v2987_v9 = vsub.f32 1.5, %v2986_v43  ;;  %3266 = vmatmul.f32.gmra.mxu2 %v3265_v28  ;;  %3439 = vmatmul.f32.gmra.mxu3 %v6420_v5  ;;  %v3270_v23 = vsub.f32 %v3178_v30, %v6420_v5 }
 0x3de   : > { %v3126_v47 = vadd.f32 %v6312_v48, %v3107_v45 }
 0x3df   : > { %v2988_v2 = vmul.f32 %v4804_v40, %v2987_v9  ;;  %3541 = vmatmul.f32.gmra.mxu0 %v3270_v23  ;;  %v3271_v63 = vand.u32 4294901760, %v3270_v23 }
 0x3e0   : > { %v3142_v25 = vmax.f32 %v3126_v47, 0.0 }
 0x3e1   : > { %v2992_v6 = vsel %vm2991_vm9, %v4804_v40, %v2988_v2  ;;  %3651 = vmatmul.f32.gmra.mxu1 %v3271_v63  ;;  %v3272_v49 = vsub.f32 %v3270_v23, %v3271_v63 }
 0x3e2   : > { %v3089_v58 = vmul.f32 %v2992_v6, %v6152_v42  ;;  %v3181_v26 = vsel %vm2739_vm1, %v3142_v25, 0 }
 0x3e3   : > { %v3273_v52 = vand.u32 4294901760, %v3272_v49  ;;  %v6429_v61 = vand.u32 4294901760, %v3181_v26 }
 0x3e4   : > { %v3108_v0 = vmul.f32 %v6304_v31, %v3089_v58 }
 0x3e5   : > { %3274 = vmatmul.f32.gmra.mxu2 %v3273_v52  ;;  %3443 = vmatmul.f32.gmra.mxu3 %v6429_v61  ;;  %v3278_v36 = vsub.f32 %v3181_v26, %v6429_v61 }
 0x3e6   : > { %v3127_v46 = vadd.f32 %v6312_v48, %v3108_v0 }
 0x3e7   : > { %3546 = vmatmul.f32.gmra.mxu0 %v3278_v36  ;;  %v3279_v4 = vand.u32 4294901760, %v3278_v36 }
 0x3e8   : > { %v3143_v19 = vmax.f32 %v3127_v46, 0.0 }
 0x3e9   : > { %3657 = vmatmul.f32.gmra.mxu1 %v3279_v4  ;;  %v3280_v7 = vsub.f32 %v3278_v36, %v3279_v4 }
 0x3ea   : > { %v3184_v42 = vsel %vm2739_vm1, %v3143_v19, 0 }
 0x3eb   : > { %v3281_v54 = vand.u32 4294901760, %v3280_v7  ;;  %v6436_v14 = vand.u32 4294901760, %v3184_v42 }
 0x3ed   : > { %3282 = vmatmul.f32.gmra.mxu2 %v3281_v54  ;;  %3447 = vmatmul.f32.gmra.mxu3 %v6436_v14  ;;  %v3286_v60 = vsub.f32 %v3184_v42, %v6436_v14 }
 0x3ef   : > { %3551 = vmatmul.f32.gmra.mxu0 %v3286_v60  ;;  %v3287_v34 = vand.u32 4294901760, %v3286_v60 }
 0x3f1   : > { %3663 = vmatmul.f32.gmra.mxu1 %v3287_v34  ;;  %v3288_v1 = vsub.f32 %v3286_v60, %v3287_v34 }
 0x3f3   : > { %v3289_v12 = vand.u32 4294901760, %v3288_v1 }
 0x3f5   : > { %3290 = vmatmul.f32.gmra.mxu2 %v3289_v12 }
 0x41e   : > { %v2866_v35 = vpop.xlane.xlu2 %2865 }
 0x41f   : > { %v2898_v3 = vmul.f32 %v2866_v35, %v6053_v17 }
 0x421   : > { %v2914_v57 = vadd.f32 1e-05, %v2898_v3 }
 0x423   : > { %4805 = vrsqrt.f32 %v2914_v57  ;;  %vm2999_vm11 = vweird.f32 %v2914_v57 }
 0x426   : > { %v2869_v32 = vpop.xlane.xlu1 %2868  ;;  %v2784_v51 = vpop.xlane.xlu2 %2783 }
 0x427   : > { %v2899_v11 = vmul.f32 %v2869_v32, %v6053_v17  ;;  %v2809_v40 = vmul.f32 %v6053_v17, %v2784_v51 }
 0x429   : > { %v4806_v56 = vpop.eup %4805  ;;  %v2915_v8 = vadd.f32 1e-05, %v2899_v11  ;;  %v6444_v15 = vsub.f32 %v6297_v44, %v2809_v40 }
 0x42a   : > { %v2994_v38 = vmul.f32 %v4806_v56, %v2914_v57  ;;  %vm3000_vm10 = vweird.f32 %v4806_v56 }
 0x42b   : > { %4807 = vrsqrt.f32 %v2915_v8  ;;  %v2841_v24 = vmul.f32 %v6444_v15, %v6444_v15  ;;  %vm3001_vm12 = vmor %vm2999_vm11, %vm3000_vm10  ;;  %vm3009_vm14 = vweird.f32 %v2915_v8 }
 0x42c   : > { %v2995_v59 = vmul.f32 %v4806_v56, %v2994_v38 }
 0x42d   : > { %v2885_v50 = vsel %vm2739_vm1, %v2841_v24, 0.0 }
 0x42e   : > { %v2996_v20 = vmul.f32 0.5, %v2995_v59  ;;  %v2787_v39 = vpop.xlane.xlu1 %2786  ;;  %2886 = vadd.xlane.f32.xlu0 %v2885_v50  ;;  %v2872_v29 = vpop.xlane.xlu0 %2871 }
 0x42f   : > { %v2810_v10 = vmul.f32 %v6053_v17, %v2787_v39  ;;  %v2900_v30 = vmul.f32 %v2872_v29, %v6053_v17 }
 0x430   : > { %v2997_v43 = vsub.f32 1.5, %v2996_v20 }
 0x431   : > { %v4808_v44 = vpop.eup %4807  ;;  %v6452_v28 = vsub.f32 %v6328_v27, %v2810_v10  ;;  %v2916_v45 = vadd.f32 1e-05, %v2900_v30 }
 0x432   : > { %v2998_v9 = vmul.f32 %v4806_v56, %v2997_v43  ;;  %v3004_v23 = vmul.f32 %v4808_v44, %v2915_v8  ;;  %vm3010_vm13 = vweird.f32 %v4808_v44 }
 0x433   : > { %4809 = vrsqrt.f32 %v2916_v45  ;;  %v2842_v47 = vmul.f32 %v6452_v28, %v6452_v28  ;;  %vm3011_vm15 = vmor %vm3009_vm14, %vm3010_vm13  ;;  %vm3019_vm3 = vweird.f32 %v2916_v45 }
 0x434   : > { %v3002_v2 = vsel %vm3001_vm12, %v4806_v56, %v2998_v9  ;;  %v3005_v63 = vmul.f32 %v4808_v44, %v3004_v23 }
 0x435   : > { %v3090_v25 = vmul.f32 %v3002_v2, %v6276_v62  ;;  %v2888_v6 = vsel %vm2739_vm1, %v2842_v47, 0.0 }
 0x436   : > { %v3006_v49 = vmul.f32 0.5, %v3005_v63  ;;  %2889 = vadd.xlane.f32.xlu1 %v2888_v6  ;;  %v2875_v58 = vpop.xlane.xlu2 %2874 }
 0x437   : > { %v3109_v27 = vmul.f32 %v6304_v31, %v3090_v25  ;;  %v2901_v26 = vmul.f32 %v2875_v58, %v6053_v17 }
 0x438   : > { %v3007_v52 = vsub.f32 1.5, %v3006_v49 }
 0x439   : > { %v4810_v0 = vpop.eup %4809  ;;  %v2917_v36 = vadd.f32 1e-05, %v2901_v26  ;;  %v3128_v46 = vadd.f32 %v6312_v48, %v3109_v27 }
 0x43a   : > { %v3008_v4 = vmul.f32 %v4808_v44, %v3007_v52  ;;  %v3014_v19 = vmul.f32 %v4810_v0, %v2916_v45  ;;  %vm3020_vm2 = vweird.f32 %v4810_v0 }
 0x43b   : > { %4811 = vrsqrt.f32 %v2917_v36  ;;  %v3144_v62 = vmax.f32 %v3128_v46, 0.0  ;;  %vm3021_vm4 = vmor %vm3019_vm3, %vm3020_vm2  ;;  %vm3029_vm6 = vweird.f32 %v2917_v36 }
 0x43c   : > { %v3012_v7 = vsel %vm3011_vm15, %v4808_v44, %v3008_v4  ;;  %v3015_v42 = vmul.f32 %v4810_v0, %v3014_v19 }
 0x43d   : > { %v3091_v54 = vmul.f32 %v3012_v7, %v6294_v33  ;;  %v3187_v60 = vsel %vm2739_vm1, %v3144_v62, 0 }
 0x43e   : > { %v3016_v34 = vmul.f32 0.5, %v3015_v42  ;;  %v2878_v1 = vpop.xlane.xlu0 %2877  ;;  %v6463_v12 = vand.u32 4294901760, %v3187_v60 }
 0x43f   : > { %v3110_v35 = vmul.f32 %v6304_v31, %v3091_v54  ;;  %v2902_v3 = vmul.f32 %v2878_v1, %v6053_v17 }
 0x440   : > { %v3017_v57 = vsub.f32 1.5, %v3016_v34  ;;  %3451 = vmatmul.f32.gmra.mxu3 %v6463_v12  ;;  %v3294_v32 = vsub.f32 %v3187_v60, %v6463_v12 }
 0x441   : > { %v4812_v51 = vpop.eup %4811  ;;  %v6469_v11 = vadd.f32 1e-05, %v2902_v3  ;;  %v3129_v33 = vadd.f32 %v6312_v48, %v3110_v35 }
 0x442   : > { %v3018_v40 = vmul.f32 %v4810_v0, %v3017_v57  ;;  %v3024_v56 = vmul.f32 %v4812_v51, %v2917_v36  ;;  %3556 = vmatmul.f32.gmra.mxu0 %v3294_v32  ;;  %v3295_v8 = vand.u32 4294901760, %v3294_v32  ;;  %vm3030_vm5 = vweird.f32 %v4812_v51 }
 0x443   : > { %4813 = vrsqrt.f32 %v6469_v11  ;;  %v3145_v38 = vmax.f32 %v3129_v33, 0.0  ;;  %vm3031_vm7 = vmor %vm3029_vm6, %vm3030_vm5  ;;  %vm3039_vm9 = vweird.f32 %v6469_v11 }
 0x444   : > { %v3022_v24 = vsel %vm3021_vm4, %v4810_v0, %v3018_v40  ;;  %v3025_v59 = vmul.f32 %v4812_v51, %v3024_v56  ;;  %3669 = vmatmul.f32.gmra.mxu1 %v3295_v8  ;;  %v3296_v50 = vsub.f32 %v3294_v32, %v3295_v8 }
 0x445   : > { %v3092_v20 = vmul.f32 %v3022_v24, %v6323_v16  ;;  %v3190_v39 = vsel %vm2739_vm1, %v3145_v38, 0 }
 0x446   : > { %v3026_v29 = vmul.f32 0.5, %v3025_v59  ;;  %v2881_v10 = vpop.xlane.xlu1 %2880  ;;  %v3297_v30 = vand.u32 4294901760, %v3296_v50  ;;  %v6475_v43 = vand.u32 4294901760, %v3190_v39 }
 0x447   : > { %v3111_v44 = vmul.f32 %v6304_v31, %v3092_v20  ;;  %v2903_v45 = vmul.f32 %v2881_v10, %v6053_v17 }
 0x448   : > { %v3027_v9 = vsub.f32 1.5, %v3026_v29  ;;  %3298 = vmatmul.f32.gmra.mxu2 %v3297_v30  ;;  %3455 = vmatmul.f32.gmra.mxu3 %v6475_v43  ;;  %v3302_v23 = vsub.f32 %v3190_v39, %v6475_v43 }
 0x449   : > { %v4814_v47 = vpop.eup %4813  ;;  %v2919_v16 = vadd.f32 1e-05, %v2903_v45  ;;  %v3130_v2 = vadd.f32 %v6312_v48, %v3111_v44 }
 0x44a   : > { %v3028_v63 = vmul.f32 %v4812_v51, %v3027_v9  ;;  %v3034_v25 = vmul.f32 %v4814_v47, %v6469_v11  ;;  %3561 = vmatmul.f32.gmra.mxu0 %v3302_v23  ;;  %v3303_v6 = vand.u32 4294901760, %v3302_v23  ;;  %vm3040_vm8 = vweird.f32 %v4814_v47 }
 0x44b   : > { %4815 = vrsqrt.f32 %v2919_v16  ;;  %v3146_v49 = vmax.f32 %v3130_v2, 0.0  ;;  %vm3041_vm10 = vmor %vm3039_vm9, %vm3040_vm8  ;;  %vm3049_vm12 = vweird.f32 %v2919_v16 }
 0x44c   : > { %v3032_v58 = vsel %vm3031_vm7, %v4812_v51, %v3028_v63  ;;  %v3035_v27 = vmul.f32 %v4814_v47, %v3034_v25  ;;  %3675 = vmatmul.f32.gmra.mxu1 %v3303_v6  ;;  %v3304_v26 = vsub.f32 %v3302_v23, %v3303_v6 }
 0x44d   : > { %v3093_v52 = vmul.f32 %v3032_v58, %v6350_v53  ;;  %v3193_v0 = vsel %vm2739_vm1, %v3146_v49, 0 }
 0x44e   : > { %v3036_v46 = vmul.f32 0.5, %v3035_v27  ;;  %v2884_v4 = vpop.xlane.xlu2 %2883  ;;  %v3305_v19 = vand.u32 4294901760, %v3304_v26  ;;  %v6485_v62 = vand.u32 4294901760, %v3193_v0 }
 0x44f   : > { %v3112_v36 = vmul.f32 %v6304_v31, %v3093_v52  ;;  %v2904_v7 = vmul.f32 %v2884_v4, %v6053_v17 }
 0x450   : > { %v3037_v42 = vsub.f32 1.5, %v3036_v46  ;;  %3306 = vmatmul.f32.gmra.mxu2 %v3305_v19  ;;  %3459 = vmatmul.f32.gmra.mxu3 %v6485_v62  ;;  %v3310_v54 = vsub.f32 %v3193_v0, %v6485_v62 }
 0x451   : > { %v4816_v60 = vpop.eup %4815  ;;  %v2920_v53 = vadd.f32 1e-05, %v2904_v7  ;;  %v3131_v34 = vadd.f32 %v6312_v48, %v3112_v36 }
 0x452   : > { %v3038_v1 = vmul.f32 %v4814_v47, %v3037_v42  ;;  %v3044_v35 = vmul.f32 %v4816_v60, %v2919_v16  ;;  %3566 = vmatmul.f32.gmra.mxu0 %v3310_v54  ;;  %v3311_v3 = vand.u32 4294901760, %v3310_v54  ;;  %vm3050_vm11 = vweird.f32 %v4816_v60 }
 0x453   : > { %4817 = vrsqrt.f32 %v2920_v53  ;;  %v3147_v57 = vmax.f32 %v3131_v34, 0.0  ;;  %vm3051_vm13 = vmor %vm3049_vm12, %vm3050_vm11  ;;  %vm3059_vm15 = vweird.f32 %v2920_v53 }
 0x454   : > { %v3042_v32 = vsel %vm3041_vm10, %v4814_v47, %v3038_v1  ;;  %v3045_v51 = vmul.f32 %v4816_v60, %v3044_v35  ;;  %3681 = vmatmul.f32.gmra.mxu1 %v3311_v3  ;;  %v3312_v33 = vsub.f32 %v3310_v54, %v3311_v3 }
 0x455   : > { %v3094_v40 = vmul.f32 %v3042_v32, %v6371_v21  ;;  %v3196_v56 = vsel %vm2739_vm1, %v3147_v57, 0 }
 0x456   : > { %v3046_v8 = vmul.f32 0.5, %v3045_v51  ;;  %v3313_v38 = vand.u32 4294901760, %v3312_v33  ;;  %v6495_v24 = vand.u32 4294901760, %v3196_v56  ;;  %v6522_v33 = vpop.f32.mrf.mxu3 }
 0x457   : > { %v3113_v11 = vmul.f32 %v6304_v31, %v3094_v40  ;;  %v6524_v40 = vpop.f32.mrf.mxu2 }
 0x458   : > { %v3047_v59 = vsub.f32 1.5, %v3046_v8  ;;  %3314 = vmatmul.f32.gmra.mxu2 %v3313_v38  ;;  %3463 = vmatmul.f32.gmra.mxu3 %v6495_v24  ;;  %v3318_v50 = vsub.f32 %v3196_v56, %v6495_v24 }
 0x459   : > { %v4818_v20 = vpop.eup %4817  ;;  %v3132_v39 = vadd.f32 %v6312_v48, %v3113_v11 }
 0x45a   : > { %v3048_v29 = vmul.f32 %v4816_v60, %v3047_v59  ;;  %v3054_v21 = vmul.f32 %v4818_v20, %v2920_v53  ;;  %3571 = vmatmul.f32.gmra.mxu0 %v3318_v50  ;;  %v3319_v10 = vand.u32 4294901760, %v3318_v50  ;;  %vm3060_vm14 = vweird.f32 %v4818_v20 }
 0x45b   : > { %v3148_v30 = vmax.f32 %v3132_v39, 0.0  ;;  %vm3061_vm2 = vmor %vm3059_vm15, %vm3060_vm14 }
 0x45c   : > { %v3052_v44 = vsel %vm3051_vm13, %v4816_v60, %v3048_v29  ;;  %v3055_v45 = vmul.f32 %v4818_v20, %v3054_v21  ;;  %3687 = vmatmul.f32.gmra.mxu1 %v3319_v10  ;;  %v3320_v9 = vsub.f32 %v3318_v50, %v3319_v10 }
 0x45d   : > { %v3095_v23 = vmul.f32 %v3052_v44, %v6390_v18  ;;  %v3199_v47 = vsel %vm2739_vm1, %v3148_v30, 0 }
 0x45e   : > { %v3056_v2 = vmul.f32 0.5, %v3055_v45  ;;  %v3321_v63 = vand.u32 4294901760, %v3320_v9  ;;  %v6503_v25 = vand.u32 4294901760, %v3199_v47  ;;  %v6526_v56 = vpop.f32.mrf.mxu3 }
 0x45f   : > { %v3114_v6 = vmul.f32 %v6304_v31, %v3095_v23  ;;  %v6528_v8 = vpop.f32.mrf.mxu2 }
 0x460   : > { %v3057_v16 = vsub.f32 1.5, %v3056_v2  ;;  %3322 = vmatmul.f32.gmra.mxu2 %v3321_v63  ;;  %3467 = vmatmul.f32.gmra.mxu3 %v6503_v25  ;;  %v3326_v49 = vsub.f32 %v3199_v47, %v6503_v25 }
 0x461   : > { %v3133_v58 = vadd.f32 %v6312_v48, %v3114_v6 }
 0x462   : > { %v3058_v27 = vmul.f32 %v4818_v20, %v3057_v16  ;;  %3576 = vmatmul.f32.gmra.mxu0 %v3326_v49  ;;  %v3327_v18 = vand.u32 4294901760, %v3326_v49 }
 0x463   : > { %v3149_v26 = vmax.f32 %v3133_v58, 0.0 }
 0x464   : > { %v3062_v52 = vsel %vm3061_vm2, %v4818_v20, %v3058_v27  ;;  %3693 = vmatmul.f32.gmra.mxu1 %v3327_v18  ;;  %v3328_v0 = vsub.f32 %v3326_v49, %v3327_v18 }
 0x465   : > { %v3096_v46 = vmul.f32 %v3062_v52, %v6410_v13  ;;  %v3202_v4 = vsel %vm2739_vm1, %v3149_v26, 0 }
 0x466   : > { %v3329_v19 = vand.u32 4294901760, %v3328_v0  ;;  %v6511_v36 = vand.u32 4294901760, %v3202_v4  ;;  %v6530_v38 = vpop.f32.mrf.mxu3 }
 0x467   : > { %v3115_v7 = vmul.f32 %v6304_v31, %v3096_v46  ;;  %v6532_v11 = vpop.f32.mrf.mxu2 }
 0x468   : > { %3330 = vmatmul.f32.gmra.mxu2 %v3329_v19  ;;  %3471 = vmatmul.f32.gmra.mxu3 %v6511_v36  ;;  %v3334_v42 = vsub.f32 %v3202_v4, %v6511_v36 }
 0x469   : > { %v3134_v54 = vadd.f32 %v6312_v48, %v3115_v7 }
 0x46a   : > { %3581 = vmatmul.f32.gmra.mxu0 %v3334_v42  ;;  %v3335_v60 = vand.u32 4294901760, %v3334_v42 }
 0x46b   : > { %v3150_v53 = vmax.f32 %v3134_v54, 0.0 }
 0x46c   : > { %3699 = vmatmul.f32.gmra.mxu1 %v3335_v60  ;;  %v3336_v34 = vsub.f32 %v3334_v42, %v3335_v60 }
 0x46d   : > { %v3205_v13 = vsel %vm2739_vm1, %v3150_v53, 0 }
 0x46e   : > { %v3337_v1 = vand.u32 4294901760, %v3336_v34  ;;  %v6518_v35 = vand.u32 4294901760, %v3205_v13  ;;  %v6534_v59 = vpop.f32.mrf.mxu3 }
 0x46f   : > { %v6537_v29 = vpop.f32.mrf.mxu2 }
 0x470   : > { %3338 = vmatmul.f32.gmra.mxu2 %v3337_v1  ;;  %3475 = vmatmul.f32.gmra.mxu3 %v6518_v35  ;;  %v3342_v3 = vsub.f32 %v3205_v13, %v6518_v35 }
 0x472   : > { %3586 = vmatmul.f32.gmra.mxu0 %v3342_v3  ;;  %v3343_v57 = vand.u32 4294901760, %v3342_v3 }
 0x474   : > { %3705 = vmatmul.f32.gmra.mxu1 %v3343_v57  ;;  %v3344_v32 = vsub.f32 %v3342_v3, %v3343_v57 }
 0x476   : > { %v3345_v51 = vand.u32 4294901760, %v3344_v32  ;;  %v6539_v21 = vpop.f32.mrf.mxu3 }
 0x477   : > { %v6542_v23 = vpop.f32.mrf.mxu2 }
 0x478   : > { %3346 = vmatmul.f32.gmra.mxu2 %v3345_v51 }
 0x47e   : > { %v6544_v2 = vpop.f32.mrf.mxu3 }
 0x47f   : > { %v6547_v26 = vpop.f32.mrf.mxu2 }
 0x486   : > { %v6550_v46 = vpop.f32.mrf.mxu3 }
 0x487   : > { %v6558_v13 = vpop.f32.mrf.mxu2 }
 0x4a1   : > { %v2887_v50 = vpop.xlane.xlu0 %2886 }
 0x4a2   : > { %v2905_v20 = vmul.f32 %v2887_v50, %v6053_v17 }
 0x4a4   : > { %v2921_v39 = vadd.f32 1e-05, %v2905_v20 }
 0x4a6   : > { %4819 = vrsqrt.f32 %v2921_v39  ;;  %vm3069_vm4 = vweird.f32 %v2921_v39 }
 0x4a9   : > { %v2890_v10 = vpop.xlane.xlu1 %2889 }
 0x4aa   : > { %v2906_v30 = vmul.f32 %v2890_v10, %v6053_v17 }
 0x4ac   : > { %v4820_v44 = vpop.eup %4819  ;;  %v2922_v45 = vadd.f32 1e-05, %v2906_v30 }
 0x4ad   : > { %v3064_v9 = vmul.f32 %v4820_v44, %v2921_v39  ;;  %vm3070_vm3 = vweird.f32 %v4820_v44 }
 0x4ae   : > { %4821 = vrsqrt.f32 %v2922_v45  ;;  %vm3071_vm5 = vmor %vm3069_vm4, %vm3070_vm3  ;;  %vm3079_vm7 = vweird.f32 %v2922_v45 }
 0x4af   : > { %v3065_v47 = vmul.f32 %v4820_v44, %v3064_v9  ;;  %v6575_v9 = vld [vmem:[%s7085_s10] ss:$0 sm:$0xff] }
 0x4b1   : > { %v3066_v63 = vmul.f32 0.5, %v3065_v47 }
 0x4b3   : > { %v3067_v6 = vsub.f32 1.5, %v3066_v63 }
 0x4b4   : > { %v4822_v16 = vpop.eup %4821 }
 0x4b5   : > { %v3068_v49 = vmul.f32 %v4820_v44, %v3067_v6  ;;  %v3074_v58 = vmul.f32 %v4822_v16, %v2922_v45  ;;  %vm3080_vm6 = vweird.f32 %v4822_v16 }
 0x4b6   : > { %vm3081_vm8 = vmor %vm3079_vm7, %vm3080_vm6 }
 0x4b7   : > { %v3072_v27 = vsel %vm3071_vm5, %v4820_v44, %v3068_v49  ;;  %v3075_v18 = vmul.f32 %v4822_v16, %v3074_v58 }
 0x4b8   : > { %v3097_v17 = vmul.f32 %v3072_v27, %v6444_v15 }
 0x4b9   : > { %v3076_v52 = vmul.f32 0.5, %v3075_v18 }
 0x4ba   : > { %v3116_v0 = vmul.f32 %v6304_v31, %v3097_v17 }
 0x4bb   : > { %v3077_v4 = vsub.f32 1.5, %v3076_v52 }
 0x4bc   : > { %v3135_v19 = vadd.f32 %v6312_v48, %v3116_v0 }
 0x4bd   : > { %v3078_v7 = vmul.f32 %v4822_v16, %v3077_v4 }
 0x4be   : > { %v3151_v42 = vmax.f32 %v3135_v19, 0.0 }
 0x4bf   : > { %v3082_v54 = vsel %vm3081_vm8, %v4822_v16, %v3078_v7 }
 0x4c0   : > { %v3098_v60 = vmul.f32 %v3082_v54, %v6452_v28  ;;  %v3208_v15 = vsel %vm2739_vm1, %v3151_v42, 0 }
 0x4c1   : > { %v6555_v53 = vand.u32 4294901760, %v3208_v15 }
 0x4c2   : > { %v3117_v34 = vmul.f32 %v6304_v31, %v3098_v60 }
 0x4c3   : > { %v6560_v1 = vpop.f32.mrf.mxu3  ;;  %3479 = vmatmul.f32.gmra.mxu3 %v6555_v53  ;;  %v3350_v3 = vsub.f32 %v3208_v15, %v6555_v53 }
 0x4c4   : > { %v3136_v57 = vadd.f32 %v6312_v48, %v3117_v34 }
 0x4c5   : > { %3591 = vmatmul.f32.gmra.mxu0 %v3350_v3  ;;  %v3351_v32 = vand.u32 4294901760, %v3350_v3 }
 0x4c6   : > { %v3152_v51 = vmax.f32 %v3136_v57, 0.0 }
 0x4c7   : > { %3711 = vmatmul.f32.gmra.mxu1 %v3351_v32  ;;  %v3352_v28 = vsub.f32 %v3350_v3, %v3351_v32 }
 0x4c8   : > { %v3211_v50 = vsel %vm2739_vm1, %v3152_v51, 0  ;;  %v3252_v51 = vadd.f32 %v6575_v9, %v6528_v8 }
 0x4c9   : > { %v3353_v20 = vand.u32 4294901760, %v3352_v28  ;;  %v6566_v39 = vand.u32 4294901760, %v3211_v50 }
 0x4cb   : > { %v6568_v31 = vpop.f32.mrf.mxu2  ;;  %3354 = vmatmul.f32.gmra.mxu2 %v3353_v20  ;;  %3483 = vmatmul.f32.gmra.mxu3 %v6566_v39  ;;  %v3358_v10 = vsub.f32 %v3211_v50, %v6566_v39  ;;  %v3456_v30 = vpop.f32.mrf.mxu3 }
 0x4cd   : > { %3596 = vmatmul.f32.gmra.mxu0 %v3358_v10  ;;  %v3359_v48 = vand.u32 4294901760, %v3358_v10 }
 0x4cf   : > { %3717 = vmatmul.f32.gmra.mxu1 %v3359_v48  ;;  %v3360_v44 = vsub.f32 %v3358_v10, %v3359_v48 }
 0x4d1   : > { %v3361_v45 = vand.u32 4294901760, %v3360_v44 }
 0x4d3   : > { %v3307_v47 = vpop.f32.mrf.mxu2  ;;  %3362 = vmatmul.f32.gmra.mxu2 %v3361_v45  ;;  %3851 = vmatmul.f32.vlgmr.msrb.gmra.mxu3 %v6340_v22  ;;  %v3460_v16 = vpop.f32.mrf.mxu3 }
 0x4d4   : > { %v3308_v63 = vadd.f32 %v6575_v9, %v3307_v47 }
 0x4d6   : > { %v6579_v6 = vadd.f32 %v3456_v30, %v3308_v63 }
 0x4db   : > { %v3315_v49 = vpop.f32.mrf.mxu2  ;;  %3762 = vmatmul.f32.vlgmr.msrb.gmra.mxu2 %v6340_v22  ;;  %3855 = vmatmul.f32.gmra.mxu3 %v6361_v41  ;;  %v3464_v18 = vpop.f32.mrf.mxu3 }
 0x4dc   : > { %v3316_v58 = vadd.f32 %v6575_v9, %v3315_v49 }
 0x4de   : > { %v6584_v27 = vadd.f32 %v3460_v16, %v3316_v58 }
 0x4e3   : > { %v3323_v17 = vpop.f32.mrf.mxu2  ;;  %3766 = vmatmul.f32.gmra.mxu2 %v6361_v41  ;;  %3859 = vmatmul.f32.gmra.mxu3 %v6382_v37  ;;  %v3468_v4 = vpop.f32.mrf.mxu3 }
 0x4e4   : > { %v3324_v52 = vadd.f32 %v6575_v9, %v3323_v17 }
 0x4e6   : > { %v6589_v0 = vadd.f32 %v3464_v18, %v3324_v52  ;;  %v3268_v52 = vadd.f32 %v6575_v9, %v6537_v29 }
 0x4eb   : > { %v3331_v19 = vpop.f32.mrf.mxu2  ;;  %3770 = vmatmul.f32.gmra.mxu2 %v6382_v37  ;;  %3863 = vmatmul.f32.gmra.mxu3 %v6403_v55  ;;  %v3472_v54 = vpop.f32.mrf.mxu3 }
 0x4ec   : > { %v3332_v22 = vadd.f32 %v6575_v9, %v3331_v19  ;;  %v3522_v37 = vpop.f32.mrf.mxu0 }
 0x4ee   : > { %v6594_v7 = vadd.f32 %v3468_v4, %v3332_v22  ;;  %v3437_v22 = vadd.f32 %v6534_v59, %v3268_v52 }
 0x4f3   : > { %v3339_v42 = vpop.f32.mrf.mxu2  ;;  %3774 = vmatmul.f32.gmra.mxu2 %v6403_v55  ;;  %3867 = vmatmul.f32.gmra.mxu3 %v6420_v5  ;;  %v6619_v55 = vpop.f32.mrf.mxu3 }
 0x4f4   : > { %v3340_v41 = vadd.f32 %v6575_v9, %v3339_v42 }
 0x4f6   : > { %v6599_v60 = vadd.f32 %v3472_v54, %v3340_v41 }
 0x4fb   : > { %3778 = vmatmul.f32.gmra.mxu2 %v6420_v5  ;;  %3871 = vmatmul.f32.gmra.mxu3 %v6429_v61  ;;  %v3628_v5 = vpop.f32.mrf.mxu1 }
 0x503   : > { %3782 = vmatmul.f32.gmra.mxu2 %v6429_v61  ;;  %3875 = vmatmul.f32.gmra.mxu3 %v6436_v14  ;;  %v6623_v61 = vpop.f32.mrf.mxu2 }
 0x50b   : > { %3786 = vmatmul.f32.gmra.mxu2 %v6436_v14  ;;  %3879 = vmatmul.f32.gmra.mxu3 %v6463_v12 }
 0x513   : > { %3790 = vmatmul.f32.gmra.mxu2 %v6463_v12  ;;  %3883 = vmatmul.f32.gmra.mxu3 %v6475_v43  ;;  %v3527_v12 = vpop.f32.mrf.mxu0 }
 0x51b   : > { %3794 = vmatmul.f32.gmra.mxu2 %v6475_v43  ;;  %3887 = vmatmul.f32.gmra.mxu3 %v6485_v62  ;;  %v3634_v43 = vpop.f32.mrf.mxu1  ;;  %v3532_v15 = vpop.f32.mrf.mxu0 }
 0x523   : > { %3798 = vmatmul.f32.gmra.mxu2 %v6485_v62  ;;  %3891 = vmatmul.f32.gmra.mxu3 %v6495_v24  ;;  %v3640_v3 = vpop.f32.mrf.mxu1  ;;  %v3537_v20 = vpop.f32.mrf.mxu0 }
 0x524   : > { %v3538_v29 = vadd.f32 %v3537_v20, %v3437_v22 }
 0x52b   : > { %3802 = vmatmul.f32.gmra.mxu2 %v6495_v24  ;;  %3895 = vmatmul.f32.gmra.mxu3 %v6503_v25  ;;  %v3542_v16 = vpop.f32.mrf.mxu0 }
 0x533   : > { %3806 = vmatmul.f32.gmra.mxu2 %v6503_v25  ;;  %3899 = vmatmul.f32.gmra.mxu3 %v6511_v36  ;;  %v3547_v54 = vpop.f32.mrf.mxu0 }
 0x53b   : > { %3810 = vmatmul.f32.gmra.mxu2 %v6511_v36  ;;  %3903 = vmatmul.f32.gmra.mxu3 %v6518_v35  ;;  %v3244_v36 = vadd.f32 %v6575_v9, %v6524_v40  ;;  %v3429_v40 = vadd.f32 %v6526_v56, %v3252_v51 }
 0x53d   : > { %v3425_v34 = vadd.f32 %v6522_v33, %v3244_v36  ;;  %v3260_v33 = vadd.f32 %v6575_v9, %v6532_v11  ;;  %v3528_v47 = vadd.f32 %v3527_v12, %v3429_v40  ;;  %v3292_v40 = vadd.f32 %v6575_v9, %v6558_v13 }
 0x53f   : > { %v3523_v50 = vadd.f32 %v3522_v37, %v3425_v34  ;;  %v3433_v63 = vadd.f32 %v6530_v38, %v3260_v33  ;;  %v3635_v49 = vadd.f32 %v3634_v43, %v3528_v47  ;;  %v3284_v34 = vadd.f32 %v6575_v9, %v6547_v26 }
 0x541   : > { %v3629_v10 = vadd.f32 %v3628_v5, %v3523_v50  ;;  %v3533_v11 = vadd.f32 %v3532_v15, %v3433_v63  ;;  %v3276_v5 = vadd.f32 %v6575_v9, %v6542_v23  ;;  %v3552_v15 = vpop.f32.mrf.mxu0  ;;  %v3300_v63 = vadd.f32 %v6575_v9, %v6568_v31 }
 0x543   : > { %3814 = vmatmul.f32.gmra.mxu2 %v6518_v35  ;;  %3907 = vmatmul.f32.gmra.mxu3 %v6555_v53  ;;  %v3641_v42 = vadd.f32 %v3640_v3, %v3533_v11 }
 0x546   : > { %v3480_v14 = vpop.f32.mrf.mxu3 }
 0x54b   : > { %3818 = vmatmul.f32.gmra.mxu2 %v6555_v53  ;;  %3911 = vmatmul.f32.gmra.mxu3 %v6566_v39 }
 0x54e   : > { %v3355_v62 = vpop.f32.mrf.mxu2  ;;  %v3484_v24 = vpop.f32.mrf.mxu3 }
 0x54f   : > { %v3356_v25 = vadd.f32 %v6575_v9, %v3355_v62  ;;  %v3441_v62 = vadd.f32 %v6539_v21, %v3276_v5 }
 0x551   : > { %v6630_v35 = vadd.f32 %v3480_v14, %v3356_v25  ;;  %v3543_v23 = vadd.f32 %v3542_v16, %v3441_v62 }
 0x553   : > { %3822 = vmatmul.f32.gmra.mxu2 %v6566_v39  ;;  %v3646_v39 = vpop.f32.mrf.mxu1 }
 0x556   : > { %v3363_v57 = vpop.f32.mrf.mxu2  ;;  %v3852_v32 = vpop.f32.mrf.mxu3 }
 0x557   : > { %v3364_v53 = vadd.f32 %v6575_v9, %v3363_v57 }
 0x559   : > { %v6637_v28 = vadd.f32 %v3484_v24, %v3364_v53  ;;  %v3647_v24 = vadd.f32 %v3646_v39, %v3538_v29  ;;  %v3445_v53 = vadd.f32 %v6544_v2, %v3284_v34  ;;  %v3449_v39 = vadd.f32 %v6550_v46, %v3292_v40 }
 0x55b   : > { %v3652_v17 = vpop.f32.mrf.mxu1  ;;  %v3548_v26 = vadd.f32 %v3547_v54, %v3445_v53  ;;  %v3553_v13 = vadd.f32 %v3552_v15, %v3449_v39 }
 0x55c   : > { %v3653_v51 = vadd.f32 %v3652_v17, %v3543_v23 }
 0x55e   : > { %v3763_v30 = vpop.f32.mrf.mxu2  ;;  %v3856_v48 = vpop.f32.mrf.mxu3 }
 0x55f   : > { %v3764_v44 = vadd.f32 %v3763_v30, %v3629_v10  ;;  %v3557_v10 = vpop.f32.mrf.mxu0 }
 0x561   : > { %v6642_v45 = vadd.f32 %v3852_v32, %v3764_v44 }
 0x563   : > { %v3917_v8 = vsel %vm602_vm0, %v6642_v45, 0.0  ;;  %v3658_v12 = vpop.f32.mrf.mxu1 }
 0x564   : > { %3918 = vadd.xlane.f32.xlu2 %v3917_v8  ;;  %v3659_v33 = vadd.f32 %v3658_v12, %v3548_v26 }
 0x566   : > { %v3767_v56 = vpop.f32.mrf.mxu2  ;;  %v3860_v58 = vpop.f32.mrf.mxu3 }
 0x567   : > { %v3768_v18 = vadd.f32 %v3767_v56, %v3635_v49  ;;  %v3562_v49 = vpop.f32.mrf.mxu0 }
 0x569   : > { %v6649_v4 = vadd.f32 %v3856_v48, %v3768_v18 }
 0x56b   : > { %v3920_v19 = vsel %vm602_vm0, %v6649_v4, 0.0  ;;  %v3664_v32 = vpop.f32.mrf.mxu1 }
 0x56c   : > { %3921 = vadd.xlane.f32.xlu0 %v3920_v19  ;;  %v3665_v18 = vadd.f32 %v3664_v32, %v3553_v13  ;;  %v3348_v13 = vadd.f32 %v6575_v9, %v6623_v61 }
 0x56e   : > { %v3771_v38 = vpop.f32.mrf.mxu2  ;;  %v3864_v41 = vpop.f32.mrf.mxu3 }
 0x56f   : > { %v3772_v37 = vadd.f32 %v3771_v38, %v3641_v42  ;;  %v3567_v42 = vpop.f32.mrf.mxu0 }
 0x570   : > { %v3568_v15 = vadd.f32 %v3567_v42, %v6584_v27 }
 0x571   : > { %v6656_v14 = vadd.f32 %v3860_v58, %v3772_v37  ;;  %v3453_v58 = vadd.f32 %v6560_v1, %v3300_v63  ;;  %v3563_v1 = vadd.f32 %v3562_v49, %v6579_v6 }
 0x573   : > { %v3923_v43 = vsel %vm602_vm0, %v6656_v14, 0.0  ;;  %v3670_v44 = vpop.f32.mrf.mxu1  ;;  %v3558_v22 = vadd.f32 %v3557_v10, %v3453_v58 }
 0x574   : > { %3924 = vadd.xlane.f32.xlu1 %v3923_v43 }
 0x575   : > { %v3671_v38 = vadd.f32 %v3670_v44, %v3558_v22 }
 0x576   : > { %v3775_v59 = vpop.f32.mrf.mxu2  ;;  %v3868_v25 = vpop.f32.mrf.mxu3 }
 0x577   : > { %v3776_v36 = vadd.f32 %v3775_v59, %v3647_v24 }
 0x579   : > { %v6663_v3 = vadd.f32 %v3864_v41, %v3776_v36 }
 0x57b   : > { %v3926_v57 = vsel %vm602_vm0, %v6663_v3, 0.0  ;;  %v3676_v11 = vpop.f32.mrf.mxu1 }
 0x57c   : > { %3927 = vadd.xlane.f32.xlu2 %v3926_v57  ;;  %v3677_v43 = vadd.f32 %v3676_v11, %v3563_v1 }
 0x57e   : > { %v3779_v21 = vpop.f32.mrf.mxu2  ;;  %v3872_v50 = vpop.f32.mrf.mxu3 }
 0x57f   : > { %v3780_v20 = vadd.f32 %v3779_v21, %v3653_v51 }
 0x581   : > { %v6670_v30 = vadd.f32 %v3868_v25, %v3780_v20  ;;  %v3572_v25 = vpop.f32.mrf.mxu0 }
 0x582   : > { %v3573_v21 = vadd.f32 %v3572_v25, %v6589_v0 }
 0x583   : > { %v3929_v48 = vsel %vm602_vm0, %v6670_v30, 0.0  ;;  %v3682_v29 = vpop.f32.mrf.mxu1 }
 0x584   : > { %3930 = vadd.xlane.f32.xlu0 %v3929_v48  ;;  %v3683_v6 = vadd.f32 %v3682_v29, %v3568_v15 }
 0x586   : > { %v3783_v2 = vpop.f32.mrf.mxu2  ;;  %v3876_v47 = vpop.f32.mrf.mxu3 }
 0x587   : > { %v3784_v8 = vadd.f32 %v3783_v2, %v3659_v33 }
 0x589   : > { %v6677_v16 = vadd.f32 %v3872_v50, %v3784_v8  ;;  %v3577_v50 = vpop.f32.mrf.mxu0 }
 0x58a   : > { %v3578_v44 = vadd.f32 %v3577_v50, %v6594_v7 }
 0x58b   : > { %v3932_v56 = vsel %vm602_vm0, %v6677_v16, 0.0  ;;  %v3688_v23 = vpop.f32.mrf.mxu1 }
 0x58c   : > { %3933 = vadd.xlane.f32.xlu1 %v3932_v56  ;;  %v3689_v40 = vadd.f32 %v3688_v23, %v3573_v21 }
 0x58e   : > { %v3787_v46 = vpop.f32.mrf.mxu2  ;;  %v3880_v17 = vpop.f32.mrf.mxu3 }
 0x58f   : > { %v3788_v52 = vadd.f32 %v3787_v46, %v3665_v18  ;;  %v4994_v18 = vmov 32.0   ;;  %v3477_v46 = vadd.f32 %v6619_v55, %v3348_v13 }
 0x590   : > { %4823 = vrcp.f32 %v4994_v18 }
 0x591   : > { %v6682_v19 = vadd.f32 %v3876_v47, %v3788_v52  ;;  %v3582_v2 = vpop.f32.mrf.mxu0 }
 0x592   : > { %v3583_v56 = vadd.f32 %v3582_v2, %v6599_v60 }
 0x593   : > { %v3935_v31 = vsel %vm602_vm0, %v6682_v19, 0.0  ;;  %v3694_v27 = vpop.f32.mrf.mxu1 }
 0x594   : > { %3936 = vadd.xlane.f32.xlu2 %v3935_v31  ;;  %v3695_v0 = vadd.f32 %v3694_v27, %v3578_v44 }
 0x596   : > { %v3791_v41 = vpop.f32.mrf.mxu2  ;;  %v3884_v54 = vpop.f32.mrf.mxu3 }
 0x597   : > { %v3792_v37 = vadd.f32 %v3791_v41, %v3671_v38  ;;  %v4824_v61 = vpop.eup %4823 }
 0x598   : > { %vm3970_vm1 = vweird.f32 %v4824_v61 }
 0x599   : > { %v6686_v5 = vadd.f32 %v3880_v17, %v3792_v37  ;;  %v3587_v52 = vpop.f32.mrf.mxu0 }
 0x59a   : > { %v3588_v9 = vadd.f32 %v3587_v52, %v3477_v46 }
 0x59b   : > { %v3938_v12 = vsel %vm602_vm0, %v6686_v5, 0.0  ;;  %v3700_v63 = vpop.f32.mrf.mxu1 }
 0x59c   : > { %3939 = vadd.xlane.f32.xlu0 %v3938_v12  ;;  %v3701_v17 = vadd.f32 %v3700_v63, %v3583_v56 }
 0x59e   : > { %v3795_v62 = vpop.f32.mrf.mxu2  ;;  %v3888_v24 = vpop.f32.mrf.mxu3 }
 0x59f   : > { %v3796_v59 = vadd.f32 %v3795_v62, %v3677_v43 }
 0x5a1   : > { %v6691_v36 = vadd.f32 %v3884_v54, %v3796_v59  ;;  %v3966_v54 = vmul.f32 32.0, %v4824_v61  ;;  %v3592_v37 = vpop.f32.mrf.mxu0 }
 0x5a2   : > { %v3593_v12 = vadd.f32 %v3592_v37, %v6630_v35 }
 0x5a3   : > { %v3941_v34 = vsel %vm602_vm0, %v6691_v36, 0.0  ;;  %v3706_v42 = vpop.f32.mrf.mxu1  ;;  %v3967_v43 = vsub.f32 1.0, %v3966_v54 }
 0x5a4   : > { %3942 = vadd.xlane.f32.xlu1 %v3941_v34  ;;  %v3707_v41 = vadd.f32 %v3706_v42, %v3588_v9 }
 0x5a5   : > { %v3968_v25 = vmul.f32 %v4824_v61, %v3967_v43 }
 0x5a6   : > { %v3799_v57 = vpop.f32.mrf.mxu2  ;;  %v3892_v32 = vpop.f32.mrf.mxu3 }
 0x5a7   : > { %v3800_v53 = vadd.f32 %v3799_v57, %v3683_v6 }
 0x5a9   : > { %v6696_v51 = vadd.f32 %v3888_v24, %v3800_v53  ;;  %v3597_v6 = vpop.f32.mrf.mxu0  ;;  %v3969_v53 = vadd.f32 %v4824_v61, %v3968_v25 }
 0x5ab   : > { %v3944_v20 = vsel %vm602_vm0, %v6696_v51, 0.0  ;;  %v3712_v62 = vpop.f32.mrf.mxu1 }
 0x5ac   : > { %3945 = vadd.xlane.f32.xlu2 %v3944_v20  ;;  %v3713_v59 = vadd.f32 %v3712_v62, %v3593_v12  ;;  %v6728_v20 = vsel %vm3970_vm1, %v4824_v61, %v3969_v53 }
 0x5ae   : > { %v3803_v10 = vpop.f32.mrf.mxu2  ;;  %v3896_v48 = vpop.f32.mrf.mxu3 }
 0x5af   : > { %v3804_v26 = vadd.f32 %v3803_v10, %v3689_v40 }
 0x5b1   : > { %v6701_v39 = vadd.f32 %v3892_v32, %v3804_v26  ;;  %v3598_v32 = vadd.f32 %v3597_v6, %v6637_v28 }
 0x5b3   : > { %v3947_v33 = vsel %vm602_vm0, %v6701_v39, 0.0  ;;  %v3718_v21 = vpop.f32.mrf.mxu1 }
 0x5b4   : > { %3948 = vadd.xlane.f32.xlu0 %v3947_v33  ;;  %v3719_v50 = vadd.f32 %v3718_v21, %v3598_v32 }
 0x5b6   : > { %v3807_v47 = vpop.f32.mrf.mxu2  ;;  %v3900_v58 = vpop.f32.mrf.mxu3 }
 0x5b7   : > { %v3808_v8 = vadd.f32 %v3807_v47, %v3695_v0 }
 0x5b9   : > { %v6708_v49 = vadd.f32 %v3896_v48, %v3808_v8 }
 0x5bb   : > { %v3950_v7 = vsel %vm602_vm0, %v6708_v49, 0.0 }
 0x5bc   : > { %3951 = vadd.xlane.f32.xlu1 %v3950_v7 }
 0x5be   : > { %v3811_v11 = vpop.f32.mrf.mxu2  ;;  %v3904_v38 = vpop.f32.mrf.mxu3 }
 0x5bf   : > { %v3812_v22 = vadd.f32 %v3811_v11, %v3701_v17 }
 0x5c1   : > { %v6714_v31 = vadd.f32 %v3900_v58, %v3812_v22 }
 0x5c3   : > { %v3953_v60 = vsel %vm602_vm0, %v6714_v31, 0.0 }
 0x5c4   : > { %3954 = vadd.xlane.f32.xlu2 %v3953_v60 }
 0x5c6   : > { %v3815_v1 = vpop.f32.mrf.mxu2  ;;  %v3908_v15 = vpop.f32.mrf.mxu3 }
 0x5c7   : > { %v3816_v29 = vadd.f32 %v3815_v1, %v3707_v41 }
 0x5c9   : > { %v6718_v55 = vadd.f32 %v3904_v38, %v3816_v29 }
 0x5cb   : > { %v3956_v24 = vsel %vm602_vm0, %v6718_v55, 0.0 }
 0x5cc   : > { %3957 = vadd.xlane.f32.xlu0 %v3956_v24 }
 0x5ce   : > { %v3819_v34 = vpop.f32.mrf.mxu2  ;;  %v3912_v26 = vpop.f32.mrf.mxu3 }
 0x5cf   : > { %v3820_v23 = vadd.f32 %v3819_v34, %v3713_v59 }
 0x5d1   : > { %v6723_v57 = vadd.f32 %v3908_v15, %v3820_v23 }
 0x5d3   : > { %v3959_v35 = vsel %vm602_vm0, %v6723_v57, 0.0 }
 0x5d4   : > { %3960 = vadd.xlane.f32.xlu1 %v3959_v35 }
 0x5d6   : > { %v3823_v40 = vpop.f32.mrf.mxu2 }
 0x5d7   : > { %v3824_v27 = vadd.f32 %v3823_v40, %v3719_v50  ;;  %v3919_v10 = vpop.xlane.xlu2 %3918 }
 0x5d8   : > { %v3972_v48 = vmul.f32 %v6728_v20, %v3919_v10 }
 0x5d9   : > { %v6731_v44 = vadd.f32 %v3912_v26, %v3824_v27 }
 0x5da   : > { %v6734_v28 = vsub.f32 %v6642_v45, %v3972_v48 }
 0x5db   : > { %v3962_v33 = vsel %vm602_vm0, %v6731_v44, 0.0 }
 0x5dc   : > { %3963 = vadd.xlane.f32.xlu2 %v3962_v33  ;;  %v4004_v2 = vmul.f32 %v6734_v28, %v6734_v28 }
 0x5de   : > { %v4020_v0 = vsel %vm602_vm0, %v4004_v2, 0.0 }
 0x5df   : > { %v3922_v47 = vpop.xlane.xlu0 %3921  ;;  %4021 = vadd.xlane.f32.xlu0 %v4020_v0 }
 0x5e0   : > { %v3973_v8 = vmul.f32 %v6728_v20, %v3922_v47 }
 0x5e2   : > { %v6743_v63 = vsub.f32 %v6649_v4, %v3973_v8 }
 0x5e4   : > { %v4005_v45 = vmul.f32 %v6743_v63, %v6743_v63 }
 0x5e6   : > { %v4023_v13 = vsel %vm602_vm0, %v4005_v45, 0.0 }
 0x5e7   : > { %v3925_v56 = vpop.xlane.xlu1 %3924  ;;  %4024 = vadd.xlane.f32.xlu1 %v4023_v13 }
 0x5e8   : > { %v3974_v58 = vmul.f32 %v6728_v20, %v3925_v56 }
 0x5ea   : > { %v6750_v7 = vsub.f32 %v6656_v14, %v3974_v58 }
 0x5ec   : > { %v4006_v18 = vmul.f32 %v6750_v7, %v6750_v7 }
 0x5ee   : > { %v4026_v46 = vsel %vm602_vm0, %v4006_v18, 0.0 }
 0x5ef   : > { %v3928_v17 = vpop.xlane.xlu2 %3927  ;;  %4027 = vadd.xlane.f32.xlu2 %v4026_v46 }
 0x5f0   : > { %v3975_v4 = vmul.f32 %v6728_v20, %v3928_v17 }
 0x5f2   : > { %v6757_v52 = vsub.f32 %v6663_v3, %v3975_v4 }
 0x5f4   : > { %v4007_v11 = vmul.f32 %v6757_v52, %v6757_v52 }
 0x5f6   : > { %v4029_v22 = vsel %vm602_vm0, %v4007_v11, 0.0 }
 0x5f7   : > { %v3931_v9 = vpop.xlane.xlu0 %3930  ;;  %4030 = vadd.xlane.f32.xlu0 %v4029_v22 }
 0x5f8   : > { %v3976_v14 = vmul.f32 %v6728_v20, %v3931_v9 }
 0x5fa   : > { %v6764_v61 = vsub.f32 %v6670_v30, %v3976_v14 }
 0x5fc   : > { %v4008_v42 = vmul.f32 %v6764_v61, %v6764_v61 }
 0x5fe   : > { %v4032_v60 = vsel %vm602_vm0, %v4008_v42, 0.0 }
 0x5ff   : > { %v3934_v38 = vpop.xlane.xlu1 %3933  ;;  %4033 = vadd.xlane.f32.xlu1 %v4032_v60 }
 0x600   : > { %v3977_v3 = vmul.f32 %v6728_v20, %v3934_v38 }
 0x602   : > { %v6771_v41 = vsub.f32 %v6677_v16, %v3977_v3 }
 0x604   : > { %v4009_v54 = vmul.f32 %v6771_v41, %v6771_v41 }
 0x606   : > { %v4035_v37 = vsel %vm602_vm0, %v4009_v54, 0.0 }
 0x607   : > { %v3937_v1 = vpop.xlane.xlu2 %3936  ;;  %4036 = vadd.xlane.f32.xlu2 %v4035_v37 }
 0x608   : > { %v3978_v30 = vmul.f32 %v6728_v20, %v3937_v1 }
 0x60a   : > { %v6778_v29 = vsub.f32 %v6682_v19, %v3978_v30 }
 0x60c   : > { %v4010_v12 = vmul.f32 %v6778_v29, %v6778_v29 }
 0x60e   : > { %v4038_v43 = vsel %vm602_vm0, %v4010_v12, 0.0 }
 0x60f   : > { %v3940_v62 = vpop.xlane.xlu0 %3939  ;;  %4039 = vadd.xlane.f32.xlu0 %v4038_v43 }
 0x610   : > { %v3979_v16 = vmul.f32 %v6728_v20, %v3940_v62 }
 0x612   : > { %v6785_v24 = vsub.f32 %v6686_v5, %v3979_v16 }
 0x614   : > { %v4011_v59 = vmul.f32 %v6785_v24, %v6785_v24 }
 0x616   : > { %v4041_v25 = vsel %vm602_vm0, %v4011_v59, 0.0 }
 0x617   : > { %v3943_v15 = vpop.xlane.xlu1 %3942  ;;  %4042 = vadd.xlane.f32.xlu1 %v4041_v25 }
 0x618   : > { %v3980_v19 = vmul.f32 %v6728_v20, %v3943_v15 }
 0x61a   : > { %v6792_v34 = vsub.f32 %v6691_v36, %v3980_v19 }
 0x61c   : > { %v4012_v23 = vmul.f32 %v6792_v34, %v6792_v34 }
 0x61e   : > { %v4044_v6 = vsel %vm602_vm0, %v4012_v23, 0.0  ;;  %v6852_v23 = vld [vmem:[%s7086_s11] ss:$0 sm:$0xff] }
 0x61f   : > { %v3946_v32 = vpop.xlane.xlu2 %3945  ;;  %4045 = vadd.xlane.f32.xlu2 %v4044_v6 }
 0x620   : > { %v3981_v5 = vmul.f32 %v6728_v20, %v3946_v32 }
 0x622   : > { %v6799_v53 = vsub.f32 %v6696_v51, %v3981_v5  ;;  %v6857_v5 = vld [vmem:[%s7087_s12] ss:$0 sm:$0xff] }
 0x624   : > { %v4013_v35 = vmul.f32 %v6799_v53, %v6799_v53 }
 0x626   : > { %v4047_v21 = vsel %vm602_vm0, %v4013_v35, 0.0 }
 0x627   : > { %v3949_v50 = vpop.xlane.xlu0 %3948  ;;  %4048 = vadd.xlane.f32.xlu0 %v4047_v21 }
 0x628   : > { %v3982_v36 = vmul.f32 %v6728_v20, %v3949_v50 }
 0x62a   : > { %v6806_v40 = vsub.f32 %v6701_v39, %v3982_v36 }
 0x62c   : > { %v4014_v27 = vmul.f32 %v6806_v40, %v6806_v40 }
 0x62e   : > { %v4050_v10 = vsel %vm602_vm0, %v4014_v27, 0.0 }
 0x62f   : > { %v3952_v26 = vpop.xlane.xlu1 %3951  ;;  %4051 = vadd.xlane.f32.xlu1 %v4050_v10 }
 0x630   : > { %v3983_v51 = vmul.f32 %v6728_v20, %v3952_v26 }
 0x632   : > { %v6813_v48 = vsub.f32 %v6708_v49, %v3983_v51 }
 0x634   : > { %v4015_v33 = vmul.f32 %v6813_v48, %v6813_v48 }
 0x636   : > { %v4053_v2 = vsel %vm602_vm0, %v4015_v33, 0.0 }
 0x637   : > { %v3955_v0 = vpop.xlane.xlu2 %3954  ;;  %4054 = vadd.xlane.f32.xlu2 %v4053_v2 }
 0x638   : > { %v3984_v39 = vmul.f32 %v6728_v20, %v3955_v0 }
 0x63a   : > { %v6820_v47 = vsub.f32 %v6714_v31, %v3984_v39 }
 0x63c   : > { %v4016_v8 = vmul.f32 %v6820_v47, %v6820_v47 }
 0x63e   : > { %v4056_v45 = vsel %vm602_vm0, %v4016_v8, 0.0 }
 0x63f   : > { %v3958_v13 = vpop.xlane.xlu0 %3957  ;;  %4057 = vadd.xlane.f32.xlu0 %v4056_v45 }
 0x640   : > { %v3985_v49 = vmul.f32 %v6728_v20, %v3958_v13 }
 0x642   : > { %v6827_v56 = vsub.f32 %v6718_v55, %v3985_v49 }
 0x644   : > { %v4017_v58 = vmul.f32 %v6827_v56, %v6827_v56 }
 0x646   : > { %v4059_v18 = vsel %vm602_vm0, %v4017_v58, 0.0 }
 0x647   : > { %4060 = vadd.xlane.f32.xlu1 %v4059_v18  ;;  %v3961_v31 = vpop.xlane.xlu1 %3960 }
 0x648   : > { %v3986_v46 = vmul.f32 %v6728_v20, %v3961_v31 }
 0x64a   : > { %v6834_v17 = vsub.f32 %v6723_v57, %v3986_v46 }
 0x64c   : > { %v4018_v4 = vmul.f32 %v6834_v17, %v6834_v17 }
 0x64e   : > { %v4062_v11 = vsel %vm602_vm0, %v4018_v4, 0.0 }
 0x64f   : > { %v3964_v22 = vpop.xlane.xlu2 %3963  ;;  %4063 = vadd.xlane.f32.xlu2 %v4062_v11 }
 0x650   : > { %v3987_v55 = vmul.f32 %v6728_v20, %v3964_v22  ;;  %v4889_v22 = vld [vmem:[%s5689_s24] sm:$0xff] }
 0x652   : > { %v6841_v9 = vsub.f32 %v6731_v44, %v3987_v55  ;;  %v4022_v14 = vpop.xlane.xlu0 %4021 }
 0x653   : > { %v4068_v42 = vmul.f32 %v4022_v14, %v6728_v20 }
 0x654   : > { %v4019_v60 = vmul.f32 %v6841_v9, %v6841_v9 }
 0x655   : > { %v4084_v57 = vadd.f32 1e-05, %v4068_v42 }
 0x656   : > { %v4065_v38 = vsel %vm602_vm0, %v4019_v60, 0.0 }
 0x657   : > { %4825 = vrsqrt.f32 %v4084_v57  ;;  %4066 = vadd.xlane.f32.xlu0 %v4065_v38  ;;  %vm4106_vm10 = vweird.f32 %v4084_v57 }
 0x65a   : > { %v4025_v3 = vpop.xlane.xlu1 %4024 }
 0x65b   : > { %v4069_v54 = vmul.f32 %v4025_v3, %v6728_v20 }
 0x65d   : > { %v4826_v37 = vpop.eup %4825  ;;  %v4085_v1 = vadd.f32 1e-05, %v4069_v54 }
 0x65e   : > { %v4101_v30 = vmul.f32 %v4826_v37, %v4084_v57  ;;  %vm4107_vm9 = vweird.f32 %v4826_v37 }
 0x65f   : > { %4827 = vrsqrt.f32 %v4085_v1  ;;  %vm4108_vm11 = vmor %vm4106_vm10, %vm4107_vm9  ;;  %vm4116_vm13 = vweird.f32 %v4085_v1 }
 0x660   : > { %v4102_v44 = vmul.f32 %v4826_v37, %v4101_v30 }
 0x662   : > { %v4103_v12 = vmul.f32 0.5, %v4102_v44  ;;  %v4028_v43 = vpop.xlane.xlu2 %4027 }
 0x663   : > { %v4070_v62 = vmul.f32 %v4028_v43, %v6728_v20 }
 0x664   : > { %v4104_v16 = vsub.f32 1.5, %v4103_v12 }
 0x665   : > { %v4828_v59 = vpop.eup %4827  ;;  %v4086_v25 = vadd.f32 1e-05, %v4070_v62  ;;  %v4890_v62 = vld [vmem:[%s5689_s24 + $0x8] sm:$0xff] }
 0x666   : > { %v4105_v15 = vmul.f32 %v4826_v37, %v4104_v16  ;;  %v4111_v19 = vmul.f32 %v4828_v59, %v4085_v1  ;;  %vm4117_vm12 = vweird.f32 %v4828_v59 }
 0x667   : > { %4829 = vrsqrt.f32 %v4086_v25  ;;  %vm4118_vm14 = vmor %vm4116_vm13, %vm4117_vm12  ;;  %vm4126_vm2 = vweird.f32 %v4086_v25 }
 0x668   : > { %v4109_v6 = vsel %vm4108_vm11, %v4826_v37, %v4105_v15  ;;  %v4112_v32 = vmul.f32 %v4828_v59, %v4111_v19 }
 0x669   : > { %v4260_v35 = vmul.f32 %v4109_v6, %v6734_v28 }
 0x66a   : > { %v4113_v21 = vmul.f32 0.5, %v4112_v32  ;;  %v4031_v50 = vpop.xlane.xlu0 %4030 }
 0x66b   : > { %v4279_v36 = vmul.f32 %v6852_v23, %v4260_v35  ;;  %v4071_v27 = vmul.f32 %v4031_v50, %v6728_v20 }
 0x66c   : > { %v4114_v10 = vsub.f32 1.5, %v4113_v21 }
 0x66d   : > { %v4830_v26 = vpop.eup %4829  ;;  %v4298_v51 = vadd.f32 %v6857_v5, %v4279_v36  ;;  %v4087_v33 = vadd.f32 1e-05, %v4071_v27 }
 0x66e   : > { %v4115_v2 = vmul.f32 %v4828_v59, %v4114_v10  ;;  %v4121_v0 = vmul.f32 %v4830_v26, %v4086_v25  ;;  %vm4127_vm15 = vweird.f32 %v4830_v26 }
 0x66f   : > { %4831 = vtanh.f32 %v4298_v51  ;;  %vm4128_vm3 = vmor %vm4126_vm2, %vm4127_vm15  ;;  %vm4136_vm5 = vweird.f32 %v4087_v33 }
 0x670   : > { %v4119_v28 = vsel %vm4118_vm14, %v4828_v59, %v4115_v2  ;;  %v4122_v39 = vmul.f32 %v4830_v26, %v4121_v0  ;;  %4833 = vrsqrt.f32 %v4087_v33 }
 0x671   : > { %v4261_v8 = vmul.f32 %v4119_v28, %v6743_v63 }
 0x672   : > { %v4123_v45 = vmul.f32 0.5, %v4122_v39  ;;  %v4034_v13 = vpop.xlane.xlu1 %4033 }
 0x673   : > { %v4280_v49 = vmul.f32 %v6852_v23, %v4261_v8  ;;  %v4072_v58 = vmul.f32 %v4034_v13, %v6728_v20 }
 0x674   : > { %v4124_v18 = vsub.f32 1.5, %v4123_v45 }
 0x675   : > { %v4832_v31 = vpop.eup %4831  ;;  %v4299_v46 = vadd.f32 %v6857_v5, %v4280_v49  ;;  %v4088_v4 = vadd.f32 1e-05, %v4072_v58 }
 0x676   : > { %v4834_v11 = vpop.eup %4833  ;;  %v4330_v55 = vadd.f32 %v4889_v22, %v4832_v31  ;;  %v4125_v14 = vmul.f32 %v4830_v26, %v4124_v18  ;;  %v4892_v22 = vld [vmem:[%s5689_s24 + $0x18] sm:$0xff] }
 0x677   : > { %4835 = vtanh.f32 %v4299_v46  ;;  %v4131_v63 = vmul.f32 %v4834_v11, %v4087_v33  ;;  %vm4137_vm4 = vweird.f32 %v4834_v11  ;;  %vm4146_vm8 = vweird.f32 %v4088_v4 }
 0x678   : > { %4346 = vst.msk [vmem:[%s6869_s25] sm:$0xff] %vm602_vm0, %v4330_v55  ;;  %v4129_v42 = vsel %vm4128_vm3, %v4830_v26, %v4125_v14  ;;  %4837 = vrsqrt.f32 %v4088_v4  ;;  %vm4138_vm6 = vmor %vm4136_vm5, %vm4137_vm4  ;;  %v4891_v26 = vld [vmem:[%s5689_s24 + $0x10] sm:$0xff] }
 0x679   : > { %v4262_v60 = vmul.f32 %v4129_v42, %v6750_v7  ;;  %v4132_v57 = vmul.f32 %v4834_v11, %v4131_v63 }
 0x67a   : > { %v4037_v38 = vpop.xlane.xlu2 %4036 }
 0x67b   : > { %v4281_v3 = vmul.f32 %v6852_v23, %v4262_v60  ;;  %v4133_v54 = vmul.f32 0.5, %v4132_v57  ;;  %v4073_v37 = vmul.f32 %v4037_v38, %v6728_v20 }
 0x67d   : > { %v4836_v1 = vpop.eup %4835  ;;  %v4300_v30 = vadd.f32 %v6857_v5, %v4281_v3  ;;  %v4134_v44 = vsub.f32 1.5, %v4133_v54  ;;  %v4089_v12 = vadd.f32 1e-05, %v4073_v37 }
 0x67e   : > { %v4838_v43 = vpop.eup %4837  ;;  %v4331_v16 = vadd.f32 %v4890_v62, %v4836_v1  ;;  %v4893_v62 = vld [vmem:[%s5689_s24 + $0x20] sm:$0xff] }
 0x67f   : > { %4839 = vtanh.f32 %v4300_v30  ;;  %v4135_v59 = vmul.f32 %v4834_v11, %v4134_v44  ;;  %v4141_v7 = vmul.f32 %v4838_v43, %v4088_v4  ;;  %vm4147_vm7 = vweird.f32 %v4838_v43 }
 0x680   : > { %4347 = vst.msk [vmem:[%s6869_s25 + $0x8] sm:$0xff] %vm602_vm0, %v4331_v16  ;;  %4841 = vrsqrt.f32 %v4089_v12  ;;  %vm4148_vm1 = vmor %vm4146_vm8, %vm4147_vm7  ;;  %vm4156_vm10 = vweird.f32 %v4089_v12 }
 0x681   : > { %v4139_v25 = vsel %vm4138_vm6, %v4834_v11, %v4135_v59  ;;  %v4142_v15 = vmul.f32 %v4838_v43, %v4141_v7 }
 0x682   : > { %v4263_v19 = vmul.f32 %v4139_v25, %v6757_v52  ;;  %v4040_v6 = vpop.xlane.xlu0 %4039 }
 0x683   : > { %v4143_v32 = vmul.f32 0.5, %v4142_v15  ;;  %v4074_v35 = vmul.f32 %v4040_v6, %v6728_v20 }
 0x684   : > { %v4282_v21 = vmul.f32 %v6852_v23, %v4263_v19 }
 0x685   : > { %v4840_v50 = vpop.eup %4839  ;;  %v4144_v36 = vsub.f32 1.5, %v4143_v32  ;;  %v4090_v27 = vadd.f32 1e-05, %v4074_v35 }
 0x686   : > { %v4842_v10 = vpop.eup %4841  ;;  %v4332_v51 = vadd.f32 %v4891_v26, %v4840_v50  ;;  %v4301_v33 = vadd.f32 %v6857_v5, %v4282_v21  ;;  %v4894_v26 = vld [vmem:[%s5689_s24 + $0x28] sm:$0xff] }
 0x687   : > { %v4145_v2 = vmul.f32 %v4838_v43, %v4144_v36  ;;  %v4151_v0 = vmul.f32 %v4842_v10, %v4089_v12  ;;  %4843 = vrsqrt.f32 %v4090_v27  ;;  %vm4157_vm9 = vweird.f32 %v4842_v10 }
 0x688   : > { %4348 = vst.msk [vmem:[%s6869_s25 + $0x10] sm:$0xff] %vm602_vm0, %v4332_v51  ;;  %4845 = vtanh.f32 %v4301_v33  ;;  %vm4158_vm11 = vmor %vm4156_vm10, %vm4157_vm9  ;;  %vm4166_vm13 = vweird.f32 %v4090_v27 }
 0x689   : > { %v4149_v52 = vsel %vm4148_vm1, %v4838_v43, %v4145_v2  ;;  %v4152_v28 = vmul.f32 %v4842_v10, %v4151_v0 }
 0x68a   : > { %v4264_v39 = vmul.f32 %v4149_v52, %v6764_v61  ;;  %v4043_v8 = vpop.xlane.xlu1 %4042 }
 0x68b   : > { %v4153_v45 = vmul.f32 0.5, %v4152_v28  ;;  %v4075_v13 = vmul.f32 %v4043_v8, %v6728_v20 }
 0x68c   : > { %v4283_v49 = vmul.f32 %v6852_v23, %v4264_v39 }
 0x68d   : > { %v4844_v58 = vpop.eup %4843  ;;  %v4154_v18 = vsub.f32 1.5, %v4153_v45  ;;  %v4091_v31 = vadd.f32 1e-05, %v4075_v13 }
 0x68e   : > { %v4846_v46 = vpop.eup %4845  ;;  %v4302_v4 = vadd.f32 %v6857_v5, %v4283_v49  ;;  %v4161_v11 = vmul.f32 %v4844_v58, %v4090_v27  ;;  %vm4167_vm12 = vweird.f32 %v4844_v58 }
 0x68f   : > { %v4333_v55 = vadd.f32 %v4892_v22, %v4846_v46  ;;  %v4155_v14 = vmul.f32 %v4842_v10, %v4154_v18  ;;  %4847 = vrsqrt.f32 %v4091_v31  ;;  %vm4168_vm14 = vmor %vm4166_vm13, %vm4167_vm12  ;;  %vm4176_vm2 = vweird.f32 %v4091_v31  ;;  %v4895_v18 = vld [vmem:[%s5689_s24 + $0x30] sm:$0xff] }
 0x690   : > { %4849 = vtanh.f32 %v4302_v4  ;;  %v4162_v61 = vmul.f32 %v4844_v58, %v4161_v11 }
 0x691   : > { %4349 = vst.msk [vmem:[%s6869_s25 + $0x18] sm:$0xff] %vm602_vm0, %v4333_v55  ;;  %v4159_v63 = vsel %vm4158_vm11, %v4842_v10, %v4155_v14 }
 0x692   : > { %v4265_v42 = vmul.f32 %v4159_v63, %v6771_v41  ;;  %v4163_v60 = vmul.f32 0.5, %v4162_v61  ;;  %v4046_v57 = vpop.xlane.xlu2 %4045 }
 0x693   : > { %v4076_v38 = vmul.f32 %v4046_v57, %v6728_v20 }
 0x694   : > { %v4284_v3 = vmul.f32 %v6852_v23, %v4265_v42  ;;  %v4164_v54 = vsub.f32 1.5, %v4163_v60 }
 0x695   : > { %v4848_v37 = vpop.eup %4847  ;;  %v4092_v1 = vadd.f32 1e-05, %v4076_v38 }
 0x696   : > { %v4850_v30 = vpop.eup %4849  ;;  %v4303_v44 = vadd.f32 %v6857_v5, %v4284_v3  ;;  %v4165_v12 = vmul.f32 %v4844_v58, %v4164_v54  ;;  %v4171_v43 = vmul.f32 %v4848_v37, %v4091_v31  ;;  %vm4177_vm15 = vweird.f32 %v4848_v37  ;;  %v4896_v54 = vld [vmem:[%s5689_s24 + $0x38] sm:$0xff] }
 0x697   : > { %v4334_v16 = vadd.f32 %v4893_v62, %v4850_v30  ;;  %4851 = vrsqrt.f32 %v4092_v1  ;;  %vm4178_vm3 = vmor %vm4176_vm2, %vm4177_vm15  ;;  %vm4186_vm5 = vweird.f32 %v4092_v1 }
 0x698   : > { %4853 = vtanh.f32 %v4303_v44  ;;  %v4169_v41 = vsel %vm4168_vm14, %v4844_v58, %v4165_v12  ;;  %v4172_v59 = vmul.f32 %v4848_v37, %v4171_v43 }
 0x699   : > { %4350 = vst.msk [vmem:[%s6869_s25 + $0x20] sm:$0xff] %vm602_vm0, %v4334_v16  ;;  %v4266_v7 = vmul.f32 %v4169_v41, %v6778_v29 }
 0x69a   : > { %v4173_v25 = vmul.f32 0.5, %v4172_v59  ;;  %v4049_v15 = vpop.xlane.xlu0 %4048 }
 0x69b   : > { %v4285_v19 = vmul.f32 %v6852_v23, %v4266_v7  ;;  %v4077_v6 = vmul.f32 %v4049_v15, %v6728_v20 }
 0x69c   : > { %v4174_v32 = vsub.f32 1.5, %v4173_v25 }
 0x69d   : > { %v4852_v35 = vpop.eup %4851  ;;  %v4304_v21 = vadd.f32 %v6857_v5, %v4285_v19  ;;  %v4093_v50 = vadd.f32 1e-05, %v4077_v6  ;;  %v4897_v19 = vld [vmem:[%s5689_s24 + $0x40] sm:$0xff] }
 0x69e   : > { %v4854_v36 = vpop.eup %4853  ;;  %v4175_v27 = vmul.f32 %v4848_v37, %v4174_v32  ;;  %v4181_v10 = vmul.f32 %v4852_v35, %v4092_v1  ;;  %vm4187_vm4 = vweird.f32 %v4852_v35 }
 0x69f   : > { %v4335_v51 = vadd.f32 %v4894_v26, %v4854_v36  ;;  %4855 = vtanh.f32 %v4304_v21  ;;  %vm4188_vm6 = vmor %vm4186_vm5, %vm4187_vm4  ;;  %vm4196_vm8 = vweird.f32 %v4093_v50 }
 0x6a0   : > { %v4179_v29 = vsel %vm4178_vm3, %v4848_v37, %v4175_v27  ;;  %v4182_v33 = vmul.f32 %v4852_v35, %v4181_v10  ;;  %4857 = vrsqrt.f32 %v4093_v50 }
 0x6a1   : > { %4351 = vst.msk [vmem:[%s6869_s25 + $0x28] sm:$0xff] %vm602_vm0, %v4335_v51  ;;  %v4267_v2 = vmul.f32 %v4179_v29, %v6785_v24 }
 0x6a2   : > { %v4183_v0 = vmul.f32 0.5, %v4182_v33  ;;  %v4052_v52 = vpop.xlane.xlu1 %4051 }
 0x6a3   : > { %v4286_v28 = vmul.f32 %v6852_v23, %v4267_v2  ;;  %v4078_v39 = vmul.f32 %v4052_v52, %v6728_v20 }
 0x6a4   : > { %v4184_v8 = vsub.f32 1.5, %v4183_v0 }
 0x6a5   : > { %v4856_v45 = vpop.eup %4855  ;;  %v4305_v13 = vadd.f32 %v6857_v5, %v4286_v28  ;;  %v4094_v49 = vadd.f32 1e-05, %v4078_v39  ;;  %v4898_v39 = vld [vmem:[%s5689_s24 + $0x48] sm:$0xff] }
 0x6a6   : > { %v4858_v58 = vpop.eup %4857  ;;  %v4336_v31 = vadd.f32 %v4895_v18, %v4856_v45  ;;  %v4185_v46 = vmul.f32 %v4852_v35, %v4184_v8 }
 0x6a7   : > { %4859 = vtanh.f32 %v4305_v13  ;;  %v4191_v24 = vmul.f32 %v4858_v58, %v4093_v50  ;;  %vm4197_vm7 = vweird.f32 %v4858_v58  ;;  %vm4206_vm10 = vweird.f32 %v4094_v49 }
 0x6a8   : > { %4352 = vst.msk [vmem:[%s6869_s25 + $0x30] sm:$0xff] %vm602_vm0, %v4336_v31  ;;  %v4189_v4 = vsel %vm4188_vm6, %v4852_v35, %v4185_v46  ;;  %4861 = vrsqrt.f32 %v4094_v49  ;;  %vm4198_vm1 = vmor %vm4196_vm8, %vm4197_vm7 }
 0x6a9   : > { %v4268_v11 = vmul.f32 %v4189_v4, %v6792_v34  ;;  %v4192_v22 = vmul.f32 %v4858_v58, %v4191_v24 }
 0x6aa   : > { %v4055_v55 = vpop.xlane.xlu2 %4054 }
 0x6ab   : > { %v4287_v14 = vmul.f32 %v6852_v23, %v4268_v11  ;;  %v4193_v61 = vmul.f32 0.5, %v4192_v22  ;;  %v4079_v63 = vmul.f32 %v4055_v55, %v6728_v20 }
 0x6ad   : > { %v4860_v42 = vpop.eup %4859  ;;  %v4306_v60 = vadd.f32 %v6857_v5, %v4287_v14  ;;  %v4194_v57 = vsub.f32 1.5, %v4193_v61  ;;  %v4095_v38 = vadd.f32 1e-05, %v4079_v63  ;;  %v4899_v63 = vld [vmem:[%s5689_s24 + $0x50] sm:$0xff] }
 0x6ae   : > { %v4862_v3 = vpop.eup %4861  ;;  %v4337_v37 = vadd.f32 %v4896_v54, %v4860_v42 }
 0x6af   : > { %4863 = vtanh.f32 %v4306_v60  ;;  %v4195_v1 = vmul.f32 %v4858_v58, %v4194_v57  ;;  %v4201_v34 = vmul.f32 %v4862_v3, %v4094_v49  ;;  %vm4207_vm9 = vweird.f32 %v4862_v3 }
 0x6b0   : > { %4353 = vst.msk [vmem:[%s6869_s25 + $0x38] sm:$0xff] %vm602_vm0, %v4337_v37  ;;  %4865 = vrsqrt.f32 %v4095_v38  ;;  %vm4208_vm11 = vmor %vm4206_vm10, %vm4207_vm9  ;;  %vm4216_vm13 = vweird.f32 %v4095_v38 }
 0x6b1   : > { %v4199_v30 = vsel %vm4198_vm1, %v4858_v58, %v4195_v1  ;;  %v4202_v44 = vmul.f32 %v4862_v3, %v4201_v34 }
 0x6b2   : > { %v4269_v12 = vmul.f32 %v4199_v30, %v6799_v53  ;;  %v4058_v43 = vpop.xlane.xlu0 %4057 }
 0x6b3   : > { %v4203_v62 = vmul.f32 0.5, %v4202_v44  ;;  %v4080_v16 = vmul.f32 %v4058_v43, %v6728_v20 }
 0x6b4   : > { %v4288_v41 = vmul.f32 %v6852_v23, %v4269_v12 }
 0x6b5   : > { %v4864_v59 = vpop.eup %4863  ;;  %v4204_v7 = vsub.f32 1.5, %v4203_v62  ;;  %v4096_v25 = vadd.f32 1e-05, %v4080_v16  ;;  %v4900_v16 = vld [vmem:[%s5689_s24 + $0x58] sm:$0xff] }
 0x6b6   : > { %v4866_v15 = vpop.eup %4865  ;;  %v4338_v6 = vadd.f32 %v4897_v19, %v4864_v59  ;;  %v4307_v32 = vadd.f32 %v6857_v5, %v4288_v41 }
 0x6b7   : > { %v4205_v35 = vmul.f32 %v4862_v3, %v4204_v7  ;;  %v4211_v21 = vmul.f32 %v4866_v15, %v4095_v38  ;;  %4867 = vrsqrt.f32 %v4096_v25  ;;  %vm4217_vm12 = vweird.f32 %v4866_v15 }
 0x6b8   : > { %4354 = vst.msk [vmem:[%s6869_s25 + $0x40] sm:$0xff] %vm602_vm0, %v4338_v6  ;;  %4869 = vtanh.f32 %v4307_v32  ;;  %vm4218_vm14 = vmor %vm4216_vm13, %vm4217_vm12  ;;  %vm4226_vm2 = vweird.f32 %v4096_v25 }
 0x6b9   : > { %v4209_v53 = vsel %vm4208_vm11, %v4862_v3, %v4205_v35  ;;  %v4212_v50 = vmul.f32 %v4866_v15, %v4211_v21  ;;  %v4901_v35 = vld [vmem:[%s5689_s24 + $0x60] sm:$0xff] }
 0x6ba   : > { %v4270_v36 = vmul.f32 %v4209_v53, %v6806_v40  ;;  %v4061_v27 = vpop.xlane.xlu1 %4060 }
 0x6bb   : > { %v4213_v10 = vmul.f32 0.5, %v4212_v50  ;;  %v4081_v26 = vmul.f32 %v4061_v27, %v6728_v20 }
 0x6bc   : > { %v4289_v51 = vmul.f32 %v6852_v23, %v4270_v36 }
 0x6bd   : > { %v4868_v29 = vpop.eup %4867  ;;  %v4214_v33 = vsub.f32 1.5, %v4213_v10  ;;  %v4097_v2 = vadd.f32 1e-05, %v4081_v26 }
 0x6be   : > { %v4870_v0 = vpop.eup %4869  ;;  %v4308_v52 = vadd.f32 %v6857_v5, %v4289_v51  ;;  %v4221_v28 = vmul.f32 %v4868_v29, %v4096_v25  ;;  %vm4227_vm15 = vweird.f32 %v4868_v29 }
 0x6bf   : > { %v4339_v8 = vadd.f32 %v4898_v39, %v4870_v0  ;;  %v4215_v45 = vmul.f32 %v4866_v15, %v4214_v33  ;;  %4871 = vrsqrt.f32 %v4097_v2  ;;  %vm4228_vm3 = vmor %vm4226_vm2, %vm4227_vm15  ;;  %vm4236_vm5 = vweird.f32 %v4097_v2 }
 0x6c0   : > { %4873 = vtanh.f32 %v4308_v52  ;;  %v4222_v40 = vmul.f32 %v4868_v29, %v4221_v28 }
 0x6c1   : > { %4355 = vst.msk [vmem:[%s6869_s25 + $0x48] sm:$0xff] %vm602_vm0, %v4339_v8  ;;  %v4219_v13 = vsel %vm4218_vm14, %v4866_v15, %v4215_v45  ;;  %v4903_v45 = vld [vmem:[%s5689_s24 + $0x70] sm:$0xff] }
 0x6c2   : > { %v4271_v49 = vmul.f32 %v4219_v13, %v6813_v48  ;;  %v4223_v58 = vmul.f32 0.5, %v4222_v40  ;;  %v4064_v18 = vpop.xlane.xlu2 %4063 }
 0x6c3   : > { %v4082_v31 = vmul.f32 %v4064_v18, %v6728_v20 }
 0x6c4   : > { %v4290_v46 = vmul.f32 %v6852_v23, %v4271_v49  ;;  %v4224_v24 = vsub.f32 1.5, %v4223_v58  ;;  %v4904_v58 = vld [vmem:[%s5689_s24 + $0x78] sm:$0xff] }
 0x6c5   : > { %v4872_v4 = vpop.eup %4871  ;;  %v4098_v11 = vadd.f32 1e-05, %v4082_v31 }
 0x6c6   : > { %v4874_v22 = vpop.eup %4873  ;;  %v4309_v55 = vadd.f32 %v6857_v5, %v4290_v46  ;;  %v4225_v14 = vmul.f32 %v4868_v29, %v4224_v24  ;;  %v4231_v61 = vmul.f32 %v4872_v4, %v4097_v2  ;;  %vm4237_vm4 = vweird.f32 %v4872_v4  ;;  %v4902_v2 = vld [vmem:[%s5689_s24 + $0x68] sm:$0xff] }
 0x6c7   : > { %v4340_v42 = vadd.f32 %v4899_v63, %v4874_v22  ;;  %4875 = vrsqrt.f32 %v4098_v11  ;;  %vm4238_vm6 = vmor %vm4236_vm5, %vm4237_vm4  ;;  %vm4246_vm8 = vweird.f32 %v4098_v11 }
 0x6c8   : > { %4877 = vtanh.f32 %v4309_v55  ;;  %v4229_v48 = vsel %vm4228_vm3, %v4868_v29, %v4225_v14  ;;  %v4232_v60 = vmul.f32 %v4872_v4, %v4231_v61 }
 0x6c9   : > { %4356 = vst.msk [vmem:[%s6869_s25 + $0x50] sm:$0xff] %vm602_vm0, %v4340_v42  ;;  %v4272_v57 = vmul.f32 %v4229_v48, %v6820_v47 }
 0x6ca   : > { %v4233_v38 = vmul.f32 0.5, %v4232_v60  ;;  %v4067_v3 = vpop.xlane.xlu0 %4066 }
 0x6cb   : > { %v4291_v54 = vmul.f32 %v6852_v23, %v4272_v57  ;;  %v4083_v37 = vmul.f32 %v4067_v3, %v6728_v20 }
 0x6cc   : > { %v4234_v1 = vsub.f32 1.5, %v4233_v38 }
 0x6cd   : > { %v4876_v34 = vpop.eup %4875  ;;  %v4310_v30 = vadd.f32 %v6857_v5, %v4291_v54  ;;  %v4099_v44 = vadd.f32 1e-05, %v4083_v37 }
 0x6ce   : > { %v4878_v12 = vpop.eup %4877  ;;  %v4235_v43 = vmul.f32 %v4872_v4, %v4234_v1  ;;  %v4241_v62 = vmul.f32 %v4876_v34, %v4098_v11  ;;  %vm4247_vm7 = vweird.f32 %v4876_v34 }
 0x6cf   : > { %v4341_v47 = vadd.f32 %v4900_v16, %v4878_v12  ;;  %4879 = vtanh.f32 %v4310_v30  ;;  %vm4248_vm1 = vmor %vm4246_vm8, %vm4247_vm7  ;;  %vm4256_vm10 = vweird.f32 %v4099_v44 }
 0x6d0   : > { %v4239_v41 = vsel %vm4238_vm6, %v4872_v4, %v4235_v43  ;;  %v4242_v59 = vmul.f32 %v4876_v34, %v4241_v62  ;;  %4881 = vrsqrt.f32 %v4099_v44 }
 0x6d1   : > { %4357 = vst.msk [vmem:[%s6869_s25 + $0x58] sm:$0xff] %vm602_vm0, %v4341_v47  ;;  %v4273_v20 = vmul.f32 %v4239_v41, %v6827_v56 }
 0x6d2   : > { %v4243_v7 = vmul.f32 0.5, %v4242_v59 }
 0x6d3   : > { %v4292_v25 = vmul.f32 %v6852_v23, %v4273_v20 }
 0x6d4   : > { %v4244_v15 = vsub.f32 1.5, %v4243_v7 }
 0x6d5   : > { %v4880_v19 = vpop.eup %4879  ;;  %v4311_v6 = vadd.f32 %v6857_v5, %v4292_v25 }
 0x6d6   : > { %v4882_v32 = vpop.eup %4881  ;;  %v4342_v21 = vadd.f32 %v4901_v35, %v4880_v19  ;;  %v4245_v53 = vmul.f32 %v4876_v34, %v4244_v15 }
 0x6d7   : > { %4883 = vtanh.f32 %v4311_v6  ;;  %v4251_v50 = vmul.f32 %v4882_v32, %v4099_v44  ;;  %vm4257_vm9 = vweird.f32 %v4882_v32 }
 0x6d8   : > { %4358 = vst.msk [vmem:[%s6869_s25 + $0x60] sm:$0xff] %vm602_vm0, %v4342_v21  ;;  %v4249_v56 = vsel %vm4248_vm1, %v4876_v34, %v4245_v53  ;;  %vm4258_vm11 = vmor %vm4256_vm10, %vm4257_vm9 }
 0x6d9   : > { %v4274_v36 = vmul.f32 %v4249_v56, %v6834_v17  ;;  %v4252_v27 = vmul.f32 %v4882_v32, %v4251_v50 }
 0x6db   : > { %v4293_v10 = vmul.f32 %v6852_v23, %v4274_v36  ;;  %v4253_v26 = vmul.f32 0.5, %v4252_v27 }
 0x6dd   : > { %v4884_v51 = vpop.eup %4883  ;;  %v4312_v29 = vadd.f32 %v6857_v5, %v4293_v10  ;;  %v4254_v33 = vsub.f32 1.5, %v4253_v26 }
 0x6de   : > { %v4343_v0 = vadd.f32 %v4902_v2, %v4884_v51 }
 0x6df   : > { %4885 = vtanh.f32 %v4312_v29  ;;  %v4255_v52 = vmul.f32 %v4882_v32, %v4254_v33 }
 0x6e0   : > { %4359 = vst.msk [vmem:[%s6869_s25 + $0x68] sm:$0xff] %vm602_vm0, %v4343_v0 }
 0x6e1   : > { %v4259_v17 = vsel %vm4258_vm11, %v4882_v32, %v4255_v52 }
 0x6e2   : > { %v4275_v28 = vmul.f32 %v4259_v17, %v6841_v9 }
 0x6e4   : > { %v4294_v39 = vmul.f32 %v6852_v23, %v4275_v28 }
 0x6e5   : > { %v4886_v8 = vpop.eup %4885 }
 0x6e6   : > { %v4344_v40 = vadd.f32 %v4903_v45, %v4886_v8  ;;  %v4313_v13 = vadd.f32 %v6857_v5, %v4294_v39 }
 0x6e8   : > { %4360 = vst.msk [vmem:[%s6869_s25 + $0x70] sm:$0xff] %vm602_vm0, %v4344_v40  ;;  %4887 = vtanh.f32 %v4313_v13 }
 0x6ed   : > { %4368 = sbr.rel (!%p5090_p4) target bundleno = 1826 (0x722), region = 76 }
 0x6ee   : > { %v4888_v49 = vpop.eup %4887 }
 0x6ef   : > { %v4345_v18 = vadd.f32 %v4904_v58, %v4888_v49 }
 0x6f1   : > { %4361 = vst.msk [vmem:[%s6869_s25 + $0x78] sm:$0xff] %vm602_vm0, %v4345_v18 }
 0x6f2   : > { %s7167_s17 = smov (!%p4371_p8, %s4370_s17), 16 }
 0x6f3   : > { %s4675_s24 = sshll.u32 %s7167_s17, 3 }
 0x6f4   : > { %p4678_p9 = scmp.eq.s32.totalorder %s4675_s24, 0 }
 0x6f5   : > { %s6984_s19 = sshrl.u32 (!%p4678_p9), %s7167_s17, 4 }
 0x6f6   : > { %4379 = sbr.rel (%p4678_p9) target bundleno = 1826 (0x722), region = 80  ;;  %p4679_p10 = scmp.le.s32.totalorder (!%p4678_p9), %s6984_s19, 0 }
 0x6fb   : > { %4606 = sbr.rel (%p4679_p10) target bundleno = 1809 (0x711), region = 162  ;;  %s7158_s28 = smov (!%p4679_p10), %s6978_s22 }
 0x6fc   : > { %s7159_s16 = smov (!%p4679_p10), %s6869_s25  ;;  %s6993_s23 = smov (!%p4679_p10), 0  }
 0x6fd   : > { %s6995_s14 = smov (!%p4679_p10), 0  }
 0x700 LB: >> { %v4472_v9 = vld [vmem:[%s4967_s16] sm:$0xff]  ;;  %v4474_v23 = vld [vmem:[%s4967_s16 + $0x8] sm:$0xff]  ;;  %v4476_v5 = vld [vmem:[%s4967_s16 + $0x10] sm:$0xff]  ;;  %s4504_s27 = sadd.s32 1, %s4971_s23  ;;  %s4466_s14 = sadd.s32 1, %s4975_s14   ;;  %s4975_s14 = sphi %s6995_s14, %s4466_s14   ;;  %s4971_s23 = sphi %s6993_s23, %s7162_s23   ;;  %s4967_s16 = sphi %s7159_s16, %s7161_s16   ;;  %s4963_s28 = sphi %s7158_s28, %s7160_s28  }
 0x701   : >> { %4473 = vst [vmem:[%s4963_s28] sm:$0xff] %v4472_v9  ;;  %v4478_v31 = vld [vmem:[%s4967_s16 + $0x18] sm:$0xff]  ;;  %p4505_p11 = scmp.ge.s32.totalorder %s4504_s27, %s6984_s19  ;;  %v4480_v46 = vld [vmem:[%s4967_s16 + $0x20] sm:$0xff]  ;;  %v4482_v24 = vld [vmem:[%s4967_s16 + $0x28] sm:$0xff]  ;;  %p4465_p12 = scmp.ge.s32.totalorder %s4466_s14, %s6984_s19 }
 0x702   : >> { %4475 = vst [vmem:[%s4963_s28 + $0x8] sm:$0xff] %v4474_v23  ;;  %v4484_v4 = vld [vmem:[%s4967_s16 + $0x30] sm:$0xff]  ;;  %v4486_v11 = vld [vmem:[%s4967_s16 + $0x38] sm:$0xff]  ;;  %v4488_v22 = vld [vmem:[%s4967_s16 + $0x40] sm:$0xff] }
 0x703   : >> { %4477 = vst [vmem:[%s4963_s28 + $0x10] sm:$0xff] %v4476_v5  ;;  %s7169_s27 = smov (%p4505_p11, %s4504_s27), 0  ;;  %v4490_v55 = vld [vmem:[%s4967_s16 + $0x48] sm:$0xff]  ;;  %v4492_v14 = vld [vmem:[%s4967_s16 + $0x50] sm:$0xff]  ;;  %v4494_v61 = vld [vmem:[%s4967_s16 + $0x58] sm:$0xff] }
 0x704   : >> { %4479 = vst [vmem:[%s4963_s28 + $0x18] sm:$0xff] %v4478_v31  ;;  %s4680_s30 = sshll.u32 %s7169_s27, 7  ;;  %v4496_v63 = vld [vmem:[%s4967_s16 + $0x60] sm:$0xff]  ;;  %v4498_v42 = vld [vmem:[%s4967_s16 + $0x68] sm:$0xff]  ;;  %v4500_v48 = vld [vmem:[%s4967_s16 + $0x70] sm:$0xff]  ;;  %s7162_s23 = smov %s7169_s27 }
 0x705   : >> { %4481 = vst [vmem:[%s4963_s28 + $0x20] sm:$0xff] %v4480_v46  ;;  %s4509_s18 = scalar_lea.vmem %s6869_s25, %s4680_s30 [#allocation2]   ;;  %s4510_s20 = scalar_lea.vmem %s6978_s22, %s4680_s30   ;;  %v4502_v60 = vld [vmem:[%s4967_s16 + $0x78] sm:$0xff] }
 0x706   : >> { %4483 = vst [vmem:[%s4963_s28 + $0x28] sm:$0xff] %v4482_v24  ;;  %s7161_s16 = smov %s4509_s18 }
 0x707   : >> { %4485 = vst [vmem:[%s4963_s28 + $0x30] sm:$0xff] %v4484_v4 }
 0x708   : >> { %4487 = vst [vmem:[%s4963_s28 + $0x38] sm:$0xff] %v4486_v11 }
 0x709   : >> { %4489 = vst [vmem:[%s4963_s28 + $0x40] sm:$0xff] %v4488_v22 }
 0x70a   : >> { %4491 = vst [vmem:[%s4963_s28 + $0x48] sm:$0xff] %v4490_v55 }
 0x70b   : >> { %4493 = vst [vmem:[%s4963_s28 + $0x50] sm:$0xff] %v4492_v14 }
 0x70c   : >> { %4495 = vst [vmem:[%s4963_s28 + $0x58] sm:$0xff] %v4494_v61  ;;  %4468 = sbr.rel (!%p4465_p12) target bundleno = 1792 (0x700), region = 168 }
 0x70d   : >> { %4497 = vst [vmem:[%s4963_s28 + $0x60] sm:$0xff] %v4496_v63 }
 0x70e   : >> { %4499 = vst [vmem:[%s4963_s28 + $0x68] sm:$0xff] %v4498_v42 }
 0x70f   : >> { %4501 = vst [vmem:[%s4963_s28 + $0x70] sm:$0xff] %v4500_v48 }
 0x710   : >> { %4503 = vst [vmem:[%s4963_s28 + $0x78] sm:$0xff] %v4502_v60  ;;  %s7160_s28 = smov %s4510_s20 }
 0x711 PF: > { %s7057_s21 = sand.u32 15, %s7167_s17   ;;  %s4691_s24 = sshll.u32 %s6984_s19, 7 }
 0x712   : > { %s4515_s30 = scalar_lea.vmem %s6869_s25, %s4691_s24 [#allocation2]   ;;  %s4517_s0 = scalar_lea.vmem %s6978_s22, %s4691_s24  }
 0x713   : > { %p4685_p13 = scmp.le.s32.totalorder %s7057_s21, 0 }
 0x714   : > { %s4977_s20 = smov (!%p4685_p13), %s4517_s0   ;;  %s4981_s18 = smov (!%p4685_p13), %s4515_s30  }
 0x715   : > { %4620 = sbr.rel (%p4685_p13) target bundleno = 1826 (0x722), region = 173  ;;  %s4985_s1 = smov (!%p4685_p13), 0  }
 0x716   : > { %s4989_s27 = smov (!%p4685_p13), 0  }
 0x71a LB: >> { %v4527_v57 = vld [vmem:[%s4983_s18] sm:$0xff]  ;;  %s4529_s17 = sadd.s32 1, %s4987_s1  ;;  %s4521_s27 = sadd.s32 1, %s4991_s27   ;;  %s4991_s27 = sphi %s4989_s27, %s4521_s27   ;;  %s4987_s1 = sphi %s4985_s1, %s4986_s1   ;;  %s4983_s18 = sphi %s4981_s18, %s4534_s18   ;;  %s4979_s20 = sphi %s4977_s20, %s4535_s20  }
 0x71b   : >> { %4528 = vst [vmem:[%s4979_s20] sm:$0xff] %v4527_v57  ;;  %p4530_p0 = scmp.ge.s32.totalorder %s4529_s17, %s7057_s21  ;;  %p4520_p1 = scmp.ge.s32.totalorder %s4521_s27, %s7057_s21 }
 0x71d   : >> { %s7171_s17 = smov (%p4530_p0, %s4529_s17), 0  ;;  %4523 = sbr.rel (!%p4520_p1) target bundleno = 1818 (0x71a), region = 179 }
 0x71e   : >> { %s4686_s25 = sshll.u32 %s7171_s17, 3  ;;  %s4986_s1 = smov %s7171_s17  }
 0x71f   : >> { %s4534_s18 = scalar_lea.vmem %s4515_s30, %s4686_s25 [#allocation2]   ;;  %s4535_s20 = scalar_lea.vmem %s4517_s0, %s4686_s25  }
 0x722 PF: > { %p20_p2 = scmp.ge.s32.totalorder %s5080_s29, 5   ;;  %s7163_s25 = smov %s4955_s26 }
 0x723   : > { %s7164_s26 = smov %s5088_s15  ;;  %s7165_s27 = smov %s5080_s29 }
 0x724   :  { %22 = sbr.rel (!%p20_p2) target bundleno = 5 (0x5), region = 190 }

</bundles_post_ra>
